<compile_context>
chip_gen: v5e
topology: v5e:2x2
jax: 0.10.0
libtpu: 0.0.40
codegen_flags: <defaults>
</compile_context>

<pallas_src>
import functools

import jax
import jax.numpy as jnp
import numpy as np
from jax.experimental import pallas as pl
from jax.experimental.pallas import tpu as pltpu

LANES = 128          # every channel dim is padded to one 128-lane slab
BN_EPS = 1e-5


# ----------------------------------------------------------------------------
# host-side geometry / packing helpers
# ----------------------------------------------------------------------------
def _round_up(x, m):
    return (x + m - 1) // m * m


def _conv_geom(Hi, Wi, k, pad, stride):
    """Per-image geometry of one conv layer in the flat padded-grid layout."""
    Hp, Wp = Hi + 2 * pad, Wi + 2 * pad
    Ho = (Hp - k) // stride + 1
    Wo = (Wp - k) // stride + 1
    Sp = Hp * Wp                           # all window-grid rows (per image)
    SpR = _round_up(Sp, 8)                 # rows read per depthwise tap
    dmax = (k - 1) * Wp + (k - 1)          # largest flat tap offset
    SpT = _round_up(SpR + dmax, 8)         # padded-buffer rows incl. zero tail
    return dict(k=k, p=pad, s=stride, Hi=Hi, Wi=Wi, Hp=Hp, Wp=Wp,
                Ho=Ho, Wo=Wo, Sp=Sp, SpR=SpR, SpT=SpT)


def upsample_matrix_1d(h):
    """PyTorch bilinear, scale_factor=2, align_corners=False (weights in {0,.25,.75,1})."""
    U = np.zeros((2 * h, h), dtype=np.float32)
    for i in range(2 * h):
        src = 0.5 * (i + 0.5) - 0.5
        src = max(src, 0.0)
        i0 = min(int(np.floor(src)), h - 1)
        lam = src - i0
        i1 = min(i0 + 1, h - 1)
        U[i, i0] += 1.0 - lam
        U[i, i1] += lam
    return U


def _pack_light(p):
    """dw taps as (k^2,128) lane vectors; pw with eval-mode BN scale folded (128,128)."""
    dw = np.asarray(p['dw'], np.float32)                  # (Cin,1,k,k)
    pw = np.asarray(p['pw'], np.float32)[:, :, 0, 0]      # (Cout,Cin)
    cin, cout = dw.shape[0], pw.shape[0]
    k = dw.shape[-1]
    dwv = np.zeros((k * k, LANES), np.float32)
    for kh in range(k):
        for kw in range(k):
            dwv[kh * k + kw, :cin] = dw[:, 0, kh, kw]
    scale = np.asarray(p['gamma'], np.float32) / np.sqrt(
        np.asarray(p['var'], np.float32) + BN_EPS)
    W = np.zeros((LANES, LANES), np.float32)
    W[:cin, :cout] = pw.T * scale[None, :]                # BN scale folded in
    bias = np.zeros((1, LANES), np.float32)
    bias[0, :cout] = (np.asarray(p['beta'], np.float32)
                      - np.asarray(p['mean'], np.float32) * scale)
    return dwv, W, bias


def _pack_1x1(p):
    w = np.asarray(p['w'], np.float32)                    # (Cout,Cin)
    mat = np.zeros((LANES, LANES), np.float32)
    mat[:w.shape[1], :w.shape[0]] = w.T
    return mat


def _pack_bias(p):
    b = np.zeros((1, LANES), np.float32)
    bb = np.asarray(p['b'], np.float32)
    b[0, :bb.shape[0]] = bb
    return b


# ----------------------------------------------------------------------------
# Pallas kernel: whole network for ONE image (grid iterates / parallelizes batch)
# ----------------------------------------------------------------------------
def _fused_kernel(xin, dw0, w0, b0, dw1, w1, b1, dw2, w2, b2,
                  dw5, w5, b5, dw8, w8, b8,
                  wo1, wi1, bi1, u3, wo2, wi2, bi2, u2, wo3,
                  out3_ref, out2_ref, out1_ref,
                  buf1, buf2, buf5, buf8, dwb,
                  *, g0, g1, g2, g5, g8):
    f32 = jnp.float32
    bf16 = jnp.bfloat16

    # padding rings + zero tails of the padded-grid scratch buffers must be zero
    # every grid step (interior rows are overwritten below).
    buf1[...] = jnp.zeros_like(buf1)
    buf2[...] = jnp.zeros_like(buf2)
    buf5[...] = jnp.zeros_like(buf5)
    buf8[...] = jnp.zeros_like(buf8)

    def depthwise(src_ref, dw_ref, g):
        """k^2 shifted slabs * per-tap (1,128) lane vectors, accumulated on the VPU."""
        k, Wp, SpR = g['k'], g['Wp'], g['SpR']
        acc = None
        for kh in range(k):
            for kw in range(k):
                v = (src_ref[pl.ds(kh * Wp + kw, SpR), :]
                     * dw_ref[pl.ds(kh * k + kw, 1), :])
                acc = v if acc is None else acc + v
        return acc                                        # (SpR, 128) f32

    def pw_bn_relu6(x, w_ref, b_ref):
        """ONE bf16 MXU dot (BN scale folded into weights) + bias + ReLU6."""
        y = jnp.dot(x.astype(bf16), w_ref[...], preferred_element_type=f32)
        return jnp.clip(y + b_ref[...], 0.0, 6.0)

    def scatter_rows(dst_ref, src, src_row_stride, Ho, Wo, g_dst):
        """copy valid activation rows into the zero-padded grid of the next layer."""
        p, Wp = g_dst['p'], g_dst['Wp']
        for hi in range(Ho):
            dst_ref[pl.ds((hi + p) * Wp + p, Wo), :] = \
                src[hi * src_row_stride:hi * src_row_stride + Wo, :]

    def strided_gather(g):
        """stride-s valid window rows of dwb -> compact (Ho*Wo, 128), BEFORE pointwise."""
        s, Wp, Ho, Wo = g['s'], g['Wp'], g['Ho'], g['Wo']
        rows = [dwb[pl.ds(s * ho * Wp, Wo, stride=s), :] for ho in range(Ho)]
        return jnp.concatenate(rows, axis=0)

    def write_padded(dst_ref, val):
        pad = dst_ref.shape[0] - val.shape[0]
        if pad:
            val = jnp.concatenate([val, jnp.zeros((pad, LANES), f32)], axis=0)
        dst_ref[...] = val

    # ---------------- encoder ----------------
    y0 = pw_bn_relu6(depthwise(xin, dw0, g0), w0, b0)        # conv0 (s=1)
    scatter_rows(buf1, y0, g0['Wp'], g0['Ho'], g0['Wo'], g1)

    y1 = pw_bn_relu6(depthwise(buf1, dw1, g1), w1, b1)       # conv1 (s=1)
    scatter_rows(buf2, y1, g1['Wp'], g1['Ho'], g1['Wo'], g2)

    dwb[pl.ds(0, g2['SpR']), :] = depthwise(buf2, dw2, g2)   # conv2 (s=2)
    x1v = pw_bn_relu6(strided_gather(g2), w2, b2)            # (Ho2*Wo2, 128)
    scatter_rows(buf5, x1v, g2['Wo'], g2['Ho'], g2['Wo'], g5)

    dwb[pl.ds(0, g5['SpR']), :] = depthwise(buf5, dw5, g5)   # conv5 (s=2)
    x2v = pw_bn_relu6(strided_gather(g5), w5, b5)            # (Ho5*Wo5, 128)
    scatter_rows(buf8, x2v, g5['Wo'], g5['Ho'], g5['Wo'], g8)

    dwb[pl.ds(0, g8['SpR']), :] = depthwise(buf8, dw8, g8)   # conv8 (s=2)
    x3v = pw_bn_relu6(strided_gather(g8), w8, b8)            # (Ho8*Wo8, 128)

    # ---------------- decoder / heads ----------------
    write_padded(out3_ref,
                 jnp.dot(x3v.astype(bf16), wo1[...], preferred_element_type=f32))

    deep_up = jnp.dot(u3[...], x3v, preferred_element_type=f32)          # bilinear 2x
    skip2 = jnp.dot(x2v.astype(bf16), wi1[...], preferred_element_type=f32) + bi1[...]
    fused_i = deep_up + skip2
    write_padded(out2_ref,
                 jnp.dot(fused_i.astype(bf16), wo2[...], preferred_element_type=f32))

    up2 = jnp.dot(u2[...], fused_i, preferred_element_type=f32)          # bilinear 2x
    skip1 = jnp.dot(x1v.astype(bf16), wi2[...], preferred_element_type=f32) + bi2[...]
    fused_s = up2 + skip1
    write_padded(out1_ref,
                 jnp.dot(fused_s.astype(bf16), wo3[...], preferred_element_type=f32))


# ----------------------------------------------------------------------------
# operand construction + wrapper
# ----------------------------------------------------------------------------
def _build_operands(raw, H, W):
    g0 = _conv_geom(H, W, 3, 1, 1)
    g1 = _conv_geom(g0['Ho'], g0['Wo'], 3, 1, 1)
    g2 = _conv_geom(g1['Ho'], g1['Wo'], 5, 2, 2)
    g5 = _conv_geom(g2['Ho'], g2['Wo'], 5, 2, 2)
    g8 = _conv_geom(g5['Ho'], g5['Wo'], 5, 2, 2)
    geoms = (g0, g1, g2, g5, g8)

    bf16, f32 = jnp.bfloat16, jnp.float32
    ops = []

    def add(arr, dt):
        ops.append(jnp.asarray(np.asarray(arr, np.float32), dtype=dt))

    for name in ('conv0', 'conv1', 'conv2', 'conv5', 'conv8'):
        dwv, Wm, bias = _pack_light(raw[name])
        add(dwv, f32)         # depthwise lane vectors: f32 (VPU math)
        add(Wm, bf16)         # pointwise + folded BN scale: bf16 MXU operand
        add(bias, f32)

    add(_pack_1x1(raw['output1']), bf16)                                     # wo1
    add(_pack_1x1(raw['inner1']), bf16)                                      # wi1
    add(_pack_bias(raw['inner1']), f32)                                      # bi1
    add(np.kron(upsample_matrix_1d(g8['Ho']), upsample_matrix_1d(g8['Wo'])), f32)  # u3
    add(_pack_1x1(raw['output2']), bf16)                                     # wo2
    add(_pack_1x1(raw['inner2']), bf16)                                      # wi2
    add(_pack_bias(raw['inner2']), f32)                                      # bi2
    add(np.kron(upsample_matrix_1d(g5['Ho']), upsample_matrix_1d(g5['Wo'])), f32)  # u2
    add(_pack_1x1(raw['output3']), bf16)                                     # wo3
    return geoms, ops


def build_forward(raw, N, H, W):
    geoms, ops = _build_operands(raw, H, W)
    g0, g1, g2, g5, g8 = geoms

    r3 = _round_up(g8['Ho'] * g8['Wo'], 8)
    r2 = _round_up(g5['Ho'] * g5['Wo'], 8)
    r1 = _round_up(g2['Ho'] * g2['Wo'], 8)

    c3 = raw['output1']['w'].shape[0]
    c2 = raw['output2']['w'].shape[0]
    c1 = raw['output3']['w'].shape[0]

    kernel = functools.partial(_fused_kernel, g0=g0, g1=g1, g2=g2, g5=g5, g8=g8)

    def _const_spec(shape):
        return pl.BlockSpec(shape, lambda n: (0, 0))

    in_specs = ([pl.BlockSpec((g0['SpT'], LANES), lambda n: (n, 0))]
                + [_const_spec(tuple(op.shape)) for op in ops])
    out_specs = (pl.BlockSpec((r3, LANES), lambda n: (n, 0)),
                 pl.BlockSpec((r2, LANES), lambda n: (n, 0)),
                 pl.BlockSpec((r1, LANES), lambda n: (n, 0)))

    # rough roofline hint
    flops = 0
    for g in geoms:
        flops += 2 * g['k'] ** 2 * g['SpR'] * LANES                  # depthwise (VPU)
    pw_rows = (g0['SpR'] + g1['SpR'] + g2['Ho'] * g2['Wo']
               + g5['Ho'] * g5['Wo'] + g8['Ho'] * g8['Wo'])
    dec_rows = (2 * g8['Ho'] * g8['Wo'] + 3 * g5['Ho'] * g5['Wo']
                + 2 * g2['Ho'] * g2['Wo'])
    flops = int(N * (flops + 2 * (pw_rows + dec_rows) * LANES * LANES))
    op_bytes = sum(int(o.size) * o.dtype.itemsize for o in ops)
    bytes_accessed = int(op_bytes + 4 * N * g0['SpT'] * LANES
                         + 4 * N * (r3 + r2 + r1) * LANES)

    call = pl.pallas_call(
        kernel,
        grid=(N,),
        out_shape=(
            jax.ShapeDtypeStruct((N * r3, LANES), jnp.float32),
            jax.ShapeDtypeStruct((N * r2, LANES), jnp.float32),
            jax.ShapeDtypeStruct((N * r1, LANES), jnp.float32),
        ),
        in_specs=in_specs,
        out_specs=out_specs,
        scratch_shapes=[
            pltpu.VMEM((g1['SpT'], LANES), jnp.float32),
            pltpu.VMEM((g2['SpT'], LANES), jnp.float32),
            pltpu.VMEM((g5['SpT'], LANES), jnp.float32),
            pltpu.VMEM((g8['SpT'], LANES), jnp.float32),
            pltpu.VMEM((max(g2['SpR'], g5['SpR'], g8['SpR']), LANES), jnp.float32),
        ],
        compiler_params=pltpu.CompilerParams(
            dimension_semantics=("parallel",),
            vmem_limit_bytes=24 * 1024 * 1024),
        cost_estimate=pl.CostEstimate(flops=flops, transcendentals=0,
                                      bytes_accessed=bytes_accessed),
    )

    def to_nchw(flat, rows_pad, Hh, Ww, C):
        v = flat.reshape(N, rows_pad, LANES)[:, :Hh * Ww, :C]
        return jnp.transpose(v.reshape(N, Hh, Ww, C), (0, 3, 1, 2))

    def forward(x_nchw):
        # one-time layout plumbing: NCHW -> per-image zero-padded (rows, 128) slab
        x = jnp.transpose(x_nchw, (0, 2, 3, 1)).astype(jnp.float32)
        p = g0['p']
        x = jnp.pad(x, ((0, 0), (p, p), (p, p), (0, LANES - x.shape[-1])))
        x = x.reshape(N, g0['Hp'] * g0['Wp'], LANES)
        x = jnp.pad(x, ((0, 0), (0, g0['SpT'] - g0['Hp'] * g0['Wp']), (0, 0)))
        x = x.reshape(N * g0['SpT'], LANES)
        o3, o2, o1 = call(x, *ops)
        return {3: to_nchw(o3, r3, g8['Ho'], g8['Wo'], c3),
                2: to_nchw(o2, r2, g5['Ho'], g5['Wo'], c2),
                1: to_nchw(o1, r1, g2['Ho'], g2['Wo'], c1)}

    return forward


# ----------------------------------------------------------------------------
# deterministic synthetic parameters + pure numpy reference (for verification)
# ----------------------------------------------------------------------------
def make_raw_params(seed=0):
    key = jax.random.PRNGKey(seed)
    raw = {}

    def nxt():
        nonlocal key
        key, sub = jax.random.split(key)
        return sub

    def light(name, cin, cout, k):
        raw[name] = dict(
            dw=0.2 * jax.random.normal(nxt(), (cin, 1, k, k), jnp.float32),
            pw=0.2 * jax.random.normal(nxt(), (cout, cin, 1, 1), jnp.float32),
            gamma=1.0 + 0.05 * jax.random.normal(nxt(), (cout,), jnp.float32),
            beta=0.05 * jax.random.normal(nxt(), (cout,), jnp.float32),
            mean=0.05 * jax.random.normal(nxt(), (cout,), jnp.float32),
            var=1.0 + 0.1 * jax.random.uniform(nxt(), (cout,), jnp.float32),
        )

    def c1x1(name, cin, cout, has_bias):
        raw[name] = dict(w=0.2 * jax.random.normal(nxt(), (cout, cin), jnp.float32))
        if has_bias:
            raw[name]['b'] = 0.05 * jax.random.normal(nxt(), (cout,), jnp.float32)

    light('conv0', 3, 8, 3)
    light('conv1', 8, 8, 3)
    light('conv2', 8, 16, 5)
    light('conv5', 16, 32, 5)
    light('conv8', 32, 64, 5)
    c1x1('output1', 64, 64, False)
    c1x1('inner1', 32, 64, True)
    c1x1('inner2', 16, 64, True)
    c1x1('output2', 64, 32, False)
    c1x1('output3', 64, 16, False)
    return jax.tree_util.tree_map(np.asarray, raw)


def _reference_forward(x_nchw, raw):
    x = np.asarray(x_nchw, np.float64)

    def light(x, name, k, s, p):
        q = raw[name]
        dw = np.asarray(q['dw'], np.float64)
        pw = np.asarray(q['pw'], np.float64)[:, :, 0, 0]
        N, C, Hi, Wi = x.shape
        Ho = (Hi + 2 * p - k) // s + 1
        Wo = (Wi + 2 * p - k) // s + 1
        xp = np.pad(x, ((0, 0), (0, 0), (p, p), (p, p)))
        d = np.zeros((N, C, Ho, Wo))
        for kh in range(k):
            for kw in range(k):
                d += (xp[:, :, kh:kh + s * Ho:s, kw:kw + s * Wo:s]
                      * dw[:, 0, kh, kw][None, :, None, None])
        y = np.einsum('oc,nchw->nohw', pw, d)
        sc = np.asarray(q['gamma'], np.float64) / np.sqrt(
            np.asarray(q['var'], np.float64) + BN_EPS)
        bi = np.asarray(q['beta'], np.float64) - np.asarray(q['mean'], np.float64) * sc
        y = y * sc[None, :, None, None] + bi[None, :, None, None]
        return np.clip(y, 0.0, 6.0)

    def c1x1(x, name):
        q = raw[name]
        y = np.einsum('oc,nchw->nohw', np.asarray(q['w'], np.float64), x)
        if 'b' in q:
            y = y + np.asarray(q['b'], np.float64)[None, :, None, None]
        return y

    def up2(x):
        _, _, Hh, Ww = x.shape
        Uh = np.asarray(upsample_matrix_1d(Hh), np.float64)
        Uw = np.asarray(upsample_matrix_1d(Ww), np.float64)
        return np.einsum('ih,jw,nchw->ncij', Uh, Uw, x)

    x0 = light(light(x, 'conv0', 3, 1, 1), 'conv1', 3, 1, 1)
    x1 = light(x0, 'conv2', 5, 2, 2)
    x2 = light(x1, 'conv5', 5, 2, 2)
    x3 = light(x2, 'conv8', 5, 2, 2)
    out3 = c1x1(x3, 'output1')
    fused_i = up2(x3) + c1x1(x2, 'inner1')
    out2 = c1x1(fused_i, 'output2')
    fused_s = up2(fused_i) + c1x1(x1, 'inner2')
    out1 = c1x1(fused_s, 'output3')
    return {3: out3, 2: out2, 1: out1}


# ----------------------------------------------------------------------------
if __name__ == "__main__":
    N, H, W = 2, 16, 16
    raw = make_raw_params(seed=0)
    fwd = jax.jit(build_forward(raw, N, H, W))

    x = jax.random.normal(jax.random.PRNGKey(0), (N, 3, H, W), jnp.float32)
    outs = jax.block_until_ready(fwd(x))

    assert outs[3].shape == (N, 64, 2, 2)
    assert outs[2].shape == (N, 32, 4, 4)
    assert outs[1].shape == (N, 16, 8, 8)
    assert all(bool(jnp.isfinite(v).all()) for v in outs.values())

    ref = _reference_forward(np.asarray(x), raw)
    for lvl in (3, 2, 1):
        np.testing.assert_allclose(np.asarray(outs[lvl]), ref[lvl],
                                   rtol=5e-2, atol=5e-2)

    print("KERNEL_OK")
</pallas_src>

<mosaic_0001>
module attributes {stable_mosaic.version = 11 : i64} {
  func.func @_fused_kernel(%arg0: i32, %arg1: memref<368x128xf32, #tpu.memory_space<vmem>>, %arg2: memref<9x128xf32, #tpu.memory_space<vmem>>, %arg3: memref<128x128xbf16, #tpu.memory_space<vmem>>, %arg4: memref<1x128xf32, #tpu.memory_space<vmem>>, %arg5: memref<9x128xf32, #tpu.memory_space<vmem>>, %arg6: memref<128x128xbf16, #tpu.memory_space<vmem>>, %arg7: memref<1x128xf32, #tpu.memory_space<vmem>>, %arg8: memref<25x128xf32, #tpu.memory_space<vmem>>, %arg9: memref<128x128xbf16, #tpu.memory_space<vmem>>, %arg10: memref<1x128xf32, #tpu.memory_space<vmem>>, %arg11: memref<25x128xf32, #tpu.memory_space<vmem>>, %arg12: memref<128x128xbf16, #tpu.memory_space<vmem>>, %arg13: memref<1x128xf32, #tpu.memory_space<vmem>>, %arg14: memref<25x128xf32, #tpu.memory_space<vmem>>, %arg15: memref<128x128xbf16, #tpu.memory_space<vmem>>, %arg16: memref<1x128xf32, #tpu.memory_space<vmem>>, %arg17: memref<128x128xbf16, #tpu.memory_space<vmem>>, %arg18: memref<128x128xbf16, #tpu.memory_space<vmem>>, %arg19: memref<1x128xf32, #tpu.memory_space<vmem>>, %arg20: memref<16x4xf32, #tpu.memory_space<vmem>>, %arg21: memref<128x128xbf16, #tpu.memory_space<vmem>>, %arg22: memref<128x128xbf16, #tpu.memory_space<vmem>>, %arg23: memref<1x128xf32, #tpu.memory_space<vmem>>, %arg24: memref<64x16xf32, #tpu.memory_space<vmem>>, %arg25: memref<128x128xbf16, #tpu.memory_space<vmem>>, %arg26: memref<8x128xf32, #tpu.memory_space<vmem>>, %arg27: memref<16x128xf32, #tpu.memory_space<vmem>>, %arg28: memref<64x128xf32, #tpu.memory_space<vmem>>, %arg29: memref<368x128xf32, #tpu.memory_space<vmem>>, %arg30: memref<488x128xf32, #tpu.memory_space<vmem>>, %arg31: memref<200x128xf32, #tpu.memory_space<vmem>>, %arg32: memref<104x128xf32, #tpu.memory_space<vmem>>, %arg33: memref<400x128xf32, #tpu.memory_space<vmem>>) attributes {dimension_semantics = [#tpu.dimension_semantics<parallel>], iteration_bounds = array<i64: 2>, scalar_prefetch = 0 : i64, scratch_operands = 5 : i64, tpu.core_type = #tpu.core_type<tc>, window_params = [{transform_indices = @transform_0, window_bounds = array<i64: 368, 128>}, {pipeline_mode = #tpu.pipeline_mode<synchronous>, transform_indices = @transform_1, window_bounds = array<i64: 9, 128>}, {pipeline_mode = #tpu.pipeline_mode<synchronous>, transform_indices = @transform_2, window_bounds = array<i64: 128, 128>}, {pipeline_mode = #tpu.pipeline_mode<synchronous>, transform_indices = @transform_3, window_bounds = array<i64: 1, 128>}, {pipeline_mode = #tpu.pipeline_mode<synchronous>, transform_indices = @transform_4, window_bounds = array<i64: 9, 128>}, {pipeline_mode = #tpu.pipeline_mode<synchronous>, transform_indices = @transform_5, window_bounds = array<i64: 128, 128>}, {pipeline_mode = #tpu.pipeline_mode<synchronous>, transform_indices = @transform_6, window_bounds = array<i64: 1, 128>}, {pipeline_mode = #tpu.pipeline_mode<synchronous>, transform_indices = @transform_7, window_bounds = array<i64: 25, 128>}, {pipeline_mode = #tpu.pipeline_mode<synchronous>, transform_indices = @transform_8, window_bounds = array<i64: 128, 128>}, {pipeline_mode = #tpu.pipeline_mode<synchronous>, transform_indices = @transform_9, window_bounds = array<i64: 1, 128>}, {pipeline_mode = #tpu.pipeline_mode<synchronous>, transform_indices = @transform_10, window_bounds = array<i64: 25, 128>}, {pipeline_mode = #tpu.pipeline_mode<synchronous>, transform_indices = @transform_11, window_bounds = array<i64: 128, 128>}, {pipeline_mode = #tpu.pipeline_mode<synchronous>, transform_indices = @transform_12, window_bounds = array<i64: 1, 128>}, {pipeline_mode = #tpu.pipeline_mode<synchronous>, transform_indices = @transform_13, window_bounds = array<i64: 25, 128>}, {pipeline_mode = #tpu.pipeline_mode<synchronous>, transform_indices = @transform_14, window_bounds = array<i64: 128, 128>}, {pipeline_mode = #tpu.pipeline_mode<synchronous>, transform_indices = @transform_15, window_bounds = array<i64: 1, 128>}, {pipeline_mode = #tpu.pipeline_mode<synchronous>, transform_indices = @transform_16, window_bounds = array<i64: 128, 128>}, {pipeline_mode = #tpu.pipeline_mode<synchronous>, transform_indices = @transform_17, window_bounds = array<i64: 128, 128>}, {pipeline_mode = #tpu.pipeline_mode<synchronous>, transform_indices = @transform_18, window_bounds = array<i64: 1, 128>}, {pipeline_mode = #tpu.pipeline_mode<synchronous>, transform_indices = @transform_19, window_bounds = array<i64: 16, 4>}, {pipeline_mode = #tpu.pipeline_mode<synchronous>, transform_indices = @transform_20, window_bounds = array<i64: 128, 128>}, {pipeline_mode = #tpu.pipeline_mode<synchronous>, transform_indices = @transform_21, window_bounds = array<i64: 128, 128>}, {pipeline_mode = #tpu.pipeline_mode<synchronous>, transform_indices = @transform_22, window_bounds = array<i64: 1, 128>}, {pipeline_mode = #tpu.pipeline_mode<synchronous>, transform_indices = @transform_23, window_bounds = array<i64: 64, 16>}, {pipeline_mode = #tpu.pipeline_mode<synchronous>, transform_indices = @transform_24, window_bounds = array<i64: 128, 128>}, {transform_indices = @transform_25, window_bounds = array<i64: 8, 128>}, {transform_indices = @transform_26, window_bounds = array<i64: 16, 128>}, {transform_indices = @transform_27, window_bounds = array<i64: 64, 128>}]} {
    %cst = arith.constant 0.000000e+00 : f32
    %0 = vector.broadcast %cst : f32 to vector<368x128xf32>
    %c0 = arith.constant 0 : index
    %c0_0 = arith.constant 0 : index
    %1 = vector.load %arg29[%c0, %c0_0] : memref<368x128xf32, #tpu.memory_space<vmem>>, vector<368x128xf32>
    tpu.vector_store %arg29[%c0, %c0_0], %0 {strides = array<i32>} : memref<368x128xf32, #tpu.memory_space<vmem>>, vector<368x128xf32>,
    %cst_1 = arith.constant 0.000000e+00 : f32
    %2 = vector.broadcast %cst_1 : f32 to vector<488x128xf32>
    %c0_2 = arith.constant 0 : index
    %c0_3 = arith.constant 0 : index
    %3 = vector.load %arg30[%c0_2, %c0_3] : memref<488x128xf32, #tpu.memory_space<vmem>>, vector<488x128xf32>
    tpu.vector_store %arg30[%c0_2, %c0_3], %2 {strides = array<i32>} : memref<488x128xf32, #tpu.memory_space<vmem>>, vector<488x128xf32>,
    %cst_4 = arith.constant 0.000000e+00 : f32
    %4 = vector.broadcast %cst_4 : f32 to vector<200x128xf32>
    %c0_5 = arith.constant 0 : index
    %c0_6 = arith.constant 0 : index
    %5 = vector.load %arg31[%c0_5, %c0_6] : memref<200x128xf32, #tpu.memory_space<vmem>>, vector<200x128xf32>
    tpu.vector_store %arg31[%c0_5, %c0_6], %4 {strides = array<i32>} : memref<200x128xf32, #tpu.memory_space<vmem>>, vector<200x128xf32>,
    %cst_7 = arith.constant 0.000000e+00 : f32
    %6 = vector.broadcast %cst_7 : f32 to vector<104x128xf32>
    %c0_8 = arith.constant 0 : index
    %c0_9 = arith.constant 0 : index
    %7 = vector.load %arg32[%c0_8, %c0_9] : memref<104x128xf32, #tpu.memory_space<vmem>>, vector<104x128xf32>
    tpu.vector_store %arg32[%c0_8, %c0_9], %6 {strides = array<i32>} : memref<104x128xf32, #tpu.memory_space<vmem>>, vector<104x128xf32>,
    %c0_10 = arith.constant 0 : index
    %c0_11 = arith.constant 0 : index
    %8 = vector.load %arg1[%c0_10, %c0_11] : memref<368x128xf32, #tpu.memory_space<vmem>>, vector<328x128xf32>
    %c0_12 = arith.constant 0 : index
    %c0_13 = arith.constant 0 : index
    %9 = vector.load %arg2[%c0_12, %c0_13] : memref<9x128xf32, #tpu.memory_space<vmem>>, vector<1x128xf32>
    %10 = vector.broadcast %9 : vector<1x128xf32> to vector<328x128xf32>
    %11 = arith.mulf %8, %10 : vector<328x128xf32>
    %c1 = arith.constant 1 : index
    %c0_14 = arith.constant 0 : index
    %12 = vector.load %arg1[%c1, %c0_14] : memref<368x128xf32, #tpu.memory_space<vmem>>, vector<328x128xf32>
    %c1_15 = arith.constant 1 : index
    %c0_16 = arith.constant 0 : index
    %13 = vector.load %arg2[%c1_15, %c0_16] : memref<9x128xf32, #tpu.memory_space<vmem>>, vector<1x128xf32>
    %14 = vector.broadcast %13 : vector<1x128xf32> to vector<328x128xf32>
    %15 = arith.mulf %12, %14 : vector<328x128xf32>
    %16 = arith.addf %11, %15 : vector<328x128xf32>
    %c2 = arith.constant 2 : index
    %c0_17 = arith.constant 0 : index
    %17 = vector.load %arg1[%c2, %c0_17] : memref<368x128xf32, #tpu.memory_space<vmem>>, vector<328x128xf32>
    %c2_18 = arith.constant 2 : index
    %c0_19 = arith.constant 0 : index
    %18 = vector.load %arg2[%c2_18, %c0_19] : memref<9x128xf32, #tpu.memory_space<vmem>>, vector<1x128xf32>
    %19 = vector.broadcast %18 : vector<1x128xf32> to vector<328x128xf32>
    %20 = arith.mulf %17, %19 : vector<328x128xf32>
    %21 = arith.addf %16, %20 : vector<328x128xf32>
    %c18 = arith.constant 18 : index
    %c0_20 = arith.constant 0 : index
    %22 = vector.load %arg1[%c18, %c0_20] : memref<368x128xf32, #tpu.memory_space<vmem>>, vector<328x128xf32>
    %c3 = arith.constant 3 : index
    %c0_21 = arith.constant 0 : index
    %23 = vector.load %arg2[%c3, %c0_21] : memref<9x128xf32, #tpu.memory_space<vmem>>, vector<1x128xf32>
    %24 = vector.broadcast %23 : vector<1x128xf32> to vector<328x128xf32>
    %25 = arith.mulf %22, %24 : vector<328x128xf32>
    %26 = arith.addf %21, %25 : vector<328x128xf32>
    %c19 = arith.constant 19 : index
    %c0_22 = arith.constant 0 : index
    %27 = vector.load %arg1[%c19, %c0_22] : memref<368x128xf32, #tpu.memory_space<vmem>>, vector<328x128xf32>
    %c4 = arith.constant 4 : index
    %c0_23 = arith.constant 0 : index
    %28 = vector.load %arg2[%c4, %c0_23] : memref<9x128xf32, #tpu.memory_space<vmem>>, vector<1x128xf32>
    %29 = vector.broadcast %28 : vector<1x128xf32> to vector<328x128xf32>
    %30 = arith.mulf %27, %29 : vector<328x128xf32>
    %31 = arith.addf %26, %30 : vector<328x128xf32>
    %c20 = arith.constant 20 : index
    %c0_24 = arith.constant 0 : index
    %32 = vector.load %arg1[%c20, %c0_24] : memref<368x128xf32, #tpu.memory_space<vmem>>, vector<328x128xf32>
    %c5 = arith.constant 5 : index
    %c0_25 = arith.constant 0 : index
    %33 = vector.load %arg2[%c5, %c0_25] : memref<9x128xf32, #tpu.memory_space<vmem>>, vector<1x128xf32>
    %34 = vector.broadcast %33 : vector<1x128xf32> to vector<328x128xf32>
    %35 = arith.mulf %32, %34 : vector<328x128xf32>
    %36 = arith.addf %31, %35 : vector<328x128xf32>
    %c36 = arith.constant 36 : index
    %c0_26 = arith.constant 0 : index
    %37 = vector.load %arg1[%c36, %c0_26] : memref<368x128xf32, #tpu.memory_space<vmem>>, vector<328x128xf32>
    %c6 = arith.constant 6 : index
    %c0_27 = arith.constant 0 : index
    %38 = vector.load %arg2[%c6, %c0_27] : memref<9x128xf32, #tpu.memory_space<vmem>>, vector<1x128xf32>
    %39 = vector.broadcast %38 : vector<1x128xf32> to vector<328x128xf32>
    %40 = arith.mulf %37, %39 : vector<328x128xf32>
    %41 = arith.addf %36, %40 : vector<328x128xf32>
    %c37 = arith.constant 37 : index
    %c0_28 = arith.constant 0 : index
    %42 = vector.load %arg1[%c37, %c0_28] : memref<368x128xf32, #tpu.memory_space<vmem>>, vector<328x128xf32>
    %c7 = arith.constant 7 : index
    %c0_29 = arith.constant 0 : index
    %43 = vector.load %arg2[%c7, %c0_29] : memref<9x128xf32, #tpu.memory_space<vmem>>, vector<1x128xf32>
    %44 = vector.broadcast %43 : vector<1x128xf32> to vector<328x128xf32>
    %45 = arith.mulf %42, %44 : vector<328x128xf32>
    %46 = arith.addf %41, %45 : vector<328x128xf32>
    %c38 = arith.constant 38 : index
    %c0_30 = arith.constant 0 : index
    %47 = vector.load %arg1[%c38, %c0_30] : memref<368x128xf32, #tpu.memory_space<vmem>>, vector<328x128xf32>
    %c8 = arith.constant 8 : index
    %c0_31 = arith.constant 0 : index
    %48 = vector.load %arg2[%c8, %c0_31] : memref<9x128xf32, #tpu.memory_space<vmem>>, vector<1x128xf32>
    %49 = vector.broadcast %48 : vector<1x128xf32> to vector<328x128xf32>
    %50 = arith.mulf %47, %49 : vector<328x128xf32>
    %51 = arith.addf %46, %50 : vector<328x128xf32>
    %52 = arith.truncf %51 : vector<328x128xf32> to vector<328x128xbf16>
    %c0_32 = arith.constant 0 : index
    %c0_33 = arith.constant 0 : index
    %53 = vector.load %arg3[%c0_32, %c0_33] : memref<128x128xbf16, #tpu.memory_space<vmem>>, vector<128x128xbf16>
    %cst_34 = arith.constant dense<0.000000e+00> : vector<328x128xf32>
    %54 = tpu.matmul %52, %53, %cst_34 {dimension_numbers = #tpu.dot_dimension_numbers<[1], [0], [0], [1], [0, 0, 1, 1], [], []>} : vector<328x128xbf16>, vector<128x128xbf16>, vector<328x128xf32> -> vector<328x128xf32>
    %c0_35 = arith.constant 0 : index
    %c0_36 = arith.constant 0 : index
    %55 = vector.load %arg4[%c0_35, %c0_36] : memref<1x128xf32, #tpu.memory_space<vmem>>, vector<1x128xf32>
    %56 = vector.broadcast %55 : vector<1x128xf32> to vector<328x128xf32>
    %57 = arith.addf %54, %56 : vector<328x128xf32>
    %cst_37 = arith.constant 0.000000e+00 : f32
    %cst_38 = arith.constant 6.000000e+00 : f32
    %58 = vector.broadcast %cst_37 : f32 to vector<328x128xf32>
    %59 = arith.maximumf %58, %57 : vector<328x128xf32>
    %60 = vector.broadcast %cst_38 : f32 to vector<328x128xf32>
    %61 = arith.minimumf %60, %59 : vector<328x128xf32>
    %62 = vector.extract_strided_slice %61 {offsets = [0, 0], sizes = [16, 128], strides = [1, 1]} : vector<328x128xf32> to vector<16x128xf32>
    %c19_39 = arith.constant 19 : index
    %c0_40 = arith.constant 0 : index
    %63 = vector.load %arg29[%c19_39, %c0_40] : memref<368x128xf32, #tpu.memory_space<vmem>>, vector<16x128xf32>
    tpu.vector_store %arg29[%c19_39, %c0_40], %62 {strides = array<i32>} : memref<368x128xf32, #tpu.memory_space<vmem>>, vector<16x128xf32>,
    %64 = vector.extract_strided_slice %61 {offsets = [18, 0], sizes = [16, 128], strides = [1, 1]} : vector<328x128xf32> to vector<16x128xf32>
    %c37_41 = arith.constant 37 : index
    %c0_42 = arith.constant 0 : index
    %65 = vector.load %arg29[%c37_41, %c0_42] : memref<368x128xf32, #tpu.memory_space<vmem>>, vector<16x128xf32>
    tpu.vector_store %arg29[%c37_41, %c0_42], %64 {strides = array<i32>} : memref<368x128xf32, #tpu.memory_space<vmem>>, vector<16x128xf32>,
    %66 = vector.extract_strided_slice %61 {offsets = [36, 0], sizes = [16, 128], strides = [1, 1]} : vector<328x128xf32> to vector<16x128xf32>
    %c55 = arith.constant 55 : index
    %c0_43 = arith.constant 0 : index
    %67 = vector.load %arg29[%c55, %c0_43] : memref<368x128xf32, #tpu.memory_space<vmem>>, vector<16x128xf32>
    tpu.vector_store %arg29[%c55, %c0_43], %66 {strides = array<i32>} : memref<368x128xf32, #tpu.memory_space<vmem>>, vector<16x128xf32>,
    %68 = vector.extract_strided_slice %61 {offsets = [54, 0], sizes = [16, 128], strides = [1, 1]} : vector<328x128xf32> to vector<16x128xf32>
    %c73 = arith.constant 73 : index
    %c0_44 = arith.constant 0 : index
    %69 = vector.load %arg29[%c73, %c0_44] : memref<368x128xf32, #tpu.memory_space<vmem>>, vector<16x128xf32>
    tpu.vector_store %arg29[%c73, %c0_44], %68 {strides = array<i32>} : memref<368x128xf32, #tpu.memory_space<vmem>>, vector<16x128xf32>,
    %70 = vector.extract_strided_slice %61 {offsets = [72, 0], sizes = [16, 128], strides = [1, 1]} : vector<328x128xf32> to vector<16x128xf32>
    %c91 = arith.constant 91 : index
    %c0_45 = arith.constant 0 : index
    %71 = vector.load %arg29[%c91, %c0_45] : memref<368x128xf32, #tpu.memory_space<vmem>>, vector<16x128xf32>
    tpu.vector_store %arg29[%c91, %c0_45], %70 {strides = array<i32>} : memref<368x128xf32, #tpu.memory_space<vmem>>, vector<16x128xf32>,
    %72 = vector.extract_strided_slice %61 {offsets = [90, 0], sizes = [16, 128], strides = [1, 1]} : vector<328x128xf32> to vector<16x128xf32>
    %c109 = arith.constant 109 : index
    %c0_46 = arith.constant 0 : index
    %73 = vector.load %arg29[%c109, %c0_46] : memref<368x128xf32, #tpu.memory_space<vmem>>, vector<16x128xf32>
    tpu.vector_store %arg29[%c109, %c0_46], %72 {strides = array<i32>} : memref<368x128xf32, #tpu.memory_space<vmem>>, vector<16x128xf32>,
    %74 = vector.extract_strided_slice %61 {offsets = [108, 0], sizes = [16, 128], strides = [1, 1]} : vector<328x128xf32> to vector<16x128xf32>
    %c127 = arith.constant 127 : index
    %c0_47 = arith.constant 0 : index
    %75 = vector.load %arg29[%c127, %c0_47] : memref<368x128xf32, #tpu.memory_space<vmem>>, vector<16x128xf32>
    tpu.vector_store %arg29[%c127, %c0_47], %74 {strides = array<i32>} : memref<368x128xf32, #tpu.memory_space<vmem>>, vector<16x128xf32>,
    %76 = vector.extract_strided_slice %61 {offsets = [126, 0], sizes = [16, 128], strides = [1, 1]} : vector<328x128xf32> to vector<16x128xf32>
    %c145 = arith.constant 145 : index
    %c0_48 = arith.constant 0 : index
    %77 = vector.load %arg29[%c145, %c0_48] : memref<368x128xf32, #tpu.memory_space<vmem>>, vector<16x128xf32>
    tpu.vector_store %arg29[%c145, %c0_48], %76 {strides = array<i32>} : memref<368x128xf32, #tpu.memory_space<vmem>>, vector<16x128xf32>,
    %78 = vector.extract_strided_slice %61 {offsets = [144, 0], sizes = [16, 128], strides = [1, 1]} : vector<328x128xf32> to vector<16x128xf32>
    %c163 = arith.constant 163 : index
    %c0_49 = arith.constant 0 : index
    %79 = vector.load %arg29[%c163, %c0_49] : memref<368x128xf32, #tpu.memory_space<vmem>>, vector<16x128xf32>
    tpu.vector_store %arg29[%c163, %c0_49], %78 {strides = array<i32>} : memref<368x128xf32, #tpu.memory_space<vmem>>, vector<16x128xf32>,
    %80 = vector.extract_strided_slice %61 {offsets = [162, 0], sizes = [16, 128], strides = [1, 1]} : vector<328x128xf32> to vector<16x128xf32>
    %c181 = arith.constant 181 : index
    %c0_50 = arith.constant 0 : index
    %81 = vector.load %arg29[%c181, %c0_50] : memref<368x128xf32, #tpu.memory_space<vmem>>, vector<16x128xf32>
    tpu.vector_store %arg29[%c181, %c0_50], %80 {strides = array<i32>} : memref<368x128xf32, #tpu.memory_space<vmem>>, vector<16x128xf32>,
    %82 = vector.extract_strided_slice %61 {offsets = [180, 0], sizes = [16, 128], strides = [1, 1]} : vector<328x128xf32> to vector<16x128xf32>
    %c199 = arith.constant 199 : index
    %c0_51 = arith.constant 0 : index
    %83 = vector.load %arg29[%c199, %c0_51] : memref<368x128xf32, #tpu.memory_space<vmem>>, vector<16x128xf32>
    tpu.vector_store %arg29[%c199, %c0_51], %82 {strides = array<i32>} : memref<368x128xf32, #tpu.memory_space<vmem>>, vector<16x128xf32>,
    %84 = vector.extract_strided_slice %61 {offsets = [198, 0], sizes = [16, 128], strides = [1, 1]} : vector<328x128xf32> to vector<16x128xf32>
    %c217 = arith.constant 217 : index
    %c0_52 = arith.constant 0 : index
    %85 = vector.load %arg29[%c217, %c0_52] : memref<368x128xf32, #tpu.memory_space<vmem>>, vector<16x128xf32>
    tpu.vector_store %arg29[%c217, %c0_52], %84 {strides = array<i32>} : memref<368x128xf32, #tpu.memory_space<vmem>>, vector<16x128xf32>,
    %86 = vector.extract_strided_slice %61 {offsets = [216, 0], sizes = [16, 128], strides = [1, 1]} : vector<328x128xf32> to vector<16x128xf32>
    %c235 = arith.constant 235 : index
    %c0_53 = arith.constant 0 : index
    %87 = vector.load %arg29[%c235, %c0_53] : memref<368x128xf32, #tpu.memory_space<vmem>>, vector<16x128xf32>
    tpu.vector_store %arg29[%c235, %c0_53], %86 {strides = array<i32>} : memref<368x128xf32, #tpu.memory_space<vmem>>, vector<16x128xf32>,
    %88 = vector.extract_strided_slice %61 {offsets = [234, 0], sizes = [16, 128], strides = [1, 1]} : vector<328x128xf32> to vector<16x128xf32>
    %c253 = arith.constant 253 : index
    %c0_54 = arith.constant 0 : index
    %89 = vector.load %arg29[%c253, %c0_54] : memref<368x128xf32, #tpu.memory_space<vmem>>, vector<16x128xf32>
    tpu.vector_store %arg29[%c253, %c0_54], %88 {strides = array<i32>} : memref<368x128xf32, #tpu.memory_space<vmem>>, vector<16x128xf32>,
    %90 = vector.extract_strided_slice %61 {offsets = [252, 0], sizes = [16, 128], strides = [1, 1]} : vector<328x128xf32> to vector<16x128xf32>
    %c271 = arith.constant 271 : index
    %c0_55 = arith.constant 0 : index
    %91 = vector.load %arg29[%c271, %c0_55] : memref<368x128xf32, #tpu.memory_space<vmem>>, vector<16x128xf32>
    tpu.vector_store %arg29[%c271, %c0_55], %90 {strides = array<i32>} : memref<368x128xf32, #tpu.memory_space<vmem>>, vector<16x128xf32>,
    %92 = vector.extract_strided_slice %61 {offsets = [270, 0], sizes = [16, 128], strides = [1, 1]} : vector<328x128xf32> to vector<16x128xf32>
    %c289 = arith.constant 289 : index
    %c0_56 = arith.constant 0 : index
    %93 = vector.load %arg29[%c289, %c0_56] : memref<368x128xf32, #tpu.memory_space<vmem>>, vector<16x128xf32>
    tpu.vector_store %arg29[%c289, %c0_56], %92 {strides = array<i32>} : memref<368x128xf32, #tpu.memory_space<vmem>>, vector<16x128xf32>,
    %c0_57 = arith.constant 0 : index
    %c0_58 = arith.constant 0 : index
    %94 = vector.load %arg29[%c0_57, %c0_58] : memref<368x128xf32, #tpu.memory_space<vmem>>, vector<328x128xf32>
    %c0_59 = arith.constant 0 : index
    %c0_60 = arith.constant 0 : index
    %95 = vector.load %arg5[%c0_59, %c0_60] : memref<9x128xf32, #tpu.memory_space<vmem>>, vector<1x128xf32>
    %96 = vector.broadcast %95 : vector<1x128xf32> to vector<328x128xf32>
    %97 = arith.mulf %94, %96 : vector<328x128xf32>
    %c1_61 = arith.constant 1 : index
    %c0_62 = arith.constant 0 : index
    %98 = vector.load %arg29[%c1_61, %c0_62] : memref<368x128xf32, #tpu.memory_space<vmem>>, vector<328x128xf32>
    %c1_63 = arith.constant 1 : index
    %c0_64 = arith.constant 0 : index
    %99 = vector.load %arg5[%c1_63, %c0_64] : memref<9x128xf32, #tpu.memory_space<vmem>>, vector<1x128xf32>
    %100 = vector.broadcast %99 : vector<1x128xf32> to vector<328x128xf32>
    %101 = arith.mulf %98, %100 : vector<328x128xf32>
    %102 = arith.addf %97, %101 : vector<328x128xf32>
    %c2_65 = arith.constant 2 : index
    %c0_66 = arith.constant 0 : index
    %103 = vector.load %arg29[%c2_65, %c0_66] : memref<368x128xf32, #tpu.memory_space<vmem>>, vector<328x128xf32>
    %c2_67 = arith.constant 2 : index
    %c0_68 = arith.constant 0 : index
    %104 = vector.load %arg5[%c2_67, %c0_68] : memref<9x128xf32, #tpu.memory_space<vmem>>, vector<1x128xf32>
    %105 = vector.broadcast %104 : vector<1x128xf32> to vector<328x128xf32>
    %106 = arith.mulf %103, %105 : vector<328x128xf32>
    %107 = arith.addf %102, %106 : vector<328x128xf32>
    %c18_69 = arith.constant 18 : index
    %c0_70 = arith.constant 0 : index
    %108 = vector.load %arg29[%c18_69, %c0_70] : memref<368x128xf32, #tpu.memory_space<vmem>>, vector<328x128xf32>
    %c3_71 = arith.constant 3 : index
    %c0_72 = arith.constant 0 : index
    %109 = vector.load %arg5[%c3_71, %c0_72] : memref<9x128xf32, #tpu.memory_space<vmem>>, vector<1x128xf32>
    %110 = vector.broadcast %109 : vector<1x128xf32> to vector<328x128xf32>
    %111 = arith.mulf %108, %110 : vector<328x128xf32>
    %112 = arith.addf %107, %111 : vector<328x128xf32>
    %c19_73 = arith.constant 19 : index
    %c0_74 = arith.constant 0 : index
    %113 = vector.load %arg29[%c19_73, %c0_74] : memref<368x128xf32, #tpu.memory_space<vmem>>, vector<328x128xf32>
    %c4_75 = arith.constant 4 : index
    %c0_76 = arith.constant 0 : index
    %114 = vector.load %arg5[%c4_75, %c0_76] : memref<9x128xf32, #tpu.memory_space<vmem>>, vector<1x128xf32>
    %115 = vector.broadcast %114 : vector<1x128xf32> to vector<328x128xf32>
    %116 = arith.mulf %113, %115 : vector<328x128xf32>
    %117 = arith.addf %112, %116 : vector<328x128xf32>
    %c20_77 = arith.constant 20 : index
    %c0_78 = arith.constant 0 : index
    %118 = vector.load %arg29[%c20_77, %c0_78] : memref<368x128xf32, #tpu.memory_space<vmem>>, vector<328x128xf32>
    %c5_79 = arith.constant 5 : index
    %c0_80 = arith.constant 0 : index
    %119 = vector.load %arg5[%c5_79, %c0_80] : memref<9x128xf32, #tpu.memory_space<vmem>>, vector<1x128xf32>
    %120 = vector.broadcast %119 : vector<1x128xf32> to vector<328x128xf32>
    %121 = arith.mulf %118, %120 : vector<328x128xf32>
    %122 = arith.addf %117, %121 : vector<328x128xf32>
    %c36_81 = arith.constant 36 : index
    %c0_82 = arith.constant 0 : index
    %123 = vector.load %arg29[%c36_81, %c0_82] : memref<368x128xf32, #tpu.memory_space<vmem>>, vector<328x128xf32>
    %c6_83 = arith.constant 6 : index
    %c0_84 = arith.constant 0 : index
    %124 = vector.load %arg5[%c6_83, %c0_84] : memref<9x128xf32, #tpu.memory_space<vmem>>, vector<1x128xf32>
    %125 = vector.broadcast %124 : vector<1x128xf32> to vector<328x128xf32>
    %126 = arith.mulf %123, %125 : vector<328x128xf32>
    %127 = arith.addf %122, %126 : vector<328x128xf32>
    %c37_85 = arith.constant 37 : index
    %c0_86 = arith.constant 0 : index
    %128 = vector.load %arg29[%c37_85, %c0_86] : memref<368x128xf32, #tpu.memory_space<vmem>>, vector<328x128xf32>
    %c7_87 = arith.constant 7 : index
    %c0_88 = arith.constant 0 : index
    %129 = vector.load %arg5[%c7_87, %c0_88] : memref<9x128xf32, #tpu.memory_space<vmem>>, vector<1x128xf32>
    %130 = vector.broadcast %129 : vector<1x128xf32> to vector<328x128xf32>
    %131 = arith.mulf %128, %130 : vector<328x128xf32>
    %132 = arith.addf %127, %131 : vector<328x128xf32>
    %c38_89 = arith.constant 38 : index
    %c0_90 = arith.constant 0 : index
    %133 = vector.load %arg29[%c38_89, %c0_90] : memref<368x128xf32, #tpu.memory_space<vmem>>, vector<328x128xf32>
    %c8_91 = arith.constant 8 : index
    %c0_92 = arith.constant 0 : index
    %134 = vector.load %arg5[%c8_91, %c0_92] : memref<9x128xf32, #tpu.memory_space<vmem>>, vector<1x128xf32>
    %135 = vector.broadcast %134 : vector<1x128xf32> to vector<328x128xf32>
    %136 = arith.mulf %133, %135 : vector<328x128xf32>
    %137 = arith.addf %132, %136 : vector<328x128xf32>
    %138 = arith.truncf %137 : vector<328x128xf32> to vector<328x128xbf16>
    %c0_93 = arith.constant 0 : index
    %c0_94 = arith.constant 0 : index
    %139 = vector.load %arg6[%c0_93, %c0_94] : memref<128x128xbf16, #tpu.memory_space<vmem>>, vector<128x128xbf16>
    %cst_95 = arith.constant dense<0.000000e+00> : vector<328x128xf32>
    %140 = tpu.matmul %138, %139, %cst_95 {dimension_numbers = #tpu.dot_dimension_numbers<[1], [0], [0], [1], [0, 0, 1, 1], [], []>} : vector<328x128xbf16>, vector<128x128xbf16>, vector<328x128xf32> -> vector<328x128xf32>
    %c0_96 = arith.constant 0 : index
    %c0_97 = arith.constant 0 : index
    %141 = vector.load %arg7[%c0_96, %c0_97] : memref<1x128xf32, #tpu.memory_space<vmem>>, vector<1x128xf32>
    %142 = vector.broadcast %141 : vector<1x128xf32> to vector<328x128xf32>
    %143 = arith.addf %140, %142 : vector<328x128xf32>
    %cst_98 = arith.constant 0.000000e+00 : f32
    %cst_99 = arith.constant 6.000000e+00 : f32
    %144 = vector.broadcast %cst_98 : f32 to vector<328x128xf32>
    %145 = arith.maximumf %144, %143 : vector<328x128xf32>
    %146 = vector.broadcast %cst_99 : f32 to vector<328x128xf32>
    %147 = arith.minimumf %146, %145 : vector<328x128xf32>
    %148 = vector.extract_strided_slice %147 {offsets = [0, 0], sizes = [16, 128], strides = [1, 1]} : vector<328x128xf32> to vector<16x128xf32>
    %c42 = arith.constant 42 : index
    %c0_100 = arith.constant 0 : index
    %149 = vector.load %arg30[%c42, %c0_100] : memref<488x128xf32, #tpu.memory_space<vmem>>, vector<16x128xf32>
    tpu.vector_store %arg30[%c42, %c0_100], %148 {strides = array<i32>} : memref<488x128xf32, #tpu.memory_space<vmem>>, vector<16x128xf32>,
    %150 = vector.extract_strided_slice %147 {offsets = [18, 0], sizes = [16, 128], strides = [1, 1]} : vector<328x128xf32> to vector<16x128xf32>
    %c62 = arith.constant 62 : index
    %c0_101 = arith.constant 0 : index
    %151 = vector.load %arg30[%c62, %c0_101] : memref<488x128xf32, #tpu.memory_space<vmem>>, vector<16x128xf32>
    tpu.vector_store %arg30[%c62, %c0_101], %150 {strides = array<i32>} : memref<488x128xf32, #tpu.memory_space<vmem>>, vector<16x128xf32>,
    %152 = vector.extract_strided_slice %147 {offsets = [36, 0], sizes = [16, 128], strides = [1, 1]} : vector<328x128xf32> to vector<16x128xf32>
    %c82 = arith.constant 82 : index
    %c0_102 = arith.constant 0 : index
    %153 = vector.load %arg30[%c82, %c0_102] : memref<488x128xf32, #tpu.memory_space<vmem>>, vector<16x128xf32>
    tpu.vector_store %arg30[%c82, %c0_102], %152 {strides = array<i32>} : memref<488x128xf32, #tpu.memory_space<vmem>>, vector<16x128xf32>,
    %154 = vector.extract_strided_slice %147 {offsets = [54, 0], sizes = [16, 128], strides = [1, 1]} : vector<328x128xf32> to vector<16x128xf32>
    %c102 = arith.constant 102 : index
    %c0_103 = arith.constant 0 : index
    %155 = vector.load %arg30[%c102, %c0_103] : memref<488x128xf32, #tpu.memory_space<vmem>>, vector<16x128xf32>
    tpu.vector_store %arg30[%c102, %c0_103], %154 {strides = array<i32>} : memref<488x128xf32, #tpu.memory_space<vmem>>, vector<16x128xf32>,
    %156 = vector.extract_strided_slice %147 {offsets = [72, 0], sizes = [16, 128], strides = [1, 1]} : vector<328x128xf32> to vector<16x128xf32>
    %c122 = arith.constant 122 : index
    %c0_104 = arith.constant 0 : index
    %157 = vector.load %arg30[%c122, %c0_104] : memref<488x128xf32, #tpu.memory_space<vmem>>, vector<16x128xf32>
    tpu.vector_store %arg30[%c122, %c0_104], %156 {strides = array<i32>} : memref<488x128xf32, #tpu.memory_space<vmem>>, vector<16x128xf32>,
    %158 = vector.extract_strided_slice %147 {offsets = [90, 0], sizes = [16, 128], strides = [1, 1]} : vector<328x128xf32> to vector<16x128xf32>
    %c142 = arith.constant 142 : index
    %c0_105 = arith.constant 0 : index
    %159 = vector.load %arg30[%c142, %c0_105] : memref<488x128xf32, #tpu.memory_space<vmem>>, vector<16x128xf32>
    tpu.vector_store %arg30[%c142, %c0_105], %158 {strides = array<i32>} : memref<488x128xf32, #tpu.memory_space<vmem>>, vector<16x128xf32>,
    %160 = vector.extract_strided_slice %147 {offsets = [108, 0], sizes = [16, 128], strides = [1, 1]} : vector<328x128xf32> to vector<16x128xf32>
    %c162 = arith.constant 162 : index
    %c0_106 = arith.constant 0 : index
    %161 = vector.load %arg30[%c162, %c0_106] : memref<488x128xf32, #tpu.memory_space<vmem>>, vector<16x128xf32>
    tpu.vector_store %arg30[%c162, %c0_106], %160 {strides = array<i32>} : memref<488x128xf32, #tpu.memory_space<vmem>>, vector<16x128xf32>,
    %162 = vector.extract_strided_slice %147 {offsets = [126, 0], sizes = [16, 128], strides = [1, 1]} : vector<328x128xf32> to vector<16x128xf32>
    %c182 = arith.constant 182 : index
    %c0_107 = arith.constant 0 : index
    %163 = vector.load %arg30[%c182, %c0_107] : memref<488x128xf32, #tpu.memory_space<vmem>>, vector<16x128xf32>
    tpu.vector_store %arg30[%c182, %c0_107], %162 {strides = array<i32>} : memref<488x128xf32, #tpu.memory_space<vmem>>, vector<16x128xf32>,
    %164 = vector.extract_strided_slice %147 {offsets = [144, 0], sizes = [16, 128], strides = [1, 1]} : vector<328x128xf32> to vector<16x128xf32>
    %c202 = arith.constant 202 : index
    %c0_108 = arith.constant 0 : index
    %165 = vector.load %arg30[%c202, %c0_108] : memref<488x128xf32, #tpu.memory_space<vmem>>, vector<16x128xf32>
    tpu.vector_store %arg30[%c202, %c0_108], %164 {strides = array<i32>} : memref<488x128xf32, #tpu.memory_space<vmem>>, vector<16x128xf32>,
    %166 = vector.extract_strided_slice %147 {offsets = [162, 0], sizes = [16, 128], strides = [1, 1]} : vector<328x128xf32> to vector<16x128xf32>
    %c222 = arith.constant 222 : index
    %c0_109 = arith.constant 0 : index
    %167 = vector.load %arg30[%c222, %c0_109] : memref<488x128xf32, #tpu.memory_space<vmem>>, vector<16x128xf32>
    tpu.vector_store %arg30[%c222, %c0_109], %166 {strides = array<i32>} : memref<488x128xf32, #tpu.memory_space<vmem>>, vector<16x128xf32>,
    %168 = vector.extract_strided_slice %147 {offsets = [180, 0], sizes = [16, 128], strides = [1, 1]} : vector<328x128xf32> to vector<16x128xf32>
    %c242 = arith.constant 242 : index
    %c0_110 = arith.constant 0 : index
    %169 = vector.load %arg30[%c242, %c0_110] : memref<488x128xf32, #tpu.memory_space<vmem>>, vector<16x128xf32>
    tpu.vector_store %arg30[%c242, %c0_110], %168 {strides = array<i32>} : memref<488x128xf32, #tpu.memory_space<vmem>>, vector<16x128xf32>,
    %170 = vector.extract_strided_slice %147 {offsets = [198, 0], sizes = [16, 128], strides = [1, 1]} : vector<328x128xf32> to vector<16x128xf32>
    %c262 = arith.constant 262 : index
    %c0_111 = arith.constant 0 : index
    %171 = vector.load %arg30[%c262, %c0_111] : memref<488x128xf32, #tpu.memory_space<vmem>>, vector<16x128xf32>
    tpu.vector_store %arg30[%c262, %c0_111], %170 {strides = array<i32>} : memref<488x128xf32, #tpu.memory_space<vmem>>, vector<16x128xf32>,
    %172 = vector.extract_strided_slice %147 {offsets = [216, 0], sizes = [16, 128], strides = [1, 1]} : vector<328x128xf32> to vector<16x128xf32>
    %c282 = arith.constant 282 : index
    %c0_112 = arith.constant 0 : index
    %173 = vector.load %arg30[%c282, %c0_112] : memref<488x128xf32, #tpu.memory_space<vmem>>, vector<16x128xf32>
    tpu.vector_store %arg30[%c282, %c0_112], %172 {strides = array<i32>} : memref<488x128xf32, #tpu.memory_space<vmem>>, vector<16x128xf32>,
    %174 = vector.extract_strided_slice %147 {offsets = [234, 0], sizes = [16, 128], strides = [1, 1]} : vector<328x128xf32> to vector<16x128xf32>
    %c302 = arith.constant 302 : index
    %c0_113 = arith.constant 0 : index
    %175 = vector.load %arg30[%c302, %c0_113] : memref<488x128xf32, #tpu.memory_space<vmem>>, vector<16x128xf32>
    tpu.vector_store %arg30[%c302, %c0_113], %174 {strides = array<i32>} : memref<488x128xf32, #tpu.memory_space<vmem>>, vector<16x128xf32>,
    %176 = vector.extract_strided_slice %147 {offsets = [252, 0], sizes = [16, 128], strides = [1, 1]} : vector<328x128xf32> to vector<16x128xf32>
    %c322 = arith.constant 322 : index
    %c0_114 = arith.constant 0 : index
    %177 = vector.load %arg30[%c322, %c0_114] : memref<488x128xf32, #tpu.memory_space<vmem>>, vector<16x128xf32>
    tpu.vector_store %arg30[%c322, %c0_114], %176 {strides = array<i32>} : memref<488x128xf32, #tpu.memory_space<vmem>>, vector<16x128xf32>,
    %178 = vector.extract_strided_slice %147 {offsets = [270, 0], sizes = [16, 128], strides = [1, 1]} : vector<328x128xf32> to vector<16x128xf32>
    %c342 = arith.constant 342 : index
    %c0_115 = arith.constant 0 : index
    %179 = vector.load %arg30[%c342, %c0_115] : memref<488x128xf32, #tpu.memory_space<vmem>>, vector<16x128xf32>
    tpu.vector_store %arg30[%c342, %c0_115], %178 {strides = array<i32>} : memref<488x128xf32, #tpu.memory_space<vmem>>, vector<16x128xf32>,
    %c0_116 = arith.constant 0 : index
    %c0_117 = arith.constant 0 : index
    %180 = vector.load %arg30[%c0_116, %c0_117] : memref<488x128xf32, #tpu.memory_space<vmem>>, vector<400x128xf32>
    %c0_118 = arith.constant 0 : index
    %c0_119 = arith.constant 0 : index
    %181 = vector.load %arg8[%c0_118, %c0_119] : memref<25x128xf32, #tpu.memory_space<vmem>>, vector<1x128xf32>
    %182 = vector.broadcast %181 : vector<1x128xf32> to vector<400x128xf32>
    %183 = arith.mulf %180, %182 : vector<400x128xf32>
    %c1_120 = arith.constant 1 : index
    %c0_121 = arith.constant 0 : index
    %184 = vector.load %arg30[%c1_120, %c0_121] : memref<488x128xf32, #tpu.memory_space<vmem>>, vector<400x128xf32>
    %c1_122 = arith.constant 1 : index
    %c0_123 = arith.constant 0 : index
    %185 = vector.load %arg8[%c1_122, %c0_123] : memref<25x128xf32, #tpu.memory_space<vmem>>, vector<1x128xf32>
    %186 = vector.broadcast %185 : vector<1x128xf32> to vector<400x128xf32>
    %187 = arith.mulf %184, %186 : vector<400x128xf32>
    %188 = arith.addf %183, %187 : vector<400x128xf32>
    %c2_124 = arith.constant 2 : index
    %c0_125 = arith.constant 0 : index
    %189 = vector.load %arg30[%c2_124, %c0_125] : memref<488x128xf32, #tpu.memory_space<vmem>>, vector<400x128xf32>
    %c2_126 = arith.constant 2 : index
    %c0_127 = arith.constant 0 : index
    %190 = vector.load %arg8[%c2_126, %c0_127] : memref<25x128xf32, #tpu.memory_space<vmem>>, vector<1x128xf32>
    %191 = vector.broadcast %190 : vector<1x128xf32> to vector<400x128xf32>
    %192 = arith.mulf %189, %191 : vector<400x128xf32>
    %193 = arith.addf %188, %192 : vector<400x128xf32>
    %c3_128 = arith.constant 3 : index
    %c0_129 = arith.constant 0 : index
    %194 = vector.load %arg30[%c3_128, %c0_129] : memref<488x128xf32, #tpu.memory_space<vmem>>, vector<400x128xf32>
    %c3_130 = arith.constant 3 : index
    %c0_131 = arith.constant 0 : index
    %195 = vector.load %arg8[%c3_130, %c0_131] : memref<25x128xf32, #tpu.memory_space<vmem>>, vector<1x128xf32>
    %196 = vector.broadcast %195 : vector<1x128xf32> to vector<400x128xf32>
    %197 = arith.mulf %194, %196 : vector<400x128xf32>
    %198 = arith.addf %193, %197 : vector<400x128xf32>
    %c4_132 = arith.constant 4 : index
    %c0_133 = arith.constant 0 : index
    %199 = vector.load %arg30[%c4_132, %c0_133] : memref<488x128xf32, #tpu.memory_space<vmem>>, vector<400x128xf32>
    %c4_134 = arith.constant 4 : index
    %c0_135 = arith.constant 0 : index
    %200 = vector.load %arg8[%c4_134, %c0_135] : memref<25x128xf32, #tpu.memory_space<vmem>>, vector<1x128xf32>
    %201 = vector.broadcast %200 : vector<1x128xf32> to vector<400x128xf32>
    %202 = arith.mulf %199, %201 : vector<400x128xf32>
    %203 = arith.addf %198, %202 : vector<400x128xf32>
    %c20_136 = arith.constant 20 : index
    %c0_137 = arith.constant 0 : index
    %204 = vector.load %arg30[%c20_136, %c0_137] : memref<488x128xf32, #tpu.memory_space<vmem>>, vector<400x128xf32>
    %c5_138 = arith.constant 5 : index
    %c0_139 = arith.constant 0 : index
    %205 = vector.load %arg8[%c5_138, %c0_139] : memref<25x128xf32, #tpu.memory_space<vmem>>, vector<1x128xf32>
    %206 = vector.broadcast %205 : vector<1x128xf32> to vector<400x128xf32>
    %207 = arith.mulf %204, %206 : vector<400x128xf32>
    %208 = arith.addf %203, %207 : vector<400x128xf32>
    %c21 = arith.constant 21 : index
    %c0_140 = arith.constant 0 : index
    %209 = vector.load %arg30[%c21, %c0_140] : memref<488x128xf32, #tpu.memory_space<vmem>>, vector<400x128xf32>
    %c6_141 = arith.constant 6 : index
    %c0_142 = arith.constant 0 : index
    %210 = vector.load %arg8[%c6_141, %c0_142] : memref<25x128xf32, #tpu.memory_space<vmem>>, vector<1x128xf32>
    %211 = vector.broadcast %210 : vector<1x128xf32> to vector<400x128xf32>
    %212 = arith.mulf %209, %211 : vector<400x128xf32>
    %213 = arith.addf %208, %212 : vector<400x128xf32>
    %c22 = arith.constant 22 : index
    %c0_143 = arith.constant 0 : index
    %214 = vector.load %arg30[%c22, %c0_143] : memref<488x128xf32, #tpu.memory_space<vmem>>, vector<400x128xf32>
    %c7_144 = arith.constant 7 : index
    %c0_145 = arith.constant 0 : index
    %215 = vector.load %arg8[%c7_144, %c0_145] : memref<25x128xf32, #tpu.memory_space<vmem>>, vector<1x128xf32>
    %216 = vector.broadcast %215 : vector<1x128xf32> to vector<400x128xf32>
    %217 = arith.mulf %214, %216 : vector<400x128xf32>
    %218 = arith.addf %213, %217 : vector<400x128xf32>
    %c23 = arith.constant 23 : index
    %c0_146 = arith.constant 0 : index
    %219 = vector.load %arg30[%c23, %c0_146] : memref<488x128xf32, #tpu.memory_space<vmem>>, vector<400x128xf32>
    %c8_147 = arith.constant 8 : index
    %c0_148 = arith.constant 0 : index
    %220 = vector.load %arg8[%c8_147, %c0_148] : memref<25x128xf32, #tpu.memory_space<vmem>>, vector<1x128xf32>
    %221 = vector.broadcast %220 : vector<1x128xf32> to vector<400x128xf32>
    %222 = arith.mulf %219, %221 : vector<400x128xf32>
    %223 = arith.addf %218, %222 : vector<400x128xf32>
    %c24 = arith.constant 24 : index
    %c0_149 = arith.constant 0 : index
    %224 = vector.load %arg30[%c24, %c0_149] : memref<488x128xf32, #tpu.memory_space<vmem>>, vector<400x128xf32>
    %c9 = arith.constant 9 : index
    %c0_150 = arith.constant 0 : index
    %225 = vector.load %arg8[%c9, %c0_150] : memref<25x128xf32, #tpu.memory_space<vmem>>, vector<1x128xf32>
    %226 = vector.broadcast %225 : vector<1x128xf32> to vector<400x128xf32>
    %227 = arith.mulf %224, %226 : vector<400x128xf32>
    %228 = arith.addf %223, %227 : vector<400x128xf32>
    %c40 = arith.constant 40 : index
    %c0_151 = arith.constant 0 : index
    %229 = vector.load %arg30[%c40, %c0_151] : memref<488x128xf32, #tpu.memory_space<vmem>>, vector<400x128xf32>
    %c10 = arith.constant 10 : index
    %c0_152 = arith.constant 0 : index
    %230 = vector.load %arg8[%c10, %c0_152] : memref<25x128xf32, #tpu.memory_space<vmem>>, vector<1x128xf32>
    %231 = vector.broadcast %230 : vector<1x128xf32> to vector<400x128xf32>
    %232 = arith.mulf %229, %231 : vector<400x128xf32>
    %233 = arith.addf %228, %232 : vector<400x128xf32>
    %c41 = arith.constant 41 : index
    %c0_153 = arith.constant 0 : index
    %234 = vector.load %arg30[%c41, %c0_153] : memref<488x128xf32, #tpu.memory_space<vmem>>, vector<400x128xf32>
    %c11 = arith.constant 11 : index
    %c0_154 = arith.constant 0 : index
    %235 = vector.load %arg8[%c11, %c0_154] : memref<25x128xf32, #tpu.memory_space<vmem>>, vector<1x128xf32>
    %236 = vector.broadcast %235 : vector<1x128xf32> to vector<400x128xf32>
    %237 = arith.mulf %234, %236 : vector<400x128xf32>
    %238 = arith.addf %233, %237 : vector<400x128xf32>
    %c42_155 = arith.constant 42 : index
    %c0_156 = arith.constant 0 : index
    %239 = vector.load %arg30[%c42_155, %c0_156] : memref<488x128xf32, #tpu.memory_space<vmem>>, vector<400x128xf32>
    %c12 = arith.constant 12 : index
    %c0_157 = arith.constant 0 : index
    %240 = vector.load %arg8[%c12, %c0_157] : memref<25x128xf32, #tpu.memory_space<vmem>>, vector<1x128xf32>
    %241 = vector.broadcast %240 : vector<1x128xf32> to vector<400x128xf32>
    %242 = arith.mulf %239, %241 : vector<400x128xf32>
    %243 = arith.addf %238, %242 : vector<400x128xf32>
    %c43 = arith.constant 43 : index
    %c0_158 = arith.constant 0 : index
    %244 = vector.load %arg30[%c43, %c0_158] : memref<488x128xf32, #tpu.memory_space<vmem>>, vector<400x128xf32>
    %c13 = arith.constant 13 : index
    %c0_159 = arith.constant 0 : index
    %245 = vector.load %arg8[%c13, %c0_159] : memref<25x128xf32, #tpu.memory_space<vmem>>, vector<1x128xf32>
    %246 = vector.broadcast %245 : vector<1x128xf32> to vector<400x128xf32>
    %247 = arith.mulf %244, %246 : vector<400x128xf32>
    %248 = arith.addf %243, %247 : vector<400x128xf32>
    %c44 = arith.constant 44 : index
    %c0_160 = arith.constant 0 : index
    %249 = vector.load %arg30[%c44, %c0_160] : memref<488x128xf32, #tpu.memory_space<vmem>>, vector<400x128xf32>
    %c14 = arith.constant 14 : index
    %c0_161 = arith.constant 0 : index
    %250 = vector.load %arg8[%c14, %c0_161] : memref<25x128xf32, #tpu.memory_space<vmem>>, vector<1x128xf32>
    %251 = vector.broadcast %250 : vector<1x128xf32> to vector<400x128xf32>
    %252 = arith.mulf %249, %251 : vector<400x128xf32>
    %253 = arith.addf %248, %252 : vector<400x128xf32>
    %c60 = arith.constant 60 : index
    %c0_162 = arith.constant 0 : index
    %254 = vector.load %arg30[%c60, %c0_162] : memref<488x128xf32, #tpu.memory_space<vmem>>, vector<400x128xf32>
    %c15 = arith.constant 15 : index
    %c0_163 = arith.constant 0 : index
    %255 = vector.load %arg8[%c15, %c0_163] : memref<25x128xf32, #tpu.memory_space<vmem>>, vector<1x128xf32>
    %256 = vector.broadcast %255 : vector<1x128xf32> to vector<400x128xf32>
    %257 = arith.mulf %254, %256 : vector<400x128xf32>
    %258 = arith.addf %253, %257 : vector<400x128xf32>
    %c61 = arith.constant 61 : index
    %c0_164 = arith.constant 0 : index
    %259 = vector.load %arg30[%c61, %c0_164] : memref<488x128xf32, #tpu.memory_space<vmem>>, vector<400x128xf32>
    %c16 = arith.constant 16 : index
    %c0_165 = arith.constant 0 : index
    %260 = vector.load %arg8[%c16, %c0_165] : memref<25x128xf32, #tpu.memory_space<vmem>>, vector<1x128xf32>
    %261 = vector.broadcast %260 : vector<1x128xf32> to vector<400x128xf32>
    %262 = arith.mulf %259, %261 : vector<400x128xf32>
    %263 = arith.addf %258, %262 : vector<400x128xf32>
    %c62_166 = arith.constant 62 : index
    %c0_167 = arith.constant 0 : index
    %264 = vector.load %arg30[%c62_166, %c0_167] : memref<488x128xf32, #tpu.memory_space<vmem>>, vector<400x128xf32>
    %c17 = arith.constant 17 : index
    %c0_168 = arith.constant 0 : index
    %265 = vector.load %arg8[%c17, %c0_168] : memref<25x128xf32, #tpu.memory_space<vmem>>, vector<1x128xf32>
    %266 = vector.broadcast %265 : vector<1x128xf32> to vector<400x128xf32>
    %267 = arith.mulf %264, %266 : vector<400x128xf32>
    %268 = arith.addf %263, %267 : vector<400x128xf32>
    %c63 = arith.constant 63 : index
    %c0_169 = arith.constant 0 : index
    %269 = vector.load %arg30[%c63, %c0_169] : memref<488x128xf32, #tpu.memory_space<vmem>>, vector<400x128xf32>
    %c18_170 = arith.constant 18 : index
    %c0_171 = arith.constant 0 : index
    %270 = vector.load %arg8[%c18_170, %c0_171] : memref<25x128xf32, #tpu.memory_space<vmem>>, vector<1x128xf32>
    %271 = vector.broadcast %270 : vector<1x128xf32> to vector<400x128xf32>
    %272 = arith.mulf %269, %271 : vector<400x128xf32>
    %273 = arith.addf %268, %272 : vector<400x128xf32>
    %c64 = arith.constant 64 : index
    %c0_172 = arith.constant 0 : index
    %274 = vector.load %arg30[%c64, %c0_172] : memref<488x128xf32, #tpu.memory_space<vmem>>, vector<400x128xf32>
    %c19_173 = arith.constant 19 : index
    %c0_174 = arith.constant 0 : index
    %275 = vector.load %arg8[%c19_173, %c0_174] : memref<25x128xf32, #tpu.memory_space<vmem>>, vector<1x128xf32>
    %276 = vector.broadcast %275 : vector<1x128xf32> to vector<400x128xf32>
    %277 = arith.mulf %274, %276 : vector<400x128xf32>
    %278 = arith.addf %273, %277 : vector<400x128xf32>
    %c80 = arith.constant 80 : index
    %c0_175 = arith.constant 0 : index
    %279 = vector.load %arg30[%c80, %c0_175] : memref<488x128xf32, #tpu.memory_space<vmem>>, vector<400x128xf32>
    %c20_176 = arith.constant 20 : index
    %c0_177 = arith.constant 0 : index
    %280 = vector.load %arg8[%c20_176, %c0_177] : memref<25x128xf32, #tpu.memory_space<vmem>>, vector<1x128xf32>
    %281 = vector.broadcast %280 : vector<1x128xf32> to vector<400x128xf32>
    %282 = arith.mulf %279, %281 : vector<400x128xf32>
    %283 = arith.addf %278, %282 : vector<400x128xf32>
    %c81 = arith.constant 81 : index
    %c0_178 = arith.constant 0 : index
    %284 = vector.load %arg30[%c81, %c0_178] : memref<488x128xf32, #tpu.memory_space<vmem>>, vector<400x128xf32>
    %c21_179 = arith.constant 21 : index
    %c0_180 = arith.constant 0 : index
    %285 = vector.load %arg8[%c21_179, %c0_180] : memref<25x128xf32, #tpu.memory_space<vmem>>, vector<1x128xf32>
    %286 = vector.broadcast %285 : vector<1x128xf32> to vector<400x128xf32>
    %287 = arith.mulf %284, %286 : vector<400x128xf32>
    %288 = arith.addf %283, %287 : vector<400x128xf32>
    %c82_181 = arith.constant 82 : index
    %c0_182 = arith.constant 0 : index
    %289 = vector.load %arg30[%c82_181, %c0_182] : memref<488x128xf32, #tpu.memory_space<vmem>>, vector<400x128xf32>
    %c22_183 = arith.constant 22 : index
    %c0_184 = arith.constant 0 : index
    %290 = vector.load %arg8[%c22_183, %c0_184] : memref<25x128xf32, #tpu.memory_space<vmem>>, vector<1x128xf32>
    %291 = vector.broadcast %290 : vector<1x128xf32> to vector<400x128xf32>
    %292 = arith.mulf %289, %291 : vector<400x128xf32>
    %293 = arith.addf %288, %292 : vector<400x128xf32>
    %c83 = arith.constant 83 : index
    %c0_185 = arith.constant 0 : index
    %294 = vector.load %arg30[%c83, %c0_185] : memref<488x128xf32, #tpu.memory_space<vmem>>, vector<400x128xf32>
    %c23_186 = arith.constant 23 : index
    %c0_187 = arith.constant 0 : index
    %295 = vector.load %arg8[%c23_186, %c0_187] : memref<25x128xf32, #tpu.memory_space<vmem>>, vector<1x128xf32>
    %296 = vector.broadcast %295 : vector<1x128xf32> to vector<400x128xf32>
    %297 = arith.mulf %294, %296 : vector<400x128xf32>
    %298 = arith.addf %293, %297 : vector<400x128xf32>
    %c84 = arith.constant 84 : index
    %c0_188 = arith.constant 0 : index
    %299 = vector.load %arg30[%c84, %c0_188] : memref<488x128xf32, #tpu.memory_space<vmem>>, vector<400x128xf32>
    %c24_189 = arith.constant 24 : index
    %c0_190 = arith.constant 0 : index
    %300 = vector.load %arg8[%c24_189, %c0_190] : memref<25x128xf32, #tpu.memory_space<vmem>>, vector<1x128xf32>
    %301 = vector.broadcast %300 : vector<1x128xf32> to vector<400x128xf32>
    %302 = arith.mulf %299, %301 : vector<400x128xf32>
    %303 = arith.addf %298, %302 : vector<400x128xf32>
    %c0_191 = arith.constant 0 : index
    %c0_192 = arith.constant 0 : index
    %304 = vector.load %arg33[%c0_191, %c0_192] : memref<400x128xf32, #tpu.memory_space<vmem>>, vector<400x128xf32>
    tpu.vector_store %arg33[%c0_191, %c0_192], %303 {strides = array<i32>} : memref<400x128xf32, #tpu.memory_space<vmem>>, vector<400x128xf32>,
    %c0_193 = arith.constant 0 : index
    %c0_194 = arith.constant 0 : index
    %305 = tpu.strided_load %arg33[%c0_193, %c0_194] {strides = array<i32: 2, 1>} : memref<400x128xf32, #tpu.memory_space<vmem>>, vector<8x128xf32>
    %c40_195 = arith.constant 40 : index
    %c0_196 = arith.constant 0 : index
    %306 = tpu.strided_load %arg33[%c40_195, %c0_196] {strides = array<i32: 2, 1>} : memref<400x128xf32, #tpu.memory_space<vmem>>, vector<8x128xf32>
    %c80_197 = arith.constant 80 : index
    %c0_198 = arith.constant 0 : index
    %307 = tpu.strided_load %arg33[%c80_197, %c0_198] {strides = array<i32: 2, 1>} : memref<400x128xf32, #tpu.memory_space<vmem>>, vector<8x128xf32>
    %c120 = arith.constant 120 : index
    %c0_199 = arith.constant 0 : index
    %308 = tpu.strided_load %arg33[%c120, %c0_199] {strides = array<i32: 2, 1>} : memref<400x128xf32, #tpu.memory_space<vmem>>, vector<8x128xf32>
    %c160 = arith.constant 160 : index
    %c0_200 = arith.constant 0 : index
    %309 = tpu.strided_load %arg33[%c160, %c0_200] {strides = array<i32: 2, 1>} : memref<400x128xf32, #tpu.memory_space<vmem>>, vector<8x128xf32>
    %c200 = arith.constant 200 : index
    %c0_201 = arith.constant 0 : index
    %310 = tpu.strided_load %arg33[%c200, %c0_201] {strides = array<i32: 2, 1>} : memref<400x128xf32, #tpu.memory_space<vmem>>, vector<8x128xf32>
    %c240 = arith.constant 240 : index
    %c0_202 = arith.constant 0 : index
    %311 = tpu.strided_load %arg33[%c240, %c0_202] {strides = array<i32: 2, 1>} : memref<400x128xf32, #tpu.memory_space<vmem>>, vector<8x128xf32>
    %c280 = arith.constant 280 : index
    %c0_203 = arith.constant 0 : index
    %312 = tpu.strided_load %arg33[%c280, %c0_203] {strides = array<i32: 2, 1>} : memref<400x128xf32, #tpu.memory_space<vmem>>, vector<8x128xf32>
    %313 = tpu.concatenate %305, %306, %307, %308, %309, %310, %311, %312 in 0 : vector<8x128xf32>, vector<8x128xf32>, vector<8x128xf32>, vector<8x128xf32>, vector<8x128xf32>, vector<8x128xf32>, vector<8x128xf32>, vector<8x128xf32> -> vector<64x128xf32>
    %314 = arith.truncf %313 : vector<64x128xf32> to vector<64x128xbf16>
    %c0_204 = arith.constant 0 : index
    %c0_205 = arith.constant 0 : index
    %315 = vector.load %arg9[%c0_204, %c0_205] : memref<128x128xbf16, #tpu.memory_space<vmem>>, vector<128x128xbf16>
    %cst_206 = arith.constant dense<0.000000e+00> : vector<64x128xf32>
    %316 = tpu.matmul %314, %315, %cst_206 {dimension_numbers = #tpu.dot_dimension_numbers<[1], [0], [0], [1], [0, 0, 1, 1], [], []>} : vector<64x128xbf16>, vector<128x128xbf16>, vector<64x128xf32> -> vector<64x128xf32>
    %c0_207 = arith.constant 0 : index
    %c0_208 = arith.constant 0 : index
    %317 = vector.load %arg10[%c0_207, %c0_208] : memref<1x128xf32, #tpu.memory_space<vmem>>, vector<1x128xf32>
    %318 = vector.broadcast %317 : vector<1x128xf32> to vector<64x128xf32>
    %319 = arith.addf %316, %318 : vector<64x128xf32>
    %cst_209 = arith.constant 0.000000e+00 : f32
    %cst_210 = arith.constant 6.000000e+00 : f32
    %320 = vector.broadcast %cst_209 : f32 to vector<64x128xf32>
    %321 = arith.maximumf %320, %319 : vector<64x128xf32>
    %322 = vector.broadcast %cst_210 : f32 to vector<64x128xf32>
    %323 = arith.minimumf %322, %321 : vector<64x128xf32>
    %324 = vector.extract_strided_slice %323 {offsets = [0, 0], sizes = [8, 128], strides = [1, 1]} : vector<64x128xf32> to vector<8x128xf32>
    %c26 = arith.constant 26 : index
    %c0_211 = arith.constant 0 : index
    %325 = vector.load %arg31[%c26, %c0_211] : memref<200x128xf32, #tpu.memory_space<vmem>>, vector<8x128xf32>
    tpu.vector_store %arg31[%c26, %c0_211], %324 {strides = array<i32>} : memref<200x128xf32, #tpu.memory_space<vmem>>, vector<8x128xf32>,
    %326 = vector.extract_strided_slice %323 {offsets = [8, 0], sizes = [8, 128], strides = [1, 1]} : vector<64x128xf32> to vector<8x128xf32>
    %c38_212 = arith.constant 38 : index
    %c0_213 = arith.constant 0 : index
    %327 = vector.load %arg31[%c38_212, %c0_213] : memref<200x128xf32, #tpu.memory_space<vmem>>, vector<8x128xf32>
    tpu.vector_store %arg31[%c38_212, %c0_213], %326 {strides = array<i32>} : memref<200x128xf32, #tpu.memory_space<vmem>>, vector<8x128xf32>,
    %328 = vector.extract_strided_slice %323 {offsets = [16, 0], sizes = [8, 128], strides = [1, 1]} : vector<64x128xf32> to vector<8x128xf32>
    %c50 = arith.constant 50 : index
    %c0_214 = arith.constant 0 : index
    %329 = vector.load %arg31[%c50, %c0_214] : memref<200x128xf32, #tpu.memory_space<vmem>>, vector<8x128xf32>
    tpu.vector_store %arg31[%c50, %c0_214], %328 {strides = array<i32>} : memref<200x128xf32, #tpu.memory_space<vmem>>, vector<8x128xf32>,
    %330 = vector.extract_strided_slice %323 {offsets = [24, 0], sizes = [8, 128], strides = [1, 1]} : vector<64x128xf32> to vector<8x128xf32>
    %c62_215 = arith.constant 62 : index
    %c0_216 = arith.constant 0 : index
    %331 = vector.load %arg31[%c62_215, %c0_216] : memref<200x128xf32, #tpu.memory_space<vmem>>, vector<8x128xf32>
    tpu.vector_store %arg31[%c62_215, %c0_216], %330 {strides = array<i32>} : memref<200x128xf32, #tpu.memory_space<vmem>>, vector<8x128xf32>,
    %332 = vector.extract_strided_slice %323 {offsets = [32, 0], sizes = [8, 128], strides = [1, 1]} : vector<64x128xf32> to vector<8x128xf32>
    %c74 = arith.constant 74 : index
    %c0_217 = arith.constant 0 : index
    %333 = vector.load %arg31[%c74, %c0_217] : memref<200x128xf32, #tpu.memory_space<vmem>>, vector<8x128xf32>
    tpu.vector_store %arg31[%c74, %c0_217], %332 {strides = array<i32>} : memref<200x128xf32, #tpu.memory_space<vmem>>, vector<8x128xf32>,
    %334 = vector.extract_strided_slice %323 {offsets = [40, 0], sizes = [8, 128], strides = [1, 1]} : vector<64x128xf32> to vector<8x128xf32>
    %c86 = arith.constant 86 : index
    %c0_218 = arith.constant 0 : index
    %335 = vector.load %arg31[%c86, %c0_218] : memref<200x128xf32, #tpu.memory_space<vmem>>, vector<8x128xf32>
    tpu.vector_store %arg31[%c86, %c0_218], %334 {strides = array<i32>} : memref<200x128xf32, #tpu.memory_space<vmem>>, vector<8x128xf32>,
    %336 = vector.extract_strided_slice %323 {offsets = [48, 0], sizes = [8, 128], strides = [1, 1]} : vector<64x128xf32> to vector<8x128xf32>
    %c98 = arith.constant 98 : index
    %c0_219 = arith.constant 0 : index
    %337 = vector.load %arg31[%c98, %c0_219] : memref<200x128xf32, #tpu.memory_space<vmem>>, vector<8x128xf32>
    tpu.vector_store %arg31[%c98, %c0_219], %336 {strides = array<i32>} : memref<200x128xf32, #tpu.memory_space<vmem>>, vector<8x128xf32>,
    %338 = vector.extract_strided_slice %323 {offsets = [56, 0], sizes = [8, 128], strides = [1, 1]} : vector<64x128xf32> to vector<8x128xf32>
    %c110 = arith.constant 110 : index
    %c0_220 = arith.constant 0 : index
    %339 = vector.load %arg31[%c110, %c0_220] : memref<200x128xf32, #tpu.memory_space<vmem>>, vector<8x128xf32>
    tpu.vector_store %arg31[%c110, %c0_220], %338 {strides = array<i32>} : memref<200x128xf32, #tpu.memory_space<vmem>>, vector<8x128xf32>,
    %c0_221 = arith.constant 0 : index
    %c0_222 = arith.constant 0 : index
    %340 = vector.load %arg31[%c0_221, %c0_222] : memref<200x128xf32, #tpu.memory_space<vmem>>, vector<144x128xf32>
    %c0_223 = arith.constant 0 : index
    %c0_224 = arith.constant 0 : index
    %341 = vector.load %arg11[%c0_223, %c0_224] : memref<25x128xf32, #tpu.memory_space<vmem>>, vector<1x128xf32>
    %342 = vector.broadcast %341 : vector<1x128xf32> to vector<144x128xf32>
    %343 = arith.mulf %340, %342 : vector<144x128xf32>
    %c1_225 = arith.constant 1 : index
    %c0_226 = arith.constant 0 : index
    %344 = vector.load %arg31[%c1_225, %c0_226] : memref<200x128xf32, #tpu.memory_space<vmem>>, vector<144x128xf32>
    %c1_227 = arith.constant 1 : index
    %c0_228 = arith.constant 0 : index
    %345 = vector.load %arg11[%c1_227, %c0_228] : memref<25x128xf32, #tpu.memory_space<vmem>>, vector<1x128xf32>
    %346 = vector.broadcast %345 : vector<1x128xf32> to vector<144x128xf32>
    %347 = arith.mulf %344, %346 : vector<144x128xf32>
    %348 = arith.addf %343, %347 : vector<144x128xf32>
    %c2_229 = arith.constant 2 : index
    %c0_230 = arith.constant 0 : index
    %349 = vector.load %arg31[%c2_229, %c0_230] : memref<200x128xf32, #tpu.memory_space<vmem>>, vector<144x128xf32>
    %c2_231 = arith.constant 2 : index
    %c0_232 = arith.constant 0 : index
    %350 = vector.load %arg11[%c2_231, %c0_232] : memref<25x128xf32, #tpu.memory_space<vmem>>, vector<1x128xf32>
    %351 = vector.broadcast %350 : vector<1x128xf32> to vector<144x128xf32>
    %352 = arith.mulf %349, %351 : vector<144x128xf32>
    %353 = arith.addf %348, %352 : vector<144x128xf32>
    %c3_233 = arith.constant 3 : index
    %c0_234 = arith.constant 0 : index
    %354 = vector.load %arg31[%c3_233, %c0_234] : memref<200x128xf32, #tpu.memory_space<vmem>>, vector<144x128xf32>
    %c3_235 = arith.constant 3 : index
    %c0_236 = arith.constant 0 : index
    %355 = vector.load %arg11[%c3_235, %c0_236] : memref<25x128xf32, #tpu.memory_space<vmem>>, vector<1x128xf32>
    %356 = vector.broadcast %355 : vector<1x128xf32> to vector<144x128xf32>
    %357 = arith.mulf %354, %356 : vector<144x128xf32>
    %358 = arith.addf %353, %357 : vector<144x128xf32>
    %c4_237 = arith.constant 4 : index
    %c0_238 = arith.constant 0 : index
    %359 = vector.load %arg31[%c4_237, %c0_238] : memref<200x128xf32, #tpu.memory_space<vmem>>, vector<144x128xf32>
    %c4_239 = arith.constant 4 : index
    %c0_240 = arith.constant 0 : index
    %360 = vector.load %arg11[%c4_239, %c0_240] : memref<25x128xf32, #tpu.memory_space<vmem>>, vector<1x128xf32>
    %361 = vector.broadcast %360 : vector<1x128xf32> to vector<144x128xf32>
    %362 = arith.mulf %359, %361 : vector<144x128xf32>
    %363 = arith.addf %358, %362 : vector<144x128xf32>
    %c12_241 = arith.constant 12 : index
    %c0_242 = arith.constant 0 : index
    %364 = vector.load %arg31[%c12_241, %c0_242] : memref<200x128xf32, #tpu.memory_space<vmem>>, vector<144x128xf32>
    %c5_243 = arith.constant 5 : index
    %c0_244 = arith.constant 0 : index
    %365 = vector.load %arg11[%c5_243, %c0_244] : memref<25x128xf32, #tpu.memory_space<vmem>>, vector<1x128xf32>
    %366 = vector.broadcast %365 : vector<1x128xf32> to vector<144x128xf32>
    %367 = arith.mulf %364, %366 : vector<144x128xf32>
    %368 = arith.addf %363, %367 : vector<144x128xf32>
    %c13_245 = arith.constant 13 : index
    %c0_246 = arith.constant 0 : index
    %369 = vector.load %arg31[%c13_245, %c0_246] : memref<200x128xf32, #tpu.memory_space<vmem>>, vector<144x128xf32>
    %c6_247 = arith.constant 6 : index
    %c0_248 = arith.constant 0 : index
    %370 = vector.load %arg11[%c6_247, %c0_248] : memref<25x128xf32, #tpu.memory_space<vmem>>, vector<1x128xf32>
    %371 = vector.broadcast %370 : vector<1x128xf32> to vector<144x128xf32>
    %372 = arith.mulf %369, %371 : vector<144x128xf32>
    %373 = arith.addf %368, %372 : vector<144x128xf32>
    %c14_249 = arith.constant 14 : index
    %c0_250 = arith.constant 0 : index
    %374 = vector.load %arg31[%c14_249, %c0_250] : memref<200x128xf32, #tpu.memory_space<vmem>>, vector<144x128xf32>
    %c7_251 = arith.constant 7 : index
    %c0_252 = arith.constant 0 : index
    %375 = vector.load %arg11[%c7_251, %c0_252] : memref<25x128xf32, #tpu.memory_space<vmem>>, vector<1x128xf32>
    %376 = vector.broadcast %375 : vector<1x128xf32> to vector<144x128xf32>
    %377 = arith.mulf %374, %376 : vector<144x128xf32>
    %378 = arith.addf %373, %377 : vector<144x128xf32>
    %c15_253 = arith.constant 15 : index
    %c0_254 = arith.constant 0 : index
    %379 = vector.load %arg31[%c15_253, %c0_254] : memref<200x128xf32, #tpu.memory_space<vmem>>, vector<144x128xf32>
    %c8_255 = arith.constant 8 : index
    %c0_256 = arith.constant 0 : index
    %380 = vector.load %arg11[%c8_255, %c0_256] : memref<25x128xf32, #tpu.memory_space<vmem>>, vector<1x128xf32>
    %381 = vector.broadcast %380 : vector<1x128xf32> to vector<144x128xf32>
    %382 = arith.mulf %379, %381 : vector<144x128xf32>
    %383 = arith.addf %378, %382 : vector<144x128xf32>
    %c16_257 = arith.constant 16 : index
    %c0_258 = arith.constant 0 : index
    %384 = vector.load %arg31[%c16_257, %c0_258] : memref<200x128xf32, #tpu.memory_space<vmem>>, vector<144x128xf32>
    %c9_259 = arith.constant 9 : index
    %c0_260 = arith.constant 0 : index
    %385 = vector.load %arg11[%c9_259, %c0_260] : memref<25x128xf32, #tpu.memory_space<vmem>>, vector<1x128xf32>
    %386 = vector.broadcast %385 : vector<1x128xf32> to vector<144x128xf32>
    %387 = arith.mulf %384, %386 : vector<144x128xf32>
    %388 = arith.addf %383, %387 : vector<144x128xf32>
    %c24_261 = arith.constant 24 : index
    %c0_262 = arith.constant 0 : index
    %389 = vector.load %arg31[%c24_261, %c0_262] : memref<200x128xf32, #tpu.memory_space<vmem>>, vector<144x128xf32>
    %c10_263 = arith.constant 10 : index
    %c0_264 = arith.constant 0 : index
    %390 = vector.load %arg11[%c10_263, %c0_264] : memref<25x128xf32, #tpu.memory_space<vmem>>, vector<1x128xf32>
    %391 = vector.broadcast %390 : vector<1x128xf32> to vector<144x128xf32>
    %392 = arith.mulf %389, %391 : vector<144x128xf32>
    %393 = arith.addf %388, %392 : vector<144x128xf32>
    %c25 = arith.constant 25 : index
    %c0_265 = arith.constant 0 : index
    %394 = vector.load %arg31[%c25, %c0_265] : memref<200x128xf32, #tpu.memory_space<vmem>>, vector<144x128xf32>
    %c11_266 = arith.constant 11 : index
    %c0_267 = arith.constant 0 : index
    %395 = vector.load %arg11[%c11_266, %c0_267] : memref<25x128xf32, #tpu.memory_space<vmem>>, vector<1x128xf32>
    %396 = vector.broadcast %395 : vector<1x128xf32> to vector<144x128xf32>
    %397 = arith.mulf %394, %396 : vector<144x128xf32>
    %398 = arith.addf %393, %397 : vector<144x128xf32>
    %c26_268 = arith.constant 26 : index
    %c0_269 = arith.constant 0 : index
    %399 = vector.load %arg31[%c26_268, %c0_269] : memref<200x128xf32, #tpu.memory_space<vmem>>, vector<144x128xf32>
    %c12_270 = arith.constant 12 : index
    %c0_271 = arith.constant 0 : index
    %400 = vector.load %arg11[%c12_270, %c0_271] : memref<25x128xf32, #tpu.memory_space<vmem>>, vector<1x128xf32>
    %401 = vector.broadcast %400 : vector<1x128xf32> to vector<144x128xf32>
    %402 = arith.mulf %399, %401 : vector<144x128xf32>
    %403 = arith.addf %398, %402 : vector<144x128xf32>
    %c27 = arith.constant 27 : index
    %c0_272 = arith.constant 0 : index
    %404 = vector.load %arg31[%c27, %c0_272] : memref<200x128xf32, #tpu.memory_space<vmem>>, vector<144x128xf32>
    %c13_273 = arith.constant 13 : index
    %c0_274 = arith.constant 0 : index
    %405 = vector.load %arg11[%c13_273, %c0_274] : memref<25x128xf32, #tpu.memory_space<vmem>>, vector<1x128xf32>
    %406 = vector.broadcast %405 : vector<1x128xf32> to vector<144x128xf32>
    %407 = arith.mulf %404, %406 : vector<144x128xf32>
    %408 = arith.addf %403, %407 : vector<144x128xf32>
    %c28 = arith.constant 28 : index
    %c0_275 = arith.constant 0 : index
    %409 = vector.load %arg31[%c28, %c0_275] : memref<200x128xf32, #tpu.memory_space<vmem>>, vector<144x128xf32>
    %c14_276 = arith.constant 14 : index
    %c0_277 = arith.constant 0 : index
    %410 = vector.load %arg11[%c14_276, %c0_277] : memref<25x128xf32, #tpu.memory_space<vmem>>, vector<1x128xf32>
    %411 = vector.broadcast %410 : vector<1x128xf32> to vector<144x128xf32>
    %412 = arith.mulf %409, %411 : vector<144x128xf32>
    %413 = arith.addf %408, %412 : vector<144x128xf32>
    %c36_278 = arith.constant 36 : index
    %c0_279 = arith.constant 0 : index
    %414 = vector.load %arg31[%c36_278, %c0_279] : memref<200x128xf32, #tpu.memory_space<vmem>>, vector<144x128xf32>
    %c15_280 = arith.constant 15 : index
    %c0_281 = arith.constant 0 : index
    %415 = vector.load %arg11[%c15_280, %c0_281] : memref<25x128xf32, #tpu.memory_space<vmem>>, vector<1x128xf32>
    %416 = vector.broadcast %415 : vector<1x128xf32> to vector<144x128xf32>
    %417 = arith.mulf %414, %416 : vector<144x128xf32>
    %418 = arith.addf %413, %417 : vector<144x128xf32>
    %c37_282 = arith.constant 37 : index
    %c0_283 = arith.constant 0 : index
    %419 = vector.load %arg31[%c37_282, %c0_283] : memref<200x128xf32, #tpu.memory_space<vmem>>, vector<144x128xf32>
    %c16_284 = arith.constant 16 : index
    %c0_285 = arith.constant 0 : index
    %420 = vector.load %arg11[%c16_284, %c0_285] : memref<25x128xf32, #tpu.memory_space<vmem>>, vector<1x128xf32>
    %421 = vector.broadcast %420 : vector<1x128xf32> to vector<144x128xf32>
    %422 = arith.mulf %419, %421 : vector<144x128xf32>
    %423 = arith.addf %418, %422 : vector<144x128xf32>
    %c38_286 = arith.constant 38 : index
    %c0_287 = arith.constant 0 : index
    %424 = vector.load %arg31[%c38_286, %c0_287] : memref<200x128xf32, #tpu.memory_space<vmem>>, vector<144x128xf32>
    %c17_288 = arith.constant 17 : index
    %c0_289 = arith.constant 0 : index
    %425 = vector.load %arg11[%c17_288, %c0_289] : memref<25x128xf32, #tpu.memory_space<vmem>>, vector<1x128xf32>
    %426 = vector.broadcast %425 : vector<1x128xf32> to vector<144x128xf32>
    %427 = arith.mulf %424, %426 : vector<144x128xf32>
    %428 = arith.addf %423, %427 : vector<144x128xf32>
    %c39 = arith.constant 39 : index
    %c0_290 = arith.constant 0 : index
    %429 = vector.load %arg31[%c39, %c0_290] : memref<200x128xf32, #tpu.memory_space<vmem>>, vector<144x128xf32>
    %c18_291 = arith.constant 18 : index
    %c0_292 = arith.constant 0 : index
    %430 = vector.load %arg11[%c18_291, %c0_292] : memref<25x128xf32, #tpu.memory_space<vmem>>, vector<1x128xf32>
    %431 = vector.broadcast %430 : vector<1x128xf32> to vector<144x128xf32>
    %432 = arith.mulf %429, %431 : vector<144x128xf32>
    %433 = arith.addf %428, %432 : vector<144x128xf32>
    %c40_293 = arith.constant 40 : index
    %c0_294 = arith.constant 0 : index
    %434 = vector.load %arg31[%c40_293, %c0_294] : memref<200x128xf32, #tpu.memory_space<vmem>>, vector<144x128xf32>
    %c19_295 = arith.constant 19 : index
    %c0_296 = arith.constant 0 : index
    %435 = vector.load %arg11[%c19_295, %c0_296] : memref<25x128xf32, #tpu.memory_space<vmem>>, vector<1x128xf32>
    %436 = vector.broadcast %435 : vector<1x128xf32> to vector<144x128xf32>
    %437 = arith.mulf %434, %436 : vector<144x128xf32>
    %438 = arith.addf %433, %437 : vector<144x128xf32>
    %c48 = arith.constant 48 : index
    %c0_297 = arith.constant 0 : index
    %439 = vector.load %arg31[%c48, %c0_297] : memref<200x128xf32, #tpu.memory_space<vmem>>, vector<144x128xf32>
    %c20_298 = arith.constant 20 : index
    %c0_299 = arith.constant 0 : index
    %440 = vector.load %arg11[%c20_298, %c0_299] : memref<25x128xf32, #tpu.memory_space<vmem>>, vector<1x128xf32>
    %441 = vector.broadcast %440 : vector<1x128xf32> to vector<144x128xf32>
    %442 = arith.mulf %439, %441 : vector<144x128xf32>
    %443 = arith.addf %438, %442 : vector<144x128xf32>
    %c49 = arith.constant 49 : index
    %c0_300 = arith.constant 0 : index
    %444 = vector.load %arg31[%c49, %c0_300] : memref<200x128xf32, #tpu.memory_space<vmem>>, vector<144x128xf32>
    %c21_301 = arith.constant 21 : index
    %c0_302 = arith.constant 0 : index
    %445 = vector.load %arg11[%c21_301, %c0_302] : memref<25x128xf32, #tpu.memory_space<vmem>>, vector<1x128xf32>
    %446 = vector.broadcast %445 : vector<1x128xf32> to vector<144x128xf32>
    %447 = arith.mulf %444, %446 : vector<144x128xf32>
    %448 = arith.addf %443, %447 : vector<144x128xf32>
    %c50_303 = arith.constant 50 : index
    %c0_304 = arith.constant 0 : index
    %449 = vector.load %arg31[%c50_303, %c0_304] : memref<200x128xf32, #tpu.memory_space<vmem>>, vector<144x128xf32>
    %c22_305 = arith.constant 22 : index
    %c0_306 = arith.constant 0 : index
    %450 = vector.load %arg11[%c22_305, %c0_306] : memref<25x128xf32, #tpu.memory_space<vmem>>, vector<1x128xf32>
    %451 = vector.broadcast %450 : vector<1x128xf32> to vector<144x128xf32>
    %452 = arith.mulf %449, %451 : vector<144x128xf32>
    %453 = arith.addf %448, %452 : vector<144x128xf32>
    %c51 = arith.constant 51 : index
    %c0_307 = arith.constant 0 : index
    %454 = vector.load %arg31[%c51, %c0_307] : memref<200x128xf32, #tpu.memory_space<vmem>>, vector<144x128xf32>
    %c23_308 = arith.constant 23 : index
    %c0_309 = arith.constant 0 : index
    %455 = vector.load %arg11[%c23_308, %c0_309] : memref<25x128xf32, #tpu.memory_space<vmem>>, vector<1x128xf32>
    %456 = vector.broadcast %455 : vector<1x128xf32> to vector<144x128xf32>
    %457 = arith.mulf %454, %456 : vector<144x128xf32>
    %458 = arith.addf %453, %457 : vector<144x128xf32>
    %c52 = arith.constant 52 : index
    %c0_310 = arith.constant 0 : index
    %459 = vector.load %arg31[%c52, %c0_310] : memref<200x128xf32, #tpu.memory_space<vmem>>, vector<144x128xf32>
    %c24_311 = arith.constant 24 : index
    %c0_312 = arith.constant 0 : index
    %460 = vector.load %arg11[%c24_311, %c0_312] : memref<25x128xf32, #tpu.memory_space<vmem>>, vector<1x128xf32>
    %461 = vector.broadcast %460 : vector<1x128xf32> to vector<144x128xf32>
    %462 = arith.mulf %459, %461 : vector<144x128xf32>
    %463 = arith.addf %458, %462 : vector<144x128xf32>
    %c0_313 = arith.constant 0 : index
    %c0_314 = arith.constant 0 : index
    %464 = vector.load %arg33[%c0_313, %c0_314] : memref<400x128xf32, #tpu.memory_space<vmem>>, vector<144x128xf32>
    tpu.vector_store %arg33[%c0_313, %c0_314], %463 {strides = array<i32>} : memref<400x128xf32, #tpu.memory_space<vmem>>, vector<144x128xf32>,
    %c0_315 = arith.constant 0 : index
    %c0_316 = arith.constant 0 : index
    %465 = tpu.strided_load %arg33[%c0_315, %c0_316] {strides = array<i32: 2, 1>} : memref<400x128xf32, #tpu.memory_space<vmem>>, vector<4x128xf32>
    %c24_317 = arith.constant 24 : index
    %c0_318 = arith.constant 0 : index
    %466 = tpu.strided_load %arg33[%c24_317, %c0_318] {strides = array<i32: 2, 1>} : memref<400x128xf32, #tpu.memory_space<vmem>>, vector<4x128xf32>
    %c48_319 = arith.constant 48 : index
    %c0_320 = arith.constant 0 : index
    %467 = tpu.strided_load %arg33[%c48_319, %c0_320] {strides = array<i32: 2, 1>} : memref<400x128xf32, #tpu.memory_space<vmem>>, vector<4x128xf32>
    %c72 = arith.constant 72 : index
    %c0_321 = arith.constant 0 : index
    %468 = tpu.strided_load %arg33[%c72, %c0_321] {strides = array<i32: 2, 1>} : memref<400x128xf32, #tpu.memory_space<vmem>>, vector<4x128xf32>
    %469 = tpu.concatenate %465, %466, %467, %468 in 0 : vector<4x128xf32>, vector<4x128xf32>, vector<4x128xf32>, vector<4x128xf32> -> vector<16x128xf32>
    %470 = arith.truncf %469 : vector<16x128xf32> to vector<16x128xbf16>
    %c0_322 = arith.constant 0 : index
    %c0_323 = arith.constant 0 : index
    %471 = vector.load %arg12[%c0_322, %c0_323] : memref<128x128xbf16, #tpu.memory_space<vmem>>, vector<128x128xbf16>
    %cst_324 = arith.constant dense<0.000000e+00> : vector<16x128xf32>
    %472 = tpu.matmul %470, %471, %cst_324 {dimension_numbers = #tpu.dot_dimension_numbers<[1], [0], [0], [1], [0, 0, 1, 1], [], []>} : vector<16x128xbf16>, vector<128x128xbf16>, vector<16x128xf32> -> vector<16x128xf32>
    %c0_325 = arith.constant 0 : index
    %c0_326 = arith.constant 0 : index
    %473 = vector.load %arg13[%c0_325, %c0_326] : memref<1x128xf32, #tpu.memory_space<vmem>>, vector<1x128xf32>
    %474 = vector.broadcast %473 : vector<1x128xf32> to vector<16x128xf32>
    %475 = arith.addf %472, %474 : vector<16x128xf32>
    %cst_327 = arith.constant 0.000000e+00 : f32
    %cst_328 = arith.constant 6.000000e+00 : f32
    %476 = vector.broadcast %cst_327 : f32 to vector<16x128xf32>
    %477 = arith.maximumf %476, %475 : vector<16x128xf32>
    %478 = vector.broadcast %cst_328 : f32 to vector<16x128xf32>
    %479 = arith.minimumf %478, %477 : vector<16x128xf32>
    %480 = vector.extract_strided_slice %479 {offsets = [0, 0], sizes = [4, 128], strides = [1, 1]} : vector<16x128xf32> to vector<4x128xf32>
    %c18_329 = arith.constant 18 : index
    %c0_330 = arith.constant 0 : index
    %481 = vector.load %arg32[%c18_329, %c0_330] : memref<104x128xf32, #tpu.memory_space<vmem>>, vector<4x128xf32>
    tpu.vector_store %arg32[%c18_329, %c0_330], %480 {strides = array<i32>} : memref<104x128xf32, #tpu.memory_space<vmem>>, vector<4x128xf32>,
    %482 = vector.extract_strided_slice %479 {offsets = [4, 0], sizes = [4, 128], strides = [1, 1]} : vector<16x128xf32> to vector<4x128xf32>
    %c26_331 = arith.constant 26 : index
    %c0_332 = arith.constant 0 : index
    %483 = vector.load %arg32[%c26_331, %c0_332] : memref<104x128xf32, #tpu.memory_space<vmem>>, vector<4x128xf32>
    tpu.vector_store %arg32[%c26_331, %c0_332], %482 {strides = array<i32>} : memref<104x128xf32, #tpu.memory_space<vmem>>, vector<4x128xf32>,
    %484 = vector.extract_strided_slice %479 {offsets = [8, 0], sizes = [4, 128], strides = [1, 1]} : vector<16x128xf32> to vector<4x128xf32>
    %c34 = arith.constant 34 : index
    %c0_333 = arith.constant 0 : index
    %485 = vector.load %arg32[%c34, %c0_333] : memref<104x128xf32, #tpu.memory_space<vmem>>, vector<4x128xf32>
    tpu.vector_store %arg32[%c34, %c0_333], %484 {strides = array<i32>} : memref<104x128xf32, #tpu.memory_space<vmem>>, vector<4x128xf32>,
    %486 = vector.extract_strided_slice %479 {offsets = [12, 0], sizes = [4, 128], strides = [1, 1]} : vector<16x128xf32> to vector<4x128xf32>
    %c42_334 = arith.constant 42 : index
    %c0_335 = arith.constant 0 : index
    %487 = vector.load %arg32[%c42_334, %c0_335] : memref<104x128xf32, #tpu.memory_space<vmem>>, vector<4x128xf32>
    tpu.vector_store %arg32[%c42_334, %c0_335], %486 {strides = array<i32>} : memref<104x128xf32, #tpu.memory_space<vmem>>, vector<4x128xf32>,
    %c0_336 = arith.constant 0 : index
    %c0_337 = arith.constant 0 : index
    %488 = vector.load %arg32[%c0_336, %c0_337] : memref<104x128xf32, #tpu.memory_space<vmem>>, vector<64x128xf32>
    %c0_338 = arith.constant 0 : index
    %c0_339 = arith.constant 0 : index
    %489 = vector.load %arg14[%c0_338, %c0_339] : memref<25x128xf32, #tpu.memory_space<vmem>>, vector<1x128xf32>
    %490 = vector.broadcast %489 : vector<1x128xf32> to vector<64x128xf32>
    %491 = arith.mulf %488, %490 : vector<64x128xf32>
    %c1_340 = arith.constant 1 : index
    %c0_341 = arith.constant 0 : index
    %492 = vector.load %arg32[%c1_340, %c0_341] : memref<104x128xf32, #tpu.memory_space<vmem>>, vector<64x128xf32>
    %c1_342 = arith.constant 1 : index
    %c0_343 = arith.constant 0 : index
    %493 = vector.load %arg14[%c1_342, %c0_343] : memref<25x128xf32, #tpu.memory_space<vmem>>, vector<1x128xf32>
    %494 = vector.broadcast %493 : vector<1x128xf32> to vector<64x128xf32>
    %495 = arith.mulf %492, %494 : vector<64x128xf32>
    %496 = arith.addf %491, %495 : vector<64x128xf32>
    %c2_344 = arith.constant 2 : index
    %c0_345 = arith.constant 0 : index
    %497 = vector.load %arg32[%c2_344, %c0_345] : memref<104x128xf32, #tpu.memory_space<vmem>>, vector<64x128xf32>
    %c2_346 = arith.constant 2 : index
    %c0_347 = arith.constant 0 : index
    %498 = vector.load %arg14[%c2_346, %c0_347] : memref<25x128xf32, #tpu.memory_space<vmem>>, vector<1x128xf32>
    %499 = vector.broadcast %498 : vector<1x128xf32> to vector<64x128xf32>
    %500 = arith.mulf %497, %499 : vector<64x128xf32>
    %501 = arith.addf %496, %500 : vector<64x128xf32>
    %c3_348 = arith.constant 3 : index
    %c0_349 = arith.constant 0 : index
    %502 = vector.load %arg32[%c3_348, %c0_349] : memref<104x128xf32, #tpu.memory_space<vmem>>, vector<64x128xf32>
    %c3_350 = arith.constant 3 : index
    %c0_351 = arith.constant 0 : index
    %503 = vector.load %arg14[%c3_350, %c0_351] : memref<25x128xf32, #tpu.memory_space<vmem>>, vector<1x128xf32>
    %504 = vector.broadcast %503 : vector<1x128xf32> to vector<64x128xf32>
    %505 = arith.mulf %502, %504 : vector<64x128xf32>
    %506 = arith.addf %501, %505 : vector<64x128xf32>
    %c4_352 = arith.constant 4 : index
    %c0_353 = arith.constant 0 : index
    %507 = vector.load %arg32[%c4_352, %c0_353] : memref<104x128xf32, #tpu.memory_space<vmem>>, vector<64x128xf32>
    %c4_354 = arith.constant 4 : index
    %c0_355 = arith.constant 0 : index
    %508 = vector.load %arg14[%c4_354, %c0_355] : memref<25x128xf32, #tpu.memory_space<vmem>>, vector<1x128xf32>
    %509 = vector.broadcast %508 : vector<1x128xf32> to vector<64x128xf32>
    %510 = arith.mulf %507, %509 : vector<64x128xf32>
    %511 = arith.addf %506, %510 : vector<64x128xf32>
    %c8_356 = arith.constant 8 : index
    %c0_357 = arith.constant 0 : index
    %512 = vector.load %arg32[%c8_356, %c0_357] : memref<104x128xf32, #tpu.memory_space<vmem>>, vector<64x128xf32>
    %c5_358 = arith.constant 5 : index
    %c0_359 = arith.constant 0 : index
    %513 = vector.load %arg14[%c5_358, %c0_359] : memref<25x128xf32, #tpu.memory_space<vmem>>, vector<1x128xf32>
    %514 = vector.broadcast %513 : vector<1x128xf32> to vector<64x128xf32>
    %515 = arith.mulf %512, %514 : vector<64x128xf32>
    %516 = arith.addf %511, %515 : vector<64x128xf32>
    %c9_360 = arith.constant 9 : index
    %c0_361 = arith.constant 0 : index
    %517 = vector.load %arg32[%c9_360, %c0_361] : memref<104x128xf32, #tpu.memory_space<vmem>>, vector<64x128xf32>
    %c6_362 = arith.constant 6 : index
    %c0_363 = arith.constant 0 : index
    %518 = vector.load %arg14[%c6_362, %c0_363] : memref<25x128xf32, #tpu.memory_space<vmem>>, vector<1x128xf32>
    %519 = vector.broadcast %518 : vector<1x128xf32> to vector<64x128xf32>
    %520 = arith.mulf %517, %519 : vector<64x128xf32>
    %521 = arith.addf %516, %520 : vector<64x128xf32>
    %c10_364 = arith.constant 10 : index
    %c0_365 = arith.constant 0 : index
    %522 = vector.load %arg32[%c10_364, %c0_365] : memref<104x128xf32, #tpu.memory_space<vmem>>, vector<64x128xf32>
    %c7_366 = arith.constant 7 : index
    %c0_367 = arith.constant 0 : index
    %523 = vector.load %arg14[%c7_366, %c0_367] : memref<25x128xf32, #tpu.memory_space<vmem>>, vector<1x128xf32>
    %524 = vector.broadcast %523 : vector<1x128xf32> to vector<64x128xf32>
    %525 = arith.mulf %522, %524 : vector<64x128xf32>
    %526 = arith.addf %521, %525 : vector<64x128xf32>
    %c11_368 = arith.constant 11 : index
    %c0_369 = arith.constant 0 : index
    %527 = vector.load %arg32[%c11_368, %c0_369] : memref<104x128xf32, #tpu.memory_space<vmem>>, vector<64x128xf32>
    %c8_370 = arith.constant 8 : index
    %c0_371 = arith.constant 0 : index
    %528 = vector.load %arg14[%c8_370, %c0_371] : memref<25x128xf32, #tpu.memory_space<vmem>>, vector<1x128xf32>
    %529 = vector.broadcast %528 : vector<1x128xf32> to vector<64x128xf32>
    %530 = arith.mulf %527, %529 : vector<64x128xf32>
    %531 = arith.addf %526, %530 : vector<64x128xf32>
    %c12_372 = arith.constant 12 : index
    %c0_373 = arith.constant 0 : index
    %532 = vector.load %arg32[%c12_372, %c0_373] : memref<104x128xf32, #tpu.memory_space<vmem>>, vector<64x128xf32>
    %c9_374 = arith.constant 9 : index
    %c0_375 = arith.constant 0 : index
    %533 = vector.load %arg14[%c9_374, %c0_375] : memref<25x128xf32, #tpu.memory_space<vmem>>, vector<1x128xf32>
    %534 = vector.broadcast %533 : vector<1x128xf32> to vector<64x128xf32>
    %535 = arith.mulf %532, %534 : vector<64x128xf32>
    %536 = arith.addf %531, %535 : vector<64x128xf32>
    %c16_376 = arith.constant 16 : index
    %c0_377 = arith.constant 0 : index
    %537 = vector.load %arg32[%c16_376, %c0_377] : memref<104x128xf32, #tpu.memory_space<vmem>>, vector<64x128xf32>
    %c10_378 = arith.constant 10 : index
    %c0_379 = arith.constant 0 : index
    %538 = vector.load %arg14[%c10_378, %c0_379] : memref<25x128xf32, #tpu.memory_space<vmem>>, vector<1x128xf32>
    %539 = vector.broadcast %538 : vector<1x128xf32> to vector<64x128xf32>
    %540 = arith.mulf %537, %539 : vector<64x128xf32>
    %541 = arith.addf %536, %540 : vector<64x128xf32>
    %c17_380 = arith.constant 17 : index
    %c0_381 = arith.constant 0 : index
    %542 = vector.load %arg32[%c17_380, %c0_381] : memref<104x128xf32, #tpu.memory_space<vmem>>, vector<64x128xf32>
    %c11_382 = arith.constant 11 : index
    %c0_383 = arith.constant 0 : index
    %543 = vector.load %arg14[%c11_382, %c0_383] : memref<25x128xf32, #tpu.memory_space<vmem>>, vector<1x128xf32>
    %544 = vector.broadcast %543 : vector<1x128xf32> to vector<64x128xf32>
    %545 = arith.mulf %542, %544 : vector<64x128xf32>
    %546 = arith.addf %541, %545 : vector<64x128xf32>
    %c18_384 = arith.constant 18 : index
    %c0_385 = arith.constant 0 : index
    %547 = vector.load %arg32[%c18_384, %c0_385] : memref<104x128xf32, #tpu.memory_space<vmem>>, vector<64x128xf32>
    %c12_386 = arith.constant 12 : index
    %c0_387 = arith.constant 0 : index
    %548 = vector.load %arg14[%c12_386, %c0_387] : memref<25x128xf32, #tpu.memory_space<vmem>>, vector<1x128xf32>
    %549 = vector.broadcast %548 : vector<1x128xf32> to vector<64x128xf32>
    %550 = arith.mulf %547, %549 : vector<64x128xf32>
    %551 = arith.addf %546, %550 : vector<64x128xf32>
    %c19_388 = arith.constant 19 : index
    %c0_389 = arith.constant 0 : index
    %552 = vector.load %arg32[%c19_388, %c0_389] : memref<104x128xf32, #tpu.memory_space<vmem>>, vector<64x128xf32>
    %c13_390 = arith.constant 13 : index
    %c0_391 = arith.constant 0 : index
    %553 = vector.load %arg14[%c13_390, %c0_391] : memref<25x128xf32, #tpu.memory_space<vmem>>, vector<1x128xf32>
    %554 = vector.broadcast %553 : vector<1x128xf32> to vector<64x128xf32>
    %555 = arith.mulf %552, %554 : vector<64x128xf32>
    %556 = arith.addf %551, %555 : vector<64x128xf32>
    %c20_392 = arith.constant 20 : index
    %c0_393 = arith.constant 0 : index
    %557 = vector.load %arg32[%c20_392, %c0_393] : memref<104x128xf32, #tpu.memory_space<vmem>>, vector<64x128xf32>
    %c14_394 = arith.constant 14 : index
    %c0_395 = arith.constant 0 : index
    %558 = vector.load %arg14[%c14_394, %c0_395] : memref<25x128xf32, #tpu.memory_space<vmem>>, vector<1x128xf32>
    %559 = vector.broadcast %558 : vector<1x128xf32> to vector<64x128xf32>
    %560 = arith.mulf %557, %559 : vector<64x128xf32>
    %561 = arith.addf %556, %560 : vector<64x128xf32>
    %c24_396 = arith.constant 24 : index
    %c0_397 = arith.constant 0 : index
    %562 = vector.load %arg32[%c24_396, %c0_397] : memref<104x128xf32, #tpu.memory_space<vmem>>, vector<64x128xf32>
    %c15_398 = arith.constant 15 : index
    %c0_399 = arith.constant 0 : index
    %563 = vector.load %arg14[%c15_398, %c0_399] : memref<25x128xf32, #tpu.memory_space<vmem>>, vector<1x128xf32>
    %564 = vector.broadcast %563 : vector<1x128xf32> to vector<64x128xf32>
    %565 = arith.mulf %562, %564 : vector<64x128xf32>
    %566 = arith.addf %561, %565 : vector<64x128xf32>
    %c25_400 = arith.constant 25 : index
    %c0_401 = arith.constant 0 : index
    %567 = vector.load %arg32[%c25_400, %c0_401] : memref<104x128xf32, #tpu.memory_space<vmem>>, vector<64x128xf32>
    %c16_402 = arith.constant 16 : index
    %c0_403 = arith.constant 0 : index
    %568 = vector.load %arg14[%c16_402, %c0_403] : memref<25x128xf32, #tpu.memory_space<vmem>>, vector<1x128xf32>
    %569 = vector.broadcast %568 : vector<1x128xf32> to vector<64x128xf32>
    %570 = arith.mulf %567, %569 : vector<64x128xf32>
    %571 = arith.addf %566, %570 : vector<64x128xf32>
    %c26_404 = arith.constant 26 : index
    %c0_405 = arith.constant 0 : index
    %572 = vector.load %arg32[%c26_404, %c0_405] : memref<104x128xf32, #tpu.memory_space<vmem>>, vector<64x128xf32>
    %c17_406 = arith.constant 17 : index
    %c0_407 = arith.constant 0 : index
    %573 = vector.load %arg14[%c17_406, %c0_407] : memref<25x128xf32, #tpu.memory_space<vmem>>, vector<1x128xf32>
    %574 = vector.broadcast %573 : vector<1x128xf32> to vector<64x128xf32>
    %575 = arith.mulf %572, %574 : vector<64x128xf32>
    %576 = arith.addf %571, %575 : vector<64x128xf32>
    %c27_408 = arith.constant 27 : index
    %c0_409 = arith.constant 0 : index
    %577 = vector.load %arg32[%c27_408, %c0_409] : memref<104x128xf32, #tpu.memory_space<vmem>>, vector<64x128xf32>
    %c18_410 = arith.constant 18 : index
    %c0_411 = arith.constant 0 : index
    %578 = vector.load %arg14[%c18_410, %c0_411] : memref<25x128xf32, #tpu.memory_space<vmem>>, vector<1x128xf32>
    %579 = vector.broadcast %578 : vector<1x128xf32> to vector<64x128xf32>
    %580 = arith.mulf %577, %579 : vector<64x128xf32>
    %581 = arith.addf %576, %580 : vector<64x128xf32>
    %c28_412 = arith.constant 28 : index
    %c0_413 = arith.constant 0 : index
    %582 = vector.load %arg32[%c28_412, %c0_413] : memref<104x128xf32, #tpu.memory_space<vmem>>, vector<64x128xf32>
    %c19_414 = arith.constant 19 : index
    %c0_415 = arith.constant 0 : index
    %583 = vector.load %arg14[%c19_414, %c0_415] : memref<25x128xf32, #tpu.memory_space<vmem>>, vector<1x128xf32>
    %584 = vector.broadcast %583 : vector<1x128xf32> to vector<64x128xf32>
    %585 = arith.mulf %582, %584 : vector<64x128xf32>
    %586 = arith.addf %581, %585 : vector<64x128xf32>
    %c32 = arith.constant 32 : index
    %c0_416 = arith.constant 0 : index
    %587 = vector.load %arg32[%c32, %c0_416] : memref<104x128xf32, #tpu.memory_space<vmem>>, vector<64x128xf32>
    %c20_417 = arith.constant 20 : index
    %c0_418 = arith.constant 0 : index
    %588 = vector.load %arg14[%c20_417, %c0_418] : memref<25x128xf32, #tpu.memory_space<vmem>>, vector<1x128xf32>
    %589 = vector.broadcast %588 : vector<1x128xf32> to vector<64x128xf32>
    %590 = arith.mulf %587, %589 : vector<64x128xf32>
    %591 = arith.addf %586, %590 : vector<64x128xf32>
    %c33 = arith.constant 33 : index
    %c0_419 = arith.constant 0 : index
    %592 = vector.load %arg32[%c33, %c0_419] : memref<104x128xf32, #tpu.memory_space<vmem>>, vector<64x128xf32>
    %c21_420 = arith.constant 21 : index
    %c0_421 = arith.constant 0 : index
    %593 = vector.load %arg14[%c21_420, %c0_421] : memref<25x128xf32, #tpu.memory_space<vmem>>, vector<1x128xf32>
    %594 = vector.broadcast %593 : vector<1x128xf32> to vector<64x128xf32>
    %595 = arith.mulf %592, %594 : vector<64x128xf32>
    %596 = arith.addf %591, %595 : vector<64x128xf32>
    %c34_422 = arith.constant 34 : index
    %c0_423 = arith.constant 0 : index
    %597 = vector.load %arg32[%c34_422, %c0_423] : memref<104x128xf32, #tpu.memory_space<vmem>>, vector<64x128xf32>
    %c22_424 = arith.constant 22 : index
    %c0_425 = arith.constant 0 : index
    %598 = vector.load %arg14[%c22_424, %c0_425] : memref<25x128xf32, #tpu.memory_space<vmem>>, vector<1x128xf32>
    %599 = vector.broadcast %598 : vector<1x128xf32> to vector<64x128xf32>
    %600 = arith.mulf %597, %599 : vector<64x128xf32>
    %601 = arith.addf %596, %600 : vector<64x128xf32>
    %c35 = arith.constant 35 : index
    %c0_426 = arith.constant 0 : index
    %602 = vector.load %arg32[%c35, %c0_426] : memref<104x128xf32, #tpu.memory_space<vmem>>, vector<64x128xf32>
    %c23_427 = arith.constant 23 : index
    %c0_428 = arith.constant 0 : index
    %603 = vector.load %arg14[%c23_427, %c0_428] : memref<25x128xf32, #tpu.memory_space<vmem>>, vector<1x128xf32>
    %604 = vector.broadcast %603 : vector<1x128xf32> to vector<64x128xf32>
    %605 = arith.mulf %602, %604 : vector<64x128xf32>
    %606 = arith.addf %601, %605 : vector<64x128xf32>
    %c36_429 = arith.constant 36 : index
    %c0_430 = arith.constant 0 : index
    %607 = vector.load %arg32[%c36_429, %c0_430] : memref<104x128xf32, #tpu.memory_space<vmem>>, vector<64x128xf32>
    %c24_431 = arith.constant 24 : index
    %c0_432 = arith.constant 0 : index
    %608 = vector.load %arg14[%c24_431, %c0_432] : memref<25x128xf32, #tpu.memory_space<vmem>>, vector<1x128xf32>
    %609 = vector.broadcast %608 : vector<1x128xf32> to vector<64x128xf32>
    %610 = arith.mulf %607, %609 : vector<64x128xf32>
    %611 = arith.addf %606, %610 : vector<64x128xf32>
    %c0_433 = arith.constant 0 : index
    %c0_434 = arith.constant 0 : index
    %612 = vector.load %arg33[%c0_433, %c0_434] : memref<400x128xf32, #tpu.memory_space<vmem>>, vector<64x128xf32>
    tpu.vector_store %arg33[%c0_433, %c0_434], %611 {strides = array<i32>} : memref<400x128xf32, #tpu.memory_space<vmem>>, vector<64x128xf32>,
    %c0_435 = arith.constant 0 : index
    %c0_436 = arith.constant 0 : index
    %613 = tpu.strided_load %arg33[%c0_435, %c0_436] {strides = array<i32: 2, 1>} : memref<400x128xf32, #tpu.memory_space<vmem>>, vector<2x128xf32>
    %c16_437 = arith.constant 16 : index
    %c0_438 = arith.constant 0 : index
    %614 = tpu.strided_load %arg33[%c16_437, %c0_438] {strides = array<i32: 2, 1>} : memref<400x128xf32, #tpu.memory_space<vmem>>, vector<2x128xf32>
    %615 = tpu.concatenate %613, %614 in 0 : vector<2x128xf32>, vector<2x128xf32> -> vector<4x128xf32>
    %616 = arith.truncf %615 : vector<4x128xf32> to vector<4x128xbf16>
    %c0_439 = arith.constant 0 : index
    %c0_440 = arith.constant 0 : index
    %617 = vector.load %arg15[%c0_439, %c0_440] : memref<128x128xbf16, #tpu.memory_space<vmem>>, vector<128x128xbf16>
    %cst_441 = arith.constant dense<0.000000e+00> : vector<4x128xf32>
    %618 = tpu.matmul %616, %617, %cst_441 {dimension_numbers = #tpu.dot_dimension_numbers<[1], [0], [0], [1], [0, 0, 1, 1], [], []>} : vector<4x128xbf16>, vector<128x128xbf16>, vector<4x128xf32> -> vector<4x128xf32>
    %c0_442 = arith.constant 0 : index
    %c0_443 = arith.constant 0 : index
    %619 = vector.load %arg16[%c0_442, %c0_443] : memref<1x128xf32, #tpu.memory_space<vmem>>, vector<1x128xf32>
    %620 = vector.broadcast %619 : vector<1x128xf32> to vector<4x128xf32>
    %621 = arith.addf %618, %620 : vector<4x128xf32>
    %cst_444 = arith.constant 0.000000e+00 : f32
    %cst_445 = arith.constant 6.000000e+00 : f32
    %622 = vector.broadcast %cst_444 : f32 to vector<4x128xf32>
    %623 = arith.maximumf %622, %621 : vector<4x128xf32>
    %624 = vector.broadcast %cst_445 : f32 to vector<4x128xf32>
    %625 = arith.minimumf %624, %623 : vector<4x128xf32>
    %626 = arith.truncf %625 : vector<4x128xf32> to vector<4x128xbf16>
    %c0_446 = arith.constant 0 : index
    %c0_447 = arith.constant 0 : index
    %627 = vector.load %arg17[%c0_446, %c0_447] : memref<128x128xbf16, #tpu.memory_space<vmem>>, vector<128x128xbf16>
    %cst_448 = arith.constant dense<0.000000e+00> : vector<4x128xf32>
    %628 = tpu.matmul %626, %627, %cst_448 {dimension_numbers = #tpu.dot_dimension_numbers<[1], [0], [0], [1], [0, 0, 1, 1], [], []>} : vector<4x128xbf16>, vector<128x128xbf16>, vector<4x128xf32> -> vector<4x128xf32>
    %cst_449 = arith.constant 0.000000e+00 : f32
    %629 = vector.broadcast %cst_449 : f32 to vector<4x128xf32>
    %630 = tpu.concatenate %628, %629 in 0 : vector<4x128xf32>, vector<4x128xf32> -> vector<8x128xf32>
    %c0_450 = arith.constant 0 : index
    %c0_451 = arith.constant 0 : index
    %631 = vector.load %arg26[%c0_450, %c0_451] : memref<8x128xf32, #tpu.memory_space<vmem>>, vector<8x128xf32>
    tpu.vector_store %arg26[%c0_450, %c0_451], %630 {strides = array<i32>} : memref<8x128xf32, #tpu.memory_space<vmem>>, vector<8x128xf32>,
    %c0_452 = arith.constant 0 : index
    %c0_453 = arith.constant 0 : index
    %632 = vector.load %arg20[%c0_452, %c0_453] : memref<16x4xf32, #tpu.memory_space<vmem>>, vector<16x4xf32>
    %cst_454 = arith.constant dense<0.000000e+00> : vector<16x128xf32>
    %633 = tpu.matmul %632, %625, %cst_454 {dimension_numbers = #tpu.dot_dimension_numbers<[1], [0], [0], [1], [0, 0, 1, 1], [], []>} : vector<16x4xf32>, vector<4x128xf32>, vector<16x128xf32> -> vector<16x128xf32>
    %634 = arith.truncf %479 : vector<16x128xf32> to vector<16x128xbf16>
    %c0_455 = arith.constant 0 : index
    %c0_456 = arith.constant 0 : index
    %635 = vector.load %arg18[%c0_455, %c0_456] : memref<128x128xbf16, #tpu.memory_space<vmem>>, vector<128x128xbf16>
    %cst_457 = arith.constant dense<0.000000e+00> : vector<16x128xf32>
    %636 = tpu.matmul %634, %635, %cst_457 {dimension_numbers = #tpu.dot_dimension_numbers<[1], [0], [0], [1], [0, 0, 1, 1], [], []>} : vector<16x128xbf16>, vector<128x128xbf16>, vector<16x128xf32> -> vector<16x128xf32>
    %c0_458 = arith.constant 0 : index
    %c0_459 = arith.constant 0 : index
    %637 = vector.load %arg19[%c0_458, %c0_459] : memref<1x128xf32, #tpu.memory_space<vmem>>, vector<1x128xf32>
    %638 = vector.broadcast %637 : vector<1x128xf32> to vector<16x128xf32>
    %639 = arith.addf %636, %638 : vector<16x128xf32>
    %640 = arith.addf %633, %639 : vector<16x128xf32>
    %641 = arith.truncf %640 : vector<16x128xf32> to vector<16x128xbf16>
    %c0_460 = arith.constant 0 : index
    %c0_461 = arith.constant 0 : index
    %642 = vector.load %arg21[%c0_460, %c0_461] : memref<128x128xbf16, #tpu.memory_space<vmem>>, vector<128x128xbf16>
    %cst_462 = arith.constant dense<0.000000e+00> : vector<16x128xf32>
    %643 = tpu.matmul %641, %642, %cst_462 {dimension_numbers = #tpu.dot_dimension_numbers<[1], [0], [0], [1], [0, 0, 1, 1], [], []>} : vector<16x128xbf16>, vector<128x128xbf16>, vector<16x128xf32> -> vector<16x128xf32>
    %c0_463 = arith.constant 0 : index
    %c0_464 = arith.constant 0 : index
    %644 = vector.load %arg27[%c0_463, %c0_464] : memref<16x128xf32, #tpu.memory_space<vmem>>, vector<16x128xf32>
    tpu.vector_store %arg27[%c0_463, %c0_464], %643 {strides = array<i32>} : memref<16x128xf32, #tpu.memory_space<vmem>>, vector<16x128xf32>,
    %c0_465 = arith.constant 0 : index
    %c0_466 = arith.constant 0 : index
    %645 = vector.load %arg24[%c0_465, %c0_466] : memref<64x16xf32, #tpu.memory_space<vmem>>, vector<64x16xf32>
    %cst_467 = arith.constant dense<0.000000e+00> : vector<64x128xf32>
    %646 = tpu.matmul %645, %640, %cst_467 {dimension_numbers = #tpu.dot_dimension_numbers<[1], [0], [0], [1], [0, 0, 1, 1], [], []>} : vector<64x16xf32>, vector<16x128xf32>, vector<64x128xf32> -> vector<64x128xf32>
    %647 = arith.truncf %323 : vector<64x128xf32> to vector<64x128xbf16>
    %c0_468 = arith.constant 0 : index
    %c0_469 = arith.constant 0 : index
    %648 = vector.load %arg22[%c0_468, %c0_469] : memref<128x128xbf16, #tpu.memory_space<vmem>>, vector<128x128xbf16>
    %cst_470 = arith.constant dense<0.000000e+00> : vector<64x128xf32>
    %649 = tpu.matmul %647, %648, %cst_470 {dimension_numbers = #tpu.dot_dimension_numbers<[1], [0], [0], [1], [0, 0, 1, 1], [], []>} : vector<64x128xbf16>, vector<128x128xbf16>, vector<64x128xf32> -> vector<64x128xf32>
    %c0_471 = arith.constant 0 : index
    %c0_472 = arith.constant 0 : index
    %650 = vector.load %arg23[%c0_471, %c0_472] : memref<1x128xf32, #tpu.memory_space<vmem>>, vector<1x128xf32>
    %651 = vector.broadcast %650 : vector<1x128xf32> to vector<64x128xf32>
    %652 = arith.addf %649, %651 : vector<64x128xf32>
    %653 = arith.addf %646, %652 : vector<64x128xf32>
    %654 = arith.truncf %653 : vector<64x128xf32> to vector<64x128xbf16>
    %c0_473 = arith.constant 0 : index
    %c0_474 = arith.constant 0 : index
    %655 = vector.load %arg25[%c0_473, %c0_474] : memref<128x128xbf16, #tpu.memory_space<vmem>>, vector<128x128xbf16>
    %cst_475 = arith.constant dense<0.000000e+00> : vector<64x128xf32>
    %656 = tpu.matmul %654, %655, %cst_475 {dimension_numbers = #tpu.dot_dimension_numbers<[1], [0], [0], [1], [0, 0, 1, 1], [], []>} : vector<64x128xbf16>, vector<128x128xbf16>, vector<64x128xf32> -> vector<64x128xf32>
    %c0_476 = arith.constant 0 : index
    %c0_477 = arith.constant 0 : index
    %657 = vector.load %arg28[%c0_476, %c0_477] : memref<64x128xf32, #tpu.memory_space<vmem>>, vector<64x128xf32>
    tpu.vector_store %arg28[%c0_476, %c0_477], %656 {strides = array<i32>} : memref<64x128xf32, #tpu.memory_space<vmem>>, vector<64x128xf32>,
    return
  }
  func.func @transform_0(%arg0: i32) -> (i32, i32) {
    %c0_i32 = arith.constant 0 : i32
    %c0_i32_0 = arith.constant 0 : i32
    return %arg0, %c0_i32 : i32, i32
  }
  func.func @transform_1(%arg0: i32) -> (i32, i32) {
    %c0_i32 = arith.constant 0 : i32
    %c0_i32_0 = arith.constant 0 : i32
    %c0_i32_1 = arith.constant 0 : i32
    return %c0_i32, %c0_i32_0 : i32, i32
  }
  func.func @transform_2(%arg0: i32) -> (i32, i32) {
    %c0_i32 = arith.constant 0 : i32
    %c0_i32_0 = arith.constant 0 : i32
    %c0_i32_1 = arith.constant 0 : i32
    return %c0_i32, %c0_i32_0 : i32, i32
  }
  func.func @transform_3(%arg0: i32) -> (i32, i32) {
    %c0_i32 = arith.constant 0 : i32
    %c0_i32_0 = arith.constant 0 : i32
    %c0_i32_1 = arith.constant 0 : i32
    return %c0_i32, %c0_i32_0 : i32, i32
  }
  func.func @transform_4(%arg0: i32) -> (i32, i32) {
    %c0_i32 = arith.constant 0 : i32
    %c0_i32_0 = arith.constant 0 : i32
    %c0_i32_1 = arith.constant 0 : i32
    return %c0_i32, %c0_i32_0 : i32, i32
  }
  func.func @transform_5(%arg0: i32) -> (i32, i32) {
    %c0_i32 = arith.constant 0 : i32
    %c0_i32_0 = arith.constant 0 : i32
    %c0_i32_1 = arith.constant 0 : i32
    return %c0_i32, %c0_i32_0 : i32, i32
  }
  func.func @transform_6(%arg0: i32) -> (i32, i32) {
    %c0_i32 = arith.constant 0 : i32
    %c0_i32_0 = arith.constant 0 : i32
    %c0_i32_1 = arith.constant 0 : i32
    return %c0_i32, %c0_i32_0 : i32, i32
  }
  func.func @transform_7(%arg0: i32) -> (i32, i32) {
    %c0_i32 = arith.constant 0 : i32
    %c0_i32_0 = arith.constant 0 : i32
    %c0_i32_1 = arith.constant 0 : i32
    return %c0_i32, %c0_i32_0 : i32, i32
  }
  func.func @transform_8(%arg0: i32) -> (i32, i32) {
    %c0_i32 = arith.constant 0 : i32
    %c0_i32_0 = arith.constant 0 : i32
    %c0_i32_1 = arith.constant 0 : i32
    return %c0_i32, %c0_i32_0 : i32, i32
  }
  func.func @transform_9(%arg0: i32) -> (i32, i32) {
    %c0_i32 = arith.constant 0 : i32
    %c0_i32_0 = arith.constant 0 : i32
    %c0_i32_1 = arith.constant 0 : i32
    return %c0_i32, %c0_i32_0 : i32, i32
  }
  func.func @transform_10(%arg0: i32) -> (i32, i32) {
    %c0_i32 = arith.constant 0 : i32
    %c0_i32_0 = arith.constant 0 : i32
    %c0_i32_1 = arith.constant 0 : i32
    return %c0_i32, %c0_i32_0 : i32, i32
  }
  func.func @transform_11(%arg0: i32) -> (i32, i32) {
    %c0_i32 = arith.constant 0 : i32
    %c0_i32_0 = arith.constant 0 : i32
    %c0_i32_1 = arith.constant 0 : i32
    return %c0_i32, %c0_i32_0 : i32, i32
  }
  func.func @transform_12(%arg0: i32) -> (i32, i32) {
    %c0_i32 = arith.constant 0 : i32
    %c0_i32_0 = arith.constant 0 : i32
    %c0_i32_1 = arith.constant 0 : i32
    return %c0_i32, %c0_i32_0 : i32, i32
  }
  func.func @transform_13(%arg0: i32) -> (i32, i32) {
    %c0_i32 = arith.constant 0 : i32
    %c0_i32_0 = arith.constant 0 : i32
    %c0_i32_1 = arith.constant 0 : i32
    return %c0_i32, %c0_i32_0 : i32, i32
  }
  func.func @transform_14(%arg0: i32) -> (i32, i32) {
    %c0_i32 = arith.constant 0 : i32
    %c0_i32_0 = arith.constant 0 : i32
    %c0_i32_1 = arith.constant 0 : i32
    return %c0_i32, %c0_i32_0 : i32, i32
  }
  func.func @transform_15(%arg0: i32) -> (i32, i32) {
    %c0_i32 = arith.constant 0 : i32
    %c0_i32_0 = arith.constant 0 : i32
    %c0_i32_1 = arith.constant 0 : i32
    return %c0_i32, %c0_i32_0 : i32, i32
  }
  func.func @transform_16(%arg0: i32) -> (i32, i32) {
    %c0_i32 = arith.constant 0 : i32
    %c0_i32_0 = arith.constant 0 : i32
    %c0_i32_1 = arith.constant 0 : i32
    return %c0_i32, %c0_i32_0 : i32, i32
  }
  func.func @transform_17(%arg0: i32) -> (i32, i32) {
    %c0_i32 = arith.constant 0 : i32
    %c0_i32_0 = arith.constant 0 : i32
    %c0_i32_1 = arith.constant 0 : i32
    return %c0_i32, %c0_i32_0 : i32, i32
  }
  func.func @transform_18(%arg0: i32) -> (i32, i32) {
    %c0_i32 = arith.constant 0 : i32
    %c0_i32_0 = arith.constant 0 : i32
    %c0_i32_1 = arith.constant 0 : i32
    return %c0_i32, %c0_i32_0 : i32, i32
  }
  func.func @transform_19(%arg0: i32) -> (i32, i32) {
    %c0_i32 = arith.constant 0 : i32
    %c0_i32_0 = arith.constant 0 : i32
    %c0_i32_1 = arith.constant 0 : i32
    return %c0_i32, %c0_i32_0 : i32, i32
  }
  func.func @transform_20(%arg0: i32) -> (i32, i32) {
    %c0_i32 = arith.constant 0 : i32
    %c0_i32_0 = arith.constant 0 : i32
    %c0_i32_1 = arith.constant 0 : i32
    return %c0_i32, %c0_i32_0 : i32, i32
  }
  func.func @transform_21(%arg0: i32) -> (i32, i32) {
    %c0_i32 = arith.constant 0 : i32
    %c0_i32_0 = arith.constant 0 : i32
    %c0_i32_1 = arith.constant 0 : i32
    return %c0_i32, %c0_i32_0 : i32, i32
  }
  func.func @transform_22(%arg0: i32) -> (i32, i32) {
    %c0_i32 = arith.constant 0 : i32
    %c0_i32_0 = arith.constant 0 : i32
    %c0_i32_1 = arith.constant 0 : i32
    return %c0_i32, %c0_i32_0 : i32, i32
  }
  func.func @transform_23(%arg0: i32) -> (i32, i32) {
    %c0_i32 = arith.constant 0 : i32
    %c0_i32_0 = arith.constant 0 : i32
    %c0_i32_1 = arith.constant 0 : i32
    return %c0_i32, %c0_i32_0 : i32, i32
  }
  func.func @transform_24(%arg0: i32) -> (i32, i32) {
    %c0_i32 = arith.constant 0 : i32
    %c0_i32_0 = arith.constant 0 : i32
    %c0_i32_1 = arith.constant 0 : i32
    return %c0_i32, %c0_i32_0 : i32, i32
  }
  func.func @transform_25(%arg0: i32) -> (i32, i32) {
    %c0_i32 = arith.constant 0 : i32
    %c0_i32_0 = arith.constant 0 : i32
    return %arg0, %c0_i32 : i32, i32
  }
  func.func @transform_26(%arg0: i32) -> (i32, i32) {
    %c0_i32 = arith.constant 0 : i32
    %c0_i32_0 = arith.constant 0 : i32
    return %arg0, %c0_i32 : i32, i32
  }
  func.func @transform_27(%arg0: i32) -> (i32, i32) {
    %c0_i32 = arith.constant 0 : i32
    %c0_i32_0 = arith.constant 0 : i32
    return %arg0, %c0_i32 : i32, i32
  }
}

</mosaic_0001>

<bundles_post_ra>
// kernel: forward.1
= control target key start
LH: loop header
LB: loop body
LE: loop exit
PB: predicated region body
PF: predicated region fallthrough
CT: control target
= control target key end

     0   :  { %s15769_s0 = inlined_call_operand.vmem [shape: f32[736,128], index: 0, kind: input, shape index: {}]   ;;  %s15770_s1 = inlined_call_operand.vmem [shape: f32[9,128], index: 1, kind: input, shape index: {}]   ;;  %s15771_s2 = inlined_call_operand.vmem [shape: bf16[128,128], index: 2, kind: input, shape index: {}]   ;;  %s15772_s3 = inlined_call_operand.vmem [shape: f32[1,128], index: 3, kind: input, shape index: {}]   ;;  %s15773_s4 = inlined_call_operand.vmem [shape: f32[9,128], index: 4, kind: input, shape index: {}]   ;;  %s15774_s5 = inlined_call_operand.vmem [shape: bf16[128,128], index: 5, kind: input, shape index: {}]   ;;  %s15775_s6 = inlined_call_operand.vmem [shape: f32[1,128], index: 6, kind: input, shape index: {}]   ;;  %s15776_s7 = inlined_call_operand.vmem [shape: f32[25,128], index: 7, kind: input, shape index: {}]   ;;  %s15777_s8 = inlined_call_operand.vmem [shape: bf16[128,128], index: 8, kind: input, shape index: {}]   ;;  %s15778_s9 = inlined_call_operand.vmem [shape: f32[1,128], index: 9, kind: input, shape index: {}]   ;;  %s15779_s10 = inlined_call_operand.vmem [shape: f32[25,128], index: 10, kind: input, shape index: {}]   ;;  %s15780_s11 = inlined_call_operand.vmem [shape: bf16[128,128], index: 11, kind: input, shape index: {}]   ;;  %s15781_s12 = inlined_call_operand.vmem [shape: f32[1,128], index: 12, kind: input, shape index: {}]   ;;  %s15782_s13 = inlined_call_operand.vmem [shape: f32[25,128], index: 13, kind: input, shape index: {}]   ;;  %s15783_s14 = inlined_call_operand.vmem [shape: bf16[128,128], index: 14, kind: input, shape index: {}]   ;;  %s15784_s15 = inlined_call_operand.vmem [shape: f32[1,128], index: 15, kind: input, shape index: {}]   ;;  %s15785_s16 = inlined_call_operand.vmem [shape: bf16[128,128], index: 16, kind: input, shape index: {}]   ;;  %s15786_s17 = inlined_call_operand.vmem [shape: bf16[128,128], index: 17, kind: input, shape index: {}]   ;;  %s15787_s18 = inlined_call_operand.vmem [shape: f32[1,128], index: 18, kind: input, shape index: {}]   ;;  %s15788_s19 = inlined_call_operand.vmem [shape: f32[16,4], index: 19, kind: input, shape index: {}]   ;;  %s15789_s20 = inlined_call_operand.vmem [shape: bf16[128,128], index: 20, kind: input, shape index: {}]   ;;  %s15790_s21 = inlined_call_operand.vmem [shape: bf16[128,128], index: 21, kind: input, shape index: {}]   ;;  %s15791_s22 = inlined_call_operand.vmem [shape: f32[1,128], index: 22, kind: input, shape index: {}]   ;;  %s15792_s23 = inlined_call_operand.vmem [shape: f32[64,16], index: 23, kind: input, shape index: {}]   ;;  %s15793_s24 = inlined_call_operand.vmem [shape: bf16[128,128], index: 24, kind: input, shape index: {}]   ;;  %s15794_s25 = inlined_call_operand.vmem [shape: f32[16,128], index: 25, kind: output, shape index: {0}]   ;;  %s15795_s26 = inlined_call_operand.hbm [shape: f32[32,128], index: 26, kind: output, shape index: {1}]   ;;  %s15796_s27 = inlined_call_operand.vmem [shape: f32[128,128], index: 27, kind: output, shape index: {2}]  }
   0x1   :  { %15919 = sst [smem:[#allocation46_spill]] %s15769_s0 }
   0x2   :  { %15920 = sst [smem:[#allocation47_spill]] %s15770_s1 }
   0x3   :  { %15921 = sst [smem:[#allocation48_spill]] %s15771_s2 }
   0x4   :  { %15922 = sst [smem:[#allocation49_spill]] %s15772_s3 }
   0x5   :  { %15923 = sst [smem:[#allocation50_spill]] %s15773_s4 }
   0x6   :  { %15924 = sst [smem:[#allocation51_spill]] %s15774_s5 }
   0x7   :  { %15925 = sst [smem:[#allocation52_spill]] %s15775_s6 }
   0x8   :  { %15926 = sst [smem:[#allocation53_spill]] %s15776_s7 }
   0x9   :  { %15927 = sst [smem:[#allocation54_spill]] %s15777_s8 }
   0xa   :  { %15928 = sst [smem:[#allocation55_spill]] %s15778_s9 }
   0xb   :  { %15929 = sst [smem:[#allocation56_spill]] %s15779_s10 }
   0xc   :  { %15930 = sst [smem:[#allocation57_spill]] %s15780_s11 }
   0xd   :  { %15931 = sst [smem:[#allocation58_spill]] %s15781_s12 }
   0xe   :  { %15932 = sst [smem:[#allocation59_spill]] %s15782_s13 }
   0xf   :  { %15933 = sst [smem:[#allocation60_spill]] %s15783_s14 }
  0x10   :  { %15934 = sst [smem:[#allocation61_spill]] %s15784_s15 }
  0x11   :  { %15935 = sst [smem:[#allocation62_spill]] %s15785_s16 }
  0x12   :  { %15936 = sst [smem:[#allocation63_spill]] %s15786_s17 }
  0x13   :  { %15937 = sst [smem:[#allocation64_spill]] %s15787_s18 }
  0x14   :  { %15938 = sst [smem:[#allocation65_spill]] %s15795_s26 }
  0x15   :  { %15939 = sst [smem:[#allocation66_spill]] %s15796_s27 }
  0x16   :  { %33 = vsyncpa [#allocation8], 0 }
  0x17   :  { %35 = vsyncpa [#allocation8 + $0x1], 0  ;;  %s10490_s7 = smov 0   ;;  %s10492_s4 = smov 0  }
  0x18   :  { %s10494_s8 = smov 0   ;;  %s10496_s30 = smov 0  }
  0x19 LB: > { %15940 = sst [smem:[#allocation10_spill]] %s10333_s7  ;;  %s10511_s9 = sadd.s32 4294967295, %s10345_s30   ;;  %s10345_s30 = sphi %s10496_s30, %s16170_s30   ;;  %s10341_s8 = sphi %s10494_s8, %s16172_s8   ;;  %s10337_s4 = sphi %s10492_s4, %s16174_s4   ;;  %s10333_s7 = sphi %s10490_s7, %s16173_s7  }
  0x1a   : > { %15941 = sst [smem:[#allocation11_spill]] %s10341_s8  ;;  %s9326_s5 = sadd.s32 4294967294, %s10345_s30  }
  0x1b   : > { %15942 = sst [smem:[#allocation12_spill]] %s10345_s30  ;;  %s10515_s28 = sadd.s32 1, %s10345_s30  }
  0x1c   : > { %15943 = sst [smem:[#allocation13_spill]] %s10515_s28  ;;  %s604_s0 = sadd.s32 1, %s10341_s8 }
  0x1d   : > { %s601_s10 = ssub.s32 %s10345_s30, %s10515_s28  ;;  %p614_p0 = scmp.ne.s32.totalorder %s10341_s8, %s10337_s4 }
  0x1e   : > { %p602_p1 = scmp.eq.s32.totalorder %s601_s10, 0  ;;  %p615_p2 = scmp.eq.s32.totalorder %s10511_s9, 1 }
  0x1f   : > { %p620_p3 = scmp.ne.s32.totalorder %s10337_s4, %s10333_s7  ;;  %p621_p4 = scmp.eq.s32.totalorder %s9326_s5, 1 }
  0x20   : > { %s10526_s29 = scalar_select %p602_p1, %s10341_s8, %s604_s0  }
  0x21   : > { %p10528_p5 = por %p615_p2, %p614_p0  ;;  %p10532_p6 = por %p621_p4, %p620_p3 }
  0x22   : > { %15944 = sst [smem:[#allocation14_spill]] %s10526_s29  ;;  %p9329_p7 = scmp.ge.s32.totalorder %s10345_s30, 1 }
  0x23   : > { %s15946_s6 = scalar_select %p10532_p6, 1, 0 }
  0x24   : > { %p746_p8 = scmp.lt.s32.totalorder %s10345_s30, 3 }
  0x25   : > { %15947 = sst [smem:[#allocation15_spill]] %s15946_s6 }
  0x26   : > { %p747_p9 = pnand %p9329_p7, %p746_p8 }
  0x28   : > { %750 = sbr.rel (%p747_p9) target bundleno = 2022 (0x7e6), region = 120 }
  0x2d   : > { %s15948_s3 = sld [smem:[#allocation48_spill]]  ;;  %s827_s5 = smul.u32 46, %s10511_s9  ;;  %vm7928_vm0 = vcmask 1043456   ;;  %vm8538_vm1 = vcmask 1041408   ;;  %vm8789_vm2 = vcmask 31744   ;;  %vm9012_vm3 = vcmask 130048  }
  0x2e   : > { %s15949_s28 = sld [smem:[#allocation47_spill]]  ;;  %p833_p11 = scmp.lt.s32.totalorder %s10511_s9, 1 }
  0x2f   : > { %p828_p10 = scmp.lt.s32.totalorder %s827_s5, 91  ;;  %s15950_s27 = sld [smem:[#allocation46_spill]] }
  0x30   : > { %s15951_s8 = sld [smem:[#allocation49_spill]] }
  0x31   : > { %s16176_s5 = smov (!%p828_p10, %s827_s5), 91  ;;  %s15953_s30 = sld [smem:[#allocation50_spill]] }
  0x32   : > { %s9331_s0 = sshll.u32 %s16176_s5, 3  ;;  %s15955_s2 = sld [smem:[#allocation51_spill]] }
  0x33   : > { %v9678_v0 = vld [vmem:[%s15948_s3 + $0x38] sm:$0xff]  ;;  %v9677_v1 = vld [vmem:[%s15948_s3 + $0x30] sm:$0xff]  ;;  %v9676_v4 = vld [vmem:[%s15948_s3 + $0x28] sm:$0xff]  ;;  %s15959_s10 = sld [smem:[#allocation52_spill]] }
  0x34   : > { %2084 = vmatpush.bf16.msra.mxu0 %v9678_v0  ;;  %9752 = vmatpush.bf16.msra.mxu3 %v9678_v0  ;;  %v10548_v2 = vld [vmem:[%s15949_s28] ss:$0 sm:$0xff]  ;;  %v10553_v3 = vld [vmem:[%s15949_s28 + $0x1] ss:$0 sm:$0xff]  ;;  %v10561_v5 = vld [vmem:[%s15949_s28 + $0x2] ss:$0 sm:$0xff] }
  0x35   : > { %s10566_s26 = scalar_lea.vmem %s15950_s27, %s9331_s0  ;;  %v10571_v6 = vld [vmem:[%s15949_s28 + $0x3] ss:$0 sm:$0xff]  ;;  %v10576_v7 = vld [vmem:[%s15949_s28 + $0x4] ss:$0 sm:$0xff]  ;;  %v10601_v27 = vld [vmem:[%s15949_s28 + $0x5] ss:$0 sm:$0xff] }
  0x36   : > { %v9675_v8 = vld [vmem:[%s15948_s3 + $0x20] sm:$0xff]  ;;  %v990_v10 = vld [vmem:[%s10566_s26 + $0x8] sm:$0xff]  ;;  %v1200_v19 = vld [vmem:[%s10566_s26 + $0x12] sm:$0xff]  ;;  %s15952_s29 = smov %s15951_s8  ;;  %s15956_s0 = sld [smem:[#allocation53_spill]] }
  0x37   : > { %v989_v9 = vld [vmem:[%s10566_s26] sm:$0xff]  ;;  %v1033_v13 = vmul.f32 %v10548_v2, %v990_v10  ;;  %v1074_v14 = vld [vmem:[%s10566_s26 + $0x9] sm:$0xff]  ;;  %v1409_v23 = vld [vmem:[%s10566_s26 + $0x13] sm:$0xff]  ;;  %v1327_v25 = vmul.f32 %v10571_v6, %v1200_v19  ;;  %v1243_v59 = vmul.f32 %v10561_v5, %v1200_v19  ;;  %s15954_s5 = smov %s15953_s30  ;;  %s16020_s6 = sld [smem:[#allocation54_spill]] }
  0x38   : > { %2085 = vmatpush.bf16.msra.mxu0 %v9677_v1  ;;  %9753 = vmatpush.bf16.msra.mxu3 %v9677_v1  ;;  %v1073_v11 = vld [vmem:[%s10566_s26 + $0x1] sm:$0xff]  ;;  %v1032_v12 = vmul.f32 %v10548_v2, %v989_v9  ;;  %v1199_v17 = vld [vmem:[%s10566_s26 + $0xa] sm:$0xff]  ;;  %v1117_v18 = vmul.f32 %v10553_v3, %v1074_v14  ;;  %v9674_v28 = vld [vmem:[%s15948_s3 + $0x18] sm:$0xff]  ;;  %v1452_v34 = vmul.f32 %v10576_v7, %v1409_v23  ;;  %s16067_s27 = sld [smem:[#allocation56_spill]] }
  0x39   : > { %v1116_v15 = vmul.f32 %v10553_v3, %v1073_v11  ;;  %v1198_v16 = vld [vmem:[%s10566_s26 + $0x2] sm:$0xff]  ;;  %v1201_v20 = vld [vmem:[%s10566_s26 + $0x1a] sm:$0xff]  ;;  %v1242_v22 = vmul.f32 %v10561_v5, %v1199_v17  ;;  %v1537_v39 = vld [vmem:[%s10566_s26 + $0x2c] sm:$0xff]  ;;  %s16092_s13 = sld [smem:[#allocation59_spill]] }
  0x3a   : > { %v1241_v21 = vmul.f32 %v10561_v5, %v1198_v16  ;;  %v1410_v26 = vld [vmem:[%s10566_s26 + $0x1b] sm:$0xff]  ;;  %v1158_v29 = vadd.f32 %v1117_v18, %v1033_v13  ;;  %v1328_v30 = vmul.f32 %v10571_v6, %v1201_v20  ;;  %v10611_v32 = vld [vmem:[%s15949_s28 + $0x6] ss:$0 sm:$0xff]  ;;  %v10623_v43 = vld [vmem:[%s15949_s28 + $0x7] ss:$0 sm:$0xff]  ;;  %v1244_v1 = vmul.f32 %v10561_v5, %v1201_v20  ;;  %s16115_s12 = sld [smem:[#allocation58_spill]] }
  0x3b   : > { %v1157_v24 = vadd.f32 %v1116_v15, %v1032_v12  ;;  %v1534_v31 = vld [vmem:[%s10566_s26 + $0x14] sm:$0xff]  ;;  %v1535_v35 = vld [vmem:[%s10566_s26 + $0x1c] sm:$0xff]  ;;  %v1536_v36 = vld [vmem:[%s10566_s26 + $0x24] sm:$0xff]  ;;  %v1453_v38 = vmul.f32 %v10576_v7, %v1410_v26  ;;  %v1664_v62 = vmul.f32 %v10611_v32, %v1537_v39  ;;  %s16129_s14 = sld [smem:[#allocation60_spill]] }
  0x3c   : > { %2086 = vmatpush.bf16.msra.mxu0 %v9676_v4  ;;  %9754 = vmatpush.bf16.msra.mxu3 %v9676_v4  ;;  %v1283_v37 = vadd.f32 %v1242_v22, %v1158_v29  ;;  %v1745_v40 = vld [vmem:[%s10566_s26 + $0x25] sm:$0xff]  ;;  %v1577_v42 = vmul.f32 %v10601_v27, %v1534_v31  ;;  %v991_v44 = vld [vmem:[%s10566_s26 + $0x10] sm:$0xff]  ;;  %v992_v45 = vld [vmem:[%s10566_s26 + $0x18] sm:$0xff]  ;;  %v1578_v47 = vmul.f32 %v10601_v27, %v1535_v35  ;;  %s16157_s17 = sld [smem:[#allocation63_spill]] }
  0x3d   : > { %v1282_v33 = vadd.f32 %v1241_v21, %v1157_v24  ;;  %v1034_v48 = vmul.f32 %v10548_v2, %v991_v44  ;;  %v1035_v49 = vmul.f32 %v10548_v2, %v992_v45  ;;  %v1075_v50 = vld [vmem:[%s10566_s26 + $0x11] sm:$0xff]  ;;  %v1076_v51 = vld [vmem:[%s10566_s26 + $0x19] sm:$0xff]  ;;  %v10633_v52 = vld [vmem:[%s10566_s26 + $0x22] sm:$0xff]  ;;  %v1663_v54 = vmul.f32 %v10611_v32, %v1536_v36  ;;  %s16159_s16 = sld [smem:[#allocation62_spill]] }
  0x3e   : > { %v1369_v46 = vadd.f32 %v1328_v30, %v1283_v37  ;;  %v1746_v55 = vld [vmem:[%s10566_s26 + $0x2d] sm:$0xff]  ;;  %v10640_v56 = vld [vmem:[%s15949_s28 + $0x8] ss:$0 sm:$0xff]  ;;  %v1118_v57 = vmul.f32 %v10553_v3, %v1075_v50  ;;  %v1119_v0 = vmul.f32 %v10553_v3, %v1076_v51  ;;  %v1788_v9 = vmul.f32 %v10623_v43, %v1745_v40  ;;  %v993_v22 = vld [vmem:[%s10566_s26 + $0x20] sm:$0xff]  ;;  %s16160_s15 = sld [smem:[#allocation61_spill]] }
  0x3f   : > { %v1368_v41 = vadd.f32 %v1327_v25, %v1282_v33  ;;  %v1203_v58 = vld [vmem:[%s10566_s26 + $0x2a] sm:$0xff]  ;;  %v1329_v12 = vmul.f32 %v10571_v6, %v10633_v52  ;;  %v1789_v15 = vmul.f32 %v10623_v43, %v1746_v55  ;;  %v1077_v23 = vld [vmem:[%s10566_s26 + $0x21] sm:$0xff]  ;;  %v1579_v35 = vmul.f32 %v10601_v27, %v1536_v36  ;;  %s834_s7 = scalar_select %p833_p11, %s10511_s9, 1 }
  0x40   : > { %2087 = vmatpush.bf16.msra.mxu0 %v9675_v8  ;;  %9755 = vmatpush.bf16.msra.mxu3 %v9675_v8  ;;  %v9673_v60 = vld [vmem:[%s15948_s3 + $0x10] sm:$0xff]  ;;  %v1494_v61 = vadd.f32 %v1453_v38, %v1369_v46  ;;  %v1870_v63 = vld [vmem:[%s10566_s26 + $0x26] sm:$0xff]  ;;  %v1159_v11 = vadd.f32 %v1118_v57, %v1034_v48  ;;  %v1160_v16 = vadd.f32 %v1119_v0, %v1035_v49  ;;  %v1539_v44 = vld [vmem:[%s10566_s26 + $0x3c] sm:$0xff]  ;;  %s16164_s18 = sld [smem:[#allocation64_spill]] }
  0x41   : > { %v1493_v53 = vadd.f32 %v1452_v34, %v1368_v41  ;;  %v1411_v4 = vld [vmem:[%s10566_s26 + $0x23] sm:$0xff]  ;;  %v1871_v10 = vld [vmem:[%s10566_s26 + $0x2e] sm:$0xff]  ;;  %v1330_v17 = vmul.f32 %v10571_v6, %v1203_v58  ;;  %v1913_v19 = vmul.f32 %v10640_v56, %v1870_v63  ;;  %v1580_v37 = vmul.f32 %v10601_v27, %v1537_v39 }
  0x42   : > { %v1412_v13 = vld [vmem:[%s10566_s26 + $0x2b] sm:$0xff]  ;;  %v1619_v14 = vadd.f32 %v1578_v47, %v1494_v61  ;;  %v1284_v20 = vadd.f32 %v1243_v59, %v1159_v11  ;;  %v1454_v21 = vmul.f32 %v10576_v7, %v1411_v4  ;;  %v1914_v26 = vmul.f32 %v10640_v56, %v1871_v10  ;;  %v9671_v38 = vld [vmem:[%s15948_s3] sm:$0xff] }
  0x43   : > { %v1618_v8 = vadd.f32 %v1577_v42, %v1493_v53  ;;  %v9672_v24 = vld [vmem:[%s15948_s3 + $0x8] sm:$0xff]  ;;  %v1455_v29 = vmul.f32 %v10576_v7, %v1412_v13  ;;  %v1538_v42 = vld [vmem:[%s10566_s26 + $0x34] sm:$0xff]  ;;  %v1036_v45 = vmul.f32 %v10548_v2, %v993_v22  ;;  %v1120_v46 = vmul.f32 %v10553_v3, %v1077_v23  ;;  %v1748_v55 = vld [vmem:[%s10566_s26 + $0x3d] sm:$0xff]  ;;  %s16087_s3 = sld [smem:[#allocation57_spill]] }
  0x44   : > { %2088 = vmatpush.bf16.msra.mxu0 %v9674_v28  ;;  %9756 = vmatpush.bf16.msra.mxu3 %v9674_v28  ;;  %v1705_v25 = vadd.f32 %v1664_v62, %v1619_v14  ;;  %v1285_v28 = vadd.f32 %v1244_v1, %v1160_v16  ;;  %v994_v30 = vld [vmem:[%s10566_s26 + $0x28] sm:$0xff]  ;;  %v1370_v34 = vadd.f32 %v1329_v12, %v1284_v20  ;;  %v1204_v59 = vld [vmem:[%s10566_s26 + $0x32] sm:$0xff]  ;;  %v1205_v4 = vld [vmem:[%s10566_s26 + $0x3a] sm:$0xff] }
  0x45   : > { %v1704_v18 = vadd.f32 %v1663_v54, %v1618_v8  ;;  %v1078_v31 = vld [vmem:[%s10566_s26 + $0x29] sm:$0xff]  ;;  %v1037_v39 = vmul.f32 %v10548_v2, %v994_v30  ;;  %v1665_v51 = vmul.f32 %v10611_v32, %v1538_v42  ;;  %v1666_v53 = vmul.f32 %v10611_v32, %v1539_v44  ;;  %v1747_v54 = vld [vmem:[%s10566_s26 + $0x35] sm:$0xff]  ;;  %v1873_v13 = vld [vmem:[%s10566_s26 + $0x3e] sm:$0xff] }
  0x46   : > { %v1830_v40 = vadd.f32 %v1789_v15, %v1705_v25  ;;  %v1371_v41 = vadd.f32 %v1330_v17, %v1285_v28  ;;  %v1495_v36 = vadd.f32 %v1454_v21, %v1370_v34  ;;  %v1121_v48 = vmul.f32 %v10553_v3, %v1078_v31  ;;  %v1413_v16 = vld [vmem:[%s10566_s26 + $0x33] sm:$0xff]  ;;  %v1414_v17 = vld [vmem:[%s10566_s26 + $0x3b] sm:$0xff]  ;;  %v1540_v31 = vld [vmem:[%s10566_s26 + $0x44] sm:$0xff] }
  0x47   : > { %v1829_v33 = vadd.f32 %v1788_v9, %v1704_v18  ;;  %v1161_v57 = vadd.f32 %v1120_v46, %v1036_v45  ;;  %v1246_v61 = vmul.f32 %v10561_v5, %v1203_v58  ;;  %v1790_v8 = vmul.f32 %v10623_v43, %v1747_v54  ;;  %v1872_v9 = vld [vmem:[%s10566_s26 + $0x36] sm:$0xff]  ;;  %v1206_v54 = vld [vmem:[%s10566_s26 + $0x42] sm:$0xff] }
  0x48   : > { %2089 = vmatpush.bf16.msra.mxu0 %v9673_v60  ;;  %9757 = vmatpush.bf16.msra.mxu3 %v9673_v60  ;;  %v1955_v49 = vadd.f32 %v1914_v26, %v1830_v40  ;;  %v1496_v50 = vadd.f32 %v1455_v29, %v1371_v41  ;;  %v1245_v60 = vmul.f32 %v10561_v5, %v10633_v52  ;;  %v995_v18 = vld [vmem:[%s10566_s26 + $0x30] sm:$0xff]  ;;  %v1080_v21 = vld [vmem:[%s10566_s26 + $0x39] sm:$0xff] }
  0x49   : > { %v1954_v47 = vadd.f32 %v1913_v19, %v1829_v33  ;;  %v1620_v63 = vadd.f32 %v1579_v35, %v1495_v36  ;;  %v1162_v1 = vadd.f32 %v1121_v48, %v1037_v39  ;;  %v1791_v52 = vmul.f32 %v10623_v43, %v1748_v55  ;;  %v996_v19 = vld [vmem:[%s10566_s26 + $0x38] sm:$0xff] }
  0x4a   : > { %v1621_v0 = vadd.f32 %v1580_v37, %v1496_v50  ;;  %v1331_v58 = vmul.f32 %v10571_v6, %v1204_v59  ;;  %v1332_v10 = vmul.f32 %v10571_v6, %v1205_v4  ;;  %v1286_v14 = vadd.f32 %v1245_v60, %v1161_v57  ;;  %v1079_v20 = vld [vmem:[%s10566_s26 + $0x31] sm:$0xff] }
  0x4b   : > { %v1995_v62 = vpack.c.bf16 %v1955_v49, %v1954_v47  ;;  %v1706_v11 = vadd.f32 %v1665_v51, %v1620_v63  ;;  %v1287_v15 = vadd.f32 %v1246_v61, %v1162_v1  ;;  %v1915_v22 = vmul.f32 %v10640_v56, %v1872_v9  ;;  %v1750_v61 = vld [vmem:[%s10566_s26 + $0x4d] sm:$0xff]  ;;  %v1415_v1 = vld [vmem:[%s10566_s26 + $0x43] sm:$0xff] }
  0x4c   : > { %2090 = vmatpush.bf16.msra.mxu0 %v9672_v24  ;;  %9758 = vmatpush.bf16.msra.mxu3 %v9672_v24  ;;  %v1707_v12 = vadd.f32 %v1666_v53, %v1621_v0  ;;  %v1916_v23 = vmul.f32 %v10640_v56, %v1873_v13  ;;  %v1456_v24 = vmul.f32 %v10576_v7, %v1413_v16  ;;  %v1749_v53 = vld [vmem:[%s10566_s26 + $0x45] sm:$0xff] }
  0x4d   : > { %v1457_v25 = vmul.f32 %v10576_v7, %v1414_v17  ;;  %v1831_v26 = vadd.f32 %v1790_v8, %v1706_v11  ;;  %v1372_v29 = vadd.f32 %v1331_v58, %v1286_v14  ;;  %v1373_v30 = vadd.f32 %v1332_v10, %v1287_v15  ;;  %v1874_v10 = vld [vmem:[%s10566_s26 + $0x46] sm:$0xff]  ;;  %v1875_v11 = vld [vmem:[%s10566_s26 + $0x4e] sm:$0xff] }
  0x4e   : > { %v1832_v28 = vadd.f32 %v1791_v52, %v1707_v12  ;;  %v1038_v33 = vmul.f32 %v10548_v2, %v995_v18  ;;  %v1039_v34 = vmul.f32 %v10548_v2, %v996_v19  ;;  %v1122_v35 = vmul.f32 %v10553_v3, %v1079_v20  ;;  %v997_v16 = vld [vmem:[%s10566_s26 + $0x40] sm:$0xff]  ;;  %v998_v17 = vld [vmem:[%s10566_s26 + $0x48] sm:$0xff] }
  0x4f   : > { %v1123_v37 = vmul.f32 %v10553_v3, %v1080_v21  ;;  %v1581_v40 = vmul.f32 %v10601_v27, %v1538_v42  ;;  %v1582_v41 = vmul.f32 %v10601_v27, %v1539_v44  ;;  %v1956_v45 = vadd.f32 %v1915_v22, %v1831_v26  ;;  %v1207_v42 = vld [vmem:[%s10566_s26 + $0x4a] sm:$0xff]  ;;  %v1081_v18 = vld [vmem:[%s10566_s26 + $0x41] sm:$0xff] }
  0x50   : > { %2091 = vmatpush.bf16.msra.mxu0 %v9671_v38  ;;  %9759 = vmatpush.bf16.msra.mxu3 %v9671_v38  ;;  %v1541_v38 = vld [vmem:[%s10566_s26 + $0x4c] sm:$0xff]  ;;  %v1957_v46 = vadd.f32 %v1916_v23, %v1832_v28  ;;  %v1497_v47 = vadd.f32 %v1456_v24, %v1372_v29  ;;  %v1498_v36 = vadd.f32 %v1457_v25, %v1373_v30  ;;  %v1542_v24 = vld [vmem:[%s10566_s26 + $0x54] sm:$0xff]  ;;  %v1543_v25 = vld [vmem:[%s10566_s26 + $0x5c] sm:$0xff] }
  0x51   : > { %v1163_v39 = vadd.f32 %v1122_v35, %v1038_v33  ;;  %v1164_v48 = vadd.f32 %v1123_v37, %v1039_v34  ;;  %v1247_v49 = vmul.f32 %v10561_v5, %v1204_v59  ;;  %v1248_v50 = vmul.f32 %v10561_v5, %v1205_v4  ;;  %v1416_v4 = vld [vmem:[%s10566_s26 + $0x4b] sm:$0xff] }
  0x52   : > { %v1667_v51 = vmul.f32 %v10611_v32, %v1540_v31  ;;  %v1996_v55 = vpack.c.bf16 %v1957_v46, %v1956_v45  ;;  %v1622_v44 = vadd.f32 %v1581_v40, %v1497_v47  ;;  %v1623_v57 = vadd.f32 %v1582_v41, %v1498_v36  ;;  %v1082_v19 = vld [vmem:[%s10566_s26 + $0x49] sm:$0xff]  ;;  %v1752_v36 = vld [vmem:[%s10566_s26 + $0x5d] sm:$0xff] }
  0x53   : > { %2092 = vmatmul.bf16.vlgmr.msra.gmra.mxu0 %v1995_v62  ;;  %v1668_v60 = vmul.f32 %v10611_v32, %v1541_v38  ;;  %v1288_v62 = vadd.f32 %v1247_v49, %v1163_v39  ;;  %v1289_v63 = vadd.f32 %v1248_v50, %v1164_v48  ;;  %v1333_v59 = vmul.f32 %v10571_v6, %v1206_v54  ;;  %v1208_v49 = vld [vmem:[%s10566_s26 + $0x52] sm:$0xff] }
  0x54   : > { %v1334_v0 = vmul.f32 %v10571_v6, %v1207_v42  ;;  %v1708_v8 = vadd.f32 %v1667_v51, %v1622_v44  ;;  %v1792_v9 = vmul.f32 %v10623_v43, %v1749_v53  ;;  %v1793_v58 = vmul.f32 %v10623_v43, %v1750_v61 }
  0x55   : > { %v1709_v52 = vadd.f32 %v1668_v60, %v1623_v57  ;;  %v1374_v12 = vadd.f32 %v1333_v59, %v1288_v62  ;;  %v1458_v14 = vmul.f32 %v10576_v7, %v1415_v1  ;;  %v1459_v15 = vmul.f32 %v10576_v7, %v1416_v4  ;;  %v1876_v62 = vld [vmem:[%s10566_s26 + $0x56] sm:$0xff] }
  0x56   : > { %v1375_v13 = vadd.f32 %v1334_v0, %v1289_v63  ;;  %v1833_v20 = vadd.f32 %v1792_v9, %v1708_v8  ;;  %v1917_v22 = vmul.f32 %v10640_v56, %v1874_v10  ;;  %v1918_v23 = vmul.f32 %v10640_v56, %v1875_v11  ;;  %v1877_v63 = vld [vmem:[%s10566_s26 + $0x5e] sm:$0xff]  ;;  %v1417_v1 = vld [vmem:[%s10566_s26 + $0x53] sm:$0xff] }
  0x57   : > { %v1834_v21 = vadd.f32 %v1793_v58, %v1709_v52  ;;  %v1499_v26 = vadd.f32 %v1458_v14, %v1374_v12  ;;  %v1583_v29 = vmul.f32 %v10601_v27, %v1540_v31  ;;  %v1584_v30 = vmul.f32 %v10601_v27, %v1541_v38  ;;  %v1751_v38 = vld [vmem:[%s10566_s26 + $0x55] sm:$0xff] }
  0x58   : > { %v1500_v28 = vadd.f32 %v1459_v15, %v1375_v13  ;;  %v1040_v33 = vmul.f32 %v10548_v2, %v997_v16  ;;  %v1041_v34 = vmul.f32 %v10548_v2, %v998_v17  ;;  %v1124_v35 = vmul.f32 %v10553_v3, %v1081_v18  ;;  %v1418_v4 = vld [vmem:[%s10566_s26 + $0x5b] sm:$0xff]  ;;  %v999_v14 = vld [vmem:[%s10566_s26 + $0x50] sm:$0xff] }
  0x59   : > { %v1125_v37 = vmul.f32 %v10553_v3, %v1082_v19  ;;  %v1958_v40 = vadd.f32 %v1917_v22, %v1833_v20  ;;  %v1959_v41 = vadd.f32 %v1918_v23, %v1834_v21  ;;  %v1624_v45 = vadd.f32 %v1583_v29, %v1499_v26  ;;  %v1000_v15 = vld [vmem:[%s10566_s26 + $0x58] sm:$0xff]  ;;  %v1544_v22 = vld [vmem:[%s10566_s26 + $0x64] sm:$0xff] }
  0x5a   : > { %v1625_v46 = vadd.f32 %v1584_v30, %v1500_v28  ;;  %v1669_v47 = vmul.f32 %v10611_v32, %v1542_v24  ;;  %v1670_v31 = vmul.f32 %v10611_v32, %v1543_v25  ;;  %v1165_v39 = vadd.f32 %v1124_v35, %v1040_v33  ;;  %v1083_v16 = vld [vmem:[%s10566_s26 + $0x51] sm:$0xff]  ;;  %v1084_v17 = vld [vmem:[%s10566_s26 + $0x59] sm:$0xff] }
  0x5b   : > { %v1166_v48 = vadd.f32 %v1125_v37, %v1041_v34  ;;  %v1249_v50 = vmul.f32 %v10561_v5, %v1206_v54  ;;  %v1250_v51 = vmul.f32 %v10561_v5, %v1207_v42  ;;  %v1997_v53 = vpack.c.bf16 %v1959_v41, %v1958_v40  ;;  %v1545_v28 = vld [vmem:[%s10566_s26 + $0x6c] sm:$0xff] }
  0x5c   : > { %v1710_v44 = vadd.f32 %v1669_v47, %v1624_v45  ;;  %v1711_v57 = vadd.f32 %v1670_v31, %v1625_v46  ;;  %v1794_v60 = vmul.f32 %v10623_v43, %v1751_v38  ;;  %v1795_v61 = vmul.f32 %v10623_v43, %v1752_v36  ;;  %v1754_v45 = vld [vmem:[%s10566_s26 + $0x6d] sm:$0xff]  ;;  %v1210_v36 = vld [vmem:[%s10566_s26 + $0x62] sm:$0xff] }
  0x5d   : > { %v1290_v59 = vadd.f32 %v1249_v50, %v1165_v39  ;;  %v1291_v0 = vadd.f32 %v1250_v51, %v1166_v48  ;;  %v1335_v54 = vmul.f32 %v10571_v6, %v1208_v49  ;;  %v1919_v9 = vmul.f32 %v10640_v56, %v1876_v62  ;;  %v1211_v39 = vld [vmem:[%s10566_s26 + $0x6a] sm:$0xff] }
  0x5e   : > { %v1835_v8 = vadd.f32 %v1794_v60, %v1710_v44  ;;  %v1836_v52 = vadd.f32 %v1795_v61, %v1711_v57  ;;  %v1920_v58 = vmul.f32 %v10640_v56, %v1877_v63  ;;  %v1460_v12 = vmul.f32 %v10576_v7, %v1417_v1  ;;  %v1878_v44 = vld [vmem:[%s10566_s26 + $0x66] sm:$0xff]  ;;  %v1879_v57 = vld [vmem:[%s10566_s26 + $0x6e] sm:$0xff] }
  0x5f   : > { %v1376_v10 = vadd.f32 %v1335_v54, %v1290_v59  ;;  %v1461_v13 = vmul.f32 %v10576_v7, %v1418_v4  ;;  %v1585_v23 = vmul.f32 %v10601_v27, %v1542_v24  ;;  %v1586_v26 = vmul.f32 %v10601_v27, %v1543_v25  ;;  %v1753_v25 = vld [vmem:[%s10566_s26 + $0x65] sm:$0xff] }
  0x60   : > { %v1960_v18 = vadd.f32 %v1919_v9, %v1835_v8  ;;  %v1961_v19 = vadd.f32 %v1920_v58, %v1836_v52  ;;  %v1042_v29 = vmul.f32 %v10548_v2, %v999_v14  ;;  %v1043_v30 = vmul.f32 %v10548_v2, %v1000_v15  ;;  %v1419_v62 = vld [vmem:[%s10566_s26 + $0x63] sm:$0xff]  ;;  %v1420_v63 = vld [vmem:[%s10566_s26 + $0x6b] sm:$0xff] }
  0x61   : > { %v1501_v20 = vadd.f32 %v1460_v12, %v1376_v10  ;;  %v1126_v33 = vmul.f32 %v10553_v3, %v1083_v16  ;;  %v1127_v34 = vmul.f32 %v10553_v3, %v1084_v17  ;;  %v1671_v35 = vmul.f32 %v10611_v32, %v1544_v22  ;;  %v1001_v59 = vld [vmem:[%s10566_s26 + $0x60] sm:$0xff]  ;;  %v1002_v4 = vld [vmem:[%s10566_s26 + $0x68] sm:$0xff] }
  0x62   : > { %v1998_v37 = vpack.c.bf16 %v1961_v19, %v1960_v18  ;;  %v1672_v24 = vmul.f32 %v10611_v32, %v1545_v28  ;;  %v1251_v31 = vmul.f32 %v10561_v5, %v1208_v49  ;;  %v1796_v51 = vmul.f32 %v10623_v43, %v1753_v25  ;;  %v1085_v8 = vld [vmem:[%s10566_s26 + $0x61] sm:$0xff]  ;;  %v1086_v52 = vld [vmem:[%s10566_s26 + $0x69] sm:$0xff]  ;;  %v1755_v25 = vld [vmem:[%s10566_s26 + $0x75] sm:$0xff] }
  0x63   : > { %2097 = vmatmul.bf16.gmra.mxu0 %v1996_v55  ;;  %v1209_v55 = vld [vmem:[%s10566_s26 + $0x5a] sm:$0xff]  ;;  %v1626_v40 = vadd.f32 %v1585_v23, %v1501_v20  ;;  %v1167_v46 = vadd.f32 %v1126_v33, %v1042_v29  ;;  %v1168_v47 = vadd.f32 %v1127_v34, %v1043_v30  ;;  %v1337_v61 = vmul.f32 %v10571_v6, %v1210_v36 }
  0x64   : > { %v1336_v42 = vmul.f32 %v10571_v6, %v1209_v55  ;;  %v1252_v38 = vmul.f32 %v10561_v5, %v1209_v55  ;;  %v1338_v55 = vmul.f32 %v10571_v6, %v1211_v39  ;;  %v1922_v1 = vmul.f32 %v10640_v56, %v1879_v57  ;;  %v1546_v23 = vld [vmem:[%s10566_s26 + $0x74] sm:$0xff]  ;;  %v1881_v57 = vld [vmem:[%s10566_s26 + $0x7e] sm:$0xff] }
  0x65   : > { %v1712_v48 = vadd.f32 %v1671_v35, %v1626_v40  ;;  %v1292_v60 = vadd.f32 %v1251_v31, %v1167_v46  ;;  %v1462_v10 = vmul.f32 %v10576_v7, %v1419_v62  ;;  %v1044_v12 = vmul.f32 %v10548_v2, %v1001_v59  ;;  %v1213_v40 = vld [vmem:[%s10566_s26 + $0x7a] sm:$0xff] }
  0x66   : > { %v1377_v11 = vadd.f32 %v1336_v42, %v1291_v0  ;;  %v1293_v49 = vadd.f32 %v1252_v38, %v1168_v47  ;;  %v1921_v42 = vmul.f32 %v10640_v56, %v1878_v44  ;;  %v1128_v14 = vmul.f32 %v10553_v3, %v1085_v8  ;;  %v1880_v44 = vld [vmem:[%s10566_s26 + $0x76] sm:$0xff] }
  0x67   : > { %v1837_v0 = vadd.f32 %v1796_v51, %v1712_v48  ;;  %v1378_v9 = vadd.f32 %v1337_v61, %v1292_v60  ;;  %v1129_v15 = vmul.f32 %v10553_v3, %v1086_v52  ;;  %v1587_v20 = vmul.f32 %v10601_v27, %v1544_v22 }
  0x68   : > { %v1502_v21 = vadd.f32 %v1461_v13, %v1377_v11  ;;  %v1379_v58 = vadd.f32 %v1338_v55, %v1293_v49  ;;  %v1463_v11 = vmul.f32 %v10576_v7, %v1420_v63  ;;  %v1045_v13 = vmul.f32 %v10548_v2, %v1002_v4  ;;  %v1088_v4 = vld [vmem:[%s10566_s26 + $0x79] sm:$0xff] }
  0x69   : > { %v1962_v16 = vadd.f32 %v1921_v42, %v1837_v0  ;;  %v1503_v18 = vadd.f32 %v1462_v10, %v1378_v9  ;;  %v1169_v29 = vadd.f32 %v1128_v14, %v1044_v12  ;;  %v1253_v33 = vmul.f32 %v10561_v5, %v1210_v36  ;;  %v1421_v36 = vld [vmem:[%s10566_s26 + $0x73] sm:$0xff]  ;;  %v1548_v10 = vld [vmem:[%s10566_s26 + $0x84] sm:$0xff] }
  0x6a   : > { %v1627_v41 = vadd.f32 %v1586_v26, %v1502_v21  ;;  %v1504_v19 = vadd.f32 %v1463_v11, %v1379_v58  ;;  %v1588_v21 = vmul.f32 %v10601_v27, %v1545_v28  ;;  %v1547_v26 = vld [vmem:[%s10566_s26 + $0x7c] sm:$0xff]  ;;  %v1170_v30 = vadd.f32 %v1129_v15, %v1045_v13  ;;  %v1087_v42 = vld [vmem:[%s10566_s26 + $0x71] sm:$0xff] }
  0x6b   : > { %v1254_v34 = vmul.f32 %v10561_v5, %v1211_v39  ;;  %v1673_v22 = vmul.f32 %v10611_v32, %v1546_v23  ;;  %v1674_v28 = vmul.f32 %v10611_v32, %v1547_v26  ;;  %v1294_v46 = vadd.f32 %v1253_v33, %v1169_v29  ;;  %v1422_v39 = vld [vmem:[%s10566_s26 + $0x7b] sm:$0xff]  ;;  %v10839_v11 = vld [vmem:[%s10566_s26 + $0x8c] sm:$0xff] }
  0x6c   : > { %v1713_v50 = vadd.f32 %v1672_v24, %v1627_v41  ;;  %v1628_v41 = vadd.f32 %v1587_v20, %v1503_v18  ;;  %v1629_v24 = vadd.f32 %v1588_v21, %v1504_v19  ;;  %v1340_v38 = vmul.f32 %v10571_v6, %v1213_v40 }
  0x6d   : > { %v1295_v47 = vadd.f32 %v1254_v34, %v1170_v30  ;;  %v1798_v51 = vmul.f32 %v10623_v43, %v1755_v25  ;;  %v1464_v61 = vmul.f32 %v10576_v7, %v1421_v36  ;;  %v1465_v55 = vmul.f32 %v10576_v7, %v1422_v39  ;;  %v1882_v25 = vld [vmem:[%s10566_s26 + $0x86] sm:$0xff] }
  0x6e   : > { %v1714_v48 = vadd.f32 %v1673_v22, %v1628_v41  ;;  %v1923_v59 = vmul.f32 %v10640_v56, %v1880_v44  ;;  %v1924_v0 = vmul.f32 %v10640_v56, %v1881_v57  ;;  %v1589_v9 = vmul.f32 %v10601_v27, %v1546_v23  ;;  %v1757_v23 = vld [vmem:[%s10566_s26 + $0x85] sm:$0xff] }
  0x6f   : > { %v1381_v49 = vadd.f32 %v1340_v38, %v1295_v47  ;;  %v1590_v58 = vmul.f32 %v10601_v27, %v1547_v26  ;;  %v1130_v13 = vmul.f32 %v10553_v3, %v1087_v42  ;;  %v1675_v20 = vmul.f32 %v10611_v32, %v1548_v10  ;;  %v1758_v26 = vld [vmem:[%s10566_s26 + $0x8d] sm:$0xff]  ;;  %v1005_v57 = vld [vmem:[%s10566_s26 + $0x80] sm:$0xff] }
  0x70   : > { %v1839_v62 = vadd.f32 %v1798_v51, %v1714_v48  ;;  %v1676_v21 = vmul.f32 %v10611_v32, %v10839_v11  ;;  %v1800_v22 = vmul.f32 %v10623_v43, %v1757_v23  ;;  %v10347_v38 = vmov 0.0   ;;  %v10921_v23 = vld [vmem:[%s10566_s26 + $0x9a] sm:$0xff] }
  0x71   : > { %v1506_v52 = vadd.f32 %v1465_v55, %v1381_v49  ;;  %846 = vst [vmem:[#allocation2 + $0x10] sm:$0xff] %v10347_v38  ;;  %v1925_v48 = vmul.f32 %v10640_v56, %v1882_v25  ;;  %v1006_v49 = vld [vmem:[%s10566_s26 + $0x88] sm:$0xff] }
  0x72   : > { %v1964_v14 = vadd.f32 %v1923_v59, %v1839_v62  ;;  %847 = vst [vmem:[#allocation2 + $0x18] sm:$0xff] %v10347_v38  ;;  %v1591_v59 = vmul.f32 %v10601_v27, %v1548_v10 }
  0x73   : > { %2102 = vmatmul.bf16.gmra.mxu0 %v1997_v53  ;;  %v1797_v53 = vmul.f32 %v10623_v43, %v1754_v45  ;;  %v1756_v45 = vld [vmem:[%s10566_s26 + $0x7d] sm:$0xff]  ;;  %v1631_v19 = vadd.f32 %v1590_v58, %v1506_v52  ;;  %844 = vst [vmem:[#allocation2] sm:$0xff] %v10347_v38 }
  0x74   : > { %845 = vst [vmem:[#allocation2 + $0x8] sm:$0xff] %v10347_v38  ;;  %v1551_v58 = vld [vmem:[%s10566_s26 + $0x9c] sm:$0xff] }
  0x75   : > { %v1838_v54 = vadd.f32 %v1797_v53, %v1713_v50  ;;  %v1715_v50 = vadd.f32 %v1674_v28, %v1629_v24  ;;  %v1799_v53 = vmul.f32 %v10623_v43, %v1756_v45  ;;  %v1717_v24 = vadd.f32 %v1676_v21, %v1631_v19  ;;  %v1883_v45 = vld [vmem:[%s10566_s26 + $0x8e] sm:$0xff]  ;;  %848 = vst [vmem:[#allocation2 + $0x20] sm:$0xff] %v10347_v38 }
  0x76   : > { %v1801_v28 = vmul.f32 %v10623_v43, %v1758_v26  ;;  %849 = vst [vmem:[#allocation2 + $0x28] sm:$0xff] %v10347_v38 }
  0x77   : > { %v1963_v17 = vadd.f32 %v1922_v1, %v1838_v54  ;;  %v1840_v63 = vadd.f32 %v1799_v53, %v1715_v50  ;;  %v1003_v54 = vld [vmem:[%s10566_s26 + $0x70] sm:$0xff]  ;;  %v1004_v1 = vld [vmem:[%s10566_s26 + $0x78] sm:$0xff]  ;;  %v1926_v50 = vmul.f32 %v10640_v56, %v1883_v45  ;;  %850 = vst [vmem:[#allocation2 + $0x30] sm:$0xff] %v10347_v38 }
  0x78   : > { %v1046_v12 = vmul.f32 %v10548_v2, %v1003_v54  ;;  %v1842_v39 = vadd.f32 %v1801_v28, %v1717_v24  ;;  %v10890_v54 = vld [vmem:[%s15949_s28 + $0x1] ss:$0 sm:$0xff]  ;;  %851 = vst [vmem:[#allocation2 + $0x38] sm:$0xff] %v10347_v38  ;;  %v1425_v24 = vld [vmem:[%s10566_s26 + $0x93] sm:$0xff] }
  0x79   : > { %v1999_v35 = vpack.c.bf16 %v1963_v17, %v1962_v16  ;;  %v1965_v15 = vadd.f32 %v1924_v0, %v1840_v63  ;;  %v1047_v16 = vmul.f32 %v10548_v2, %v1004_v1  ;;  %v1131_v17 = vmul.f32 %v10553_v3, %v1088_v4  ;;  %v1214_v2 = vld [vmem:[%s10566_s26 + $0x82] sm:$0xff]  ;;  %v1550_v4 = vld [vmem:[%s10566_s26 + $0x94] sm:$0xff]  ;;  %852 = vst [vmem:[#allocation2 + $0x40] sm:$0xff] %v10347_v38 }
  0x7a   : > { %v1171_v29 = vadd.f32 %v1130_v13, %v1046_v12  ;;  %v1256_v3 = vmul.f32 %v10561_v5, %v1213_v40  ;;  %v1424_v40 = vld [vmem:[%s10566_s26 + $0x8b] sm:$0xff]  ;;  %v1967_v62 = vadd.f32 %v1926_v50, %v1842_v39  ;;  %853 = vst [vmem:[#allocation2 + $0x48] sm:$0xff] %v10347_v38  ;;  %v1677_v13 = vmul.f32 %v10611_v32, %v1550_v4 }
  0x7b   : > { %v2000_v33 = vpack.c.bf16 %v1965_v15, %v1964_v14  ;;  %v1172_v34 = vadd.f32 %v1131_v17, %v1047_v16  ;;  %v1467_v44 = vmul.f32 %v10576_v7, %v1424_v40  ;;  %v1759_v14 = vld [vmem:[%s10566_s26 + $0x95] sm:$0xff]  ;;  %854 = vst [vmem:[#allocation2 + $0x50] sm:$0xff] %v10347_v38  ;;  %v1678_v17 = vmul.f32 %v10611_v32, %v1551_v58 }
  0x7c   : > { %855 = vst [vmem:[#allocation2 + $0x58] sm:$0xff] %v10347_v38  ;;  %v1802_v26 = vmul.f32 %v10623_v43, %v1759_v14 }
  0x7d   : > { %v1297_v47 = vadd.f32 %v1256_v3, %v1172_v34  ;;  %856 = vst [vmem:[#allocation2 + $0x60] sm:$0xff] %v10347_v38  ;;  %v1884_v3 = vld [vmem:[%s10566_s26 + $0x96] sm:$0xff] }
  0x7e   : > { %857 = vst [vmem:[#allocation2 + $0x68] sm:$0xff] %v10347_v38  ;;  %v1927_v28 = vmul.f32 %v10640_v56, %v1884_v3  ;;  %v1092_v3 = vld [vmem:[%s10566_s26 + $0x99] sm:$0xff] }
  0x7f   : > { %858 = vst [vmem:[#allocation2 + $0x70] sm:$0xff] %v10347_v38 }
  0x80   : > { %859 = vst [vmem:[#allocation2 + $0x78] sm:$0xff] %v10347_v38 }
  0x81   : > { %860 = vst [vmem:[#allocation2 + $0x80] sm:$0xff] %v10347_v38 }
  0x82   : > { %861 = vst [vmem:[#allocation2 + $0x88] sm:$0xff] %v10347_v38 }
  0x83   : > { %2107 = vmatmul.bf16.gmra.mxu0 %v1998_v37  ;;  %v1212_v37 = vld [vmem:[%s10566_s26 + $0x72] sm:$0xff]  ;;  %862 = vst [vmem:[#allocation2 + $0x90] sm:$0xff] %v10347_v38 }
  0x84   : > { %v1339_v31 = vmul.f32 %v10571_v6, %v1212_v37  ;;  %v1255_v30 = vmul.f32 %v10561_v5, %v1212_v37  ;;  %v1341_v37 = vmul.f32 %v10571_v6, %v1214_v2  ;;  %v1423_v5 = vld [vmem:[%s10566_s26 + $0x83] sm:$0xff]  ;;  %863 = vst [vmem:[#allocation2 + $0x98] sm:$0xff] %v10347_v38 }
  0x85   : > { %864 = vst [vmem:[#allocation2 + $0xa0] sm:$0xff] %v10347_v38 }
  0x86   : > { %v1380_v60 = vadd.f32 %v1339_v31, %v1294_v46  ;;  %v1296_v46 = vadd.f32 %v1255_v30, %v1171_v29  ;;  %865 = vst [vmem:[#allocation2 + $0xa8] sm:$0xff] %v10347_v38 }
  0x87   : > { %866 = vst [vmem:[#allocation2 + $0xb0] sm:$0xff] %v10347_v38 }
  0x88   : > { %v1505_v8 = vadd.f32 %v1464_v61, %v1380_v60  ;;  %v1382_v51 = vadd.f32 %v1341_v37, %v1296_v46  ;;  %v1089_v60 = vld [vmem:[%s10566_s26 + $0x81] sm:$0xff]  ;;  %v1090_v61 = vld [vmem:[%s10566_s26 + $0x89] sm:$0xff]  ;;  %867 = vst [vmem:[#allocation2 + $0xb8] sm:$0xff] %v10347_v38 }
  0x89   : > { %v1132_v42 = vmul.f32 %v10890_v54, %v1089_v60  ;;  %v10949_v46 = vld [vmem:[%s15949_s28 + $0x4] ss:$0 sm:$0xff]  ;;  %868 = vst [vmem:[#allocation2 + $0xc0] sm:$0xff] %v10347_v38  ;;  %v10977_v60 = vld [vmem:[%s15949_s28 + $0x6] ss:$0 sm:$0xff] }
  0x8a   : > { %v1630_v18 = vadd.f32 %v1589_v9, %v1505_v8  ;;  %v1592_v8 = vmul.f32 %v10601_v27, %v10839_v11  ;;  %v1133_v9 = vmul.f32 %v10890_v54, %v1090_v61  ;;  %v10908_v11 = vld [vmem:[%s15949_s28 + $0x2] ss:$0 sm:$0xff]  ;;  %v1468_v37 = vmul.f32 %v10949_v46, %v1425_v24  ;;  %869 = vst [vmem:[#allocation2 + $0xc8] sm:$0xff] %v10347_v38 }
  0x8b   : > { %v1257_v15 = vmul.f32 %v10908_v11, %v1214_v2  ;;  %870 = vst [vmem:[#allocation2 + $0xd0] sm:$0xff] %v10347_v38 }
  0x8c   : > { %v1716_v41 = vadd.f32 %v1675_v20, %v1630_v18  ;;  %v1760_v18 = vld [vmem:[%s10566_s26 + $0x9d] sm:$0xff]  ;;  %v10915_v20 = vld [vmem:[%s10566_s26 + $0x92] sm:$0xff]  ;;  %871 = vst [vmem:[#allocation2 + $0xd8] sm:$0xff] %v10347_v38 }
  0x8d   : > { %v1803_v29 = vmul.f32 %v10623_v43, %v1760_v18  ;;  %872 = vst [vmem:[#allocation2 + $0xe0] sm:$0xff] %v10347_v38  ;;  %v1259_v24 = vmul.f32 %v10908_v11, %v10915_v20 }
  0x8e   : > { %v1841_v36 = vadd.f32 %v1800_v22, %v1716_v41  ;;  %v1426_v22 = vld [vmem:[%s10566_s26 + $0x9b] sm:$0xff]  ;;  %873 = vst [vmem:[#allocation2 + $0xe8] sm:$0xff] %v10347_v38 }
  0x8f   : > { %v1469_v40 = vmul.f32 %v10949_v46, %v1426_v22  ;;  %874 = vst [vmem:[#allocation2 + $0xf0] sm:$0xff] %v10347_v38  ;;  %v1260_v22 = vmul.f32 %v10908_v11, %v10921_v23 }
  0x90   : > { %v1966_v55 = vadd.f32 %v1925_v48, %v1841_v36  ;;  %v10960_v36 = vld [vmem:[%s15949_s28 + $0x5] ss:$0 sm:$0xff]  ;;  %875 = vst [vmem:[#allocation2 + $0xf8] sm:$0xff] %v10347_v38 }
  0x91   : > { %v1593_v39 = vmul.f32 %v10960_v36, %v1550_v4  ;;  %876 = vst [vmem:[#allocation2 + $0x100] sm:$0xff] %v10347_v38 }
  0x92   : > { %v2001_v10 = vpack.c.bf16 %v1967_v62, %v1966_v55  ;;  %877 = vst [vmem:[#allocation2 + $0x108] sm:$0xff] %v10347_v38 }
  0x93   : > { %2112 = vmatmul.bf16.gmra.mxu0 %v1999_v35  ;;  %v10854_v35 = vld [vmem:[%s10566_s26 + $0x8a] sm:$0xff]  ;;  %878 = vst [vmem:[#allocation2 + $0x110] sm:$0xff] %v10347_v38 }
  0x94   : > { %v1342_v31 = vmul.f32 %v10571_v6, %v10854_v35  ;;  %v1466_v6 = vmul.f32 %v10576_v7, %v1423_v5  ;;  %v10884_v7 = vld [vmem:[%s15949_s28] ss:$0 sm:$0xff]  ;;  %v1258_v21 = vmul.f32 %v10908_v11, %v10854_v35  ;;  %879 = vst [vmem:[#allocation2 + $0x118] sm:$0xff] %v10347_v38 }
  0x95   : > { %v1048_v0 = vmul.f32 %v10884_v7, %v1005_v57  ;;  %v1049_v52 = vmul.f32 %v10884_v7, %v1006_v49  ;;  %v1885_v35 = vld [vmem:[%s10566_s26 + $0x9e] sm:$0xff]  ;;  %880 = vst [vmem:[#allocation2 + $0x120] sm:$0xff] %v10347_v38 }
  0x96   : > { %v1383_v53 = vadd.f32 %v1342_v31, %v1297_v47  ;;  %v1507_v63 = vadd.f32 %v1466_v6, %v1382_v51  ;;  %v1928_v25 = vmul.f32 %v10640_v56, %v1885_v35  ;;  %v10965_v6 = vld [vmem:[%s10566_s26 + $0xa4] sm:$0xff]  ;;  %881 = vst [vmem:[#allocation2 + $0x128] sm:$0xff] %v10347_v38 }
  0x97   : > { %v1173_v27 = vadd.f32 %v1132_v42, %v1048_v0  ;;  %v1174_v19 = vadd.f32 %v1133_v9, %v1049_v52  ;;  %v1679_v49 = vmul.f32 %v10977_v60, %v10965_v6  ;;  %v1886_v52 = vld [vmem:[%s10566_s26 + $0xa6] sm:$0xff]  ;;  %v1887_v9 = vld [vmem:[%s10566_s26 + $0xae] sm:$0xff]  ;;  %882 = vst [vmem:[#allocation2 + $0x130] sm:$0xff] %v10347_v38 }
  0x98   : > { %v1508_v1 = vadd.f32 %v1467_v44, %v1383_v53  ;;  %v1632_v12 = vadd.f32 %v1591_v59, %v1507_v63  ;;  %v1594_v53 = vmul.f32 %v10960_v36, %v1551_v58  ;;  %v10970_v44 = vld [vmem:[%s10566_s26 + $0xac] sm:$0xff]  ;;  %883 = vst [vmem:[#allocation2 + $0x138] sm:$0xff] %v10347_v38 }
  0x99   : > { %v1298_v30 = vadd.f32 %v1257_v15, %v1173_v27  ;;  %v1299_v41 = vadd.f32 %v1258_v21, %v1174_v19  ;;  %v1680_v62 = vmul.f32 %v10977_v60, %v10970_v44  ;;  %v1761_v63 = vld [vmem:[%s10566_s26 + $0xa5] sm:$0xff]  ;;  %v1762_v59 = vld [vmem:[%s10566_s26 + $0xad] sm:$0xff]  ;;  %884 = vst [vmem:[#allocation2 + $0x140] sm:$0xff] %v10347_v38 }
  0x9a   : > { %v1633_v16 = vadd.f32 %v1592_v8, %v1508_v1  ;;  %v1718_v32 = vadd.f32 %v1677_v13, %v1632_v12  ;;  %v10993_v1 = vld [vmem:[%s15949_s28 + $0x7] ss:$0 sm:$0xff]  ;;  %v11006_v12 = vld [vmem:[%s15949_s28 + $0x8] ss:$0 sm:$0xff]  ;;  %885 = vst [vmem:[#allocation2 + $0x148] sm:$0xff] %v10347_v38 }
  0x9b   : > { %v1804_v4 = vmul.f32 %v10993_v1, %v1761_v63  ;;  %v1805_v8 = vmul.f32 %v10993_v1, %v1762_v59  ;;  %v1929_v13 = vmul.f32 %v11006_v12, %v1886_v52  ;;  %v1930_v14 = vmul.f32 %v11006_v12, %v1887_v9  ;;  %886 = vst [vmem:[#allocation2 + $0x150] sm:$0xff] %v10347_v38  ;;  %v1763_v59 = vld [vmem:[%s10566_s26 + $0xb5] sm:$0xff] }
  0x9c   : > { %v1719_v2 = vadd.f32 %v1678_v17, %v1633_v16  ;;  %v1843_v47 = vadd.f32 %v1802_v26, %v1718_v32  ;;  %v11018_v16 = vld [vmem:[%s15951_s8] ss:$0 sm:$0xff]  ;;  %887 = vst [vmem:[#allocation2 + $0x158] sm:$0xff] %v10347_v38  ;;  %v1007_v32 = vld [vmem:[%s10566_s26 + $0x90] sm:$0xff] }
  0x9d   : > { %888 = vst [vmem:[#allocation2 + $0x160] sm:$0xff] %v10347_v38  ;;  %v1888_v9 = vld [vmem:[%s10566_s26 + $0xb6] sm:$0xff] }
  0x9e   : > { %v1844_v31 = vadd.f32 %v1803_v29, %v1719_v2  ;;  %v1968_v48 = vadd.f32 %v1927_v28, %v1843_v47  ;;  %889 = vst [vmem:[#allocation2 + $0x168] sm:$0xff] %v10347_v38  ;;  %v1008_v29 = vld [vmem:[%s10566_s26 + $0x98] sm:$0xff] }
  0x9f   : > { %890 = vst [vmem:[#allocation3] sm:$0xff] %v10347_v38  ;;  %v1051_v2 = vmul.f32 %v10884_v7, %v1008_v29 }
  0xa0   : > { %v1969_v50 = vadd.f32 %v1928_v25, %v1844_v31  ;;  %891 = vst [vmem:[#allocation3 + $0x8] sm:$0xff] %v10347_v38  ;;  %v11093_v25 = vld [vmem:[%s10566_s26 + $0xa2] sm:$0xff] }
  0xa1   : > { %892 = vst [vmem:[#allocation3 + $0x10] sm:$0xff] %v10347_v38 }
  0xa2   : > { %v2002_v61 = vpack.c.bf16 %v1969_v50, %v1968_v48  ;;  %893 = vst [vmem:[#allocation3 + $0x18] sm:$0xff] %v10347_v38 }
  0xa3   : > { %2117 = vmatmul.bf16.gmra.mxu0 %v2000_v33  ;;  %v10930_v33 = vld [vmem:[%s15949_s28 + $0x3] ss:$0 sm:$0xff]  ;;  %894 = vst [vmem:[#allocation3 + $0x20] sm:$0xff] %v10347_v38 }
  0xa4   : > { %v1343_v34 = vmul.f32 %v10930_v33, %v10915_v20  ;;  %v1344_v43 = vmul.f32 %v10930_v33, %v10921_v23  ;;  %895 = vst [vmem:[#allocation3 + $0x28] sm:$0xff] %v10347_v38  ;;  %v1345_v47 = vmul.f32 %v10930_v33, %v11093_v25  ;;  %v1427_v23 = vld [vmem:[%s10566_s26 + $0xa3] sm:$0xff] }
  0xa5   : > { %896 = vst [vmem:[#allocation3 + $0x30] sm:$0xff] %v10347_v38 }
  0xa6   : > { %v1384_v45 = vadd.f32 %v1343_v34, %v1298_v30  ;;  %v1385_v5 = vadd.f32 %v1344_v43, %v1299_v41  ;;  %897 = vst [vmem:[#allocation3 + $0x38] sm:$0xff] %v10347_v38  ;;  %v1091_v30 = vld [vmem:[%s10566_s26 + $0x91] sm:$0xff]  ;;  %v1050_v34 = vmul.f32 %v10884_v7, %v1007_v32  ;;  %v1135_v41 = vmul.f32 %v10890_v54, %v1092_v3 }
  0xa7   : > { %898 = vst [vmem:[#allocation3 + $0x40] sm:$0xff] %v10347_v38  ;;  %v1134_v35 = vmul.f32 %v10890_v54, %v1091_v30  ;;  %v1094_v30 = vld [vmem:[%s10566_s26 + $0xa9] sm:$0xff] }
  0xa8   : > { %v1509_v56 = vadd.f32 %v1468_v37, %v1384_v45  ;;  %v1510_v51 = vadd.f32 %v1469_v40, %v1385_v5  ;;  %899 = vst [vmem:[#allocation3 + $0x48] sm:$0xff] %v10347_v38  ;;  %v1176_v28 = vadd.f32 %v1135_v41, %v1051_v2  ;;  %v11096_v45 = vld [vmem:[%s10566_s26 + $0xaa] sm:$0xff]  ;;  %v1137_v3 = vmul.f32 %v10890_v54, %v1094_v30  ;;  %v9686_v41 = vld [vmem:[%s15955_s2 + $0x38] sm:$0xff] }
  0xa9   : > { %900 = vst [vmem:[#allocation3 + $0x50] sm:$0xff] %v10347_v38  ;;  %v1175_v43 = vadd.f32 %v1134_v35, %v1050_v34  ;;  %v1346_v31 = vmul.f32 %v10930_v33, %v11096_v45  ;;  %v1428_v5 = vld [vmem:[%s10566_s26 + $0xab] sm:$0xff]  ;;  %v11153_v35 = vld [vmem:[%s15953_s30] ss:$0 sm:$0xff]  ;;  %3403 = vmatpush.bf16.msra.mxu1 %v9686_v41  ;;  %9760 = vmatpush.bf16.msra.mxu2 %v9686_v41 }
  0xaa   : > { %v1634_v57 = vadd.f32 %v1593_v39, %v1509_v56  ;;  %v1635_v55 = vadd.f32 %v1594_v53, %v1510_v51  ;;  %901 = vst [vmem:[#allocation3 + $0x58] sm:$0xff] %v10347_v38  ;;  %v1301_v20 = vadd.f32 %v1260_v22, %v1176_v28  ;;  %v1470_v39 = vmul.f32 %v10949_v46, %v1427_v23  ;;  %v2392_v28 = vld [vmem:[#allocation2 + $0x1] sm:$0xff]  ;;  %v1891_v30 = vld [vmem:[%s10566_s26 + $0xce] sm:$0xff] }
  0xab   : > { %902 = vst [vmem:[#allocation3 + $0x60] sm:$0xff] %v10347_v38  ;;  %v1300_v37 = vadd.f32 %v1259_v24, %v1175_v43  ;;  %v1471_v48 = vmul.f32 %v10949_v46, %v1428_v5  ;;  %v1595_v53 = vmul.f32 %v10960_v36, %v10965_v6  ;;  %v1261_v24 = vmul.f32 %v10908_v11, %v11093_v25  ;;  %v11175_v25 = vld [vmem:[%s15955_s2 + $0x30] sm:$0xff]  ;;  %v1221_v23 = vld [vmem:[%s10566_s26 + $0xba] sm:$0xff] }
  0xac   : > { %v1720_v0 = vadd.f32 %v1679_v49, %v1634_v57  ;;  %v1721_v42 = vadd.f32 %v1680_v62, %v1635_v55  ;;  %904 = vst [vmem:[#allocation3 + $0x70] sm:$0xff] %v10347_v38  ;;  %v1387_v50 = vadd.f32 %v1346_v31, %v1301_v20  ;;  %v1596_v57 = vmul.f32 %v10960_v36, %v10970_v44  ;;  %v11120_v55 = vld [vmem:[%s10566_s26 + $0xbc] sm:$0xff]  ;;  %v1220_v20 = vld [vmem:[%s10566_s26 + $0xb2] sm:$0xff] }
  0xad   : > { %905 = vst [vmem:[#allocation3 + $0x78] sm:$0xff] %v10347_v38  ;;  %v1386_v56 = vadd.f32 %v1345_v47, %v1300_v37  ;;  %v1682_v6 = vmul.f32 %v10977_v60, %v11120_v55  ;;  %v1262_v22 = vmul.f32 %v10908_v11, %v11096_v45  ;;  %v11166_v37 = vld [vmem:[%s15954_s5 + $0x1] ss:$0 sm:$0xff]  ;;  %3404 = vmatpush.bf16.msra.mxu1 %v11175_v25 }
  0xae   : > { %v1845_v58 = vadd.f32 %v1804_v4, %v1720_v0  ;;  %906 = vst [vmem:[#allocation3 + $0x80] sm:$0xff] %v10347_v38  ;;  %v1512_v49 = vadd.f32 %v1471_v48, %v1387_v50  ;;  %v1764_v0 = vld [vmem:[%s10566_s26 + $0xbd] sm:$0xff]  ;;  %v1806_v4 = vmul.f32 %v10993_v1, %v1763_v59  ;;  %v11201_v59 = vmul.f32 %v11166_v37, %v2392_v28 }
  0xaf   : > { %907 = vst [vmem:[#allocation3 + $0x88] sm:$0xff] %v10347_v38  ;;  %v1511_v51 = vadd.f32 %v1470_v39, %v1386_v56  ;;  %v1347_v56 = vmul.f32 %v10930_v33, %v1220_v20  ;;  %v1429_v39 = vld [vmem:[%s10566_s26 + $0xb3] sm:$0xff]  ;;  %v1430_v48 = vld [vmem:[%s10566_s26 + $0xbb] sm:$0xff]  ;;  %v11185_v50 = vld [vmem:[%s10566_s26 + $0xc4] sm:$0xff]  ;;  %9761 = vmatpush.bf16.msrb.mxu3 %v9686_v41  ;;  %9762 = vmatpush.bf16.msra.mxu2 %v11175_v25 }
  0xb0   : > { %v1970_v27 = vadd.f32 %v1929_v13, %v1845_v58  ;;  %908 = vst [vmem:[#allocation3 + $0x90] sm:$0xff] %v10347_v38  ;;  %v1637_v44 = vadd.f32 %v1596_v57, %v1512_v49  ;;  %v1889_v58 = vld [vmem:[%s10566_s26 + $0xbe] sm:$0xff]  ;;  %v1931_v13 = vmul.f32 %v11006_v12, %v1888_v9  ;;  %v1473_v57 = vmul.f32 %v10949_v46, %v1430_v48  ;;  %v11191_v49 = vld [vmem:[%s10566_s26 + $0xcc] sm:$0xff] }
  0xb1   : > { %909 = vst [vmem:[#allocation3 + $0x98] sm:$0xff] %v10347_v38  ;;  %v1636_v62 = vadd.f32 %v1595_v53, %v1511_v51  ;;  %v1472_v53 = vmul.f32 %v10949_v46, %v1429_v39  ;;  %v1890_v9 = vld [vmem:[%s10566_s26 + $0xc6] sm:$0xff]  ;;  %v1934_v48 = vmul.f32 %v11006_v12, %v1891_v30 }
  0xb2   : > { %910 = vst [vmem:[#allocation3 + $0xa0] sm:$0xff] %v10347_v38  ;;  %v1723_v52 = vadd.f32 %v1682_v6, %v1637_v44  ;;  %v11198_v44 = vmul.f32 0.0, %v11153_v35  ;;  %v11241_v41 = vld [vmem:[%s10566_s26 + $0xca] sm:$0xff] }
  0xb3   : > { %2122 = vmatmul.bf16.gmra.mxu0 %v2001_v10  ;;  %v1846_v10 = vadd.f32 %v1805_v8, %v1721_v42  ;;  %911 = vst [vmem:[#allocation3 + $0xa8] sm:$0xff] %v10347_v38  ;;  %v1807_v8 = vmul.f32 %v10993_v1, %v1764_v0  ;;  %9763 = vmatpush.bf16.msrb.mxu3 %v11175_v25 }
  0xb4   : > { %912 = vst [vmem:[#allocation3 + $0xb0] sm:$0xff] %v10347_v38 }
  0xb5   : > { %v1971_v15 = vadd.f32 %v1930_v14, %v1846_v10  ;;  %914 = vst [vmem:[#allocation3 + $0xc0] sm:$0xff] %v10347_v38  ;;  %v1932_v14 = vmul.f32 %v11006_v12, %v1889_v58 }
  0xb6   : > { %915 = vst [vmem:[#allocation3 + $0xc8] sm:$0xff] %v10347_v38 }
  0xb7   : > { %v2003_v17 = vpack.c.bf16 %v1971_v15, %v1970_v27  ;;  %916 = vst [vmem:[#allocation3 + $0xd0] sm:$0xff] %v10347_v38  ;;  %v1848_v27 = vadd.f32 %v1807_v8, %v1723_v52  ;;  %v1009_v15 = vld [vmem:[%s10566_s26 + $0xa0] sm:$0xff]  ;;  %v1683_v8 = vmul.f32 %v10977_v60, %v11185_v50  ;;  %v1766_v52 = vld [vmem:[%s10566_s26 + $0xcd] sm:$0xff] }
  0xb8   : > { %917 = vst [vmem:[#allocation3 + $0xd8] sm:$0xff] %v10347_v38  ;;  %v1052_v32 = vmul.f32 %v10884_v7, %v1009_v15  ;;  %v1095_v15 = vld [vmem:[%s10566_s26 + $0xb1] sm:$0xff]  ;;  %v1809_v28 = vmul.f32 %v10993_v1, %v1766_v52 }
  0xb9   : > { %918 = vst [vmem:[#allocation3 + $0xe0] sm:$0xff] %v10347_v38  ;;  %v1973_v2 = vadd.f32 %v1932_v14, %v1848_v27  ;;  %v1012_v27 = vld [vmem:[%s10566_s26 + $0xb8] sm:$0xff] }
  0xba   : > { %919 = vst [vmem:[#allocation3 + $0xe8] sm:$0xff] %v10347_v38  ;;  %v11275_v52 = vld [vmem:[%s10566_s26 + $0xd4] sm:$0xff] }
  0xbb   : > { %920 = vst [vmem:[#allocation3 + $0xf0] sm:$0xff] %v10347_v38  ;;  %v1685_v30 = vmul.f32 %v10977_v60, %v11275_v52 }
  0xbc   : > { %921 = vst [vmem:[#allocation3 + $0xf8] sm:$0xff] %v10347_v38 }
  0xbd   : > { %922 = vst [vmem:[#allocation3 + $0x100] sm:$0xff] %v10347_v38 }
  0xbe   : > { %924 = vst [vmem:[#allocation3 + $0x110] sm:$0xff] %v10347_v38 }
  0xbf   : > { %925 = vst [vmem:[#allocation3 + $0x118] sm:$0xff] %v10347_v38 }
  0xc0   : > { %926 = vst [vmem:[#allocation3 + $0x120] sm:$0xff] %v10347_v38 }
  0xc1   : > { %927 = vst [vmem:[#allocation3 + $0x128] sm:$0xff] %v10347_v38 }
  0xc2   : > { %928 = vst [vmem:[#allocation3 + $0x130] sm:$0xff] %v10347_v38 }
  0xc3   : > { %2127 = vmatmul.bf16.gmra.mxu0 %v2002_v61  ;;  %929 = vst [vmem:[#allocation3 + $0x138] sm:$0xff] %v10347_v38  ;;  %v11117_v61 = vld [vmem:[%s10566_s26 + $0xb4] sm:$0xff] }
  0xc4   : > { %930 = vst [vmem:[#allocation3 + $0x140] sm:$0xff] %v10347_v38  ;;  %v1681_v63 = vmul.f32 %v10977_v60, %v11117_v61  ;;  %v1597_v6 = vmul.f32 %v10960_v36, %v11117_v61 }
  0xc5   : > { %931 = vst [vmem:[#allocation3 + $0x148] sm:$0xff] %v10347_v38 }
  0xc6   : > { %932 = vst [vmem:[#allocation3 + $0x150] sm:$0xff] %v10347_v38  ;;  %v1722_v42 = vadd.f32 %v1681_v63, %v1636_v62  ;;  %v1765_v62 = vld [vmem:[%s10566_s26 + $0xc5] sm:$0xff] }
  0xc7   : > { %934 = vst [vmem:[#allocation3 + $0x160] sm:$0xff] %v10347_v38  ;;  %v1808_v14 = vmul.f32 %v10993_v1, %v1765_v62 }
  0xc8   : > { %935 = vst [vmem:[#allocation3 + $0x168] sm:$0xff] %v10347_v38  ;;  %v1847_v10 = vadd.f32 %v1806_v4, %v1722_v42  ;;  %v11210_v42 = vld [vmem:[%s15955_s2 + $0x28] sm:$0xff]  ;;  %v1598_v4 = vmul.f32 %v10960_v36, %v11120_v55  ;;  %v1011_v55 = vld [vmem:[%s10566_s26 + $0xb0] sm:$0xff] }
  0xc9   : > { %936 = vst [vmem:[#allocation3 + $0x170] sm:$0xff] %v10347_v38  ;;  %3405 = vmatpush.bf16.msra.mxu1 %v11210_v42  ;;  %9764 = vmatpush.bf16.msra.mxu2 %v11210_v42 }
  0xca   : > { %937 = vst [vmem:[#allocation3 + $0x178] sm:$0xff] %v10347_v38  ;;  %9765 = vmatpush.bf16.msrb.mxu3 %v11210_v42 }
  0xcb   : > { %938 = vst [vmem:[#allocation3 + $0x180] sm:$0xff] %v10347_v38 }
  0xcc   : > { %939 = vst [vmem:[#allocation3 + $0x188] sm:$0xff] %v10347_v38 }
  0xcd   : > { %940 = vst [vmem:[#allocation3 + $0x190] sm:$0xff] %v10347_v38 }
  0xce   : > { %941 = vst [vmem:[#allocation3 + $0x198] sm:$0xff] %v10347_v38 }
  0xcf   : > { %942 = vst [vmem:[#allocation3 + $0x1a0] sm:$0xff] %v10347_v38 }
  0xd0   : > { %v2093_v18 = vpop.f32.mrf.mxu0  ;;  %943 = vst [vmem:[#allocation3 + $0x1a8] sm:$0xff] %v10347_v38 }
  0xd1   : > { %v2094_v19 = vadd.f32 %v11018_v16, %v2093_v18  ;;  %944 = vst [vmem:[#allocation3 + $0x1b0] sm:$0xff] %v10347_v38  ;;  %v1093_v18 = vld [vmem:[%s10566_s26 + $0xa1] sm:$0xff] }
  0xd2   : > { %945 = vst [vmem:[#allocation3 + $0x1b8] sm:$0xff] %v10347_v38  ;;  %v1136_v34 = vmul.f32 %v10890_v54, %v1093_v18  ;;  %v1054_v18 = vmul.f32 %v10884_v7, %v1011_v55 }
  0xd3   : > { %v2192_v21 = vmax.f32 %v2094_v19, 0.0  ;;  %2132 = vmatmul.bf16.gmra.mxu0 %v2003_v17  ;;  %946 = vst [vmem:[#allocation3 + $0x1c0] sm:$0xff] %v10347_v38  ;;  %v1010_v17 = vld [vmem:[%s10566_s26 + $0xa8] sm:$0xff] }
  0xd4   : > { %947 = vst [vmem:[#allocation3 + $0x1c8] sm:$0xff] %v10347_v38  ;;  %v1053_v29 = vmul.f32 %v10884_v7, %v1010_v17  ;;  %v1177_v43 = vadd.f32 %v1136_v34, %v1052_v32  ;;  %v1263_v32 = vmul.f32 %v10908_v11, %v1220_v20  ;;  %v1138_v34 = vmul.f32 %v10890_v54, %v1095_v15 }
  0xd5   : > { %v11029_v26 = vmin.f32 %v2192_v21, 6.0  ;;  %948 = vst [vmem:[#allocation3 + $0x1d0] sm:$0xff] %v10347_v38  ;;  %v1972_v21 = vadd.f32 %v1931_v13, %v1847_v10  ;;  %v1684_v13 = vmul.f32 %v10977_v60, %v11191_v49 }
  0xd6   : > { %949 = vst [vmem:[#allocation3 + $0x1d8] sm:$0xff] %v10347_v38  ;;  %v1178_v45 = vadd.f32 %v1137_v3, %v1053_v29  ;;  %v1302_v5 = vadd.f32 %v1261_v24, %v1177_v43  ;;  %v11238_v3 = vld [vmem:[%s10566_s26 + $0xc2] sm:$0xff]  ;;  %v1264_v43 = vmul.f32 %v10908_v11, %v1221_v23 }
  0xd7   : > { %2264 = vst [vmem:[#allocation2 + $0x13] sm:$0xff] %v11029_v26  ;;  %v2004_v31 = vpack.c.bf16 %v1973_v2, %v1972_v21  ;;  %v1096_v21 = vld [vmem:[%s10566_s26 + $0xb9] sm:$0xff] }
  0xd8   : > { %v2095_v40 = vpop.f32.mrf.mxu0  ;;  %950 = vst [vmem:[#allocation3 + $0x1e0] sm:$0xff] %v10347_v38  ;;  %v1303_v51 = vadd.f32 %v1262_v22, %v1178_v45  ;;  %v1388_v63 = vadd.f32 %v1347_v56, %v1302_v5  ;;  %v1139_v2 = vmul.f32 %v10890_v54, %v1096_v21  ;;  %v1431_v45 = vld [vmem:[%s10566_s26 + $0xc3] sm:$0xff]  ;;  %v1179_v5 = vadd.f32 %v1138_v34, %v1054_v18  ;;  %v1767_v18 = vld [vmem:[%s10566_s26 + $0xd5] sm:$0xff] }
  0xd9   : > { %951 = vst [vmem:[#allocation4] sm:$0xff] %v10347_v38  ;;  %v11170_v47 = vadd.f32 %v11018_v16, %v2095_v40  ;;  %v1348_v40 = vmul.f32 %v10930_v33, %v1221_v23  ;;  %v11255_v23 = vld [vmem:[%s15955_s2 + $0x20] sm:$0xff] }
  0xda   : > { %952 = vst [vmem:[#allocation4 + $0x8] sm:$0xff] %v10347_v38  ;;  %v1513_v10 = vadd.f32 %v1472_v53, %v1388_v63  ;;  %v1350_v53 = vmul.f32 %v10930_v33, %v11241_v41  ;;  %v1304_v62 = vadd.f32 %v1263_v32, %v1179_v5  ;;  %3406 = vmatpush.bf16.msra.mxu1 %v11255_v23 }
  0xdb   : > { %953 = vst [vmem:[#allocation4 + $0x10] sm:$0xff] %v10347_v38  ;;  %v1389_v61 = vadd.f32 %v1348_v40, %v1303_v51  ;;  %v2193_v24 = vmax.f32 %v11170_v47, 0.0  ;;  %v1432_v40 = vld [vmem:[%s10566_s26 + $0xcb] sm:$0xff]  ;;  %v1349_v51 = vmul.f32 %v10930_v33, %v11238_v3  ;;  %9766 = vmatpush.bf16.msra.mxu2 %v11255_v23  ;;  %9767 = vmatpush.bf16.msrb.mxu3 %v11255_v23 }
  0xdc   : > { %954 = vst [vmem:[#allocation4 + $0x18] sm:$0xff] %v10347_v38  ;;  %v1638_v29 = vadd.f32 %v1597_v6, %v1513_v10  ;;  %v1474_v6 = vmul.f32 %v10949_v46, %v1431_v45  ;;  %v1599_v10 = vmul.f32 %v10960_v36, %v11185_v50  ;;  %v1810_v45 = vmul.f32 %v10993_v1, %v1767_v18  ;;  %v11366_v18 = vld [vmem:[%s10566_s26 + $0xda] sm:$0xff] }
  0xdd   : > { %955 = vst [vmem:[#allocation4 + $0x20] sm:$0xff] %v10347_v38  ;;  %v1514_v17 = vadd.f32 %v1473_v57, %v1389_v61  ;;  %v11268_v57 = vld [vmem:[%s15954_s5 + $0x2] ss:$0 sm:$0xff]  ;;  %v1390_v15 = vadd.f32 %v1349_v51, %v1304_v62  ;;  %v11330_v42 = vmin.f32 %v2193_v24, 6.0  ;;  %v11343_v24 = vld [vmem:[%s15955_s2 + $0x8] sm:$0xff]  ;;  %v1265_v62 = vmul.f32 %v10908_v11, %v11238_v3 }
  0xde   : > { %956 = vst [vmem:[#allocation4 + $0x28] sm:$0xff] %v10347_v38  ;;  %v1724_v20 = vadd.f32 %v1683_v8, %v1638_v29  ;;  %v2517_v61 = vld [vmem:[#allocation2 + $0x2] sm:$0xff]  ;;  %v1475_v8 = vmul.f32 %v10949_v46, %v1432_v40  ;;  %v1266_v23 = vmul.f32 %v10908_v11, %v11241_v41  ;;  %v2310_v11 = vld [vmem:[#allocation2 + $0x10] sm:$0xff] }
  0xdf   : > { %957 = vst [vmem:[#allocation4 + $0x30] sm:$0xff] %v10347_v38  ;;  %v1639_v22 = vadd.f32 %v1598_v4, %v1514_v17  ;;  %v2560_v21 = vmul.f32 %v11268_v57, %v2517_v61  ;;  %v1515_v32 = vadd.f32 %v1474_v6, %v1390_v15  ;;  %v1893_v40 = vld [vmem:[%s10566_s26 + $0xde] sm:$0xff]  ;;  %v2518_v41 = vld [vmem:[#allocation2 + $0xa] sm:$0xff] }
  0xe0   : > { %v2098_v19 = vpop.f32.mrf.mxu0  ;;  %958 = vst [vmem:[#allocation4 + $0x38] sm:$0xff] %v10347_v38  ;;  %v1849_v25 = vadd.f32 %v1808_v14, %v1724_v20  ;;  %v11324_v20 = vld [vmem:[#allocation2 + $0x12] sm:$0xff] }
  0xe1   : > { %959 = vst [vmem:[#allocation4 + $0x40] sm:$0xff] %v10347_v38  ;;  %v11205_v0 = vadd.f32 %v11018_v16, %v2098_v19  ;;  %v1055_v19 = vmul.f32 %v10884_v7, %v1012_v27  ;;  %v1725_v39 = vadd.f32 %v1684_v13, %v1639_v22  ;;  %v1600_v13 = vmul.f32 %v10960_v36, %v11191_v49  ;;  %v11289_v27 = vld [vmem:[%s15955_s2 + $0x18] sm:$0xff]  ;;  %v11313_v22 = vld [vmem:[%s15954_s5 + $0x3] ss:$0 sm:$0xff] }
  0xe2   : > { %960 = vst [vmem:[#allocation4 + $0x48] sm:$0xff] %v10347_v38  ;;  %3407 = vmatpush.bf16.msra.mxu1 %v11289_v27  ;;  %9768 = vmatpush.bf16.msra.mxu2 %v11289_v27 }
  0xe3   : > { %961 = vst [vmem:[#allocation4 + $0x50] sm:$0xff] %v10347_v38  ;;  %2137 = vmatmul.bf16.gmra.mxu0 %v2004_v31  ;;  %v1933_v31 = vmul.f32 %v11006_v12, %v1890_v9  ;;  %v1180_v56 = vadd.f32 %v1139_v2, %v1055_v19  ;;  %v1850_v4 = vadd.f32 %v1809_v28, %v1725_v39  ;;  %v11278_v9 = vld [vmem:[%s10566_s26 + $0xdc] sm:$0xff] }
  0xe4   : > { %962 = vst [vmem:[#allocation4 + $0x58] sm:$0xff] %v10347_v38  ;;  %v2476_v19 = vadd.f32 %v11201_v59, %v11198_v44  ;;  %v1686_v34 = vmul.f32 %v10977_v60, %v11278_v9  ;;  %v1768_v2 = vld [vmem:[%s10566_s26 + $0xdd] sm:$0xff]  ;;  %v1640_v28 = vadd.f32 %v1599_v10, %v1515_v32  ;;  %9769 = vmatpush.bf16.msrb.mxu3 %v11289_v27 }
  0xe5   : > { %963 = vst [vmem:[#allocation4 + $0x60] sm:$0xff] %v10347_v38  ;;  %v1305_v63 = vadd.f32 %v1264_v43, %v1180_v56  ;;  %v1974_v55 = vadd.f32 %v1933_v31, %v1849_v25  ;;  %v1975_v49 = vadd.f32 %v1934_v48, %v1850_v4  ;;  %v1811_v5 = vmul.f32 %v10993_v1, %v1768_v2  ;;  %v1892_v56 = vld [vmem:[%s10566_s26 + $0xd6] sm:$0xff]  ;;  %v1013_v10 = vld [vmem:[%s10566_s26 + $0xc0] sm:$0xff] }
  0xe6   : > { %964 = vst [vmem:[#allocation4 + $0x68] sm:$0xff] %v10347_v38  ;;  %v1726_v48 = vadd.f32 %v1685_v30, %v1640_v28  ;;  %v1935_v4 = vmul.f32 %v11006_v12, %v1892_v56  ;;  %v1056_v15 = vmul.f32 %v10884_v7, %v1013_v10  ;;  %v1601_v30 = vmul.f32 %v10960_v36, %v11275_v52 }
  0xe7   : > { %965 = vst [vmem:[#allocation4 + $0x70] sm:$0xff] %v10347_v38  ;;  %v1391_v17 = vadd.f32 %v1350_v53, %v1305_v63  ;;  %v2005_v59 = vpack.c.bf16 %v1975_v49, %v1974_v55  ;;  %v2601_v53 = vadd.f32 %v2560_v21, %v2476_v19  ;;  %v2646_v63 = vmul.f32 %v11313_v22, %v11324_v20  ;;  %v11363_v49 = vld [vmem:[%s10566_s26 + $0xd2] sm:$0xff]  ;;  %v2393_v21 = vld [vmem:[#allocation2 + $0x9] sm:$0xff] }
  0xe8   : > { %v11219_v58 = vpop.f32.mrf.mxu0  ;;  %966 = vst [vmem:[#allocation4 + $0x78] sm:$0xff] %v10347_v38  ;;  %v1851_v61 = vadd.f32 %v1810_v45, %v1726_v48  ;;  %v1351_v2 = vmul.f32 %v10930_v33, %v11363_v49  ;;  %v2561_v27 = vmul.f32 %v11268_v57, %v2518_v41 }
  0xe9   : > { %967 = vst [vmem:[#allocation4 + $0x80] sm:$0xff] %v10347_v38  ;;  %v2101_v50 = vadd.f32 %v11018_v16, %v11219_v58  ;;  %v1516_v29 = vadd.f32 %v1475_v8, %v1391_v17  ;;  %v2194_v58 = vmax.f32 %v11205_v0, 0.0  ;;  %v11321_v0 = vld [vmem:[%s15955_s2 + $0x10] sm:$0xff]  ;;  %v1936_v8 = vmul.f32 %v11006_v12, %v1893_v40 }
  0xea   : > { %968 = vst [vmem:[#allocation4 + $0x88] sm:$0xff] %v10347_v38  ;;  %3408 = vmatpush.bf16.msra.mxu1 %v11321_v0  ;;  %v2687_v48 = vadd.f32 %v2646_v63, %v2601_v53  ;;  %9770 = vmatpush.bf16.msra.mxu2 %v11321_v0 }
  0xeb   : > { %969 = vst [vmem:[#allocation4 + $0x90] sm:$0xff] %v10347_v38  ;;  %v1641_v31 = vadd.f32 %v1600_v13, %v1516_v29  ;;  %v2195_v39 = vmax.f32 %v2101_v50, 0.0  ;;  %v11337_v25 = vmin.f32 %v2194_v58, 6.0  ;;  %v1014_v13 = vld [vmem:[%s10566_s26 + $0xc8] sm:$0xff]  ;;  %v1433_v58 = vld [vmem:[%s10566_s26 + $0xd3] sm:$0xff]  ;;  %9771 = vmatpush.bf16.msrb.mxu3 %v11321_v0 }
  0xec   : > { %970 = vst [vmem:[#allocation4 + $0x98] sm:$0xff] %v10347_v38  ;;  %v1057_v17 = vmul.f32 %v10884_v7, %v1014_v13  ;;  %v1098_v50 = vld [vmem:[%s10566_s26 + $0xc9] sm:$0xff]  ;;  %v11437_v0 = vld [vmem:[%s15954_s5 + $0x5] ss:$0 sm:$0xff] }
  0xed   : > { %971 = vst [vmem:[#allocation4 + $0xa0] sm:$0xff] %v10347_v38  ;;  %v1727_v51 = vadd.f32 %v1686_v34, %v1641_v31  ;;  %v11369_v19 = vmin.f32 %v2195_v39, 6.0  ;;  %v1141_v29 = vmul.f32 %v10890_v54, %v1098_v50  ;;  %v1602_v34 = vmul.f32 %v10960_v36, %v11278_v9  ;;  %v1769_v13 = vld [vmem:[%s10566_s26 + $0xe5] sm:$0xff] }
  0xee   : > { %972 = vst [vmem:[#allocation4 + $0xa8] sm:$0xff] %v10347_v38  ;;  %3409 = vmatpush.bf16.msra.mxu1 %v11343_v24  ;;  %v1352_v9 = vmul.f32 %v10930_v33, %v11366_v18  ;;  %v1976_v31 = vadd.f32 %v1935_v4, %v1851_v61  ;;  %v1476_v39 = vmul.f32 %v10949_v46, %v1433_v58 }
  0xef   : > { %973 = vst [vmem:[#allocation4 + $0xb0] sm:$0xff] %v10347_v38  ;;  %v1852_v55 = vadd.f32 %v1811_v5, %v1727_v51  ;;  %v1182_v36 = vadd.f32 %v1141_v29, %v1057_v17  ;;  %v2436_v5 = vmul.f32 %v11166_v37, %v2393_v21  ;;  %v11405_v51 = vld [vmem:[%s15954_s5 + $0x4] ss:$0 sm:$0xff]  ;;  %v1894_v29 = vld [vmem:[%s10566_s26 + $0xe6] sm:$0xff]  ;;  %9772 = vmatpush.bf16.msra.mxu2 %v11343_v24 }
  0xf0   : > { %v2103_v14 = vpop.f32.mrf.mxu0  ;;  %974 = vst [vmem:[#allocation4 + $0xb8] sm:$0xff] %v10347_v38  ;;  %v2562_v58 = vmul.f32 %v11268_v57, %v11324_v20  ;;  %9773 = vmatpush.bf16.msrb.mxu3 %v11343_v24 }
  0xf1   : > { %975 = vst [vmem:[#allocation4 + $0xc0] sm:$0xff] %v10347_v38  ;;  %v11308_v43 = vadd.f32 %v11018_v16, %v2103_v14  ;;  %v1097_v14 = vld [vmem:[%s10566_s26 + $0xc1] sm:$0xff]  ;;  %v1977_v45 = vadd.f32 %v1936_v8, %v1852_v55  ;;  %v1307_v40 = vadd.f32 %v1266_v23, %v1182_v36  ;;  %v2477_v10 = vadd.f32 %v2436_v5, %v11198_v44 }
  0xf2   : > { %976 = vst [vmem:[#allocation5] sm:$0xff] %v10347_v38  ;;  %v1140_v32 = vmul.f32 %v10890_v54, %v1097_v14  ;;  %v11390_v54 = vld [vmem:[%s15955_s2] sm:$0xff]  ;;  %v2771_v44 = vmul.f32 %v11405_v51, %v11029_v26  ;;  %v2772_v26 = vmul.f32 %v11405_v51, %v11330_v42  ;;  %v1937_v36 = vmul.f32 %v11006_v12, %v1894_v29 }
  0xf3   : > { %977 = vst [vmem:[#allocation5 + $0x8] sm:$0xff] %v10347_v38  ;;  %2142 = vmatmul.bf16.gmra.mxu0 %v2005_v59  ;;  %v2196_v47 = vmax.f32 %v11308_v43, 0.0  ;;  %v1434_v43 = vld [vmem:[%s10566_s26 + $0xdb] sm:$0xff]  ;;  %v2394_v59 = vld [vmem:[#allocation2 + $0x11] sm:$0xff]  ;;  %3410 = vmatpush.bf16.msra.mxu1 %v11390_v54  ;;  %v1393_v63 = vadd.f32 %v1352_v9, %v1307_v40  ;;  %v2006_v8 = vpack.c.bf16 %v1977_v45, %v1976_v31 }
  0xf4   : > { %978 = vst [vmem:[#allocation5 + $0x10] sm:$0xff] %v10347_v38  ;;  %v1181_v52 = vadd.f32 %v1140_v32, %v1056_v15  ;;  %v1477_v33 = vmul.f32 %v10949_v46, %v1434_v43  ;;  %v2437_v61 = vmul.f32 %v11166_v37, %v2394_v59  ;;  %v1770_v15 = vld [vmem:[%s10566_s26 + $0xed] sm:$0xff]  ;;  %v1812_v32 = vmul.f32 %v10993_v1, %v1769_v13  ;;  %v11452_v43 = vld [vmem:[%s15954_s5 + $0x6] ss:$0 sm:$0xff] }
  0xf5   : > { %979 = vst [vmem:[#allocation5 + $0x18] sm:$0xff] %v10347_v38  ;;  %v2232_v28 = vmin.f32 %v2196_v47, 6.0  ;;  %v11408_v47 = vld [vmem:[%s10566_s26 + $0xe4] sm:$0xff]  ;;  %9774 = vmatpush.bf16.msra.mxu2 %v11390_v54  ;;  %9775 = vmatpush.bf16.msrb.mxu3 %v11390_v54 }
  0xf6   : > { %980 = vst [vmem:[#allocation5 + $0x20] sm:$0xff] %v10347_v38  ;;  %v1306_v56 = vadd.f32 %v1265_v62, %v1181_v52  ;;  %v2353_v62 = vmul.f32 %v11153_v35, %v2310_v11  ;;  %v1687_v55 = vmul.f32 %v10977_v60, %v11408_v47  ;;  %v11457_v11 = vld [vmem:[%s15954_s5 + $0x7] ss:$0 sm:$0xff] }
  0xf7   : > { %981 = vst [vmem:[#allocation5 + $0x28] sm:$0xff] %v10347_v38 }
  0xf8   : > { %v2105_v6 = vpop.f32.mrf.mxu0  ;;  %982 = vst [vmem:[#allocation5 + $0x30] sm:$0xff] %v10347_v38  ;;  %v1392_v53 = vadd.f32 %v1351_v2, %v1306_v56  ;;  %v2478_v50 = vadd.f32 %v2437_v61, %v2353_v62  ;;  %v1813_v2 = vmul.f32 %v10993_v1, %v1770_v15  ;;  %v11462_v1 = vld [vmem:[%s15954_s5 + $0x8] ss:$0 sm:$0xff] }
  0xf9   : > { %v2106_v3 = vadd.f32 %v11018_v16, %v2105_v6  ;;  %983 = vst [vmem:[#allocation5 + $0x38] sm:$0xff] %v10347_v38  ;;  %v11411_v6 = vld [vmem:[%s10566_s26 + $0xec] sm:$0xff] }
  0xfa   : > { %984 = vst [vmem:[#allocation5 + $0x40] sm:$0xff] %v10347_v38  ;;  %v1517_v14 = vadd.f32 %v1476_v39, %v1392_v53  ;;  %v2603_v59 = vadd.f32 %v2562_v58, %v2478_v50 }
  0xfb   : > { %v2197_v7 = vmax.f32 %v2106_v3, 0.0  ;;  %985 = vst [vmem:[#allocation5 + $0x48] sm:$0xff] %v10347_v38  ;;  %v1518_v3 = vadd.f32 %v1477_v33, %v1393_v63 }
  0xfc   : > { %986 = vst [vmem:[#allocation5 + $0x50] sm:$0xff] %v10347_v38  ;;  %v1642_v23 = vadd.f32 %v1601_v30, %v1517_v14  ;;  %v2602_v30 = vadd.f32 %v2561_v27, %v2477_v10 }
  0xfd   : > { %987 = vst [vmem:[#allocation5 + $0x58] sm:$0xff] %v10347_v38  ;;  %v1643_v21 = vadd.f32 %v1602_v34, %v1518_v3  ;;  %v2812_v34 = vadd.f32 %v2771_v44, %v2687_v48 }
  0xfe   : > { %988 = vst [vmem:[#allocation5 + $0x60] sm:$0xff] %v10347_v38  ;;  %v11416_v38 = vmin.f32 %v2197_v7, 6.0  ;;  %v1728_v20 = vadd.f32 %v1687_v55, %v1642_v23 }
  0xff   : > { %2265 = vst [vmem:[#allocation2 + $0x1b] sm:$0xff] %v11330_v42 }
 0x100   : > { %v2108_v46 = vpop.f32.mrf.mxu0  ;;  %2266 = vst [vmem:[#allocation2 + $0x23] sm:$0xfc] %v11337_v25  ;;  %v1688_v25 = vmul.f32 %v10977_v60, %v11411_v6  ;;  %v1895_v60 = vld [vmem:[%s10566_s26 + $0xee] sm:$0xff]  ;;  %v1853_v40 = vadd.f32 %v1812_v32, %v1728_v20 }
 0x101   : > { %v2109_v4 = vadd.f32 %v11018_v16, %v2108_v46  ;;  %2267 = vst [vmem:[#allocation2 + $0x2b] sm:$0xff] %v11369_v19  ;;  %v1938_v9 = vmul.f32 %v11006_v12, %v1895_v60 }
 0x102   : > { %2268 = vst [vmem:[#allocation2 + $0x33] sm:$0xf3] %v2232_v28   ;;  %v1729_v42 = vadd.f32 %v1688_v25, %v1643_v21  ;;  %v11468_v28 = vmul.f32 %v11405_v51, %v11369_v19  ;;  %v1978_v21 = vadd.f32 %v1937_v36, %v1853_v40 }
 0x103   : > { %v2198_v17 = vmax.f32 %v2109_v4, 0.0  ;;  %2270 = vst [vmem:[#allocation2 + $0x3b] sm:$0xff] %v11416_v38  ;;  %2147 = vmatmul.bf16.gmra.mxu0 %v2006_v8 }
 0x104   : > { %v1854_v61 = vadd.f32 %v1813_v2, %v1729_v42 }
 0x105   : > { %v2234_v7 = vmin.f32 %v2198_v17, 6.0 }
 0x106   : > { %v2520_v24 = vld [vmem:[#allocation2 + $0x1a] sm:$0xff]  ;;  %v1979_v60 = vadd.f32 %v1938_v9, %v1854_v61 }
 0x107   : > { %2271 = vst [vmem:[#allocation2 + $0x43] sm:$0xcf] %v2234_v7   ;;  %v2853_v41 = vld [vmem:[#allocation2 + $0x14] sm:$0xff]  ;;  %v2854_v52 = vld [vmem:[#allocation2 + $0x1c] sm:$0xff]  ;;  %v2647_v45 = vmul.f32 %v11313_v22, %v2520_v24  ;;  %v2563_v2 = vmul.f32 %v11268_v57, %v2520_v24 }
 0x108   : > { %v2110_v31 = vpop.f32.mrf.mxu0  ;;  %v2896_v5 = vmul.f32 %v11437_v0, %v2853_v41  ;;  %v2897_v56 = vmul.f32 %v11437_v0, %v2854_v52  ;;  %v2311_v39 = vld [vmem:[#allocation2 + $0x18] sm:$0xff]  ;;  %v2855_v12 = vld [vmem:[#allocation2 + $0x24] sm:$0xff]  ;;  %v2007_v41 = vpack.c.bf16 %v1979_v60, %v1978_v21 }
 0x109   : > { %v2395_v33 = vld [vmem:[#allocation2 + $0x19] sm:$0xff]  ;;  %v2111_v27 = vadd.f32 %v11018_v16, %v2110_v31  ;;  %v3064_v48 = vld [vmem:[#allocation2 + $0x25] sm:$0xff]  ;;  %v2354_v19 = vmul.f32 %v11153_v35, %v2311_v39  ;;  %v2688_v53 = vadd.f32 %v2647_v45, %v2602_v30  ;;  %v2982_v8 = vmul.f32 %v11452_v43, %v2855_v12  ;;  %v3065_v10 = vld [vmem:[#allocation2 + $0x2d] sm:$0xff] }
 0x10a   : > { %v3189_v62 = vld [vmem:[#allocation2 + $0x26] sm:$0xff]  ;;  %v2438_v46 = vmul.f32 %v11166_v37, %v2395_v33  ;;  %v2937_v4 = vadd.f32 %v2896_v5, %v2812_v34  ;;  %v3107_v13 = vmul.f32 %v11457_v11, %v3064_v48  ;;  %v3190_v14 = vld [vmem:[#allocation2 + $0x2e] sm:$0xff]  ;;  %v3108_v25 = vmul.f32 %v11457_v11, %v3065_v10  ;;  %v3191_v33 = vld [vmem:[#allocation2 + $0x36] sm:$0xff] }
 0x10b   : > { %v2856_v63 = vld [vmem:[#allocation2 + $0x2c] sm:$0xff]  ;;  %v2199_v3 = vmax.f32 %v2111_v27, 0.0  ;;  %v3232_v15 = vmul.f32 %v11462_v1, %v3189_v62  ;;  %v11483_v17 = vld [vmem:[#allocation2 + $0x22] sm:$0xff]  ;;  %v2813_v54 = vadd.f32 %v2772_v26, %v2688_v53  ;;  %v3233_v23 = vmul.f32 %v11462_v1, %v3190_v14  ;;  %v11495_v26 = vld [vmem:[#allocation2 + $0x34] sm:$0xff] }
 0x10c   : > { %v2983_v55 = vmul.f32 %v11452_v43, %v2856_v63  ;;  %v11485_v44 = vld [vmem:[#allocation2 + $0x2a] sm:$0xff]  ;;  %v3023_v50 = vadd.f32 %v2982_v8, %v2937_v4  ;;  %v2479_v7 = vadd.f32 %v2438_v46, %v2354_v19  ;;  %v2648_v34 = vmul.f32 %v11313_v22, %v11483_v17  ;;  %v3066_v9 = vld [vmem:[#allocation2 + $0x35] sm:$0xff] }
 0x10d   : > { %v2730_v32 = vld [vmem:[#allocation2 + $0x23] sm:$0xff]  ;;  %v11488_v29 = vmin.f32 %v2199_v3, 6.0  ;;  %v2938_v58 = vadd.f32 %v2897_v56, %v2813_v54  ;;  %v2649_v20 = vmul.f32 %v11313_v22, %v11485_v44  ;;  %v2898_v24 = vmul.f32 %v11437_v0, %v2855_v12  ;;  %v1015_v19 = vld [vmem:[%s10566_s26 + $0xd0] sm:$0xff]  ;;  %v1016_v46 = vld [vmem:[%s10566_s26 + $0xd8] sm:$0xff] }
 0x10e   : > { %v3148_v30 = vadd.f32 %v3107_v13, %v3023_v50  ;;  %v11497_v42 = vld [vmem:[#allocation2 + $0x3c] sm:$0xff]  ;;  %v2604_v52 = vadd.f32 %v2563_v2, %v2479_v7  ;;  %v2773_v36 = vmul.f32 %v11405_v51, %v2730_v32  ;;  %v2689_v40 = vadd.f32 %v2648_v34, %v2603_v59  ;;  %v1099_v8 = vld [vmem:[%s10566_s26 + $0xd1] sm:$0xff] }
 0x10f   : > { %2273 = vst [vmem:[#allocation2 + $0x4b] sm:$0xff] %v11488_v29  ;;  %v3067_v31 = vld [vmem:[#allocation2 + $0x3d] sm:$0xff]  ;;  %v3024_v45 = vadd.f32 %v2983_v55, %v2938_v58  ;;  %v2899_v39 = vmul.f32 %v11437_v0, %v2856_v63  ;;  %v2984_v61 = vmul.f32 %v11452_v43, %v11495_v26  ;;  %v2985_v12 = vmul.f32 %v11452_v43, %v11497_v42  ;;  %v11535_v58 = vld [vmem:[%s10566_s26 + $0xea] sm:$0xff] }
 0x110   : > { %v3273_v5 = vadd.f32 %v3232_v15, %v3148_v30  ;;  %v2113_v56 = vpop.f32.mrf.mxu0  ;;  %v3192_v27 = vld [vmem:[#allocation2 + $0x3e] sm:$0xff]  ;;  %v2690_v62 = vadd.f32 %v2649_v20, %v2604_v52  ;;  %v2814_v4 = vadd.f32 %v2773_v36, %v2689_v40  ;;  %v3109_v59 = vmul.f32 %v11457_v11, %v3066_v9  ;;  %v1436_v34 = vld [vmem:[%s10566_s26 + $0xeb] sm:$0xff] }
 0x111   : > { %v2114_v48 = vadd.f32 %v11018_v16, %v2113_v56  ;;  %v3149_v53 = vadd.f32 %v3108_v25, %v3024_v45  ;;  %v3110_v63 = vmul.f32 %v11457_v11, %v3067_v31  ;;  %v1100_v10 = vld [vmem:[%s10566_s26 + $0xd9] sm:$0xff]  ;;  %v3234_v3 = vmul.f32 %v11462_v1, %v3191_v33  ;;  %v11525_v32 = vld [vmem:[%s10566_s26 + $0xe2] sm:$0xff]  ;;  %v11530_v7 = vld [vmem:[%s15949_s28 + $0x1] ss:$0 sm:$0xff] }
 0x112   : > { %v2815_v14 = vadd.f32 %v11468_v28, %v2690_v62  ;;  %v3235_v55 = vmul.f32 %v11462_v1, %v3192_v27  ;;  %v2939_v54 = vadd.f32 %v2898_v24, %v2814_v4  ;;  %v11520_v25 = vld [vmem:[%s15949_s28] ss:$0 sm:$0xff]  ;;  %v1143_v2 = vmul.f32 %v11530_v7, %v1100_v10  ;;  %v1435_v30 = vld [vmem:[%s10566_s26 + $0xe3] sm:$0xff] }
 0x113   : > { %v2200_v13 = vmax.f32 %v2114_v48, 0.0  ;;  %v3274_v15 = vadd.f32 %v3233_v23, %v3149_v53  ;;  %v1058_v50 = vmul.f32 %v11520_v25, %v1015_v19  ;;  %v1059_v21 = vmul.f32 %v11520_v25, %v1016_v46  ;;  %2152 = vmatmul.bf16.gmra.mxu0 %v2007_v41  ;;  %v11542_v41 = vld [vmem:[%s15949_s28 + $0x2] ss:$0 sm:$0xff]  ;;  %v11563_v33 = vld [vmem:[%s15949_s28 + $0x4] ss:$0 sm:$0xff]  ;;  %v1771_v53 = vld [vmem:[%s10566_s26 + $0xf5] sm:$0xff] }
 0x114   : > { %v2940_v60 = vadd.f32 %v2899_v39, %v2815_v14  ;;  %v1142_v23 = vmul.f32 %v11530_v7, %v1099_v8  ;;  %v3025_v52 = vadd.f32 %v2984_v61, %v2939_v54  ;;  %v1267_v36 = vmul.f32 %v11542_v41, %v11363_v49  ;;  %v11556_v49 = vld [vmem:[%s10566_s26 + $0xf4] sm:$0xff]  ;;  %v11568_v62 = vld [vmem:[%s10566_s26 + $0xfc] sm:$0xff]  ;;  %v11579_v10 = vld [vmem:[%s15949_s28 + $0x5] ss:$0 sm:$0xff] }
 0x115   : > { %v2236_v28 = vmin.f32 %v2200_v13, 6.0  ;;  %v3314_v20 = vpack.c.bf16 %v3274_v15, %v3273_v5  ;;  %v1268_v24 = vmul.f32 %v11542_v41, %v11366_v18  ;;  %v1184_v45 = vadd.f32 %v1143_v2, %v1059_v21  ;;  %v11551_v5 = vld [vmem:[%s15949_s28 + $0x3] ss:$0 sm:$0xff] }
 0x116   : > { %v3026_v9 = vadd.f32 %v2985_v12, %v2940_v60  ;;  %v1183_v31 = vadd.f32 %v1142_v23, %v1058_v50  ;;  %v1353_v56 = vmul.f32 %v11551_v5, %v11525_v32  ;;  %v3150_v18 = vadd.f32 %v3109_v59, %v3025_v52  ;;  %v1772_v4 = vld [vmem:[%s10566_s26 + $0xfd] sm:$0xff]  ;;  %v2313_v60 = vld [vmem:[#allocation2 + $0x28] sm:$0xff]  ;;  %v11600_v23 = vld [vmem:[%s15949_s28 + $0x7] ss:$0 sm:$0xff] }
 0x117   : > { %2274 = vst [vmem:[#allocation2 + $0x53] sm:$0x3f] %v2236_v28  ;;  %3411 = vmatmul.bf16.vlgmr.msra.gmra.mxu1 %v3314_v20  ;;  %v1354_v39 = vmul.f32 %v11551_v5, %v11535_v58  ;;  %v1478_v27 = vmul.f32 %v11563_v33, %v1435_v30  ;;  %v1479_v48 = vmul.f32 %v11563_v33, %v1436_v34  ;;  %v1896_v59 = vld [vmem:[%s10566_s26 + $0xf6] sm:$0xff]  ;;  %v2312_v28 = vld [vmem:[#allocation2 + $0x20] sm:$0xff]  ;;  %v2397_v20 = vld [vmem:[#allocation2 + $0x29] sm:$0xff] }
 0x118   : > { %v2115_v40 = vpop.f32.mrf.mxu0  ;;  %v3151_v12 = vadd.f32 %v3110_v63, %v3026_v9  ;;  %v1308_v19 = vadd.f32 %v1267_v36, %v1183_v31  ;;  %v1309_v46 = vadd.f32 %v1268_v24, %v1184_v45  ;;  %v11574_v8 = vadd.f32 %v3234_v3, %v3150_v18  ;;  %v1897_v3 = vld [vmem:[%s10566_s26 + $0xfe] sm:$0xff]  ;;  %v11614_v31 = vld [vmem:[#allocation2 + $0x32] sm:$0xff] }
 0x119   : > { %v2116_v61 = vadd.f32 %v11018_v16, %v2115_v40  ;;  %v1603_v13 = vmul.f32 %v11579_v10, %v11408_v47  ;;  %v1604_v14 = vmul.f32 %v11579_v10, %v11411_v6  ;;  %v11588_v16 = vld [vmem:[%s15949_s28 + $0x6] ss:$0 sm:$0xff]  ;;  %v1814_v2 = vmul.f32 %v11600_v23, %v1771_v53  ;;  %v11616_v45 = vld [vmem:[#allocation2 + $0x3a] sm:$0xff] }
 0x11a   : > { %v1689_v63 = vmul.f32 %v11588_v16, %v11556_v49  ;;  %v11593_v54 = vadd.f32 %v3235_v55, %v3151_v12  ;;  %v1394_v50 = vadd.f32 %v1353_v56, %v1308_v19  ;;  %v1395_v21 = vadd.f32 %v1354_v39, %v1309_v46  ;;  %v2396_v47 = vld [vmem:[#allocation2 + $0x21] sm:$0xff] }
 0x11b   : > { %v2201_v15 = vmax.f32 %v2116_v61, 0.0  ;;  %v1690_v6 = vmul.f32 %v11588_v16, %v11568_v62  ;;  %v1815_v30 = vmul.f32 %v11600_v23, %v1772_v4  ;;  %v11607_v55 = vld [vmem:[%s15949_s28 + $0x8] ss:$0 sm:$0xff]  ;;  %v2355_v40 = vmul.f32 %v11153_v35, %v2312_v28 }
 0x11c   : > { %v1939_v34 = vmul.f32 %v11607_v55, %v1896_v59  ;;  %v3315_v36 = vpack.c.bf16 %v11593_v54, %v11574_v8  ;;  %v1519_v24 = vadd.f32 %v1478_v27, %v1394_v50  ;;  %v1520_v9 = vadd.f32 %v1479_v48, %v1395_v21  ;;  %v2732_v48 = vld [vmem:[#allocation2 + $0x33] sm:$0xff]  ;;  %v11638_v54 = vld [vmem:[#allocation2 + $0x44] sm:$0xff] }
 0x11d   : > { %v11610_v52 = vmin.f32 %v2201_v15, 6.0  ;;  %v1940_v56 = vmul.f32 %v11607_v55, %v1897_v3  ;;  %v2356_v18 = vmul.f32 %v11153_v35, %v2313_v60  ;;  %v2439_v39 = vmul.f32 %v11166_v37, %v2396_v47 }
 0x11e   : > { %v1644_v61 = vadd.f32 %v1603_v13, %v1519_v24  ;;  %v1645_v12 = vadd.f32 %v1604_v14, %v1520_v9  ;;  %v2440_v19 = vmul.f32 %v11166_v37, %v2397_v20  ;;  %v2564_v27 = vmul.f32 %v11268_v57, %v11483_v17  ;;  %v11635_v13 = vld [vmem:[%s15952_s29] ss:$0 sm:$0xff]  ;;  %v11640_v50 = vld [vmem:[#allocation2 + $0x4c] sm:$0xff] }
 0x11f   : > { %2275 = vst [vmem:[#allocation2 + $0x5b] sm:$0xff] %v11610_v52  ;;  %v2480_v53 = vadd.f32 %v2439_v39, %v2355_v40  ;;  %v2565_v4 = vmul.f32 %v11268_v57, %v11485_v44  ;;  %v2650_v59 = vmul.f32 %v11313_v22, %v11614_v31  ;;  %v2651_v8 = vmul.f32 %v11313_v22, %v11616_v45  ;;  %v3068_v24 = vld [vmem:[#allocation2 + $0x45] sm:$0xff]  ;;  %v3069_v9 = vld [vmem:[#allocation2 + $0x4d] sm:$0xff] }
 0x120   : > { %v2118_v46 = vpop.f32.mrf.mxu0  ;;  %v1730_v17 = vadd.f32 %v1689_v63, %v1644_v61  ;;  %v1731_v3 = vadd.f32 %v1690_v6, %v1645_v12  ;;  %v2481_v15 = vadd.f32 %v2440_v19, %v2356_v18  ;;  %v2775_v21 = vmul.f32 %v11405_v51, %v2732_v48  ;;  %v3193_v40 = vld [vmem:[#allocation2 + $0x46] sm:$0xff]  ;;  %v3194_v61 = vld [vmem:[#allocation2 + $0x4e] sm:$0xff] }
 0x121   : > { %v2119_v14 = vadd.f32 %v11635_v13, %v2118_v46  ;;  %v2605_v44 = vadd.f32 %v2564_v27, %v2480_v53  ;;  %v2776_v28 = vmul.f32 %v11405_v51, %v11416_v38  ;;  %v2900_v60 = vmul.f32 %v11437_v0, %v11495_v26  ;;  %v1018_v48 = vld [vmem:[%s10566_s26 + $0xe8] sm:$0xff] }
 0x122   : > { %v1855_v20 = vadd.f32 %v1814_v2, %v1730_v17  ;;  %v1856_v63 = vadd.f32 %v1815_v30, %v1731_v3  ;;  %v2606_v6 = vadd.f32 %v2565_v4, %v2481_v15  ;;  %v2901_v39 = vmul.f32 %v11437_v0, %v11497_v42  ;;  %v1017_v2 = vld [vmem:[%s10566_s26 + $0xe0] sm:$0xff]  ;;  %v1102_v53 = vld [vmem:[%s10566_s26 + $0xe9] sm:$0xff] }
 0x123   : > { %v2202_v47 = vmax.f32 %v2119_v14, 0.0  ;;  %v2691_v18 = vadd.f32 %v2650_v59, %v2605_v44  ;;  %v2986_v38 = vmul.f32 %v11452_v43, %v11638_v54  ;;  %v2987_v26 = vmul.f32 %v11452_v43, %v11640_v50  ;;  %v1101_v46 = vld [vmem:[%s10566_s26 + $0xe1] sm:$0xff] }
 0x124   : > { %v1980_v30 = vadd.f32 %v1939_v34, %v1855_v20  ;;  %v1981_v19 = vadd.f32 %v1940_v56, %v1856_v63  ;;  %v2692_v27 = vadd.f32 %v2651_v8, %v2606_v6  ;;  %v3111_v42 = vmul.f32 %v11457_v11, %v3068_v24  ;;  %v11666_v8 = vld [vmem:[%s10566_s26 + $0xf2] sm:$0xff]  ;;  %v11672_v63 = vld [vmem:[%s10566_s26 + $0xfa] sm:$0xff] }
 0x125   : > { %v11654_v12 = vmin.f32 %v2202_v47, 6.0  ;;  %v2816_v4 = vadd.f32 %v2775_v21, %v2691_v18  ;;  %v3112_v59 = vmul.f32 %v11457_v11, %v3069_v9  ;;  %v3236_v14 = vmul.f32 %v11462_v1, %v3193_v40 }
 0x126   : > { %v2008_v17 = vpack.c.bf16 %v1981_v19, %v1980_v30  ;;  %v2817_v3 = vadd.f32 %v2776_v28, %v2692_v27  ;;  %v3237_v34 = vmul.f32 %v11462_v1, %v3194_v61  ;;  %v1060_v56 = vmul.f32 %v11520_v25, %v1017_v2  ;;  %v1437_v28 = vld [vmem:[%s10566_s26 + $0xf3] sm:$0xff]  ;;  %v11687_v27 = vld [vmem:[%s10566_s26 + $0x104] sm:$0xff] }
 0x127   : > { %2276 = vst [vmem:[#allocation2 + $0x63] sm:$0xff] %v11654_v12  ;;  %3416 = vmatmul.bf16.gmra.mxu1 %v3315_v36  ;;  %v2941_v44 = vadd.f32 %v2900_v60, %v2816_v4  ;;  %v1061_v21 = vmul.f32 %v11520_v25, %v1018_v48  ;;  %v1144_v47 = vmul.f32 %v11530_v7, %v1101_v46  ;;  %v1438_v60 = vld [vmem:[%s10566_s26 + $0xfb] sm:$0xff]  ;;  %v1773_v4 = vld [vmem:[%s10566_s26 + $0x105] sm:$0xff] }
 0x128   : > { %v2120_v15 = vpop.f32.mrf.mxu0  ;;  %v1145_v20 = vmul.f32 %v11530_v7, %v1102_v53  ;;  %2157 = vmatmul.bf16.gmra.mxu0 %v2008_v17  ;;  %v2942_v24 = vadd.f32 %v2901_v39, %v2817_v3  ;;  %v1269_v9 = vmul.f32 %v11542_v41, %v11525_v32  ;;  %v1270_v36 = vmul.f32 %v11542_v41, %v11535_v58  ;;  %v11691_v53 = vld [vmem:[%s10566_s26 + $0x10c] sm:$0xff] }
 0x129   : > { %v2121_v6 = vadd.f32 %v11635_v13, %v2120_v15  ;;  %v3027_v40 = vadd.f32 %v2986_v38, %v2941_v44  ;;  %v1185_v18 = vadd.f32 %v1144_v47, %v1060_v56  ;;  %v1355_v2 = vmul.f32 %v11551_v5, %v11666_v8  ;;  %v1774_v17 = vld [vmem:[%s10566_s26 + $0x10d] sm:$0xff] }
 0x12a   : > { %v1186_v61 = vadd.f32 %v1145_v20, %v1061_v21  ;;  %v3028_v19 = vadd.f32 %v2987_v26, %v2942_v24  ;;  %v1356_v32 = vmul.f32 %v11551_v5, %v11672_v63  ;;  %v1480_v39 = vmul.f32 %v11563_v33, %v1437_v28  ;;  %v1898_v44 = vld [vmem:[%s10566_s26 + $0x106] sm:$0xff]  ;;  %v1899_v21 = vld [vmem:[%s10566_s26 + $0x10e] sm:$0xff]  ;;  %v2315_v24 = vld [vmem:[#allocation2 + $0x38] sm:$0xff] }
 0x12b   : > { %v2203_v30 = vmax.f32 %v2121_v6, 0.0  ;;  %v3152_v58 = vadd.f32 %v3111_v42, %v3027_v40  ;;  %v1310_v48 = vadd.f32 %v1269_v9, %v1185_v18  ;;  %v1481_v38 = vmul.f32 %v11563_v33, %v1438_v60  ;;  %v2314_v6 = vld [vmem:[#allocation2 + $0x30] sm:$0xff]  ;;  %v2399_v60 = vld [vmem:[#allocation2 + $0x39] sm:$0xff] }
 0x12c   : > { %v1311_v46 = vadd.f32 %v1270_v36, %v1186_v61  ;;  %v3153_v56 = vadd.f32 %v3112_v59, %v3028_v19  ;;  %v1605_v26 = vmul.f32 %v11579_v10, %v11556_v49  ;;  %v1606_v15 = vmul.f32 %v11579_v10, %v11568_v62  ;;  %v2398_v62 = vld [vmem:[#allocation2 + $0x31] sm:$0xff] }
 0x12d   : > { %v2239_v3 = vmin.f32 %v2203_v30, 6.0  ;;  %v3277_v47 = vadd.f32 %v3236_v14, %v3152_v58  ;;  %v1396_v42 = vadd.f32 %v1355_v2, %v1310_v48  ;;  %v1691_v28 = vmul.f32 %v11588_v16, %v11687_v27  ;;  %v11709_v30 = vld [vmem:[#allocation2 + $0x42] sm:$0xff]  ;;  %v11716_v58 = vld [vmem:[%s15954_s5] ss:$0 sm:$0xff] }
 0x12e   : > { %v1397_v20 = vadd.f32 %v1356_v32, %v1311_v46  ;;  %v3278_v9 = vadd.f32 %v3237_v34, %v3153_v56  ;;  %v1692_v59 = vmul.f32 %v11588_v16, %v11691_v53  ;;  %v1816_v49 = vmul.f32 %v11600_v23, %v1773_v4 }
 0x12f   : > { %2277 = vst [vmem:[#allocation2 + $0x6b] sm:$0xfc] %v2239_v3  ;;  %v1817_v36 = vmul.f32 %v11600_v23, %v1774_v17  ;;  %v1521_v14 = vadd.f32 %v1480_v39, %v1396_v42  ;;  %v1941_v61 = vmul.f32 %v11607_v55, %v1898_v44  ;;  %v1942_v2 = vmul.f32 %v11607_v55, %v1899_v21  ;;  %v11721_v17 = vld [vmem:[#allocation2 + $0x4a] sm:$0xff] }
 0x130   : > { %v2123_v40 = vpop.f32.mrf.mxu0  ;;  %v1522_v18 = vadd.f32 %v1481_v38, %v1397_v20  ;;  %v3316_v19 = vpack.c.bf16 %v3278_v9, %v3277_v47  ;;  %v2357_v32 = vmul.f32 %v11153_v35, %v2314_v6  ;;  %v2358_v48 = vmul.f32 %v11716_v58, %v2315_v24  ;;  %v2734_v3 = vld [vmem:[#allocation2 + $0x43] sm:$0xff]  ;;  %v11729_v20 = vld [vmem:[#allocation2 + $0x54] sm:$0xff] }
 0x131   : > { %v2124_v34 = vadd.f32 %v11635_v13, %v2123_v40  ;;  %v1646_v39 = vadd.f32 %v1605_v26, %v1521_v14  ;;  %v2441_v38 = vmul.f32 %v11166_v37, %v2398_v62  ;;  %v2442_v4 = vmul.f32 %v11166_v37, %v2399_v60  ;;  %v11731_v37 = vld [vmem:[#allocation2 + $0x5c] sm:$0xff] }
 0x132   : > { %v1647_v46 = vadd.f32 %v1606_v15, %v1522_v18  ;;  %v2566_v35 = vmul.f32 %v11268_v57, %v11614_v31  ;;  %v2567_v44 = vmul.f32 %v11268_v57, %v11616_v45  ;;  %v2652_v21 = vmul.f32 %v11313_v22, %v11709_v30  ;;  %v3070_v62 = vld [vmem:[#allocation2 + $0x55] sm:$0xff]  ;;  %v3071_v60 = vld [vmem:[#allocation2 + $0x5d] sm:$0xff] }
 0x133   : > { %v2204_v56 = vmax.f32 %v2124_v34, 0.0  ;;  %v1732_v47 = vadd.f32 %v1691_v28, %v1646_v39  ;;  %v2482_v15 = vadd.f32 %v2441_v38, %v2357_v32  ;;  %v2483_v42 = vadd.f32 %v2442_v4, %v2358_v48  ;;  %v3195_v40 = vld [vmem:[#allocation2 + $0x56] sm:$0xff] }
 0x134   : > { %v1733_v26 = vadd.f32 %v1692_v59, %v1647_v46  ;;  %v2653_v24 = vmul.f32 %v11313_v22, %v11721_v17  ;;  %v2777_v31 = vmul.f32 %v11405_v51, %v2734_v3  ;;  %v2778_v57 = vmul.f32 %v11405_v51, %v11488_v29  ;;  %v1019_v38 = vld [vmem:[%s10566_s26 + $0xf0] sm:$0xff] }
 0x135   : > { %v11733_v6 = vmin.f32 %v2204_v56, 6.0  ;;  %v1857_v45 = vadd.f32 %v1816_v49, %v1732_v47  ;;  %v2607_v28 = vadd.f32 %v2566_v35, %v2482_v15  ;;  %v2608_v59 = vadd.f32 %v2567_v44, %v2483_v42  ;;  %v1103_v4 = vld [vmem:[%s10566_s26 + $0xf1] sm:$0xff]  ;;  %v1104_v44 = vld [vmem:[%s10566_s26 + $0xf9] sm:$0xff]  ;;  %v11759_v47 = vld [vmem:[%s10566_s26 + $0x102] sm:$0xff] }
 0x136   : > { %v1858_v9 = vadd.f32 %v1817_v36, %v1733_v26  ;;  %v2902_v14 = vmul.f32 %v11437_v0, %v11638_v54  ;;  %v2903_v18 = vmul.f32 %v11437_v0, %v11640_v50  ;;  %v2988_v29 = vmul.f32 %v11452_v43, %v11729_v20  ;;  %v3196_v36 = vld [vmem:[#allocation2 + $0x5e] sm:$0xff] }
 0x137   : > { %2278 = vst [vmem:[#allocation2 + $0x73] sm:$0xff] %v11733_v6  ;;  %v2989_v49 = vmul.f32 %v11452_v43, %v11731_v37  ;;  %3421 = vmatmul.bf16.gmra.mxu1 %v3316_v19  ;;  %v1982_v34 = vadd.f32 %v1941_v61, %v1857_v45  ;;  %v2693_v39 = vadd.f32 %v2652_v21, %v2607_v28  ;;  %v1020_v54 = vld [vmem:[%s10566_s26 + $0xf8] sm:$0xff]  ;;  %v11765_v45 = vld [vmem:[%s10566_s26 + $0x10a] sm:$0xff] }
 0x138   : > { %v1983_v32 = vadd.f32 %v1942_v2, %v1858_v9  ;;  %v2125_v48 = vpop.f32.mrf.mxu0  ;;  %v2694_v46 = vadd.f32 %v2653_v24, %v2608_v59  ;;  %v3113_v3 = vmul.f32 %v11457_v11, %v3070_v62  ;;  %v3114_v56 = vmul.f32 %v11457_v11, %v3071_v60  ;;  %v1439_v59 = vld [vmem:[%s10566_s26 + $0x103] sm:$0xff]  ;;  %v1440_v62 = vld [vmem:[%s10566_s26 + $0x10b] sm:$0xff] }
 0x139   : > { %v2126_v50 = vadd.f32 %v11635_v13, %v2125_v48  ;;  %v3238_v35 = vmul.f32 %v11462_v1, %v3195_v40  ;;  %v2818_v2 = vadd.f32 %v2777_v31, %v2693_v39  ;;  %v3239_v21 = vmul.f32 %v11462_v1, %v3196_v36  ;;  %v11782_v39 = vld [vmem:[%s10566_s26 + $0x11c] sm:$0xff] }
 0x13a   : > { %v2009_v61 = vpack.c.bf16 %v1983_v32, %v1982_v34  ;;  %v2819_v19 = vadd.f32 %v2778_v57, %v2694_v46  ;;  %v1062_v15 = vmul.f32 %v11520_v25, %v1019_v38  ;;  %v1063_v42 = vmul.f32 %v11520_v25, %v1020_v54 }
 0x13b   : > { %v2205_v26 = vmax.f32 %v2126_v50, 0.0  ;;  %v1146_v24 = vmul.f32 %v11530_v7, %v1103_v4  ;;  %v2943_v9 = vadd.f32 %v2902_v14, %v2818_v2  ;;  %v1147_v31 = vmul.f32 %v11530_v7, %v1104_v44  ;;  %v1776_v2 = vld [vmem:[%s10566_s26 + $0x11d] sm:$0xff] }
 0x13c   : > { %2162 = vmatmul.bf16.gmra.mxu0 %v2009_v61  ;;  %v2944_v28 = vadd.f32 %v2903_v18, %v2819_v19  ;;  %v1271_v57 = vmul.f32 %v11542_v41, %v11666_v8  ;;  %v1272_v36 = vmul.f32 %v11542_v41, %v11672_v63  ;;  %v1357_v34 = vmul.f32 %v11551_v5, %v11759_v47  ;;  %v11779_v8 = vld [vmem:[%s10566_s26 + $0x114] sm:$0xff] }
 0x13d   : > { %v2241_v60 = vmin.f32 %v2205_v26, 6.0  ;;  %v1187_v40 = vadd.f32 %v1146_v24, %v1062_v15  ;;  %v3029_v32 = vadd.f32 %v2988_v29, %v2943_v9  ;;  %v1188_v14 = vadd.f32 %v1147_v31, %v1063_v42  ;;  %v1900_v19 = vld [vmem:[%s10566_s26 + $0x116] sm:$0xff]  ;;  %v2316_v9 = vld [vmem:[#allocation2 + $0x40] sm:$0xff] }
 0x13e   : > { %v3030_v48 = vadd.f32 %v2989_v49, %v2944_v28  ;;  %v1358_v18 = vmul.f32 %v11551_v5, %v11765_v45  ;;  %v1482_v63 = vmul.f32 %v11563_v33, %v1439_v59  ;;  %v1483_v38 = vmul.f32 %v11563_v33, %v1440_v62  ;;  %v1775_v49 = vld [vmem:[%s10566_s26 + $0x115] sm:$0xff] }
 0x13f   : > { %2279 = vst [vmem:[#allocation2 + $0x7b] sm:$0xf3] %v2241_v60   ;;  %v1312_v46 = vadd.f32 %v1271_v57, %v1187_v40  ;;  %v1607_v29 = vmul.f32 %v11579_v10, %v11687_v27  ;;  %v3154_v54 = vadd.f32 %v3113_v3, %v3029_v32  ;;  %v1313_v44 = vadd.f32 %v1272_v36, %v1188_v14  ;;  %v1901_v27 = vld [vmem:[%s10566_s26 + $0x11e] sm:$0xff]  ;;  %v2317_v57 = vld [vmem:[#allocation2 + $0x48] sm:$0xff] }
 0x140   : > { %v3155_v4 = vadd.f32 %v3114_v56, %v3030_v48  ;;  %v2128_v50 = vpop.f32.mrf.mxu0  ;;  %v1608_v61 = vmul.f32 %v11579_v10, %v11691_v53  ;;  %v1693_v42 = vmul.f32 %v11588_v16, %v11779_v8  ;;  %v1694_v24 = vmul.f32 %v11588_v16, %v11782_v39  ;;  %v2400_v53 = vld [vmem:[#allocation2 + $0x41] sm:$0xff]  ;;  %v2401_v36 = vld [vmem:[#allocation2 + $0x49] sm:$0xff] }
 0x141   : > { %v2129_v26 = vadd.f32 %v11635_v13, %v2128_v50  ;;  %v1398_v15 = vadd.f32 %v1357_v34, %v1312_v46  ;;  %v3279_v3 = vadd.f32 %v3238_v35, %v3154_v54  ;;  %v1399_v28 = vadd.f32 %v1358_v18, %v1313_v44  ;;  %v11804_v35 = vld [vmem:[#allocation2 + $0x52] sm:$0xff]  ;;  %v11821_v44 = vld [vmem:[%s15954_s5 + $0x2] ss:$0 sm:$0xff] }
 0x142   : > { %v3280_v56 = vadd.f32 %v3239_v21, %v3155_v4  ;;  %v1818_v31 = vmul.f32 %v11600_v23, %v1775_v49  ;;  %v1819_v60 = vmul.f32 %v11600_v23, %v1776_v2  ;;  %v1943_v40 = vmul.f32 %v11607_v55, %v1900_v19  ;;  %v11806_v21 = vld [vmem:[#allocation2 + $0x5a] sm:$0xff] }
 0x143   : > { %v2206_v59 = vmax.f32 %v2129_v26, 0.0  ;;  %v1523_v62 = vadd.f32 %v1482_v63, %v1398_v15  ;;  %v1524_v32 = vadd.f32 %v1483_v38, %v1399_v28  ;;  %v1944_v48 = vmul.f32 %v11607_v55, %v1901_v27  ;;  %v11814_v49 = vld [vmem:[%s15954_s5 + $0x1] ss:$0 sm:$0xff]  ;;  %v2736_v54 = vld [vmem:[#allocation2 + $0x53] sm:$0xff]  ;;  %v11832_v27 = vld [vmem:[#allocation2 + $0x64] sm:$0xff] }
 0x144   : > { %v3317_v34 = vpack.c.bf16 %v3280_v56, %v3279_v3  ;;  %v2359_v14 = vmul.f32 %v11716_v58, %v2316_v9  ;;  %v2360_v63 = vmul.f32 %v11716_v58, %v2317_v57  ;;  %v2443_v38 = vmul.f32 %v11814_v49, %v2400_v53  ;;  %v11837_v28 = vld [vmem:[#allocation2 + $0x6c] sm:$0xff] }
 0x145   : > { %v11808_v18 = vmin.f32 %v2206_v59, 6.0  ;;  %v1648_v46 = vadd.f32 %v1607_v29, %v1523_v62  ;;  %v1649_v4 = vadd.f32 %v1608_v61, %v1524_v32  ;;  %v2444_v50 = vmul.f32 %v11814_v49, %v2401_v36  ;;  %v3072_v59 = vld [vmem:[#allocation2 + $0x65] sm:$0xff] }
 0x146   : > { %v2568_v29 = vmul.f32 %v11821_v44, %v11709_v30  ;;  %v2569_v2 = vmul.f32 %v11821_v44, %v11721_v17  ;;  %v2484_v26 = vadd.f32 %v2443_v38, %v2359_v14  ;;  %v2654_v61 = vmul.f32 %v11313_v22, %v11804_v35 }
 0x147   : > { %2281 = vst [vmem:[#allocation2 + $0x83] sm:$0xff] %v11808_v18  ;;  %v1734_v19 = vadd.f32 %v1693_v42, %v1648_v46  ;;  %v2655_v15 = vmul.f32 %v11313_v22, %v11806_v21  ;;  %3426 = vmatmul.bf16.gmra.mxu1 %v3317_v34  ;;  %v1735_v9 = vadd.f32 %v1694_v24, %v1649_v4  ;;  %v3073_v24 = vld [vmem:[#allocation2 + $0x6d] sm:$0xff] }
 0x148   : > { %v2130_v3 = vpop.f32.mrf.mxu0  ;;  %v2485_v56 = vadd.f32 %v2444_v50, %v2360_v63  ;;  %v2779_v30 = vmul.f32 %v11405_v51, %v2736_v54  ;;  %v2780_v17 = vmul.f32 %v11405_v51, %v11610_v52  ;;  %v2609_v53 = vadd.f32 %v2568_v29, %v2484_v26  ;;  %v3198_v34 = vld [vmem:[#allocation2 + $0x6e] sm:$0xff]  ;;  %v1024_v63 = vld [vmem:[%s10566_s26 + $0x118] sm:$0xff]  ;;  %v1234_v26 = vld [vmem:[%s10566_s26 + $0x122] sm:$0xff] }
 0x149   : > { %v1859_v42 = vadd.f32 %v1818_v31, %v1734_v19  ;;  %v2131_v57 = vadd.f32 %v11635_v13, %v2130_v3  ;;  %v2904_v22 = vmul.f32 %v11437_v0, %v11729_v20  ;;  %v1860_v62 = vadd.f32 %v1819_v60, %v1735_v9  ;;  %v3197_v31 = vld [vmem:[#allocation2 + $0x66] sm:$0xff]  ;;  %v1023_v60 = vld [vmem:[%s10566_s26 + $0x110] sm:$0xff]  ;;  %v1108_v50 = vld [vmem:[%s10566_s26 + $0x119] sm:$0xff] }
 0x14a   : > { %v2610_v36 = vadd.f32 %v2569_v2, %v2485_v56  ;;  %v2905_v51 = vmul.f32 %v11437_v0, %v11731_v37  ;;  %v2990_v52 = vmul.f32 %v11452_v43, %v11832_v27  ;;  %v2695_v46 = vadd.f32 %v2654_v61, %v2609_v53  ;;  %v1107_v4 = vld [vmem:[%s10566_s26 + $0x111] sm:$0xff]  ;;  %v1443_v56 = vld [vmem:[%s10566_s26 + $0x123] sm:$0xff] }
 0x14b   : > { %v1984_v32 = vadd.f32 %v1943_v40, %v1859_v42  ;;  %v2207_v14 = vmax.f32 %v2131_v57, 0.0  ;;  %v2991_v20 = vmul.f32 %v11452_v43, %v11837_v28  ;;  %v1985_v38 = vadd.f32 %v1944_v48, %v1860_v62  ;;  %v11855_v40 = vld [vmem:[%s10566_s26 + $0x112] sm:$0xff]  ;;  %v11860_v48 = vld [vmem:[%s10566_s26 + $0x11a] sm:$0xff]  ;;  %v1235_v61 = vld [vmem:[%s10566_s26 + $0x12a] sm:$0xff] }
 0x14c   : > { %v2696_v54 = vadd.f32 %v2655_v15, %v2610_v36  ;;  %v3115_v0 = vmul.f32 %v11457_v11, %v3072_v59  ;;  %v3116_v37 = vmul.f32 %v11457_v11, %v3073_v24  ;;  %v2820_v2 = vadd.f32 %v2779_v30, %v2695_v46  ;;  %v1444_v53 = vld [vmem:[%s10566_s26 + $0x12b] sm:$0xff] }
 0x14d   : > { %v2243_v29 = vmin.f32 %v2207_v14, 6.0  ;;  %v3240_v19 = vmul.f32 %v11462_v1, %v3197_v31  ;;  %v3241_v43 = vmul.f32 %v11462_v1, %v3198_v34  ;;  %v2010_v15 = vpack.c.bf16 %v1985_v38, %v1984_v32  ;;  %v11876_v59 = vld [vmem:[%s10566_s26 + $0x12c] sm:$0xff]  ;;  %v1570_v31 = vld [vmem:[%s10566_s26 + $0x134] sm:$0xff] }
 0x14e   : > { %v2821_v9 = vadd.f32 %v2780_v17, %v2696_v54  ;;  %v1066_v11 = vmul.f32 %v11520_v25, %v1023_v60  ;;  %v1067_v3 = vmul.f32 %v11520_v25, %v1024_v63  ;;  %v2945_v30 = vadd.f32 %v2904_v22, %v2820_v2  ;;  %v11873_v17 = vld [vmem:[%s10566_s26 + $0x124] sm:$0xff]  ;;  %v1571_v63 = vld [vmem:[%s10566_s26 + $0x13c] sm:$0xff] }
 0x14f   : > { %2282 = vst [vmem:[#allocation2 + $0x8b] sm:$0xcf] %v2243_v29   ;;  %v1150_v42 = vmul.f32 %v11530_v7, %v1107_v4  ;;  %v1151_v57 = vmul.f32 %v11530_v7, %v1108_v50  ;;  %v1275_v1 = vmul.f32 %v11542_v41, %v11855_v40  ;;  %2167 = vmatmul.bf16.gmra.mxu0 %v2010_v15  ;;  %v1779_v38 = vld [vmem:[%s10566_s26 + $0x135] sm:$0xff] }
 0x150   : > { %v2946_v24 = vadd.f32 %v2905_v51, %v2821_v9  ;;  %v1276_v22 = vmul.f32 %v11542_v41, %v11860_v48  ;;  %v1361_v62 = vmul.f32 %v11551_v5, %v1234_v26  ;;  %v1362_v36 = vmul.f32 %v11551_v5, %v1235_v61  ;;  %v2133_v34 = vpop.f32.mrf.mxu0  ;;  %v1780_v51 = vld [vmem:[%s10566_s26 + $0x13d] sm:$0xff] }
 0x151   : > { %v3031_v32 = vadd.f32 %v2990_v52, %v2945_v30  ;;  %v1191_v14 = vadd.f32 %v1150_v42, %v1066_v11  ;;  %v1192_v46 = vadd.f32 %v1151_v57, %v1067_v3  ;;  %v1486_v60 = vmul.f32 %v11563_v33, %v1443_v56  ;;  %v1904_v29 = vld [vmem:[%s10566_s26 + $0x136] sm:$0xff]  ;;  %v1905_v9 = vld [vmem:[%s10566_s26 + $0x13e] sm:$0xff]  ;;  %v1022_v42 = vld [vmem:[%s10566_s26 + $0x108] sm:$0xff] }
 0x152   : > { %v3032_v54 = vadd.f32 %v2991_v20, %v2946_v24  ;;  %v1487_v4 = vmul.f32 %v11563_v33, %v1444_v53  ;;  %v1611_v50 = vmul.f32 %v11579_v10, %v11873_v17  ;;  %v1612_v52 = vmul.f32 %v11579_v10, %v11876_v59  ;;  %v1021_v11 = vld [vmem:[%s10566_s26 + $0x100] sm:$0xff] }
 0x153   : > { %v3156_v2 = vadd.f32 %v3115_v0, %v3031_v32  ;;  %v1316_v26 = vadd.f32 %v1275_v1, %v1191_v14  ;;  %v1317_v61 = vadd.f32 %v1276_v22, %v1192_v46  ;;  %v1697_v15 = vmul.f32 %v11588_v16, %v1570_v31  ;;  %v1105_v57 = vld [vmem:[%s10566_s26 + $0x101] sm:$0xff]  ;;  %v1106_v22 = vld [vmem:[%s10566_s26 + $0x109] sm:$0xff] }
 0x154   : > { %v3157_v3 = vadd.f32 %v3116_v37, %v3032_v54  ;;  %v1698_v20 = vmul.f32 %v11588_v16, %v1571_v63  ;;  %v1822_v56 = vmul.f32 %v11600_v23, %v1779_v38  ;;  %v1823_v30 = vmul.f32 %v11600_v23, %v1780_v51  ;;  %v1441_v54 = vld [vmem:[%s10566_s26 + $0x113] sm:$0xff] }
 0x155   : > { %v3281_v53 = vadd.f32 %v3240_v19, %v3156_v2  ;;  %v1402_v24 = vadd.f32 %v1361_v62, %v1316_v26  ;;  %v1403_v0 = vadd.f32 %v1362_v36, %v1317_v61  ;;  %v1947_v1 = vmul.f32 %v11607_v55, %v1904_v29 }
 0x156   : > { %v3282_v32 = vadd.f32 %v3241_v43, %v3157_v3  ;;  %v1948_v31 = vmul.f32 %v11607_v55, %v1905_v9  ;;  %v2134_v37 = vadd.f32 %v11635_v13, %v2133_v34  ;;  %v1064_v14 = vmul.f32 %v11520_v25, %v1021_v11  ;;  %v1777_v3 = vld [vmem:[%s10566_s26 + $0x125] sm:$0xff] }
 0x157   : > { %v1527_v46 = vadd.f32 %v1486_v60, %v1402_v24  ;;  %v1528_v63 = vadd.f32 %v1487_v4, %v1403_v0  ;;  %v1065_v38 = vmul.f32 %v11520_v25, %v1022_v42  ;;  %v1148_v19 = vmul.f32 %v11530_v7, %v1105_v57  ;;  %v1442_v25 = vld [vmem:[%s10566_s26 + $0x11b] sm:$0xff]  ;;  %v1903_v24 = vld [vmem:[%s10566_s26 + $0x12e] sm:$0xff] }
 0x158   : > { %v3318_v62 = vpack.c.bf16 %v3282_v32, %v3281_v53  ;;  %v2208_v51 = vmax.f32 %v2134_v37, 0.0  ;;  %v1149_v36 = vmul.f32 %v11530_v7, %v1106_v22  ;;  %v1273_v43 = vmul.f32 %v11542_v41, %v11759_v47  ;;  %v2135_v29 = vpop.f32.mrf.mxu0  ;;  %v2318_v0 = vld [vmem:[#allocation2 + $0x50] sm:$0xff]  ;;  %v2319_v37 = vld [vmem:[#allocation2 + $0x58] sm:$0xff] }
 0x159   : > { %v1652_v34 = vadd.f32 %v1611_v50, %v1527_v46  ;;  %v1653_v2 = vadd.f32 %v1612_v52, %v1528_v63  ;;  %v1189_v26 = vadd.f32 %v1148_v19, %v1064_v14  ;;  %v1274_v60 = vmul.f32 %v11542_v41, %v11765_v45  ;;  %v1778_v41 = vld [vmem:[%s10566_s26 + $0x12d] sm:$0xff]  ;;  %v2403_v46 = vld [vmem:[#allocation2 + $0x59] sm:$0xff] }
 0x15a   : > { %3431 = vmatmul.bf16.gmra.mxu1 %v3318_v62  ;;  %v11915_v4 = vmin.f32 %v2208_v51, 6.0  ;;  %v1190_v61 = vadd.f32 %v1149_v36, %v1065_v38  ;;  %v1359_v7 = vmul.f32 %v11551_v5, %v11855_v40  ;;  %v1360_v47 = vmul.f32 %v11551_v5, %v11860_v48  ;;  %v1902_v5 = vld [vmem:[%s10566_s26 + $0x126] sm:$0xff]  ;;  %v2402_v14 = vld [vmem:[#allocation2 + $0x51] sm:$0xff] }
 0x15b   : > { %v1738_v9 = vadd.f32 %v1697_v15, %v1652_v34  ;;  %v1739_v50 = vadd.f32 %v1698_v20, %v1653_v2  ;;  %v1314_v52 = vadd.f32 %v1273_v43, %v1189_v26  ;;  %v1484_v11 = vmul.f32 %v11563_v33, %v1441_v54  ;;  %v11956_v26 = vld [vmem:[%s15954_s5 + $0x3] ss:$0 sm:$0xff] }
 0x15c   : > { %2284 = vst [vmem:[#allocation2 + $0x93] sm:$0xff] %v11915_v4  ;;  %v1315_v45 = vadd.f32 %v1274_v60, %v1190_v61  ;;  %v1485_v42 = vmul.f32 %v11563_v33, %v1442_v25  ;;  %v1609_v57 = vmul.f32 %v11579_v10, %v11779_v8  ;;  %v1610_v40 = vmul.f32 %v11579_v10, %v11782_v39  ;;  %v2739_v25 = vld [vmem:[#allocation2 + $0x6b] sm:$0xff] }
 0x15d   : > { %v1863_v48 = vadd.f32 %v1822_v56, %v1738_v9  ;;  %v1864_v15 = vadd.f32 %v1823_v30, %v1739_v50  ;;  %v1400_v20 = vadd.f32 %v1359_v7, %v1314_v52  ;;  %v1695_v53 = vmul.f32 %v11588_v16, %v11873_v17  ;;  %v11962_v52 = vld [vmem:[#allocation2 + $0x74] sm:$0xff] }
 0x15e   : > { %v1401_v22 = vadd.f32 %v1360_v47, %v1315_v45  ;;  %v1696_v32 = vmul.f32 %v11588_v16, %v11876_v59  ;;  %v1820_v33 = vmul.f32 %v11600_v23, %v1777_v3  ;;  %v1821_v8 = vmul.f32 %v11600_v23, %v1778_v41  ;;  %v11942_v16 = vld [vmem:[#allocation2 + $0x62] sm:$0xff] }
 0x15f   : > { %v1988_v10 = vadd.f32 %v1947_v1, %v1863_v48  ;;  %v1989_v39 = vadd.f32 %v1948_v31, %v1864_v15  ;;  %v1525_v56 = vadd.f32 %v1484_v11, %v1400_v20  ;;  %v1945_v30 = vmul.f32 %v11607_v55, %v1902_v5  ;;  %v11946_v31 = vld [vmem:[#allocation2 + $0x6a] sm:$0xff]  ;;  %v11969_v41 = vld [vmem:[%s15954_s5 + $0x4] ss:$0 sm:$0xff]  ;;  %v11977_v15 = vld [vmem:[%s15954_s5 + $0x5] ss:$0 sm:$0xff] }
 0x160   : > { %v1526_v63 = vadd.f32 %v1485_v42, %v1401_v22  ;;  %v1946_v17 = vmul.f32 %v11607_v55, %v1903_v24  ;;  %v2136_v38 = vadd.f32 %v11635_v13, %v2135_v29  ;;  %v2361_v19 = vmul.f32 %v11716_v58, %v2318_v0  ;;  %v2138_v54 = vpop.f32.mrf.mxu0  ;;  %v2320_v24 = vld [vmem:[#allocation2 + $0x60] sm:$0xff]  ;;  %v2321_v0 = vld [vmem:[#allocation2 + $0x68] sm:$0xff] }
 0x161   : > { %v2012_v59 = vpack.c.bf16 %v1989_v39, %v1988_v10  ;;  %v1650_v62 = vadd.f32 %v1609_v57, %v1525_v56  ;;  %v2362_v23 = vmul.f32 %v11716_v58, %v2319_v37  ;;  %v2445_v1 = vmul.f32 %v11814_v49, %v2402_v14  ;;  %v3074_v57 = vld [vmem:[#allocation2 + $0x75] sm:$0xff]  ;;  %v2404_v37 = vld [vmem:[#allocation2 + $0x61] sm:$0xff]  ;;  %v2405_v56 = vld [vmem:[#allocation2 + $0x69] sm:$0xff] }
 0x162   : > { %v1651_v51 = vadd.f32 %v1610_v40, %v1526_v63  ;;  %v2209_v36 = vmax.f32 %v2136_v38, 0.0  ;;  %v2446_v43 = vmul.f32 %v11814_v49, %v2403_v46  ;;  %v2570_v55 = vmul.f32 %v11821_v44, %v11804_v35  ;;  %v3075_v40 = vld [vmem:[#allocation2 + $0x7d] sm:$0xff] }
 0x163   : > { %2177 = vmatmul.bf16.vlgmr.msra.gmra.mxu3 %v2012_v59  ;;  %v1736_v29 = vadd.f32 %v1695_v53, %v1650_v62  ;;  %v2486_v34 = vadd.f32 %v2445_v1, %v2361_v19  ;;  %v2571_v2 = vmul.f32 %v11821_v44, %v11806_v21  ;;  %v2656_v60 = vmul.f32 %v11956_v26, %v11942_v16  ;;  %v11964_v21 = vld [vmem:[#allocation2 + $0x7c] sm:$0xff]  ;;  %v12004_v1 = vld [vmem:[#allocation2 + $0x72] sm:$0xff] }
 0x164   : > { %v1737_v61 = vadd.f32 %v1696_v32, %v1651_v51  ;;  %v2245_v7 = vmin.f32 %v2209_v36, 6.0  ;;  %v2487_v47 = vadd.f32 %v2446_v43, %v2362_v23  ;;  %v2657_v35 = vmul.f32 %v11956_v26, %v11946_v31  ;;  %v11986_v32 = vld [vmem:[%s15954_s5 + $0x6] ss:$0 sm:$0xff]  ;;  %v12006_v51 = vld [vmem:[#allocation2 + $0x7a] sm:$0xff] }
 0x165   : > { %v1861_v9 = vadd.f32 %v1820_v33, %v1736_v29  ;;  %v2611_v50 = vadd.f32 %v2570_v55, %v2486_v34  ;;  %v2781_v45 = vmul.f32 %v11969_v41, %v11654_v12  ;;  %v2782_v42 = vmul.f32 %v11969_v41, %v2739_v25  ;;  %v3199_v34 = vld [vmem:[#allocation2 + $0x76] sm:$0xff] }
 0x166   : > { %v1862_v11 = vadd.f32 %v1821_v8, %v1737_v61  ;;  %2285 = vst [vmem:[#allocation2 + $0x9b] sm:$0x3f] %v2245_v7  ;;  %v2612_v3 = vadd.f32 %v2571_v2, %v2487_v47  ;;  %v2906_v20 = vmul.f32 %v11977_v15, %v11832_v27  ;;  %v2907_v53 = vmul.f32 %v11977_v15, %v11837_v28  ;;  %v11995_v28 = vld [vmem:[%s15954_s5 + $0x7] ss:$0 sm:$0xff]  ;;  %v3200_v2 = vld [vmem:[#allocation2 + $0x7e] sm:$0xff] }
 0x167   : > { %v1986_v5 = vadd.f32 %v1945_v30, %v1861_v9  ;;  %v2697_v48 = vadd.f32 %v2656_v60, %v2611_v50  ;;  %v2992_v33 = vmul.f32 %v11986_v32, %v11962_v52  ;;  %v2993_v8 = vmul.f32 %v11986_v32, %v11964_v21  ;;  %v2741_v50 = vld [vmem:[#allocation2 + $0x7b] sm:$0xff] }
 0x168   : > { %v1987_v12 = vadd.f32 %v1946_v17, %v1862_v11  ;;  %v2698_v22 = vadd.f32 %v2657_v35, %v2612_v3  ;;  %v3117_v14 = vmul.f32 %v11995_v28, %v3074_v57  ;;  %v3118_v10 = vmul.f32 %v11995_v28, %v3075_v40  ;;  %v2140_v63 = vpop.f32.mrf.mxu0 }
 0x169   : > { %v2822_v27 = vadd.f32 %v2781_v45, %v2697_v48  ;;  %v2139_v39 = vadd.f32 %v11635_v13, %v2138_v54  ;;  %v2363_v17 = vmul.f32 %v11716_v58, %v2320_v24  ;;  %v2364_v38 = vmul.f32 %v11716_v58, %v2321_v0  ;;  %v12025_v45 = vld [vmem:[%s15954_s5 + $0x8] ss:$0 sm:$0xff]  ;;  %v12031_v48 = vld [vmem:[#allocation2 + $0x8c] sm:$0xff] }
 0x16a   : > { %v2011_v30 = vpack.c.bf16 %v1987_v12, %v1986_v5  ;;  %v2823_v46 = vadd.f32 %v2782_v42, %v2698_v22  ;;  %v2141_v62 = vadd.f32 %v11635_v13, %v2140_v63  ;;  %v2447_v23 = vmul.f32 %v11814_v49, %v2404_v37  ;;  %v12029_v5 = vld [vmem:[#allocation2 + $0x84] sm:$0xff]  ;;  %v2322_v12 = vld [vmem:[#allocation2 + $0x70] sm:$0xff] }
 0x16b   : > { %v2947_v19 = vadd.f32 %v2906_v20, %v2822_v27  ;;  %v2210_v59 = vmax.f32 %v2139_v39, 0.0  ;;  %v2448_v43 = vmul.f32 %v11814_v49, %v2405_v56  ;;  %v2572_v55 = vmul.f32 %v11821_v44, %v11942_v16  ;;  %v2407_v39 = vld [vmem:[#allocation2 + $0x79] sm:$0xff]  ;;  %v3077_v63 = vld [vmem:[#allocation2 + $0x8d] sm:$0xff] }
 0x16c   : > { %2172 = vmatmul.bf16.gmra.mxu0 %v2011_v30  ;;  %v2948_v36 = vadd.f32 %v2907_v53, %v2823_v46  ;;  %v2573_v54 = vmul.f32 %v11821_v44, %v11946_v31  ;;  %v2211_v25 = vmax.f32 %v2141_v62, 0.0  ;;  %v2488_v61 = vadd.f32 %v2447_v23, %v2363_v17  ;;  %v12050_v62 = vld [vmem:[#allocation2 + $0x8a] sm:$0xff] }
 0x16d   : > { %v3033_v29 = vadd.f32 %v2992_v33, %v2947_v19  ;;  %v12013_v60 = vmin.f32 %v2210_v59, 6.0  ;;  %v2489_v47 = vadd.f32 %v2448_v43, %v2364_v38  ;;  %v2658_v35 = vmul.f32 %v11956_v26, %v12004_v1 }
 0x16e   : > { %v3034_v7 = vadd.f32 %v2993_v8, %v2948_v36  ;;  %v2659_v9 = vmul.f32 %v11956_v26, %v12006_v51  ;;  %v12020_v31 = vmin.f32 %v2211_v25, 6.0  ;;  %v2613_v11 = vadd.f32 %v2572_v55, %v2488_v61  ;;  %v12052_v55 = vld [vmem:[#allocation2 + $0x82] sm:$0xff] }
 0x16f   : > { %v3158_v16 = vadd.f32 %v3117_v14, %v3033_v29  ;;  %2286 = vst [vmem:[#allocation2 + $0xa3] sm:$0xff] %v12013_v60  ;;  %v3242_v42 = vmul.f32 %v12025_v45, %v3199_v34  ;;  %v3243_v57 = vmul.f32 %v12025_v45, %v3200_v2  ;;  %v2614_v40 = vadd.f32 %v2573_v54, %v2489_v47  ;;  %v2323_v14 = vld [vmem:[#allocation2 + $0x78] sm:$0xff]  ;;  %v3076_v54 = vld [vmem:[#allocation2 + $0x85] sm:$0xff] }
 0x170   : > { %v3159_v3 = vadd.f32 %v3118_v10, %v3034_v7  ;;  %2287 = vst [vmem:[#allocation2 + $0xab] sm:$0xff] %v12020_v31  ;;  %v2699_v20 = vadd.f32 %v2658_v35, %v2613_v11  ;;  %v2783_v53 = vmul.f32 %v11969_v41, %v11733_v6  ;;  %v2784_v24 = vmul.f32 %v11969_v41, %v2741_v50  ;;  %v2143_v27 = vpop.f32.mrf.mxu0  ;;  %v2406_v10 = vld [vmem:[#allocation2 + $0x71] sm:$0xff] }
 0x171   : > { %v2908_v0 = vmul.f32 %v11977_v15, %v11962_v52  ;;  %v3283_v22 = vadd.f32 %v3242_v42, %v3158_v16  ;;  %v2700_v8 = vadd.f32 %v2659_v9, %v2614_v40  ;;  %v2909_v37 = vmul.f32 %v11977_v15, %v11964_v21  ;;  %v3202_v9 = vld [vmem:[#allocation2 + $0x8e] sm:$0xff] }
 0x172   : > { %v3284_v33 = vadd.f32 %v3243_v57, %v3159_v3  ;;  %v2824_v56 = vadd.f32 %v2783_v53, %v2699_v20  ;;  %v2994_v6 = vmul.f32 %v11986_v32, %v12029_v5  ;;  %v2995_v30 = vmul.f32 %v11986_v32, %v12031_v48  ;;  %v2743_v53 = vld [vmem:[#allocation2 + $0x8b] sm:$0xff] }
 0x173   : > { %v2825_v52 = vadd.f32 %v2784_v24, %v2700_v8  ;;  %v2144_v17 = vadd.f32 %v11635_v13, %v2143_v27  ;;  %v2365_v38 = vmul.f32 %v11716_v58, %v2322_v12  ;;  %v2366_v21 = vmul.f32 %v11716_v58, %v2323_v14  ;;  %v12070_v14 = vld [vmem:[#allocation2 + $0x94] sm:$0xff] }
 0x174   : > { %v3319_v46 = vpack.c.bf16 %v3284_v33, %v3283_v22  ;;  %v2449_v19 = vmul.f32 %v11814_v49, %v2406_v10  ;;  %v2450_v59 = vmul.f32 %v11814_v49, %v2407_v39  ;;  %v2949_v23 = vadd.f32 %v2908_v0, %v2824_v56  ;;  %v2324_v56 = vld [vmem:[#allocation2 + $0x80] sm:$0xff] }
 0x175   : > { %v2950_v36 = vadd.f32 %v2909_v37, %v2825_v52  ;;  %v2212_v43 = vmax.f32 %v2144_v17, 0.0  ;;  %v3120_v29 = vmul.f32 %v11995_v28, %v3077_v63  ;;  %v2575_v25 = vmul.f32 %v11821_v44, %v12006_v51  ;;  %v3201_v51 = vld [vmem:[#allocation2 + $0x86] sm:$0xff] }
 0x176   : > { %3436 = vmatmul.bf16.gmra.mxu1 %v3319_v46  ;;  %v2490_v34 = vadd.f32 %v2449_v19, %v2365_v38  ;;  %v2491_v2 = vadd.f32 %v2450_v59, %v2366_v21  ;;  %v3035_v61 = vadd.f32 %v2994_v6, %v2949_v23  ;;  %v2661_v35 = vmul.f32 %v11956_v26, %v12050_v62  ;;  %v12066_v33 = vld [vmem:[#allocation2 + $0x9c] sm:$0xff] }
 0x177   : > { %v3036_v7 = vadd.f32 %v2995_v30, %v2950_v36  ;;  %v2248_v47 = vmin.f32 %v2212_v43, 6.0  ;;  %v2574_v50 = vmul.f32 %v11821_v44, %v12004_v1  ;;  %v2660_v16 = vmul.f32 %v11956_v26, %v12052_v55  ;;  %v2408_v6 = vld [vmem:[#allocation2 + $0x81] sm:$0xff]  ;;  %v3078_v19 = vld [vmem:[#allocation2 + $0x95] sm:$0xff] }
 0x178   : > { %v3119_v11 = vmul.f32 %v11995_v28, %v3076_v54  ;;  %v2145_v42 = vpop.f32.mrf.mxu0  ;;  %v2616_v57 = vadd.f32 %v2575_v25, %v2491_v2  ;;  %v3245_v0 = vmul.f32 %v12025_v45, %v3202_v9  ;;  %v3244_v8 = vmul.f32 %v12025_v45, %v3201_v51  ;;  %v3079_v59 = vld [vmem:[#allocation2 + $0x9d] sm:$0xff]  ;;  %v3729_v25 = vld [vmem:[#allocation3 + $0x1] sm:$0xff] }
 0x179   : > { %v3161_v3 = vadd.f32 %v3120_v29, %v3036_v7  ;;  %2288 = vst [vmem:[#allocation2 + $0xb3] sm:$0xfc] %v2248_v47  ;;  %v2146_v40 = vadd.f32 %v11635_v13, %v2145_v42  ;;  %v2615_v20 = vadd.f32 %v2574_v50, %v2490_v34  ;;  %v2786_v27 = vmul.f32 %v11969_v41, %v2743_v53  ;;  %v12093_v54 = vld [vmem:[%s15956_s0] ss:$0 sm:$0xff]  ;;  %v2325_v29 = vld [vmem:[#allocation2 + $0x88] sm:$0xff]  ;;  %v2535_v50 = vld [vmem:[#allocation2 + $0x92] sm:$0xff] }
 0x17a   : > { %v3160_v24 = vadd.f32 %v3119_v11, %v3035_v61  ;;  %v2702_v12 = vadd.f32 %v2661_v35, %v2616_v57  ;;  %v2911_v13 = vmul.f32 %v11977_v15, %v12031_v48  ;;  %v2785_v39 = vmul.f32 %v11969_v41, %v11808_v18  ;;  %v12098_v61 = vld [vmem:[%s15956_s0 + $0x1] ss:$0 sm:$0xff]  ;;  %v2409_v7 = vld [vmem:[#allocation2 + $0x89] sm:$0xff]  ;;  %v2410_v11 = vld [vmem:[#allocation2 + $0x91] sm:$0xff] }
 0x17b   : > { %v2213_v22 = vmax.f32 %v2146_v40, 0.0  ;;  %v2701_v1 = vadd.f32 %v2660_v16, %v2615_v20  ;;  %v3286_v37 = vadd.f32 %v3245_v0, %v3161_v3  ;;  %v2910_v52 = vmul.f32 %v11977_v15, %v12029_v5  ;;  %v12087_v5 = vld [vmem:[%s15952_s29] ss:$0 sm:$0xff]  ;;  %15957 = vst [vmem:[#allocation16_spill] sm:$0xff] %v12098_v61  ;;  %v2326_v16 = vld [vmem:[#allocation2 + $0x90] sm:$0xff] }
 0x17c   : > { %v3285_v30 = vadd.f32 %v3244_v8, %v3160_v24  ;;  %v2827_v46 = vadd.f32 %v2786_v27, %v2702_v12  ;;  %v2997_v63 = vmul.f32 %v11986_v32, %v12066_v33  ;;  %v2996_v38 = vmul.f32 %v11986_v32, %v12070_v14  ;;  %v3204_v42 = vld [vmem:[#allocation2 + $0x9e] sm:$0xff]  ;;  %v3881_v0 = vld [vmem:[#allocation3 + $0x2] sm:$0xff] }
 0x17d   : > { %v2249_v10 = vmin.f32 %v2213_v22, 6.0  ;;  %v2826_v17 = vadd.f32 %v2785_v39, %v2701_v1  ;;  %v2367_v23 = vmul.f32 %v11716_v58, %v2324_v56  ;;  %v2451_v36 = vmul.f32 %v11814_v49, %v2408_v6  ;;  %v12102_v57 = vld [vmem:[#allocation2] sm:$0xff] }
 0x17e   : > { %v3320_v48 = vpack.c.bf16 %v3286_v37, %v3285_v30  ;;  %v2952_v21 = vadd.f32 %v2911_v13, %v2827_v46  ;;  %v3121_v47 = vmul.f32 %v11995_v28, %v3078_v19  ;;  %v3122_v35 = vmul.f32 %v11995_v28, %v3079_v59  ;;  %v12112_v20 = vld [vmem:[%s15956_s0 + $0x2] ss:$0 sm:$0xff]  ;;  %v4185_v59 = vld [vmem:[#allocation3 + $0x4] sm:$0xff] }
 0x17f   : > { %2289 = vst [vmem:[#allocation2 + $0xbb] sm:$0xff] %v2249_v10  ;;  %v2951_v34 = vadd.f32 %v2910_v52, %v2826_v17  ;;  %v12106_v51 = vmul.f32 %v12102_v57, %v12093_v54  ;;  %v3781_v40 = vmul.f32 %v12098_v61, %v3729_v25  ;;  %v2492_v53 = vadd.f32 %v2451_v36, %v2367_v23  ;;  %v3203_v10 = vld [vmem:[#allocation2 + $0x96] sm:$0xff] }
 0x180   : > { %v2148_v18 = vpop.f32.mrf.mxu0  ;;  %v3038_v2 = vadd.f32 %v2997_v63, %v2952_v21  ;;  %15958 = vst [vmem:[#allocation17_spill] sm:$0xff] %v12112_v20  ;;  %v2368_v12 = vmul.f32 %v11716_v58, %v2325_v29  ;;  %v2452_v22 = vmul.f32 %v11814_v49, %v2409_v7  ;;  %v2576_v1 = vmul.f32 %v11821_v44, %v12052_v55  ;;  %v12127_v55 = vld [vmem:[%s15956_s0 + $0x3] ss:$0 sm:$0xff]  ;;  %v4033_v63 = vld [vmem:[#allocation3 + $0x3] sm:$0xff]  ;;  %v4187_v7 = vld [vmem:[#allocation3 + $0x14] sm:$0xff] }
 0x181   : > { %v2149_v43 = vadd.f32 %v12087_v5, %v2148_v18  ;;  %v3037_v3 = vadd.f32 %v2996_v38, %v2951_v34  ;;  %v2662_v37 = vmul.f32 %v11956_v26, %v2535_v50  ;;  %v2369_v27 = vmul.f32 %v11716_v58, %v2326_v16  ;;  %v12131_v23 = vld [vmem:[#allocation2 + $0x9a] sm:$0xff] }
 0x182   : > { %v3163_v8 = vadd.f32 %v3122_v35, %v3038_v2  ;;  %v2453_v13 = vmul.f32 %v11814_v49, %v2410_v11  ;;  %v3247_v39 = vmul.f32 %v12025_v45, %v3204_v42  ;;  %v3831_v6 = vadd.f32 %v3781_v40, %v12106_v51  ;;  %v12147_v35 = vld [vmem:[%s15956_s0 + $0x5] ss:$0 sm:$0xff]  ;;  %v2745_v16 = vld [vmem:[#allocation2 + $0x9b] sm:$0xff] }
 0x183   : > { %v2214_v9 = vmax.f32 %v2149_v43, 0.0  ;;  %v3162_v56 = vadd.f32 %v3121_v47, %v3037_v3  ;;  %v3933_v30 = vmul.f32 %v12112_v20, %v3881_v0  ;;  %v2617_v52 = vadd.f32 %v2576_v1, %v2492_v53  ;;  %v12142_v47 = vld [vmem:[%s15956_s0 + $0x4] ss:$0 sm:$0xff]  ;;  %v3730_v53 = vld [vmem:[#allocation3 + $0x9] sm:$0xff] }
 0x184   : > { %v2493_v17 = vadd.f32 %v2452_v22, %v2368_v12  ;;  %v3246_v38 = vmul.f32 %v12025_v45, %v3203_v10  ;;  %v2494_v19 = vadd.f32 %v2453_v13, %v2369_v27  ;;  %v2577_v36 = vmul.f32 %v11821_v44, %v12050_v62  ;;  %v12154_v62 = vld [vmem:[%s15956_s0 + $0x6] ss:$0 sm:$0xff]  ;;  %v4034_v0 = vld [vmem:[#allocation3 + $0xb] sm:$0xff] }
 0x185   : > { %v2250_v24 = vmin.f32 %v2214_v9, 6.0  ;;  %v2703_v21 = vadd.f32 %v2662_v37, %v2617_v52  ;;  %v2787_v43 = vmul.f32 %v11969_v41, %v11915_v4  ;;  %v2578_v29 = vmul.f32 %v11821_v44, %v2535_v50  ;;  %v12156_v11 = vld [vmem:[#allocation2 + $0xa4] sm:$0xff]  ;;  %v2327_v10 = vld [vmem:[#allocation2 + $0x98] sm:$0xff] }
 0x186   : > { %3441 = vmatmul.bf16.gmra.mxu1 %v3320_v48  ;;  %v3288_v48 = vadd.f32 %v3247_v39, %v3163_v8  ;;  %v3287_v34 = vadd.f32 %v3246_v38, %v3162_v56  ;;  %v3983_v2 = vadd.f32 %v3933_v30, %v3831_v6  ;;  %v4085_v25 = vmul.f32 %v12127_v55, %v4033_v63  ;;  %v4441_v22 = vld [vmem:[#allocation3 + $0x15] sm:$0xff]  ;;  %v4186_v30 = vld [vmem:[#allocation3 + $0xc] sm:$0xff] }
 0x187   : > { %2290 = vst [vmem:[#allocation2 + $0xc3] sm:$0xf3] %v2250_v24   ;;  %v2663_v4 = vmul.f32 %v11956_v26, %v12131_v23  ;;  %v2618_v50 = vadd.f32 %v2577_v36, %v2493_v17  ;;  %v2828_v42 = vadd.f32 %v2787_v43, %v2703_v21  ;;  %v2912_v40 = vmul.f32 %v11977_v15, %v12070_v14  ;;  %v3882_v24 = vld [vmem:[#allocation3 + $0xa] sm:$0xff]  ;;  %v12160_v8 = vld [vmem:[#allocation2 + $0xac] sm:$0xff] }
 0x188   : > { %v2150_v46 = vpop.f32.mrf.mxu0  ;;  %v3321_v3 = vpack.c.bf16 %v3288_v48, %v3287_v34  ;;  %v2619_v12 = vadd.f32 %v2578_v29, %v2494_v19  ;;  %v2913_v37 = vmul.f32 %v11977_v15, %v12066_v33  ;;  %v3782_v27 = vmul.f32 %v12098_v61, %v3730_v53  ;;  %v12169_v14 = vld [vmem:[%s15959_s10] ss:$0 sm:$0xff]  ;;  %v4188_v17 = vld [vmem:[#allocation3 + $0x1c] sm:$0xff] }
 0x189   : > { %v2151_v58 = vadd.f32 %v12087_v5, %v2150_v46  ;;  %v2704_v1 = vadd.f32 %v2663_v4, %v2618_v50  ;;  %v3934_v13 = vmul.f32 %v12112_v20, %v3882_v24  ;;  %v4135_v39 = vadd.f32 %v4085_v25, %v3983_v2  ;;  %v2411_v38 = vld [vmem:[#allocation2 + $0x99] sm:$0xff]  ;;  %v4442_v2 = vld [vmem:[#allocation3 + $0x1d] sm:$0xff] }
 0x18a   : > { %v4237_v56 = vmul.f32 %v12142_v47, %v4185_v59  ;;  %v2998_v6 = vmul.f32 %v11986_v32, %v12156_v11  ;;  %v12176_v33 = vmul.f32 %v11969_v41, %v12013_v60  ;;  %v12179_v46 = vmul.f32 %v12147_v35, %v4187_v7  ;;  %v12192_v59 = vld [vmem:[%s15954_s5] ss:$0 sm:$0xff] }
 0x18b   : > { %v2215_v18 = vmax.f32 %v2151_v58, 0.0  ;;  %v2788_v52 = vmul.f32 %v11969_v41, %v2745_v16  ;;  %v3832_v63 = vadd.f32 %v3782_v27, %v12106_v51  ;;  %v4086_v58 = vmul.f32 %v12127_v55, %v4034_v0  ;;  %v12195_v51 = vld [vmem:[#allocation2 + $0xa2] sm:$0xff]  ;;  %v12202_v16 = vld [vmem:[#allocation2 + $0xaa] sm:$0xff] }
 0x18c   : > { %v12185_v48 = vmul.f32 %v12154_v62, %v4441_v22  ;;  %v2953_v21 = vadd.f32 %v2912_v40, %v2828_v42  ;;  %v2999_v19 = vmul.f32 %v11986_v32, %v12160_v8  ;;  %v4238_v34 = vmul.f32 %v12142_v47, %v4186_v30  ;;  %v3080_v40 = vld [vmem:[#allocation2 + $0xa5] sm:$0xff]  ;;  %v3206_v27 = vld [vmem:[#allocation2 + $0xae] sm:$0xff] }
 0x18d   : > { %v2251_v9 = vmin.f32 %v2215_v18, 6.0  ;;  %v2370_v18 = vmul.f32 %v12192_v59, %v2327_v10  ;;  %v2829_v43 = vadd.f32 %v2788_v52, %v2704_v1  ;;  %v3984_v29 = vadd.f32 %v3934_v13, %v3832_v63  ;;  %v3081_v1 = vld [vmem:[#allocation2 + $0xad] sm:$0xff] }
 0x18e   : > { %v3039_v4 = vadd.f32 %v2998_v6, %v2953_v21  ;;  %v2454_v50 = vmul.f32 %v11814_v49, %v2411_v38  ;;  %v2664_v0 = vmul.f32 %v11956_v26, %v12195_v51  ;;  %v2579_v10 = vmul.f32 %v11821_v44, %v12131_v23 }
 0x18f   : > { %2292 = vst [vmem:[#allocation2 + $0xcb] sm:$0xff] %v2251_v9  ;;  %v4342_v9 = vmul.f32 %v12147_v35, %v4188_v17  ;;  %v2954_v42 = vadd.f32 %v2913_v37, %v2829_v43  ;;  %v4136_v53 = vadd.f32 %v4086_v58, %v3984_v29  ;;  %v2665_v37 = vmul.f32 %v11956_v26, %v12202_v16  ;;  %v4594_v58 = vld [vmem:[#allocation3 + $0x1e] sm:$0xff] }
 0x190   : > { %v2153_v60 = vpop.f32.mrf.mxu0  ;;  %v2495_v13 = vadd.f32 %v2454_v50, %v2370_v18  ;;  %v3123_v63 = vmul.f32 %v11995_v28, %v3080_v40  ;;  %v2705_v38 = vadd.f32 %v2664_v0, %v2619_v12  ;;  %v4287_v21 = vadd.f32 %v4237_v56, %v4135_v39  ;;  %v12221_v18 = vld [vmem:[#allocation2 + $0xb4] sm:$0xff]  ;;  %v12226_v39 = vld [vmem:[#allocation2 + $0xbc] sm:$0xff] }
 0x191   : > { %v2154_v25 = vadd.f32 %v12087_v5, %v2153_v60  ;;  %v3040_v6 = vadd.f32 %v2999_v19, %v2954_v42  ;;  %v4288_v49 = vadd.f32 %v4238_v34, %v4136_v53  ;;  %v12217_v60 = vld [vmem:[%s15956_s0 + $0x7] ss:$0 sm:$0xff]  ;;  %v3124_v44 = vmul.f32 %v11995_v28, %v3081_v1  ;;  %v4746_v42 = vld [vmem:[#allocation3 + $0x1f] sm:$0xff] }
 0x192   : > { %v2620_v17 = vadd.f32 %v2579_v10, %v2495_v13  ;;  %v3249_v23 = vmul.f32 %v12025_v45, %v3206_v27  ;;  %v2790_v12 = vmul.f32 %v11969_v41, %v12020_v31  ;;  %v2914_v56 = vmul.f32 %v11977_v15, %v12156_v11  ;;  %v12240_v11 = vld [vmem:[%s15956_s0 + $0x8] ss:$0 sm:$0xff] }
 0x193   : > { %v2216_v24 = vmax.f32 %v2154_v25, 0.0  ;;  %v4392_v19 = vadd.f32 %v4342_v9, %v4288_v49  ;;  %v3165_v34 = vadd.f32 %v3124_v44, %v3040_v6  ;;  %v4646_v9 = vmul.f32 %v12217_v60, %v4594_v58  ;;  %v4593_v10 = vld [vmem:[#allocation3 + $0x16] sm:$0xff] }
 0x194   : > { %v3412_v36 = vpop.f32.mrf.mxu1  ;;  %v2706_v29 = vadd.f32 %v2665_v37, %v2620_v17  ;;  %v2830_v40 = vadd.f32 %v12176_v33, %v2705_v38  ;;  %v3000_v31 = vmul.f32 %v11986_v32, %v12221_v18  ;;  %v3001_v1 = vmul.f32 %v11986_v32, %v12226_v39  ;;  %v3083_v38 = vld [vmem:[#allocation2 + $0xbd] sm:$0xff] }
 0x195   : > { %v3413_v7 = vadd.f32 %v12169_v14, %v3412_v36  ;;  %v2252_v30 = vmin.f32 %v2216_v24, 6.0  ;;  %v3164_v36 = vadd.f32 %v3123_v63, %v3039_v4  ;;  %v4391_v24 = vadd.f32 %v12179_v46, %v4287_v21  ;;  %v12250_v46 = vld [vmem:[%s15956_s0 + $0x9] ss:$0 sm:$0xff]  ;;  %v2328_v44 = vld [vmem:[#allocation2 + $0xa0] sm:$0xff] }
 0x196   : > { %3446 = vmatmul.bf16.gmra.mxu1 %v3321_v3  ;;  %v4494_v3 = vmul.f32 %v12154_v62, %v4442_v2  ;;  %v3205_v2 = vld [vmem:[#allocation2 + $0xa6] sm:$0xff]  ;;  %v2831_v53 = vadd.f32 %v2790_v12, %v2706_v29  ;;  %v3290_v27 = vadd.f32 %v3249_v23, %v3165_v34  ;;  %v2955_v13 = vadd.f32 %v2914_v56, %v2830_v40 }
 0x197   : > { %v3511_v22 = vmax.f32 %v3413_v7, 0.0  ;;  %2293 = vst [vmem:[#allocation2 + $0xd3] sm:$0xcf] %v2252_v30   ;;  %v3248_v33 = vmul.f32 %v12025_v45, %v3205_v2  ;;  %v4798_v49 = vmul.f32 %v12240_v11, %v4746_v42  ;;  %v2412_v23 = vld [vmem:[#allocation2 + $0xa1] sm:$0xff]  ;;  %v2413_v56 = vld [vmem:[#allocation2 + $0xa9] sm:$0xff]  ;;  %v12265_v34 = vmul.f32 %v12102_v57, %v12250_v46 }
 0x198   : > { %v2155_v43 = vpop.f32.mrf.mxu0  ;;  %v4544_v7 = vadd.f32 %v4494_v3, %v4392_v19  ;;  %v3041_v17 = vadd.f32 %v3000_v31, %v2955_v13  ;;  %v12256_v19 = vmul.f32 %v12217_v60, %v4593_v10  ;;  %v2329_v12 = vld [vmem:[#allocation2 + $0xa8] sm:$0xff]  ;;  %v2371_v31 = vmul.f32 %v12192_v59, %v2328_v44  ;;  %v12277_v57 = vld [vmem:[%s15954_s5 + $0x1] ss:$0 sm:$0xff] }
 0x199   : > { %v12211_v52 = vmin.f32 %v3511_v22, 6.0  ;;  %v2156_v50 = vadd.f32 %v12087_v5, %v2155_v43  ;;  %v2915_v22 = vmul.f32 %v11977_v15, %v12160_v8  ;;  %v3082_v8 = vld [vmem:[#allocation2 + $0xb5] sm:$0xff]  ;;  %v3289_v63 = vadd.f32 %v3248_v33, %v3164_v36 }
 0x19a   : > { %v4696_v6 = vadd.f32 %v4646_v9, %v4544_v7  ;;  %v3125_v29 = vmul.f32 %v11995_v28, %v3082_v8  ;;  %v12261_v36 = vadd.f32 %v12185_v48, %v4391_v24  ;;  %v3126_v7 = vmul.f32 %v11995_v28, %v3083_v38  ;;  %v3207_v9 = vld [vmem:[#allocation2 + $0xb6] sm:$0xff] }
 0x19b   : > { %3583 = vst [vmem:[#allocation3 + $0x2a] sm:$0xff] %v12211_v52  ;;  %v2217_v0 = vmax.f32 %v2156_v50, 0.0  ;;  %v2956_v37 = vadd.f32 %v2915_v22, %v2831_v53  ;;  %v3322_v43 = vpack.c.bf16 %v3290_v27, %v3289_v63  ;;  %v3208_v50 = vld [vmem:[#allocation2 + $0xbe] sm:$0xff]  ;;  %v2455_v24 = vmul.f32 %v12277_v57, %v2412_v23  ;;  %v12294_v8 = vld [vmem:[#allocation2 + $0xb2] sm:$0xff]  ;;  %v12299_v63 = vld [vmem:[%s15956_s0 + $0xa] ss:$0 sm:$0xff] }
 0x19c   : > { %v3414_v25 = vpop.f32.mrf.mxu1  ;;  %v4848_v2 = vadd.f32 %v4798_v49, %v4696_v6  ;;  %v3166_v53 = vadd.f32 %v3125_v29, %v3041_v17  ;;  %v2456_v33 = vmul.f32 %v12277_v57, %v2413_v56  ;;  %v12285_v27 = vmul.f32 %v12112_v20, %v12211_v52  ;;  %v12303_v44 = vld [vmem:[#allocation2 + $0xba] sm:$0xff]  ;;  %v12308_v23 = vld [vmem:[%s15954_s5 + $0x2] ss:$0 sm:$0xff]  ;;  %v12315_v29 = vld [vmem:[%s15956_s0 + $0xc] ss:$0 sm:$0xff] }
 0x19d   : > { %v3415_v4 = vadd.f32 %v12169_v14, %v3414_v25  ;;  %v2253_v30 = vmin.f32 %v2217_v0, 6.0  ;;  %v3042_v21 = vadd.f32 %v3001_v1, %v2956_v37  ;;  %v2372_v1 = vmul.f32 %v12192_v59, %v2329_v12  ;;  %15960 = vst [vmem:[#allocation18_spill] sm:$0xff] %v12308_v23 }
 0x19e   : > { %v3250_v13 = vmul.f32 %v12025_v45, %v3207_v9  ;;  %v3251_v10 = vmul.f32 %v12025_v45, %v3208_v50  ;;  %v12322_v50 = vld [vmem:[%s15956_s0 + $0xb] ss:$0 sm:$0xff] }
 0x19f   : > { %v3512_v3 = vmax.f32 %v3415_v4, 0.0  ;;  %2295 = vst [vmem:[#allocation2 + $0xdb] sm:$0xff] %v2253_v30  ;;  %v3167_v0 = vadd.f32 %v3126_v7, %v3042_v21  ;;  %v4953_v30 = vadd.f32 %v12265_v34, %v4848_v2  ;;  %v2496_v21 = vadd.f32 %v2455_v24, %v2371_v31  ;;  %v2748_v31 = vld [vmem:[#allocation2 + $0xb3] sm:$0xff] }
 0x1a0   : > { %v12301_v38 = vadd.f32 %v3250_v13, %v3166_v53  ;;  %v2497_v9 = vadd.f32 %v2456_v33, %v2372_v1  ;;  %v2581_v33 = vmul.f32 %v12308_v23, %v12202_v16 }
 0x1a1   : > { %v12253_v58 = vmin.f32 %v3512_v3, 6.0 }
 0x1a2   : > { %v12268_v4 = vld [vmem:[#allocation3 + $0x28] sm:$0xff]  ;;  %v2622_v16 = vadd.f32 %v2581_v33, %v2497_v9 }
 0x1a3   : > { %3584 = vst [vmem:[#allocation3 + $0x32] sm:$0xff] %v12253_v58  ;;  %v12270_v42 = vld [vmem:[#allocation3 + $0x29] sm:$0xff]  ;;  %v3684_v6 = vmul.f32 %v12093_v54, %v12268_v4  ;;  %v3939_v2 = vmul.f32 %v12112_v20, %v12253_v58  ;;  %v2791_v20 = vmul.f32 %v11969_v41, %v2748_v31 }
 0x1a4   : > { %v3417_v25 = vpop.f32.mrf.mxu1  ;;  %v3786_v49 = vmul.f32 %v12098_v61, %v12270_v42 }
 0x1a5   : > { %v3418_v40 = vadd.f32 %v12169_v14, %v3417_v25  ;;  %v2158_v48 = vpop.f32.mrf.mxu0  ;;  %v3292_v25 = vadd.f32 %v3251_v10, %v3167_v0 }
 0x1a6   : > { %3451 = vmatmul.bf16.gmra.mxu1 %v3322_v43  ;;  %v2159_v22 = vadd.f32 %v12087_v5, %v2158_v48  ;;  %v2580_v43 = vmul.f32 %v12308_v23, %v12195_v51  ;;  %v2666_v48 = vmul.f32 %v11956_v26, %v12294_v8  ;;  %v3836_v24 = vadd.f32 %v3786_v49, %v3684_v6  ;;  %v12339_v6 = vld [vmem:[%s15956_s0 + $0xd] ss:$0 sm:$0xff] }
 0x1a7   : > { %v3513_v3 = vmax.f32 %v3418_v40, 0.0 }
 0x1a8   : > { %v2218_v37 = vmax.f32 %v2159_v22, 0.0  ;;  %v5221_v22 = vmul.f32 %v12315_v29, %v12253_v58 }
 0x1a9   : > { %v3549_v17 = vmin.f32 %v3513_v3, 6.0  ;;  %v2667_v3 = vmul.f32 %v11956_v26, %v12303_v44 }
 0x1aa   : > { %v3633_v12 = vld [vmem:[#allocation3 + $0x30] sm:$0xff]  ;;  %v2254_v7 = vmin.f32 %v2218_v37, 6.0 }
 0x1ab   : > { %v3735_v56 = vld [vmem:[#allocation3 + $0x31] sm:$0xff]  ;;  %v3685_v51 = vmul.f32 %v12093_v54, %v3633_v12  ;;  %v5007_v53 = vmul.f32 %v12299_v63, %v3633_v12  ;;  %3585 = vst [vmem:[#allocation3 + $0x3c] sm:$0xfc] %v3549_v17  ;;  %v2621_v17 = vadd.f32 %v2580_v43, %v2496_v21  ;;  %v3323_v12 = vpack.c.bf16 %v3292_v25, %v12301_v38 }
 0x1ac   : > { %v3787_v40 = vmul.f32 %v12098_v61, %v3735_v56  ;;  %v4039_v0 = vld [vmem:[#allocation3 + $0x33] sm:$0xff]  ;;  %v3419_v1 = vpop.f32.mrf.mxu1  ;;  %2296 = vst [vmem:[#allocation2 + $0xe3] sm:$0x3f] %v2254_v7  ;;  %v5114_v37 = vmul.f32 %v12322_v50, %v3735_v56  ;;  %v12348_v56 = vld [vmem:[%s15956_s0 + $0xe] ss:$0 sm:$0xff]  ;;  %v2708_v38 = vadd.f32 %v2667_v3, %v2622_v16  ;;  %v2916_v25 = vmul.f32 %v11977_v15, %v12221_v18  ;;  %v12353_v9 = vld [vmem:[#allocation3 + $0x2b] sm:$0xff] }
 0x1ad   : > { %v5057_v10 = vadd.f32 %v5007_v53, %v4953_v30  ;;  %v2160_v49 = vpop.f32.mrf.mxu0  ;;  %v4191_v58 = vld [vmem:[#allocation3 + $0x34] sm:$0xff]  ;;  %v3420_v7 = vadd.f32 %v12169_v14, %v3419_v1  ;;  %v4091_v30 = vmul.f32 %v12127_v55, %v4039_v0  ;;  %v2749_v53 = vld [vmem:[#allocation2 + $0xbb] sm:$0xff]  ;;  %15961 = vst [vmem:[#allocation19_spill] sm:$0xff] %v12353_v9  ;;  %v5328_v33 = vmul.f32 %v12339_v6, %v4039_v0  ;;  %v12368_v0 = vld [vmem:[#allocation2 + $0xcc] sm:$0xff] }
 0x1ae   : > { %v3837_v13 = vadd.f32 %v3787_v40, %v3685_v51  ;;  %v2707_v40 = vadd.f32 %v2666_v48, %v2621_v17  ;;  %v2161_v43 = vadd.f32 %v12087_v5, %v2160_v49  ;;  %v4243_v31 = vmul.f32 %v12142_v47, %v4191_v58  ;;  %v12360_v48 = vld [vmem:[%s15956_s0 + $0xf] ss:$0 sm:$0xff] }
 0x1af   : > { %v5164_v51 = vadd.f32 %v5114_v37, %v5057_v10  ;;  %v3514_v21 = vmax.f32 %v3420_v7, 0.0  ;;  %v2792_v3 = vmul.f32 %v11969_v41, %v2749_v53  ;;  %v2917_v18 = vmul.f32 %v11977_v15, %v12226_v39 }
 0x1b0   : > { %v3989_v61 = vadd.f32 %v3939_v2, %v3837_v13  ;;  %v2219_v10 = vmax.f32 %v2161_v43, 0.0  ;;  %v2832_v17 = vadd.f32 %v2791_v20, %v2707_v40  ;;  %v4090_v7 = vmul.f32 %v12127_v55, %v12353_v9  ;;  %v3085_v40 = vld [vmem:[#allocation2 + $0xcd] sm:$0xff] }
 0x1b1   : > { %v5271_v1 = vadd.f32 %v5221_v22, %v5164_v51  ;;  %v3550_v13 = vmin.f32 %v3514_v21, 6.0  ;;  %v12366_v22 = vld [vmem:[#allocation2 + $0xc4] sm:$0xff]  ;;  %v2833_v51 = vadd.f32 %v2792_v3, %v2708_v38 }
 0x1b2   : > { %v4141_v2 = vadd.f32 %v4091_v30, %v3989_v61  ;;  %v5433_v61 = vmul.f32 %v12348_v56, %v4191_v58  ;;  %v2255_v41 = vmin.f32 %v2219_v10, 6.0  ;;  %v2957_v20 = vadd.f32 %v2916_v25, %v2832_v17  ;;  %v4745_v38 = vld [vmem:[#allocation3 + $0x17] sm:$0xff] }
 0x1b3   : > { %v5378_v37 = vadd.f32 %v5328_v33, %v5271_v1  ;;  %3586 = vst [vmem:[#allocation3 + $0x44] sm:$0xff] %v3550_v13  ;;  %v4347_v30 = vmul.f32 %v12147_v35, %v3550_v13  ;;  %v5537_v58 = vmul.f32 %v12360_v48, %v3550_v13  ;;  %v2958_v21 = vadd.f32 %v2917_v18, %v2833_v51  ;;  %v12384_v13 = vld [vmem:[#allocation3 + $0x2c] sm:$0xff]  ;;  %v4192_v25 = vld [vmem:[#allocation3 + $0x3c] sm:$0xff] }
 0x1b4   : > { %v4293_v49 = vadd.f32 %v4243_v31, %v4141_v2  ;;  %v3422_v16 = vpop.f32.mrf.mxu1  ;;  %2297 = vst [vmem:[#allocation2 + $0xeb] sm:$0xff] %v2255_v41  ;;  %v3002_v43 = vmul.f32 %v11986_v32, %v12366_v22  ;;  %v3003_v2 = vmul.f32 %v11986_v32, %v12368_v0  ;;  %v3084_v31 = vld [vmem:[#allocation2 + $0xc5] sm:$0xff]  ;;  %v3128_v18 = vmul.f32 %v11995_v28, %v3085_v40  ;;  %v3210_v17 = vld [vmem:[#allocation2 + $0xce] sm:$0xff] }
 0x1b5   : > { %v3423_v15 = vadd.f32 %v12169_v14, %v3422_v16  ;;  %v5483_v39 = vadd.f32 %v5433_v61, %v5378_v37  ;;  %15963 = vst [vmem:[#allocation21_spill] sm:$0xff] %v12384_v13  ;;  %v4695_v32 = vadd.f32 %v12256_v19, %v12261_v36  ;;  %v3209_v16 = vld [vmem:[#allocation2 + $0xc6] sm:$0xff]  ;;  %v4346_v41 = vmul.f32 %v12147_v35, %v4192_v25  ;;  %v2414_v40 = vld [vmem:[#allocation2 + $0xb1] sm:$0xff] }
 0x1b6   : > { %3456 = vmatmul.bf16.gmra.mxu1 %v3323_v12  ;;  %v12375_v53 = vadd.f32 %v4347_v30, %v4293_v49  ;;  %v3988_v12 = vadd.f32 %v12285_v27, %v3836_v24  ;;  %v3043_v10 = vadd.f32 %v3002_v43, %v2957_v20  ;;  %v3044_v3 = vadd.f32 %v3003_v2, %v2958_v21  ;;  %v2330_v20 = vld [vmem:[#allocation2 + $0xb0] sm:$0xff]  ;;  %v2331_v2 = vld [vmem:[#allocation2 + $0xb8] sm:$0xff] }
 0x1b7   : > { %v3515_v1 = vmax.f32 %v3423_v15, 0.0  ;;  %v12382_v33 = vadd.f32 %v5537_v58, %v5483_v39  ;;  %v3127_v49 = vmul.f32 %v11995_v28, %v3084_v31  ;;  %v4797_v27 = vmul.f32 %v12240_v11, %v4745_v38  ;;  %v2415_v31 = vld [vmem:[#allocation2 + $0xb9] sm:$0xff] }
 0x1b8   : > { %v4140_v37 = vadd.f32 %v4090_v7, %v3988_v12  ;;  %v3169_v24 = vadd.f32 %v3128_v18, %v3044_v3  ;;  %v4242_v30 = vmul.f32 %v12142_v47, %v12384_v13  ;;  %v3253_v28 = vmul.f32 %v12025_v45, %v3210_v17 }
 0x1b9   : > { %15962 = vst [vmem:[#allocation20_spill] sm:$0xff] %v12382_v33  ;;  %v3551_v61 = vmin.f32 %v3515_v1, 6.0  ;;  %v3168_v15 = vadd.f32 %v3127_v49, %v3043_v10  ;;  %v2163_v7 = vpop.f32.mrf.mxu0  ;;  %v3252_v36 = vmul.f32 %v12025_v45, %v3209_v16  ;;  %v4847_v21 = vadd.f32 %v4797_v27, %v4695_v32 }
 0x1ba   : > { %v4446_v51 = vld [vmem:[#allocation3 + $0x3d] sm:$0xff]  ;;  %v4292_v58 = vadd.f32 %v4242_v30, %v4140_v37  ;;  %v3294_v43 = vadd.f32 %v3253_v28, %v3169_v24  ;;  %v2164_v25 = vadd.f32 %v12087_v5, %v2163_v7  ;;  %v2373_v3 = vmul.f32 %v12192_v59, %v2330_v20  ;;  %v2541_v24 = vld [vmem:[#allocation2 + $0xc2] sm:$0xff] }
 0x1bb   : > { %3587 = vst [vmem:[#allocation3 + $0x4c] sm:$0x3] %v3551_v61  ;;  %v4498_v19 = vmul.f32 %v12154_v62, %v4446_v51  ;;  %v3293_v38 = vadd.f32 %v3252_v36, %v3168_v15  ;;  %v4598_v10 = vld [vmem:[#allocation3 + $0x3e] sm:$0xff]  ;;  %v2457_v18 = vmul.f32 %v12277_v57, %v2414_v40  ;;  %v2374_v45 = vmul.f32 %v12192_v59, %v2331_v2 }
 0x1bc   : > { %3588 = vst [vmem:[#allocation3 + $0x4e] sm:$0xf0] %v3551_v61  ;;  %v3424_v39 = vpop.f32.mrf.mxu1  ;;  %v4396_v12 = vadd.f32 %v4346_v41, %v4292_v58  ;;  %v2458_v49 = vmul.f32 %v12277_v57, %v2415_v31  ;;  %v2220_v27 = vmax.f32 %v2164_v25, 0.0  ;;  %v4952_v16 = vadd.f32 %v12265_v34, %v4847_v21  ;;  %v2542_v58 = vld [vmem:[#allocation2 + $0xca] sm:$0xff] }
 0x1bd   : > { %v3425_v1 = vadd.f32 %v12169_v14, %v3424_v39  ;;  %v3324_v61 = vpack.c.bf16 %v3294_v43, %v3293_v38  ;;  %v5006_v30 = vmul.f32 %v12299_v63, %v12268_v4  ;;  %v4650_v41 = vmul.f32 %v12217_v60, %v4598_v10  ;;  %v4750_v20 = vld [vmem:[#allocation3 + $0x3f] sm:$0xff] }
 0x1be   : > { %v4548_v37 = vadd.f32 %v4498_v19, %v4396_v12  ;;  %v2498_v39 = vadd.f32 %v2457_v18, %v2373_v3  ;;  %v2582_v19 = vmul.f32 %v12308_v23, %v12294_v8  ;;  %v2499_v34 = vadd.f32 %v2458_v49, %v2374_v45  ;;  %v2750_v49 = vld [vmem:[#allocation2 + $0xc3] sm:$0xff] }
 0x1bf   : > { %v3516_v32 = vmax.f32 %v3425_v1, 0.0  ;;  %v2668_v4 = vmul.f32 %v11956_v26, %v2541_v24  ;;  %v2256_v43 = vmin.f32 %v2220_v27, 6.0  ;;  %v5056_v12 = vadd.f32 %v5006_v30, %v4952_v16  ;;  %v2751_v30 = vld [vmem:[#allocation2 + $0xcb] sm:$0xff] }
 0x1c0   : > { %v4700_v36 = vadd.f32 %v4650_v41, %v4548_v37  ;;  %v2583_v8 = vmul.f32 %v12308_v23, %v12303_v44  ;;  %v4802_v26 = vmul.f32 %v12240_v11, %v4750_v20  ;;  %v2623_v18 = vadd.f32 %v2582_v19, %v2498_v39  ;;  %v12440_v19 = vld [vmem:[%s15954_s5 + $0x4] ss:$0 sm:$0xff]  ;;  %v2878_v20 = vld [vmem:[#allocation2 + $0xdc] sm:$0xff] }
 0x1c1   : > { %v2165_v15 = vpop.f32.mrf.mxu0  ;;  %v3552_v21 = vmin.f32 %v3516_v32, 6.0  ;;  %v5113_v37 = vmul.f32 %v12322_v50, %v12270_v42  ;;  %2298 = vst [vmem:[#allocation2 + $0xf3] sm:$0xff] %v2256_v43  ;;  %v12428_v41 = vmul.f32 %v12315_v29, %v12211_v52  ;;  %v12435_v39 = vmul.f32 %v12308_v23, %v2541_v24 }
 0x1c2   : > { %v4447_v17 = vld [vmem:[#allocation3 + $0x45] sm:$0xff]  ;;  %v2166_v31 = vadd.f32 %v12087_v5, %v2165_v15  ;;  %v2624_v44 = vadd.f32 %v2583_v8, %v2499_v34  ;;  %v2709_v16 = vadd.f32 %v2668_v4, %v2623_v18  ;;  %15965 = vst [vmem:[#allocation23_spill] sm:$0xff] %v12440_v19  ;;  %v2793_v52 = vmul.f32 %v12440_v19, %v2750_v49  ;;  %v12447_v4 = vld [vmem:[%s15954_s5 + $0x5] ss:$0 sm:$0xff]  ;;  %v3087_v8 = vld [vmem:[#allocation2 + $0xdd] sm:$0xff] }
 0x1c3   : > { %v4499_v51 = vmul.f32 %v12154_v62, %v4447_v17  ;;  %v4599_v7 = vld [vmem:[#allocation3 + $0x46] sm:$0xff]  ;;  %3589 = vst [vmem:[#allocation3 + $0x56] sm:$0xff] %v3552_v21  ;;  %v4852_v17 = vadd.f32 %v4802_v26, %v4700_v36  ;;  %v2794_v34 = vmul.f32 %v12440_v19, %v2751_v30  ;;  %v2918_v24 = vmul.f32 %v12447_v4, %v12366_v22  ;;  %v12463_v22 = vld [vmem:[%s15954_s5 + $0x6] ss:$0 sm:$0xff]  ;;  %v12476_v30 = vld [vmem:[%s15954_s5 + $0x7] ss:$0 sm:$0xff] }
 0x1c4   : > { %v3427_v28 = vpop.f32.mrf.mxu1  ;;  %v4651_v38 = vmul.f32 %v12217_v60, %v4599_v7  ;;  %v4751_v25 = vld [vmem:[#allocation3 + $0x47] sm:$0xff]  ;;  %v2221_v3 = vmax.f32 %v2166_v31, 0.0  ;;  %15964 = vst [vmem:[#allocation22_spill] sm:$0xff] %v12428_v41  ;;  %v2919_v21 = vmul.f32 %v12447_v4, %v12368_v0  ;;  %v12455_v31 = vmul.f32 %v12308_v23, %v2542_v58 }
 0x1c5   : > { %v4549_v40 = vadd.f32 %v4499_v51, %v12375_v53  ;;  %v3428_v2 = vadd.f32 %v12169_v14, %v3427_v28  ;;  %v12420_v53 = vld [vmem:[%s15954_s5 + $0x3] ss:$0 sm:$0xff]  ;;  %v3636_v51 = vld [vmem:[#allocation3 + $0x48] sm:$0xff]  ;;  %v4803_v15 = vmul.f32 %v12240_v11, %v4751_v25  ;;  %v12431_v28 = vadd.f32 %v5113_v37, %v5056_v12  ;;  %15966 = vst [vmem:[#allocation24_spill] sm:$0xff] %v12447_v4 }
 0x1c6   : > { %3461 = vmatmul.bf16.gmra.mxu1 %v3324_v61  ;;  %v2669_v1 = vmul.f32 %v12420_v53, %v2542_v58  ;;  %v3635_v61 = vld [vmem:[#allocation3 + $0x40] sm:$0xff]  ;;  %v2257_v27 = vmin.f32 %v2221_v3, 6.0  ;;  %v2834_v12 = vadd.f32 %v2793_v52, %v2709_v16  ;;  %15967 = vst [vmem:[#allocation25_spill] sm:$0xff] %v12463_v22  ;;  %v3005_v58 = vmul.f32 %v12463_v22, %v2878_v20  ;;  %v15968_v37 = vld [vmem:[#allocation16_spill] sm:$0xff] }
 0x1c7   : > { %v3517_v10 = vmax.f32 %v3428_v2, 0.0  ;;  %v4701_v45 = vadd.f32 %v4651_v38, %v4549_v40  ;;  %v4907_v42 = vmul.f32 %v12250_v46, %v3635_v61  ;;  %v2877_v36 = vld [vmem:[#allocation2 + $0xd4] sm:$0xff]  ;;  %v4908_v2 = vmul.f32 %v12250_v46, %v3636_v51  ;;  %15969 = vst [vmem:[#allocation16_spill] sm:$0xff] %v12476_v30 }
 0x1c8   : > { %v2710_v7 = vadd.f32 %v2669_v1, %v2624_v44  ;;  %2299 = vst [vmem:[#allocation2 + $0xfb] sm:$0xfc] %v2257_v27  ;;  %v3086_v38 = vld [vmem:[#allocation2 + $0xd5] sm:$0xff]  ;;  %v12458_v3 = vmul.f32 %v12447_v4, %v2877_v36  ;;  %v3004_v0 = vmul.f32 %v12463_v22, %v2877_v36  ;;  %v12471_v44 = vmul.f32 %v12447_v4, %v2878_v20 }
 0x1c9   : > { %v3553_v32 = vmin.f32 %v3517_v10, 6.0  ;;  %v4853_v40 = vadd.f32 %v4803_v15, %v4701_v45  ;;  %v4957_v43 = vadd.f32 %v4907_v42, %v4852_v17  ;;  %v2959_v27 = vadd.f32 %v2918_v24, %v2834_v12  ;;  %v3211_v20 = vld [vmem:[#allocation2 + $0xd6] sm:$0xff] }
 0x1ca   : > { %v3637_v1 = vld [vmem:[#allocation3 + $0x50] sm:$0xff]  ;;  %v2835_v10 = vadd.f32 %v2794_v34, %v2710_v7  ;;  %v3129_v51 = vmul.f32 %v12476_v30, %v3086_v38  ;;  %v3130_v36 = vmul.f32 %v12476_v30, %v3087_v8  ;;  %v12497_v41 = vld [vmem:[#allocation2 + $0xd2] sm:$0xff] }
 0x1cb   : > { %3590 = vst [vmem:[#allocation3 + $0x5e] sm:$0xf] %v3553_v32  ;;  %v3739_v26 = vld [vmem:[#allocation3 + $0x51] sm:$0xff]  ;;  %v3689_v18 = vmul.f32 %v12093_v54, %v3637_v1  ;;  %v5011_v45 = vmul.f32 %v12299_v63, %v3637_v1  ;;  %v4958_v17 = vadd.f32 %v4908_v2, %v4853_v40 }
 0x1cc   : > { %3591 = vst [vmem:[#allocation3 + $0x60] sm:$0xc0] %v3553_v32  ;;  %v3891_v25 = vld [vmem:[#allocation3 + $0x52] sm:$0xff]  ;;  %v3791_v61 = vmul.f32 %v15968_v37, %v3739_v26  ;;  %v3429_v49 = vpop.f32.mrf.mxu1  ;;  %v2960_v16 = vadd.f32 %v2919_v21, %v2835_v10  ;;  %v2168_v1 = vpop.f32.mrf.mxu0  ;;  %v5118_v24 = vmul.f32 %v12322_v50, %v3739_v26  ;;  %v3045_v10 = vadd.f32 %v3004_v0, %v2959_v27 }
 0x1cd   : > { %v4043_v32 = vld [vmem:[#allocation3 + $0x53] sm:$0xff]  ;;  %v5061_v52 = vadd.f32 %v5011_v45, %v4957_v43  ;;  %v3430_v4 = vadd.f32 %v12169_v14, %v3429_v49 }
 0x1ce   : > { %v3841_v15 = vadd.f32 %v3791_v61, %v3689_v18  ;;  %v15970_v7 = vld [vmem:[#allocation17_spill] sm:$0xff]  ;;  %v3046_v33 = vadd.f32 %v3005_v58, %v2960_v16  ;;  %v4095_v18 = vmul.f32 %v12127_v55, %v4043_v32  ;;  %v12489_v26 = vld [vmem:[%s15954_s5 + $0x8] ss:$0 sm:$0xff] }
 0x1cf   : > { %v3943_v42 = vmul.f32 %v15970_v7, %v3891_v25  ;;  %v3212_v34 = vld [vmem:[#allocation2 + $0xde] sm:$0xff]  ;;  %v5168_v61 = vadd.f32 %v5118_v24, %v5061_v52  ;;  %15971 = vst [vmem:[#allocation17_spill] sm:$0xff] %v12489_v26  ;;  %v3254_v23 = vmul.f32 %v12489_v26, %v3211_v20  ;;  %v5225_v52 = vmul.f32 %v12315_v29, %v3891_v25 }
 0x1d0   : > { %v2332_v40 = vld [vmem:[#allocation2 + $0xc0] sm:$0xff]  ;;  %v3255_v0 = vmul.f32 %v12489_v26, %v3212_v34  ;;  %v3170_v24 = vadd.f32 %v3129_v51, %v3045_v10  ;;  %v3171_v13 = vadd.f32 %v3130_v36, %v3046_v33  ;;  %v3518_v9 = vmax.f32 %v3430_v4, 0.0 }
 0x1d1   : > { %v3993_v38 = vadd.f32 %v3943_v42, %v3841_v15  ;;  %v2375_v58 = vmul.f32 %v12192_v59, %v2332_v40  ;;  %v2416_v15 = vld [vmem:[#allocation2 + $0xc1] sm:$0xff]  ;;  %v2417_v42 = vld [vmem:[#allocation2 + $0xc9] sm:$0xff] }
 0x1d2   : > { %v3638_v21 = vld [vmem:[#allocation3 + $0x58] sm:$0xff]  ;;  %v2460_v25 = vmul.f32 %v12277_v57, %v2417_v42  ;;  %v3295_v10 = vadd.f32 %v3254_v23, %v3170_v24 }
 0x1d3   : > { %v3740_v2 = vld [vmem:[#allocation3 + $0x59] sm:$0xff]  ;;  %v3690_v43 = vmul.f32 %v12093_v54, %v3638_v21  ;;  %v4145_v49 = vadd.f32 %v4095_v18, %v3993_v38  ;;  %v5012_v54 = vmul.f32 %v12299_v63, %v3638_v21  ;;  %v2752_v18 = vld [vmem:[#allocation2 + $0xd3] sm:$0xff] }
 0x1d4   : > { %v3892_v12 = vld [vmem:[#allocation3 + $0x5a] sm:$0xff]  ;;  %v3792_v8 = vmul.f32 %v15968_v37, %v3740_v2  ;;  %v5119_v38 = vmul.f32 %v12322_v50, %v3740_v2  ;;  %v5332_v2 = vmul.f32 %v12339_v6, %v4043_v32 }
 0x1d5   : > { %v4044_v45 = vld [vmem:[#allocation3 + $0x5b] sm:$0xff]  ;;  %v3944_v16 = vmul.f32 %v15970_v7, %v3892_v12  ;;  %v5062_v40 = vadd.f32 %v5012_v54, %v4958_v17  ;;  %v5275_v7 = vadd.f32 %v5225_v52, %v5168_v61  ;;  %v5226_v4 = vmul.f32 %v12315_v29, %v3892_v12 }
 0x1d6   : > { %v3842_v27 = vadd.f32 %v3792_v8, %v3690_v43  ;;  %v2333_v37 = vld [vmem:[#allocation2 + $0xc8] sm:$0xff]  ;;  %v4096_v34 = vmul.f32 %v12127_v55, %v4044_v45  ;;  %v2459_v8 = vmul.f32 %v12277_v57, %v2416_v15  ;;  %v2670_v55 = vmul.f32 %v12420_v53, %v12497_v41  ;;  %v2170_v15 = vpop.f32.mrf.mxu0 }
 0x1d7   : > { %v4196_v43 = vld [vmem:[#allocation3 + $0x5c] sm:$0xff]  ;;  %v2376_v21 = vmul.f32 %v12192_v59, %v2333_v37  ;;  %v5169_v33 = vadd.f32 %v5119_v38, %v5062_v40  ;;  %v3432_v36 = vpop.f32.mrf.mxu1  ;;  %v4195_v17 = vld [vmem:[#allocation3 + $0x54] sm:$0xff]  ;;  %v3296_v61 = vadd.f32 %v3255_v0, %v3171_v13  ;;  %v5333_v54 = vmul.f32 %v12339_v6, %v4044_v45 }
 0x1d8   : > { %v3994_v20 = vadd.f32 %v3944_v16, %v3842_v27  ;;  %v12509_v27 = vmul.f32 %v12440_v19, %v2752_v18  ;;  %v4248_v59 = vmul.f32 %v12142_v47, %v4196_v43  ;;  %v3554_v37 = vmin.f32 %v3518_v9, 6.0 }
 0x1d9   : > { %v5276_v16 = vadd.f32 %v5226_v4, %v5169_v33  ;;  %v5382_v12 = vadd.f32 %v5332_v2, %v5275_v7  ;;  %v3325_v42 = vpack.c.bf16 %v3296_v61, %v3295_v10  ;;  %v2169_v52 = vadd.f32 %v12087_v5, %v2168_v1  ;;  %v2753_v7 = vld [vmem:[#allocation2 + $0xdb] sm:$0xff]  ;;  %v1110_v61 = vld [vmem:[%s10566_s26 + $0x129] sm:$0xff] }
 0x1da   : > { %v4146_v51 = vadd.f32 %v4096_v34, %v3994_v20  ;;  %v3433_v20 = vadd.f32 %v12169_v14, %v3432_v36  ;;  %v12515_v34 = vld [vmem:[#allocation2 + $0xda] sm:$0xff]  ;;  %v4247_v23 = vmul.f32 %v12142_v47, %v4195_v17  ;;  %v5437_v13 = vmul.f32 %v12348_v56, %v4195_v17  ;;  %3592 = vst [vmem:[#allocation3 + $0x68] sm:$0xff] %v3554_v37  ;;  %v12526_v14 = vld [vmem:[%s15956_s0 + $0x13] ss:$0 sm:$0xff]  ;;  %v3088_v17 = vld [vmem:[#allocation2 + $0xe5] sm:$0xff] }
 0x1db   : > { %v5438_v32 = vmul.f32 %v12348_v56, %v4196_v43  ;;  %v5383_v45 = vadd.f32 %v5333_v54, %v5276_v16  ;;  %3466 = vmatmul.bf16.gmra.mxu1 %v3325_v42  ;;  %v2222_v9 = vmax.f32 %v2169_v52, 0.0  ;;  %v2171_v1 = vadd.f32 %v12087_v5, %v2170_v15  ;;  %15972 = vst [vmem:[#allocation26_spill] sm:$0xff] %v12526_v14  ;;  %v12530_v43 = vld [vmem:[#allocation2 + $0xe4] sm:$0xff]  ;;  %v12532_v36 = vld [vmem:[#allocation2 + $0xec] sm:$0xff] }
 0x1dc   : > { %v12520_v0 = vadd.f32 %v4248_v59, %v4146_v51  ;;  %v3519_v24 = vmax.f32 %v3433_v20, 0.0  ;;  %v4297_v47 = vadd.f32 %v4247_v23, %v4145_v49  ;;  %v2500_v40 = vadd.f32 %v2459_v8, %v2375_v58  ;;  %v1025_v2 = vld [vmem:[%s10566_s26 + $0x120] sm:$0xff]  ;;  %v3214_v23 = vld [vmem:[#allocation2 + $0xee] sm:$0xff] }
 0x1dd   : > { %v2501_v38 = vadd.f32 %v2460_v25, %v2376_v21  ;;  %v2671_v18 = vmul.f32 %v12420_v53, %v12515_v34  ;;  %v5487_v51 = vadd.f32 %v5437_v13, %v5382_v12  ;;  %v2258_v33 = vmin.f32 %v2222_v9, 6.0  ;;  %v1026_v25 = vld [vmem:[%s10566_s26 + $0x128] sm:$0xff]  ;;  %v12568_v9 = vld [vmem:[%s15949_s28] ss:$0 sm:$0xff] }
 0x1de   : > { %v3555_v5 = vmin.f32 %v3519_v24, 6.0  ;;  %v2223_v4 = vmax.f32 %v2171_v1, 0.0  ;;  %v12536_v58 = vmul.f32 %v12250_v46, %v3554_v37  ;;  %v12539_v49 = vmul.f32 %v12526_v14, %v3554_v37  ;;  %v1109_v10 = vld [vmem:[%s10566_s26 + $0x121] sm:$0xff]  ;;  %v3089_v12 = vld [vmem:[#allocation2 + $0xed] sm:$0xff] }
 0x1df   : > { %v2625_v21 = vadd.f32 %v12435_v39, %v2500_v40  ;;  %v2626_v8 = vadd.f32 %v12455_v31, %v2501_v38  ;;  %2300 = vst [vmem:[#allocation2 + $0x103] sm:$0xff] %v2258_v33  ;;  %v12546_v59 = vadd.f32 %v5438_v32, %v5383_v45  ;;  %v2796_v54 = vmul.f32 %v12440_v19, %v2753_v7  ;;  %v3213_v37 = vld [vmem:[#allocation2 + $0xe6] sm:$0xff]  ;;  %v12556_v39 = vld [vmem:[%s15956_s0 + $0x10] ss:$0 sm:$0xff]  ;;  %v12575_v1 = vld [vmem:[%s15949_s28 + $0x1] ss:$0 sm:$0xff] }
 0x1e0   : > { %v2259_v16 = vmin.f32 %v2223_v4, 6.0  ;;  %v12551_v15 = vmul.f32 %v12463_v22, %v12530_v43  ;;  %15973 = vst [vmem:[#allocation27_spill] sm:$0xff] %v12556_v39  ;;  %v12560_v52 = vmul.f32 %v12463_v22, %v12532_v36  ;;  %v12563_v20 = vmul.f32 %v12476_v30, %v3088_v17 }
 0x1e1   : > { %3593 = vst [vmem:[#allocation3 + $0x70] sm:$0x3f] %v3555_v5  ;;  %v2711_v31 = vadd.f32 %v2670_v55, %v2625_v21  ;;  %v2712_v42 = vadd.f32 %v2671_v18, %v2626_v8  ;;  %v4197_v13 = vld [vmem:[#allocation3 + $0x64] sm:$0xff]  ;;  %v1068_v55 = vmul.f32 %v12568_v9, %v1025_v2  ;;  %v1069_v24 = vmul.f32 %v12568_v9, %v1026_v25 }
 0x1e2   : > { %v4451_v32 = vld [vmem:[#allocation3 + $0x65] sm:$0xff]  ;;  %2301 = vst [vmem:[#allocation2 + $0x10b] sm:$0xf3] %v2259_v16   ;;  %v1152_v40 = vmul.f32 %v12575_v1, %v1109_v10  ;;  %v1153_v38 = vmul.f32 %v12575_v1, %v1110_v61  ;;  %v4351_v18 = vmul.f32 %v12147_v35, %v4197_v13  ;;  %v5541_v7 = vmul.f32 %v12360_v48, %v4197_v13  ;;  %v12596_v35 = vld [vmem:[%s15956_s0 + $0x11] ss:$0 sm:$0xff]  ;;  %v9960_v13 = vld [vmem:[%s10566_s26 + $0x122] sm:$0xff] }
 0x1e3   : > { %v4603_v45 = vld [vmem:[#allocation3 + $0x66] sm:$0xff]  ;;  %v12582_v33 = vmul.f32 %v12476_v30, %v3089_v12  ;;  %v12585_v5 = vmul.f32 %v12489_v26, %v3213_v37  ;;  %v4503_v4 = vmul.f32 %v12154_v62, %v4451_v32  ;;  %v5648_v21 = vmul.f32 %v12556_v39, %v4451_v32  ;;  %15974 = vst [vmem:[#allocation28_spill] sm:$0xff] %v12596_v35  ;;  %v12602_v16 = vld [vmem:[%s15956_s0 + $0x12] ss:$0 sm:$0xff]  ;;  %v12632_v30 = vpop.f32.mrf.mxu1 }
 0x1e4   : > { %v4655_v17 = vmul.f32 %v12217_v60, %v4603_v45  ;;  %v4755_v2 = vld [vmem:[#allocation3 + $0x67] sm:$0xff]  ;;  %v12591_v8 = vmul.f32 %v12489_v26, %v3214_v23  ;;  %v4401_v25 = vadd.f32 %v4351_v18, %v4297_v47  ;;  %v5591_v10 = vadd.f32 %v5541_v7, %v5487_v51  ;;  %15975 = vst [vmem:[#allocation29_spill] sm:$0xff] %v12602_v16  ;;  %v12607_v23 = vld [vmem:[%s15949_s28 + $0x2] ss:$0 sm:$0xff]  ;;  %v9961_v51 = vld [vmem:[%s10566_s26 + $0x12a] sm:$0xff] }
 0x1e5   : > { %v2836_v62 = vadd.f32 %v12509_v27, %v2711_v31  ;;  %v2837_v61 = vadd.f32 %v2796_v54, %v2712_v42  ;;  %v1193_v12 = vadd.f32 %v1152_v40, %v1068_v55  ;;  %v1194_v37 = vadd.f32 %v1153_v38, %v1069_v24  ;;  %15976 = vst [vmem:[#allocation30_spill] sm:$0xff] %v12607_v23  ;;  %v12616_v18 = vld [vmem:[%s10566_s26 + $0x132] sm:$0xff]  ;;  %v12619_v55 = vld [vmem:[%s10566_s26 + $0x13a] sm:$0xff] }
 0x1e6   : > { %v1277_v47 = vmul.f32 %v9960_v13, %v12607_v23  ;;  %v1278_v32 = vmul.f32 %v9961_v51, %v12607_v23  ;;  %v4553_v27 = vadd.f32 %v4503_v4, %v4401_v25  ;;  %v4807_v54 = vmul.f32 %v12240_v11, %v4755_v2  ;;  %15977 = vst [vmem:[#allocation31_spill] sm:$0xff] %v12619_v55 }
 0x1e7   : > { %v5698_v31 = vadd.f32 %v5648_v21, %v5591_v10  ;;  %v5755_v42 = vmul.f32 %v12596_v35, %v4603_v45  ;;  %v5862_v24 = vmul.f32 %v12602_v16, %v4755_v2  ;;  %v2961_v7 = vadd.f32 %v12458_v3, %v2836_v62  ;;  %v12629_v45 = vld [vmem:[%s15956_s0 + $0x5] ss:$0 sm:$0xff]  ;;  %v9963_v3 = vld [vmem:[%s15956_s0 + $0x6] ss:$0 sm:$0xff]  ;;  %v12641_v62 = vld [vmem:[%s15949_s28 + $0x3] ss:$0 sm:$0xff] }
 0x1e8   : > { %v4198_v40 = vld [vmem:[#allocation3 + $0x6c] sm:$0xff]  ;;  %v2962_v13 = vadd.f32 %v12471_v44, %v2837_v61  ;;  %v1318_v26 = vadd.f32 %v1277_v47, %v1193_v12  ;;  %v4705_v51 = vadd.f32 %v4655_v17, %v4553_v27  ;;  %15978 = vst [vmem:[#allocation32_spill] sm:$0xff] %v12629_v45  ;;  %v1319_v23 = vadd.f32 %v1278_v32, %v1194_v37  ;;  %v12649_v47 = vpop.f32.mrf.mxu3 }
 0x1e9   : > { %v4452_v38 = vld [vmem:[#allocation3 + $0x6d] sm:$0xff]  ;;  %v5805_v4 = vadd.f32 %v5755_v42, %v5698_v31  ;;  %v4352_v21 = vmul.f32 %v12629_v45, %v4198_v40  ;;  %v5542_v17 = vmul.f32 %v12360_v48, %v4198_v40  ;;  %15979 = vst [vmem:[#allocation33_spill] sm:$0xff] %v12641_v62  ;;  %v1363_v61 = vmul.f32 %v12641_v62, %v12616_v18  ;;  %v12647_v37 = vpop.f32.mrf.mxu0 }
 0x1ea   : > { %v12624_v25 = vld [vmem:[#allocation3 + $0x70] sm:$0xff]  ;;  %v4504_v44 = vmul.f32 %v9963_v3, %v4452_v38  ;;  %v1364_v12 = vmul.f32 %v12641_v62, %v12619_v55  ;;  %v4857_v32 = vadd.f32 %v4807_v54, %v4705_v51  ;;  %v5649_v45 = vmul.f32 %v12556_v39, %v4452_v38  ;;  %v1445_v62 = vld [vmem:[%s10566_s26 + $0x133] sm:$0xff] }
 0x1eb   : > { %v4604_v10 = vld [vmem:[#allocation3 + $0x6e] sm:$0xff]  ;;  %v5912_v27 = vadd.f32 %v5862_v24, %v5805_v4  ;;  %v4402_v31 = vadd.f32 %v4352_v21, %v12520_v0  ;;  %v4913_v40 = vmul.f32 %v12250_v46, %v12624_v25  ;;  %v5592_v3 = vadd.f32 %v5542_v17, %v12546_v59 }
 0x1ec   : > { %v4756_v2 = vld [vmem:[#allocation3 + $0x6f] sm:$0xff]  ;;  %v4656_v48 = vmul.f32 %v12217_v60, %v4604_v10  ;;  %v12661_v54 = vadd.f32 %v12536_v58, %v4857_v32  ;;  %v5756_v46 = vmul.f32 %v12596_v35, %v4604_v10  ;;  %v3048_v59 = vadd.f32 %v12560_v52, %v2962_v13  ;;  %v12681_v52 = vld [vmem:[%s10566_s26 + $0x14c] sm:$0xff]  ;;  %v9967_v13 = vld [vmem:[%s10566_s26 + $0x134] sm:$0xff] }
 0x1ed   : > { %v4808_v42 = vmul.f32 %v12240_v11, %v4756_v2  ;;  %v1446_v55 = vld [vmem:[%s10566_s26 + $0x13b] sm:$0xff]  ;;  %v12664_v0 = vadd.f32 %v12539_v49, %v5912_v27  ;;  %v4554_v60 = vadd.f32 %v4504_v44, %v4402_v31  ;;  %v3047_v11 = vadd.f32 %v12551_v15, %v2961_v7  ;;  %v12673_v58 = vld [vmem:[%s15949_s28 + $0x4] ss:$0 sm:$0xff]  ;;  %v1781_v44 = vld [vmem:[%s10566_s26 + $0x145] sm:$0xff] }
 0x1ee   : > { %v1404_v24 = vadd.f32 %v1363_v61, %v1318_v26  ;;  %v1405_v38 = vadd.f32 %v1364_v12, %v1319_v23  ;;  %v1488_v49 = vmul.f32 %v12673_v58, %v1445_v62  ;;  %v1489_v15 = vmul.f32 %v12673_v58, %v1446_v55  ;;  %v12678_v7 = vld [vmem:[%s10566_s26 + $0x144] sm:$0xff]  ;;  %v9968_v10 = vld [vmem:[%s10566_s26 + $0x13c] sm:$0xff]  ;;  %v1782_v12 = vld [vmem:[%s10566_s26 + $0x14d] sm:$0xff] }
 0x1ef   : > { %v4706_v51 = vadd.f32 %v4656_v48, %v4554_v60  ;;  %v3172_v4 = vadd.f32 %v12563_v20, %v3047_v11  ;;  %v5699_v26 = vadd.f32 %v5649_v45, %v5592_v3  ;;  %v3173_v23 = vadd.f32 %v12582_v33, %v3048_v59  ;;  %v12687_v20 = vld [vmem:[%s15949_s28 + $0x5] ss:$0 sm:$0xff]  ;;  %v1906_v33 = vld [vmem:[%s10566_s26 + $0x146] sm:$0xff] }
 0x1f0   : > { %v1613_v21 = vmul.f32 %v9967_v13, %v12687_v20  ;;  %v1614_v55 = vmul.f32 %v9968_v10, %v12687_v20  ;;  %v5863_v62 = vmul.f32 %v12602_v16, %v4756_v2  ;;  %v1529_v61 = vadd.f32 %v1488_v49, %v1404_v24  ;;  %v12702_v31 = vld [vmem:[%s15949_s28 + $0x6] ss:$0 sm:$0xff]  ;;  %v1907_v2 = vld [vmem:[%s10566_s26 + $0x14e] sm:$0xff]  ;;  %v9973_v10 = vld [vmem:[%s15952_s29] ss:$0 sm:$0xff] }
 0x1f1   : > { %v4858_v17 = vadd.f32 %v4808_v42, %v4706_v51  ;;  %v1530_v45 = vadd.f32 %v1489_v15, %v1405_v38  ;;  %v3297_v32 = vadd.f32 %v12585_v5, %v3172_v4  ;;  %v3298_v27 = vadd.f32 %v12591_v8, %v3173_v23  ;;  %v12714_v5 = vld [vmem:[%s15949_s28 + $0x7] ss:$0 sm:$0xff]  ;;  %v12721_v4 = vld [vmem:[%s15949_s28 + $0x8] ss:$0 sm:$0xff]  ;;  %v2175_v49 = vpop.f32.mrf.mxu0  ;;  %v2180_v15 = vpop.f32.mrf.mxu3 }
 0x1f2   : > { %v1699_v48 = vmul.f32 %v12702_v31, %v12678_v7  ;;  %v1700_v42 = vmul.f32 %v12702_v31, %v12681_v52  ;;  %v1654_v60 = vadd.f32 %v1613_v21, %v1529_v61  ;;  %v1824_v8 = vmul.f32 %v12714_v5, %v1781_v44  ;;  %15980 = vst [vmem:[#allocation34_spill] sm:$0xff] %v12721_v4 }
 0x1f3   : > { %v12709_v3 = vadd.f32 %v4913_v40, %v4858_v17  ;;  %v1655_v11 = vadd.f32 %v1614_v55, %v1530_v45  ;;  %v3437_v59 = vpop.f32.mrf.mxu1  ;;  %v5806_v24 = vadd.f32 %v5756_v46, %v5699_v26  ;;  %v3326_v38 = vpack.c.bf16 %v3298_v27, %v3297_v32  ;;  %v12728_v46 = vld [vmem:[%s15959_s10] ss:$0 sm:$0xff] }
 0x1f4   : > { %v1825_v51 = vmul.f32 %v12714_v5, %v1782_v12  ;;  %v1949_v40 = vmul.f32 %v12721_v4, %v1906_v33  ;;  %v1740_v23 = vadd.f32 %v1699_v48, %v1654_v60  ;;  %v1950_v21 = vmul.f32 %v12721_v4, %v1907_v2  ;;  %v2335_v4 = vld [vmem:[#allocation2 + $0xd8] sm:$0xff] }
 0x1f5   : > { %v1741_v13 = vadd.f32 %v1700_v42, %v1655_v11  ;;  %v3435_v26 = vadd.f32 %v12728_v46, %v12632_v30  ;;  %3471 = vmatmul.bf16.gmra.mxu1 %v3326_v38  ;;  %v2174_v55 = vadd.f32 %v9973_v10, %v12647_v37  ;;  %v2179_v44 = vadd.f32 %v9973_v10, %v12649_v47  ;;  %v2334_v47 = vld [vmem:[#allocation2 + $0xd0] sm:$0xff] }
 0x1f6   : > { %v3438_v17 = vadd.f32 %v12728_v46, %v3437_v59  ;;  %v2176_v61 = vadd.f32 %v9973_v10, %v2175_v49  ;;  %v1865_v45 = vadd.f32 %v1824_v8, %v1740_v23  ;;  %v2181_v32 = vadd.f32 %v9973_v10, %v2180_v15  ;;  %v2418_v59 = vld [vmem:[#allocation2 + $0xd1] sm:$0xff]  ;;  %v15981_v15 = vld [vmem:[#allocation22_spill] sm:$0xff] }
 0x1f7   : > { %v1866_v12 = vadd.f32 %v1825_v51, %v1741_v13  ;;  %v3520_v33 = vmax.f32 %v3435_v26, 0.0  ;;  %v2224_v27 = vmax.f32 %v2174_v55, 0.0  ;;  %v2226_v48 = vmax.f32 %v2179_v44, 0.0  ;;  %v2419_v51 = vld [vmem:[#allocation2 + $0xd9] sm:$0xff]  ;;  %v15982_v13 = vld [vmem:[#allocation19_spill] sm:$0xff] }
 0x1f8   : > { %v3521_v42 = vmax.f32 %v3438_v17, 0.0  ;;  %v2225_v30 = vmax.f32 %v2176_v61, 0.0  ;;  %v1990_v2 = vadd.f32 %v1949_v40, %v1865_v45  ;;  %v2227_v38 = vmax.f32 %v2181_v32, 0.0  ;;  %v9975_v17 = vld [vmem:[%s15956_s0 + $0x2] ss:$0 sm:$0xff] }
 0x1f9   : > { %v1991_v60 = vadd.f32 %v1950_v21, %v1866_v12  ;;  %v3556_v11 = vmin.f32 %v3520_v33, 6.0  ;;  %v5913_v16 = vadd.f32 %v5863_v62, %v5806_v24  ;;  %v2260_v35 = vmin.f32 %v2224_v27, 6.0  ;;  %v12751_v21 = vld [vmem:[%s15956_s0 + $0x16] ss:$0 sm:$0xff]  ;;  %v12771_v12 = vld [vmem:[#allocation2 + $0xe2] sm:$0xff]  ;;  %v12773_v33 = vld [vmem:[#allocation2 + $0xea] sm:$0xff] }
 0x1fa   : > { %v2262_v37 = vmin.f32 %v2226_v48, 6.0  ;;  %v3557_v39 = vmin.f32 %v3521_v42, 6.0  ;;  %v2261_v8 = vmin.f32 %v2225_v30, 6.0  ;;  %v12740_v23 = vadd.f32 %v15981_v15, %v12431_v28  ;;  %15983 = vst [vmem:[#allocation22_spill] sm:$0xff] %v12751_v21  ;;  %v12756_v28 = vld [vmem:[%s15954_s5] ss:$0 sm:$0xff] }
 0x1fb   : > { %v2013_v49 = vpack.c.bf16 %v1991_v60, %v1990_v2  ;;  %3594 = vst [vmem:[#allocation3 + $0x7a] sm:$0xff] %v3556_v11  ;;  %v12744_v40 = vmul.f32 %v12339_v6, %v15982_v13  ;;  %v5968_v62 = vmul.f32 %v12526_v14, %v12624_v25  ;;  %v2263_v24 = vmin.f32 %v2227_v38, 6.0  ;;  %v2755_v42 = vld [vmem:[#allocation2 + $0xeb] sm:$0xff]  ;;  %v12781_v30 = vld [vmem:[#allocation2 + $0xf4] sm:$0xff] }
 0x1fc   : > { %2303 = vst [vmem:[#allocation2 + $0x113] sm:$0xff] %v2260_v35  ;;  %v2377_v26 = vmul.f32 %v12756_v28, %v2334_v47  ;;  %v2378_v10 = vmul.f32 %v12756_v28, %v2335_v4  ;;  %v2461_v25 = vmul.f32 %v12277_v57, %v2418_v59  ;;  %v15984_v35 = vld [vmem:[#allocation21_spill] sm:$0xff]  ;;  %v3948_v61 = vmul.f32 %v9975_v17, %v3556_v11  ;;  %v15988_v38 = vld [vmem:[#allocation18_spill] sm:$0xff]  ;;  %v15990_v15 = vld [vmem:[#allocation24_spill] sm:$0xff] }
 0x1fd   : > { %2182 = vmatmul.bf16.gmra.mxu3 %v2013_v49  ;;  %2306 = vst [vmem:[#allocation2 + $0x123] sm:$0xff] %v2262_v37  ;;  %v12763_v55 = vmul.f32 %v12348_v56, %v15984_v35  ;;  %v12765_v44 = vadd.f32 %v5968_v62, %v5913_v16  ;;  %v2462_v45 = vmul.f32 %v12277_v57, %v2419_v51  ;;  %v2754_v4 = vld [vmem:[#allocation2 + $0xe3] sm:$0xff] }
 0x1fe   : > { %3595 = vst [vmem:[#allocation3 + $0x82] sm:$0xff] %v3557_v39  ;;  %v5230_v32 = vmul.f32 %v12315_v29, %v3556_v11  ;;  %v12777_v27 = vmul.f32 %v12751_v21, %v3556_v11  ;;  %v12779_v16 = vmul.f32 %v9975_v17, %v3557_v39  ;;  %v2502_v48 = vadd.f32 %v2461_v25, %v2377_v26  ;;  %v12800_v49 = vld [vmem:[#allocation2 + $0xfc] sm:$0xff]  ;;  %v12826_v26 = vld [vmem:[%s15956_s0 + $0x15] ss:$0 sm:$0xff] }
 0x1ff   : > { %15985 = vst [vmem:[#allocation19_spill] sm:$0xff] %v12763_v55  ;;  %v12784_v57 = vmul.f32 %v12315_v29, %v3557_v39  ;;  %v12787_v2 = vmul.f32 %v12751_v21, %v3557_v39  ;;  %v2503_v60 = vadd.f32 %v2462_v45, %v2378_v10  ;;  %v2586_v11 = vmul.f32 %v15988_v38, %v12497_v41  ;;  %v1027_v39 = vld [vmem:[%s10566_s26 + $0x130] sm:$0xff]  ;;  %v9976_v10 = vld [vmem:[%s15956_s0] ss:$0 sm:$0xff] }
 0x200   : > { %15986 = vst [vmem:[#allocation21_spill] sm:$0xff] %v12773_v33  ;;  %v2587_v37 = vmul.f32 %v15988_v38, %v12515_v34  ;;  %v2672_v47 = vmul.f32 %v12420_v53, %v12771_v12  ;;  %v2673_v59 = vmul.f32 %v12420_v53, %v12773_v33  ;;  %v12798_v29 = vmul.f32 %v12440_v19, %v2754_v4 }
 0x201   : > { %2304 = vst [vmem:[#allocation2 + $0x11b] sm:$0xcf] %v2261_v8   ;;  %v12806_v8 = vld [vmem:[%s15956_s0 + $0x14] ss:$0 sm:$0xff]  ;;  %v12809_v34 = vmul.f32 %v12440_v19, %v2755_v42  ;;  %v12813_v13 = vmul.f32 %v15990_v15, %v12530_v43  ;;  %v12817_v62 = vmul.f32 %v15990_v15, %v12532_v36  ;;  %v9977_v43 = vld [vmem:[%s15956_s0 + $0x1] ss:$0 sm:$0xff]  ;;  %v2627_v17 = vadd.f32 %v2586_v11, %v2502_v48 }
 0x202   : > { %15987 = vst [vmem:[#allocation35_spill] sm:$0xff] %v12781_v30  ;;  %v3642_v41 = vld [vmem:[#allocation3 + $0x78] sm:$0xff]  ;;  %v2628_v4 = vadd.f32 %v2587_v37, %v2503_v60  ;;  %v12838_v42 = vmul.f32 %v12463_v22, %v12800_v49  ;;  %v1070_v38 = vmul.f32 %v12568_v9, %v1027_v39  ;;  %v9978_v39 = vld [vmem:[%s15956_s0 + $0x3] ss:$0 sm:$0xff] }
 0x203   : > { %2307 = vst [vmem:[#allocation2 + $0x12b] sm:$0x3f] %v2263_v24  ;;  %v3744_v51 = vld [vmem:[#allocation3 + $0x79] sm:$0xff]  ;;  %v12821_v24 = vmul.f32 %v12463_v22, %v12781_v30  ;;  %v3694_v25 = vmul.f32 %v9976_v10, %v3642_v41  ;;  %v5016_v35 = vmul.f32 %v12299_v63, %v3642_v41  ;;  %v6071_v45 = vmul.f32 %v12806_v8, %v3642_v41 }
 0x204   : > { %15989 = vst [vmem:[#allocation18_spill] sm:$0xff] %v12800_v49  ;;  %v3796_v36 = vmul.f32 %v9977_v43, %v3744_v51  ;;  %v5123_v15 = vmul.f32 %v12322_v50, %v3744_v51  ;;  %v6178_v30 = vmul.f32 %v12826_v26, %v3744_v51 }
 0x205   : > { %v5066_v14 = vadd.f32 %v5016_v35, %v12661_v54  ;;  %v3643_v19 = vld [vmem:[#allocation3 + $0x80] sm:$0xff]  ;;  %v6121_v48 = vadd.f32 %v6071_v45, %v12664_v0 }
 0x206   : > { %v3846_v21 = vadd.f32 %v3796_v36, %v3694_v25  ;;  %v3745_v55 = vld [vmem:[#allocation3 + $0x81] sm:$0xff]  ;;  %v3695_v60 = vmul.f32 %v9976_v10, %v3643_v19  ;;  %v2713_v25 = vadd.f32 %v2672_v47, %v2627_v17  ;;  %v2714_v36 = vadd.f32 %v2673_v59, %v2628_v4  ;;  %v9979_v10 = vld [vmem:[%s15956_s0 + $0xa] ss:$0 sm:$0xff]  ;;  %v3091_v4 = vld [vmem:[#allocation2 + $0xfd] sm:$0xff] }
 0x207   : > { %v12844_v63 = vld [vmem:[#allocation3 + $0x7b] sm:$0xff]  ;;  %v3797_v11 = vmul.f32 %v9977_v43, %v3745_v55  ;;  %v12847_v37 = vld [vmem:[#allocation3 + $0x83] sm:$0xff]  ;;  %v5173_v51 = vadd.f32 %v5123_v15, %v5066_v14  ;;  %v6228_v35 = vadd.f32 %v6178_v30, %v6121_v48  ;;  %v5017_v43 = vmul.f32 %v9979_v10, %v3643_v19 }
 0x208   : > { %v4100_v54 = vmul.f32 %v9978_v39, %v12844_v63  ;;  %v12853_v50 = vld [vmem:[#allocation3 + $0x7c] sm:$0xff]  ;;  %v3998_v41 = vadd.f32 %v3948_v61, %v3846_v21  ;;  %v4101_v0 = vmul.f32 %v9978_v39, %v12847_v37  ;;  %v12863_v21 = vld [vmem:[%s15956_s0 + $0x4] ss:$0 sm:$0xff]  ;;  %v5337_v61 = vmul.f32 %v12339_v6, %v12844_v63  ;;  %v3090_v30 = vld [vmem:[#allocation2 + $0xf5] sm:$0xff]  ;;  %v12883_v39 = vpop.f32.mrf.mxu1 }
 0x209   : > { %15991 = vst [vmem:[#allocation36_spill] sm:$0xff] %v12853_v50  ;;  %v3847_v49 = vadd.f32 %v3797_v11, %v3695_v60  ;;  %v1111_v45 = vld [vmem:[%s10566_s26 + $0x131] sm:$0xff]  ;;  %v5280_v22 = vadd.f32 %v5230_v32, %v5173_v51  ;;  %v4252_v14 = vmul.f32 %v12863_v21, %v12853_v50  ;;  %v12870_v47 = vadd.f32 %v12777_v27, %v6228_v35  ;;  %v9981_v15 = vld [vmem:[%s15956_s0 + $0xb] ss:$0 sm:$0xff] }
 0x20a   : > { %v4150_v33 = vadd.f32 %v4100_v54, %v3998_v41  ;;  %v5067_v32 = vadd.f32 %v5017_v43, %v12709_v3  ;;  %v5124_v17 = vmul.f32 %v9981_v15, %v3745_v55  ;;  %v1028_v48 = vld [vmem:[%s10566_s26 + $0x138] sm:$0xff]  ;;  %v5442_v6 = vmul.f32 %v12348_v56, %v12853_v50 }
 0x20b   : > { %15992 = vst [vmem:[#allocation37_spill] sm:$0xff] %v12870_v47  ;;  %v3999_v59 = vadd.f32 %v12779_v16, %v3847_v49  ;;  %v5387_v11 = vadd.f32 %v5337_v61, %v5280_v22  ;;  %v1154_v27 = vmul.f32 %v12575_v1, %v1111_v45  ;;  %v6072_v49 = vmul.f32 %v12806_v8, %v3643_v19  ;;  %v15994_v54 = vld [vmem:[#allocation16_spill] sm:$0xff]  ;;  %v9982_v22 = vld [vmem:[%s15956_s0 + $0xd] ss:$0 sm:$0xff]  ;;  %v12903_v61 = vld [vmem:[%s10566_s26 + $0x142] sm:$0xff] }
 0x20c   : > { %v12878_v60 = vadd.f32 %v4252_v14, %v4150_v33  ;;  %v5174_v3 = vadd.f32 %v5124_v17, %v5067_v32  ;;  %v3133_v41 = vmul.f32 %v15994_v54, %v3090_v30  ;;  %v3215_v51 = vld [vmem:[#allocation2 + $0xf6] sm:$0xff]  ;;  %v5338_v56 = vmul.f32 %v9982_v22, %v12847_v37  ;;  %v10007_v47 = vld [vmem:[#allocation2] sm:$0xff] }
 0x20d   : > { %v12885_v16 = vadd.f32 %v4101_v0, %v3999_v59  ;;  %v1112_v33 = vld [vmem:[%s10566_s26 + $0x139] sm:$0xff]  ;;  %v12894_v35 = vadd.f32 %v5442_v6, %v5387_v11  ;;  %v3134_v10 = vmul.f32 %v15994_v54, %v3091_v4  ;;  %v1071_v0 = vmul.f32 %v12568_v9, %v1028_v48  ;;  %v1323_v4 = vld [vmem:[%s10566_s26 + $0x14a] sm:$0xff] }
 0x20e   : > { %15993 = vst [vmem:[#allocation38_spill] sm:$0xff] %v12878_v60  ;;  %v5281_v19 = vadd.f32 %v12784_v57, %v5174_v3  ;;  %v6122_v43 = vadd.f32 %v6072_v49, %v12765_v44  ;;  %v6179_v45 = vmul.f32 %v12826_v26, %v3745_v55  ;;  %v2838_v14 = vadd.f32 %v12798_v29, %v2713_v25  ;;  %v15996_v59 = vld [vmem:[#allocation17_spill] sm:$0xff]  ;;  %v15997_v44 = vld [vmem:[#allocation30_spill] sm:$0xff]  ;;  %v15998_v6 = vld [vmem:[#allocation31_spill] sm:$0xff] }
 0x20f   : > { %15995 = vst [vmem:[#allocation16_spill] sm:$0xff] %v12894_v35  ;;  %v2839_v30 = vadd.f32 %v12809_v34, %v2714_v36  ;;  %v3258_v32 = vmul.f32 %v15996_v59, %v3215_v51  ;;  %v1155_v15 = vmul.f32 %v12575_v1, %v1112_v33  ;;  %v1195_v17 = vadd.f32 %v1154_v27, %v1070_v38  ;;  %v1447_v29 = vld [vmem:[%s10566_s26 + $0x143] sm:$0xff]  ;;  %v1448_v25 = vld [vmem:[%s10566_s26 + $0x14b] sm:$0xff]  ;;  %v2431_v35 = vld [vmem:[#allocation2 + $0x139] sm:$0xff] }
 0x210   : > { %v12909_v48 = vadd.f32 %v5338_v56, %v5281_v19  ;;  %v6229_v11 = vadd.f32 %v6179_v45, %v6122_v43  ;;  %v2963_v57 = vadd.f32 %v12813_v13, %v2838_v14  ;;  %v1279_v55 = vmul.f32 %v15997_v44, %v12616_v18  ;;  %v15999_v38 = vld [vmem:[#allocation33_spill] sm:$0xff]  ;;  %v12930_v19 = vld [vmem:[%s10566_s26 + $0x154] sm:$0xff] }
 0x211   : > { %v2964_v34 = vadd.f32 %v12817_v62, %v2839_v30  ;;  %v1196_v36 = vadd.f32 %v1155_v15, %v1071_v0  ;;  %v1280_v3 = vmul.f32 %v15997_v44, %v15998_v6  ;;  %v1365_v27 = vmul.f32 %v15999_v38, %v12903_v61  ;;  %v3216_v13 = vld [vmem:[#allocation2 + $0xfe] sm:$0xff]  ;;  %v1783_v30 = vld [vmem:[%s10566_s26 + $0x155] sm:$0xff] }
 0x212   : > { %v12922_v49 = vadd.f32 %v12787_v2, %v6229_v11  ;;  %v3049_v18 = vadd.f32 %v12821_v24, %v2963_v57  ;;  %v1320_v51 = vadd.f32 %v1279_v55, %v1195_v17  ;;  %v1366_v33 = vmul.f32 %v15999_v38, %v1323_v4  ;;  %v1659_v43 = vld [vmem:[%s10566_s26 + $0x15c] sm:$0xff]  ;;  %v3442_v55 = vpop.f32.mrf.mxu1  ;;  %v2430_v60 = vld [vmem:[#allocation2 + $0x131] sm:$0xff] }
 0x213   : > { %v3050_v62 = vadd.f32 %v12838_v42, %v2964_v34  ;;  %v1321_v22 = vadd.f32 %v1280_v3, %v1196_v36  ;;  %v1490_v56 = vmul.f32 %v12673_v58, %v1447_v29  ;;  %v1491_v0 = vmul.f32 %v12673_v58, %v1448_v25  ;;  %v1784_v42 = vld [vmem:[%s10566_s26 + $0x15d] sm:$0xff]  ;;  %v2337_v25 = vld [vmem:[#allocation2 + $0xe8] sm:$0xff] }
 0x214   : > { %16000 = vst [vmem:[#allocation17_spill] sm:$0xff] %v12922_v49  ;;  %v12935_v2 = vadd.f32 %v12744_v40, %v12740_v23  ;;  %v3174_v24 = vadd.f32 %v3133_v41, %v3049_v18  ;;  %v1406_v45 = vadd.f32 %v1365_v27, %v1320_v51  ;;  %v1615_v14 = vmul.f32 %v12687_v20, %v12678_v7  ;;  %v1908_v57 = vld [vmem:[%s10566_s26 + $0x156] sm:$0xff]  ;;  %v2336_v7 = vld [vmem:[#allocation2 + $0xe0] sm:$0xff]  ;;  %v16001_v18 = vld [vmem:[#allocation34_spill] sm:$0xff] }
 0x215   : > { %v3175_v15 = vadd.f32 %v3134_v10, %v3050_v62  ;;  %v3259_v17 = vmul.f32 %v15996_v59, %v3216_v13  ;;  %v1407_v4 = vadd.f32 %v1366_v33, %v1321_v22  ;;  %v1616_v11 = vmul.f32 %v12687_v20, %v12681_v52  ;;  %v2420_v3 = vld [vmem:[#allocation2 + $0xe1] sm:$0xff]  ;;  %v2421_v33 = vld [vmem:[#allocation2 + $0xe9] sm:$0xff] }
 0x216   : > { %v3299_v29 = vadd.f32 %v3258_v32, %v3174_v24  ;;  %v1531_v23 = vadd.f32 %v1490_v56, %v1406_v45  ;;  %v1701_v40 = vmul.f32 %v12702_v31, %v12930_v19  ;;  %v1702_v41 = vmul.f32 %v12702_v31, %v1659_v43  ;;  %v1909_v52 = vld [vmem:[%s10566_s26 + $0x15e] sm:$0xff] }
 0x217   : > { %v3300_v34 = vadd.f32 %v3259_v17, %v3175_v15  ;;  %v1532_v10 = vadd.f32 %v1491_v0, %v1407_v4  ;;  %v1826_v36 = vmul.f32 %v12714_v5, %v1783_v30  ;;  %v1827_v6 = vmul.f32 %v12714_v5, %v1784_v42  ;;  %v12967_v4 = vld [vmem:[#allocation2 + $0xfa] sm:$0xff] }
 0x218   : > { %v1656_v27 = vadd.f32 %v1615_v14, %v1531_v23  ;;  %v1951_v13 = vmul.f32 %v16001_v18, %v1908_v57  ;;  %v3440_v32 = vadd.f32 %v12728_v46, %v12883_v39  ;;  %v3443_v51 = vadd.f32 %v12728_v46, %v3442_v55  ;;  %v12960_v14 = vld [vmem:[%s15954_s5 + $0x1] ss:$0 sm:$0xff]  ;;  %v12963_v39 = vld [vmem:[#allocation2 + $0xf2] sm:$0xff] }
 0x219   : > { %v3327_v62 = vpack.c.bf16 %v3300_v34, %v3299_v29  ;;  %v1657_v22 = vadd.f32 %v1616_v11, %v1532_v10  ;;  %v2379_v56 = vmul.f32 %v12756_v28, %v2336_v7  ;;  %v2380_v0 = vmul.f32 %v12756_v28, %v2337_v25  ;;  %v12972_v11 = vld [vmem:[%s15954_s5 + $0x2] ss:$0 sm:$0xff]  ;;  %v9986_v7 = vld [vmem:[#allocation3 + $0x3c] sm:$0xff] }
 0x21a   : > { %v1742_v43 = vadd.f32 %v1701_v40, %v1656_v27  ;;  %v3522_v24 = vmax.f32 %v3440_v32, 0.0  ;;  %v3523_v45 = vmax.f32 %v3443_v51, 0.0  ;;  %v2463_v30 = vmul.f32 %v12960_v14, %v2420_v3  ;;  %v16003_v27 = vld [vmem:[#allocation21_spill] sm:$0xff] }
 0x21b   : > { %3476 = vmatmul.bf16.gmra.mxu1 %v3327_v62  ;;  %v1743_v42 = vadd.f32 %v1702_v41, %v1657_v22  ;;  %v1952_v15 = vmul.f32 %v16001_v18, %v1909_v52  ;;  %v2464_v17 = vmul.f32 %v12960_v14, %v2421_v33  ;;  %v2588_v57 = vmul.f32 %v12972_v11, %v12771_v12  ;;  %v12981_v41 = vld [vmem:[%s15956_s0 + $0xf] ss:$0 sm:$0xff] }
 0x21c   : > { %v1867_v55 = vadd.f32 %v1826_v36, %v1742_v43  ;;  %v3558_v29 = vmin.f32 %v3522_v24, 6.0  ;;  %v12976_v23 = vmin.f32 %v3523_v45, 6.0  ;;  %v2504_v40 = vadd.f32 %v2463_v30, %v2379_v56  ;;  %16002 = vst [vmem:[#allocation30_spill] sm:$0xff] %v12981_v41  ;;  %v2756_v36 = vld [vmem:[#allocation2 + $0xf3] sm:$0xff]  ;;  %v12994_v24 = vld [vmem:[#allocation2 + $0x104] sm:$0xff] }
 0x21d   : > { %v5536_v25 = vmul.f32 %v9986_v7, %v12981_v41  ;;  %v1868_v34 = vadd.f32 %v1827_v6, %v1743_v42  ;;  %v2505_v10 = vadd.f32 %v2464_v17, %v2380_v0  ;;  %v2674_v12 = vmul.f32 %v12420_v53, %v12963_v39  ;;  %v16004_v6 = vld [vmem:[#allocation19_spill] sm:$0xff]  ;;  %v1113_v45 = vld [vmem:[%s10566_s26 + $0x141] sm:$0xff]  ;;  %v16008_v7 = vld [vmem:[#allocation24_spill] sm:$0xff] }
 0x21e   : > { %v1992_v3 = vadd.f32 %v1951_v13, %v1867_v55  ;;  %3596 = vst [vmem:[#allocation3 + $0x8c] sm:$0xfc] %v3558_v29  ;;  %v2589_v52 = vmul.f32 %v12972_v11, %v16003_v27  ;;  %v2629_v32 = vadd.f32 %v2588_v57, %v2504_v40  ;;  %v2675_v51 = vmul.f32 %v12420_v53, %v12967_v4  ;;  %v16005_v0 = vld [vmem:[#allocation23_spill] sm:$0xff]  ;;  %v1029_v13 = vld [vmem:[%s10566_s26 + $0x140] sm:$0xff] }
 0x21f   : > { %v1993_v33 = vadd.f32 %v1952_v15, %v1868_v34  ;;  %3597 = vst [vmem:[#allocation3 + $0x94] sm:$0xff] %v12976_v23  ;;  %v5482_v62 = vadd.f32 %v16004_v6, %v12935_v2  ;;  %v2799_v43 = vmul.f32 %v16005_v0, %v2756_v36  ;;  %v9987_v30 = vld [vmem:[#allocation3 + $0x3d] sm:$0xff]  ;;  %v2757_v55 = vld [vmem:[#allocation2 + $0xfb] sm:$0xff]  ;;  %v1072_v36 = vmul.f32 %v12568_v9, %v1029_v13 }
 0x220   : > { %v2630_v22 = vadd.f32 %v2589_v52, %v2505_v10  ;;  %v2715_v56 = vadd.f32 %v2674_v12, %v2629_v32  ;;  %v16006_v42 = vld [vmem:[#allocation27_spill] sm:$0xff]  ;;  %v16009_v10 = vld [vmem:[#allocation25_spill] sm:$0xff]  ;;  %v1156_v27 = vmul.f32 %v12575_v1, %v1113_v45  ;;  %v3444_v52 = vpop.f32.mrf.mxu1  ;;  %v16011_v1 = vld [vmem:[#allocation28_spill] sm:$0xff] }
 0x221   : > { %v5643_v17 = vmul.f32 %v9987_v30, %v16006_v42  ;;  %v2014_v57 = vpack.c.bf16 %v1993_v33, %v1992_v3  ;;  %v5586_v53 = vadd.f32 %v5536_v25, %v5482_v62  ;;  %v12999_v40 = vld [vmem:[#allocation2 + $0x10c] sm:$0xff]  ;;  %v3010_v12 = vmul.f32 %v16009_v10, %v12994_v24  ;;  %v9988_v33 = vld [vmem:[#allocation3 + $0x45] sm:$0xff] }
 0x222   : > { %v2716_v15 = vadd.f32 %v2675_v51, %v2630_v22  ;;  %v2840_v29 = vadd.f32 %v2799_v43, %v2715_v56  ;;  %v16007_v2 = vld [vmem:[#allocation35_spill] sm:$0xff]  ;;  %v2800_v3 = vmul.f32 %v16005_v0, %v2757_v55  ;;  %v16010_v25 = vld [vmem:[#allocation18_spill] sm:$0xff]  ;;  %v5644_v6 = vmul.f32 %v9988_v33, %v16006_v42 }
 0x223   : > { %2185 = vmatmul.bf16.gmra.mxu3 %v2014_v57  ;;  %v2924_v34 = vmul.f32 %v16008_v7, %v16007_v2  ;;  %v2925_v32 = vmul.f32 %v16008_v7, %v16010_v25  ;;  %v5693_v51 = vadd.f32 %v5643_v17, %v5586_v53  ;;  %v3011_v56 = vmul.f32 %v16009_v10, %v12999_v40  ;;  %v3092_v43 = vld [vmem:[#allocation2 + $0x105] sm:$0xff]  ;;  %v1324_v9 = vld [vmem:[%s10566_s26 + $0x152] sm:$0xff] }
 0x224   : > { %v2841_v22 = vadd.f32 %v2800_v3, %v2716_v15  ;;  %v9989_v13 = vld [vmem:[#allocation3 + $0x3e] sm:$0xff]  ;;  %v1197_v55 = vadd.f32 %v1156_v27, %v1072_v36  ;;  %v1281_v17 = vmul.f32 %v15997_v44, %v12903_v61  ;;  %v16013_v53 = vld [vmem:[#allocation29_spill] sm:$0xff]  ;;  %v16014_v3 = vld [vmem:[#allocation20_spill] sm:$0xff]  ;;  %v3135_v33 = vmul.f32 %v15994_v54, %v3092_v43 }
 0x225   : > { %v2965_v62 = vadd.f32 %v2924_v34, %v2840_v29  ;;  %v5750_v45 = vmul.f32 %v9989_v13, %v16011_v1  ;;  %v13015_v30 = vld [vmem:[#allocation3 + $0x84] sm:$0xff]  ;;  %v3217_v2 = vld [vmem:[#allocation2 + $0x106] sm:$0xff]  ;;  %v3445_v34 = vadd.f32 %v12728_v46, %v3444_v52  ;;  %v5694_v25 = vadd.f32 %v5644_v6, %v16014_v3  ;;  %v9991_v44 = vld [vmem:[%s15956_s0 + $0xe] ss:$0 sm:$0xff] }
 0x226   : > { %16012 = vst [vmem:[#allocation31_spill] sm:$0xff] %v13015_v30  ;;  %v3093_v57 = vld [vmem:[#allocation2 + $0x10d] sm:$0xff]  ;;  %v2966_v15 = vadd.f32 %v2925_v32, %v2841_v22  ;;  %v1367_v36 = vmul.f32 %v15999_v38, %v1324_v9  ;;  %v4253_v61 = vmul.f32 %v12863_v21, %v13015_v30  ;;  %v5443_v27 = vmul.f32 %v9991_v44, %v13015_v30  ;;  %v1660_v21 = vld [vmem:[%s10566_s26 + $0x164] sm:$0xff]  ;;  %v3102_v30 = vld [vmem:[#allocation2 + $0x155] sm:$0xff] }
 0x227   : > { %v3051_v0 = vadd.f32 %v3010_v12, %v2965_v62  ;;  %v9990_v42 = vld [vmem:[#allocation3 + $0x3f] sm:$0xff]  ;;  %v5800_v10 = vadd.f32 %v5750_v45, %v5693_v51  ;;  %v3136_v52 = vmul.f32 %v15994_v54, %v3093_v57  ;;  %v3260_v6 = vmul.f32 %v15996_v59, %v3217_v2  ;;  %v1910_v44 = vld [vmem:[%s10566_s26 + $0x166] sm:$0xff] }
 0x228   : > { %v5857_v29 = vmul.f32 %v9990_v42, %v16013_v53  ;;  %v1449_v7 = vld [vmem:[%s10566_s26 + $0x153] sm:$0xff]  ;;  %v3052_v32 = vadd.f32 %v3011_v56, %v2966_v15  ;;  %v1322_v62 = vadd.f32 %v1281_v17, %v1197_v55  ;;  %v3524_v9 = vmax.f32 %v3445_v34, 0.0  ;;  %v1785_v55 = vld [vmem:[%s10566_s26 + $0x165] sm:$0xff]  ;;  %s16075_s26 = sld [smem:[#allocation55_spill]] }
 0x229   : > { %v3218_v12 = vld [vmem:[#allocation2 + $0x10e] sm:$0xff]  ;;  %v3176_v51 = vadd.f32 %v3135_v33, %v3051_v0  ;;  %v1492_v22 = vmul.f32 %v12673_v58, %v1449_v7  ;;  %v4303_v13 = vadd.f32 %v4253_v61, %v12885_v16  ;;  %v9992_v45 = vld [vmem:[#allocation3 + $0x46] sm:$0xff]  ;;  %v1617_v54 = vmul.f32 %v12687_v20, %v12930_v19  ;;  %v3447_v0 = vpop.f32.mrf.mxu1 }
 0x22a   : > { %v3177_v38 = vadd.f32 %v3136_v52, %v3052_v32  ;;  %v3261_v43 = vmul.f32 %v15996_v59, %v3218_v12  ;;  %v5751_v42 = vmul.f32 %v9992_v45, %v16011_v1  ;;  %v1408_v15 = vadd.f32 %v1367_v36, %v1322_v62  ;;  %v16015_v17 = vld [vmem:[#allocation32_spill] sm:$0xff]  ;;  %v2338_v7 = vld [vmem:[#allocation2 + $0xf0] sm:$0xff] }
 0x22b   : > { %v3301_v56 = vadd.f32 %v3260_v6, %v3176_v51  ;;  %v3560_v58 = vmin.f32 %v3524_v9, 6.0  ;;  %v4357_v59 = vmul.f32 %v16015_v17, %v12976_v23  ;;  %v5493_v2 = vadd.f32 %v5443_v27, %v12909_v48  ;;  %v9993_v16 = vld [vmem:[#allocation3 + $0x47] sm:$0xff] }
 0x22c   : > { %v3302_v57 = vadd.f32 %v3261_v43, %v3177_v38  ;;  %v5858_v34 = vmul.f32 %v9993_v16, %v16013_v53  ;;  %v1533_v1 = vadd.f32 %v1492_v22, %v1408_v15  ;;  %v1703_v3 = vmul.f32 %v12702_v31, %v1660_v21  ;;  %v2339_v19 = vld [vmem:[#allocation2 + $0xf8] sm:$0xff]  ;;  %v9994_v9 = vld [vmem:[#allocation3 + $0x40] sm:$0xff] }
 0x22d   : > { %v5547_v20 = vmul.f32 %v12981_v41, %v12976_v23  ;;  %v2422_v33 = vld [vmem:[#allocation2 + $0xf1] sm:$0xff]  ;;  %v2423_v12 = vld [vmem:[#allocation2 + $0xf9] sm:$0xff]  ;;  %v5801_v36 = vadd.f32 %v5751_v42, %v5694_v25  ;;  %3598 = vst [vmem:[#allocation3 + $0x9c] sm:$0x3] %v3560_v58  ;;  %v13049_v32 = vadd.f32 %v4357_v59, %v4303_v13  ;;  %v3448_v48 = vadd.f32 %v12728_v46, %v3447_v0  ;;  %v16018_v13 = vld [vmem:[#allocation26_spill] sm:$0xff] }
 0x22e   : > { %v3328_v61 = vpack.c.bf16 %v3302_v57, %v3301_v56  ;;  %v1658_v27 = vadd.f32 %v1617_v54, %v1533_v1  ;;  %v1828_v53 = vmul.f32 %v12714_v5, %v1785_v55  ;;  %3599 = vst [vmem:[#allocation3 + $0x9e] sm:$0xf0] %v3560_v58  ;;  %v2381_v31 = vmul.f32 %v12756_v28, %v2338_v7  ;;  %v13060_v5 = vld [vmem:[#allocation2 + $0x102] sm:$0xff]  ;;  %v13063_v15 = vld [vmem:[#allocation2 + $0x10a] sm:$0xff]  ;;  %v9995_v54 = vld [vmem:[#allocation3 + $0x48] sm:$0xff] }
 0x22f   : > { %16016 = vst [vmem:[#allocation33_spill] sm:$0xff] %v13049_v32  ;;  %v13053_v52 = vadd.f32 %v5547_v20, %v5493_v2  ;;  %v3525_v23 = vmax.f32 %v3448_v48, 0.0  ;;  %v2382_v51 = vmul.f32 %v12756_v28, %v2339_v19  ;;  %v2465_v25 = vmul.f32 %v12960_v14, %v2422_v33  ;;  %v9996_v57 = vld [vmem:[#allocation3 + $0x50] sm:$0xff]  ;;  %v9997_v58 = vld [vmem:[#allocation3 + $0x58] sm:$0xff]  ;;  %v13082_v48 = vld [vmem:[#allocation2 + $0x114] sm:$0xff] }
 0x230   : > { %3481 = vmatmul.bf16.gmra.mxu1 %v3328_v61  ;;  %v2466_v6 = vmul.f32 %v12960_v14, %v2423_v12  ;;  %v1744_v62 = vadd.f32 %v1703_v3, %v1658_v27  ;;  %v1953_v22 = vmul.f32 %v16001_v18, %v1910_v44  ;;  %v5907_v38 = vadd.f32 %v5857_v29, %v5800_v10  ;;  %v13073_v59 = vld [vmem:[%s15954_s5 + $0x3] ss:$0 sm:$0xff]  ;;  %v2759_v12 = vld [vmem:[#allocation2 + $0x10b] sm:$0xff] }
 0x231   : > { %16017 = vst [vmem:[#allocation34_spill] sm:$0xff] %v13053_v52  ;;  %v5908_v43 = vadd.f32 %v5858_v34, %v5801_v36  ;;  %v3561_v21 = vmin.f32 %v3525_v23, 6.0  ;;  %v5962_v45 = vmul.f32 %v9994_v9, %v16018_v13  ;;  %v2506_v56 = vadd.f32 %v2465_v25, %v2381_v31  ;;  %v2758_v20 = vld [vmem:[#allocation2 + $0x103] sm:$0xff] }
 0x232   : > { %v1869_v42 = vadd.f32 %v1828_v53, %v1744_v62  ;;  %v5963_v0 = vmul.f32 %v9995_v54, %v16018_v13  ;;  %v6066_v55 = vmul.f32 %v9996_v57, %v12806_v8  ;;  %v6067_v18 = vmul.f32 %v9997_v58, %v12806_v8  ;;  %v9999_v36 = vld [vmem:[#allocation3 + $0x51] sm:$0xff]  ;;  %v3094_v62 = vld [vmem:[#allocation2 + $0x115] sm:$0xff] }
 0x233   : > { %3600 = vst [vmem:[#allocation3 + $0xa6] sm:$0xff] %v3561_v21  ;;  %v2507_v29 = vadd.f32 %v2466_v6, %v2382_v51  ;;  %v2590_v17 = vmul.f32 %v12972_v11, %v12963_v39  ;;  %v2676_v2 = vmul.f32 %v13073_v59, %v13060_v5  ;;  %v6012_v7 = vadd.f32 %v5962_v45, %v5907_v38  ;;  %v13084_v27 = vld [vmem:[#allocation2 + $0x11c] sm:$0xff]  ;;  %v13090_v23 = vld [vmem:[%s15954_s5 + $0x4] ss:$0 sm:$0xff]  ;;  %v13096_v25 = vld [vmem:[%s15954_s5 + $0x5] ss:$0 sm:$0xff] }
 0x234   : > { %v1994_v10 = vadd.f32 %v1953_v22, %v1869_v42  ;;  %v6013_v16 = vadd.f32 %v5963_v0, %v5908_v43  ;;  %v2591_v34 = vmul.f32 %v12972_v11, %v12967_v4  ;;  %v2677_v8 = vmul.f32 %v13073_v59, %v13063_v15  ;;  %v10000_v4 = vld [vmem:[#allocation3 + $0x59] sm:$0xff]  ;;  %v3095_v22 = vld [vmem:[#allocation2 + $0x11d] sm:$0xff]  ;;  %v13113_v57 = vld [vmem:[%s15954_s5 + $0x6] ss:$0 sm:$0xff] }
 0x235   : > { %v2631_v3 = vadd.f32 %v2590_v17, %v2506_v56  ;;  %v6116_v39 = vadd.f32 %v6066_v55, %v6012_v7  ;;  %v6173_v61 = vmul.f32 %v9999_v36, %v12826_v26  ;;  %v6174_v53 = vmul.f32 %v10000_v4, %v12826_v26  ;;  %v2342_v38 = vld [vmem:[#allocation2 + $0x110] sm:$0xff]  ;;  %v10003_v26 = vld [vmem:[#allocation3 + $0x52] sm:$0xff]  ;;  %v2343_v56 = vld [vmem:[#allocation2 + $0x118] sm:$0xff] }
 0x236   : > { %v2015_v1 = vpack.c.bf16 %v1994_v10, %v1994_v10  ;;  %v6117_v19 = vadd.f32 %v6067_v18, %v6013_v16  ;;  %v2632_v33 = vadd.f32 %v2591_v34, %v2507_v29  ;;  %v2801_v51 = vmul.f32 %v13090_v23, %v2758_v20  ;;  %v16019_v43 = vld [vmem:[#allocation22_spill] sm:$0xff]  ;;  %v3219_v45 = vld [vmem:[#allocation2 + $0x116] sm:$0xff]  ;;  %v3220_v42 = vld [vmem:[#allocation2 + $0x11e] sm:$0xff] }
 0x237   : > { %v2717_v44 = vadd.f32 %v2676_v2, %v2631_v3  ;;  %v2926_v6 = vmul.f32 %v13096_v25, %v12994_v24  ;;  %v13101_v21 = vmul.f32 %v10003_v26, %v16019_v43  ;;  %v2802_v9 = vmul.f32 %v13090_v23, %v2759_v12  ;;  %v2426_v58 = vld [vmem:[#allocation2 + $0x111] sm:$0xff]  ;;  %v2427_v18 = vld [vmem:[#allocation2 + $0x119] sm:$0xff]  ;;  %v13125_v17 = vld [vmem:[%s15954_s5 + $0x7] ss:$0 sm:$0xff] }
 0x238   : > { %2188 = vmatmul.bf16.gmra.mxu3 %v2015_v1  ;;  %v2718_v31 = vadd.f32 %v2677_v8, %v2632_v33  ;;  %v2927_v13 = vmul.f32 %v13096_v25, %v12999_v40  ;;  %v13106_v54 = vadd.f32 %v6173_v61, %v6116_v39  ;;  %v13108_v0 = vadd.f32 %v6174_v53, %v6117_v19  ;;  %v9694_v40 = vld [vmem:[%s16020_s6 + $0x38] sm:$0xff]  ;;  %v13133_v8 = vld [vmem:[#allocation2 + $0x122] sm:$0xff]  ;;  %v13135_v1 = vpop.f32.mrf.mxu1  ;;  %v9693_v12 = vld [vmem:[%s16020_s6 + $0x30] sm:$0xff] }
 0x239   : > { %v2842_v24 = vadd.f32 %v2801_v51, %v2717_v44  ;;  %v3012_v55 = vmul.f32 %v13113_v57, %v13082_v48  ;;  %v3013_v10 = vmul.f32 %v13113_v57, %v13084_v27  ;;  %v3137_v2 = vmul.f32 %v13125_v17, %v3094_v62  ;;  %v13129_v16 = vld [vmem:[#allocation2 + $0x112] sm:$0xff]  ;;  %v13131_v34 = vld [vmem:[#allocation2 + $0x11a] sm:$0xff]  ;;  %16021 = vst [vmem:[#allocation21_spill] sm:$0xff] %v13133_v8  ;;  %v13141_v39 = vld [vmem:[%s15954_s5 + $0x8] ss:$0 sm:$0xff] }
 0x23a   : > { %v2843_v29 = vadd.f32 %v2802_v9, %v2718_v31  ;;  %v2385_v7 = vmul.f32 %v12756_v28, %v2342_v38  ;;  %v3138_v20 = vmul.f32 %v13125_v17, %v3095_v22  ;;  %v3262_v19 = vmul.f32 %v13141_v39, %v3219_v45  ;;  %6729 = vmatpush.bf16.msrb.mxu2 %v9694_v40  ;;  %v2762_v53 = vld [vmem:[#allocation2 + $0x123] sm:$0xff]  ;;  %v2763_v31 = vld [vmem:[#allocation2 + $0x12b] sm:$0xff] }
 0x23b   : > { %v2967_v3 = vadd.f32 %v2926_v6, %v2842_v24  ;;  %v2386_v33 = vmul.f32 %v12756_v28, %v2343_v56  ;;  %v3263_v61 = vmul.f32 %v13141_v39, %v3220_v42  ;;  %v2469_v44 = vmul.f32 %v12960_v14, %v2426_v58  ;;  %v13151_v6 = vld [vmem:[#allocation2 + $0x12a] sm:$0xff]  ;;  %v13165_v24 = vld [vmem:[#allocation2 + $0x134] sm:$0xff] }
 0x23c   : > { %v2968_v36 = vadd.f32 %v2927_v13, %v2843_v29  ;;  %v2470_v4 = vmul.f32 %v12960_v14, %v2427_v18  ;;  %v2594_v62 = vmul.f32 %v12972_v11, %v13129_v16  ;;  %v2595_v22 = vmul.f32 %v12972_v11, %v13131_v34  ;;  %v13159_v26 = vld [vmem:[#allocation2 + $0x124] sm:$0xff]  ;;  %v13163_v56 = vld [vmem:[#allocation2 + $0x12c] sm:$0xff]  ;;  %16022 = vst [vmem:[#allocation19_spill] sm:$0xff] %v13165_v24  ;;  %v13169_v29 = vld [vmem:[#allocation2 + $0x13c] sm:$0xff] }
 0x23d   : > { %v3053_v51 = vadd.f32 %v3012_v55, %v2967_v3  ;;  %v2680_v38 = vmul.f32 %v13073_v59, %v13133_v8  ;;  %v2510_v13 = vadd.f32 %v2469_v44, %v2385_v7  ;;  %v2681_v42 = vmul.f32 %v13073_v59, %v13151_v6  ;;  %v3098_v55 = vld [vmem:[#allocation2 + $0x135] sm:$0xff]  ;;  %16023 = vst [vmem:[#allocation23_spill] sm:$0xff] %v13169_v29  ;;  %v3099_v7 = vld [vmem:[#allocation2 + $0x13d] sm:$0xff]  ;;  %v9692_v3 = vld [vmem:[%s16020_s6 + $0x28] sm:$0xff] }
 0x23e   : > { %v3054_v9 = vadd.f32 %v3013_v10, %v2968_v36  ;;  %v2511_v45 = vadd.f32 %v2470_v4, %v2386_v33  ;;  %v2805_v18 = vmul.f32 %v13090_v23, %v2762_v53  ;;  %v2806_v40 = vmul.f32 %v13090_v23, %v2763_v31  ;;  %6730 = vmatpush.bf16.msrb.mxu2 %v9693_v12  ;;  %v3223_v4 = vld [vmem:[#allocation2 + $0x136] sm:$0xff]  ;;  %v3224_v53 = vld [vmem:[#allocation2 + $0x13e] sm:$0xff] }
 0x23f   : > { %v3178_v58 = vadd.f32 %v3137_v2, %v3053_v51  ;;  %v2930_v10 = vmul.f32 %v13096_v25, %v13159_v26  ;;  %v2635_v36 = vadd.f32 %v2594_v62, %v2510_v13  ;;  %v2931_v2 = vmul.f32 %v13096_v25, %v13163_v56  ;;  %v2346_v31 = vld [vmem:[#allocation2 + $0x130] sm:$0xff] }
 0x240   : > { %v3179_v33 = vadd.f32 %v3138_v20, %v3054_v9  ;;  %v2636_v44 = vadd.f32 %v2595_v22, %v2511_v45  ;;  %v3016_v52 = vmul.f32 %v13113_v57, %v13165_v24  ;;  %v3017_v12 = vmul.f32 %v13113_v57, %v13169_v29  ;;  %v13184_v13 = vld [vmem:[#allocation2 + $0x132] sm:$0xff]  ;;  %v13186_v45 = vld [vmem:[#allocation2 + $0x13a] sm:$0xff]  ;;  %v2642_v29 = vld [vmem:[#allocation2 + $0x14a] sm:$0xff] }
 0x241   : > { %v3303_v51 = vadd.f32 %v3262_v19, %v3178_v58  ;;  %v3141_v32 = vmul.f32 %v13125_v17, %v3098_v55  ;;  %v2721_v62 = vadd.f32 %v2680_v38, %v2635_v36  ;;  %v3142_v9 = vmul.f32 %v13125_v17, %v3099_v7  ;;  %16024 = vst [vmem:[#allocation27_spill] sm:$0xff] %v13184_v13  ;;  %v2557_v19 = vld [vmem:[#allocation2 + $0x142] sm:$0xff] }
 0x242   : > { %v3304_v20 = vadd.f32 %v3263_v61, %v3179_v33  ;;  %v2722_v22 = vadd.f32 %v2681_v42, %v2636_v44  ;;  %16025 = vst [vmem:[#allocation35_spill] sm:$0xff] %v13186_v45  ;;  %v3266_v58 = vmul.f32 %v13141_v39, %v3223_v4  ;;  %v3267_v41 = vmul.f32 %v13141_v39, %v3224_v53  ;;  %v9691_v61 = vld [vmem:[%s16020_s6 + $0x20] sm:$0xff]  ;;  %v2767_v44 = vld [vmem:[#allocation2 + $0x14b] sm:$0xff]  ;;  %v3452_v53 = vpop.f32.mrf.mxu1 }
 0x243   : > { %v2389_v49 = vmul.f32 %v12756_v28, %v2346_v31  ;;  %v2390_v55 = vmul.f32 %v10007_v47, %v12756_v28  ;;  %6731 = vmatpush.bf16.msrb.mxu2 %v9692_v3  ;;  %v2846_v42 = vadd.f32 %v2805_v18, %v2721_v62  ;;  %v2473_v33 = vmul.f32 %v12960_v14, %v2430_v60  ;;  %v2766_v36 = vld [vmem:[#allocation2 + $0x143] sm:$0xff]  ;;  %v2893_v62 = vld [vmem:[#allocation2 + $0x154] sm:$0xff] }
 0x244   : > { %v3329_v38 = vpack.c.bf16 %v3304_v20, %v3303_v51  ;;  %v2847_v7 = vadd.f32 %v2806_v40, %v2722_v22  ;;  %v13196_v4 = vld [vmem:[#allocation2 + $0x144] sm:$0xff]  ;;  %v2474_v31 = vmul.f32 %v12960_v14, %v2431_v35  ;;  %v2598_v47 = vmul.f32 %v12972_v11, %v13184_v13  ;;  %v13204_v51 = vld [vmem:[#allocation2 + $0x14c] sm:$0xff]  ;;  %v2978_v22 = vld [vmem:[#allocation2 + $0x15c] sm:$0xff] }
 0x245   : > { %v2599_v3 = vmul.f32 %v12972_v11, %v13186_v45  ;;  %v2684_v24 = vmul.f32 %v13073_v59, %v2557_v19  ;;  %v2971_v18 = vadd.f32 %v2930_v10, %v2846_v42  ;;  %v2514_v40 = vadd.f32 %v2473_v33, %v2389_v49  ;;  %v3103_v19 = vld [vmem:[#allocation2 + $0x15d] sm:$0xff] }
 0x246   : > { %3486 = vmatmul.bf16.gmra.mxu1 %v3329_v38  ;;  %v2972_v60 = vadd.f32 %v2931_v2, %v2847_v7  ;;  %v2685_v20 = vmul.f32 %v13073_v59, %v2642_v29  ;;  %v2515_v35 = vadd.f32 %v2474_v31, %v2390_v55  ;;  %v2809_v8 = vmul.f32 %v13090_v23, %v2766_v36  ;;  %v3227_v29 = vld [vmem:[#allocation2 + $0x156] sm:$0xff]  ;;  %v3228_v2 = vld [vmem:[#allocation2 + $0x15e] sm:$0xff] }
 0x247   : > { %v2810_v13 = vmul.f32 %v13090_v23, %v2767_v44  ;;  %v2934_v45 = vmul.f32 %v13096_v25, %v13196_v4  ;;  %6732 = vmatpush.bf16.msrb.mxu2 %v9691_v61  ;;  %v3057_v50 = vadd.f32 %v3016_v52, %v2971_v18  ;;  %v2639_v10 = vadd.f32 %v2598_v47, %v2514_v40  ;;  %v2340_v52 = vld [vmem:[#allocation2 + $0x100] sm:$0xff] }
 0x248   : > { %v3058_v38 = vadd.f32 %v3017_v12, %v2972_v60  ;;  %v2935_v49 = vmul.f32 %v13096_v25, %v13204_v51  ;;  %v2640_v42 = vadd.f32 %v2599_v3, %v2515_v35  ;;  %v3020_v55 = vmul.f32 %v13113_v57, %v2893_v62  ;;  %v2341_v12 = vld [vmem:[#allocation2 + $0x108] sm:$0xff] }
 0x249   : > { %v3021_v7 = vmul.f32 %v13113_v57, %v2978_v22  ;;  %v3145_v33 = vmul.f32 %v13125_v17, %v3102_v30  ;;  %v3182_v36 = vadd.f32 %v3141_v32, %v3057_v50  ;;  %v2725_v31 = vadd.f32 %v2684_v24, %v2639_v10  ;;  %v2424_v40 = vld [vmem:[#allocation2 + $0x101] sm:$0xff]  ;;  %v2425_v30 = vld [vmem:[#allocation2 + $0x109] sm:$0xff] }
 0x24a   : > { %v3183_v44 = vadd.f32 %v3142_v9, %v3058_v38  ;;  %v3146_v61 = vmul.f32 %v13125_v17, %v3103_v19  ;;  %v2726_v47 = vadd.f32 %v2685_v20, %v2640_v42  ;;  %v3270_v18 = vmul.f32 %v13141_v39, %v3227_v29  ;;  %v13227_v19 = vld [vmem:[%s15956_s0 + $0x17] ss:$0 sm:$0xff]  ;;  %v9690_v42 = vld [vmem:[%s16020_s6 + $0x18] sm:$0xff] }
 0x24b   : > { %v3271_v60 = vmul.f32 %v13141_v39, %v3228_v2  ;;  %v3450_v3 = vadd.f32 %v12728_v46, %v13135_v1  ;;  %v3307_v62 = vadd.f32 %v3266_v58, %v3182_v36  ;;  %v2850_v35 = vadd.f32 %v2809_v8, %v2725_v31  ;;  %v13230_v8 = vpop.f32.mrf.mxu1  ;;  %v10008_v31 = vld [vmem:[#allocation3 + $0x53] sm:$0xff]  ;;  %6733 = vmatpush.bf16.msrb.mxu2 %v9690_v42 }
 0x24c   : > { %v3308_v22 = vadd.f32 %v3267_v41, %v3183_v44  ;;  %v3453_v50 = vadd.f32 %v12728_v46, %v3452_v53  ;;  %v2851_v32 = vadd.f32 %v2810_v13, %v2726_v47  ;;  %v2383_v9 = vmul.f32 %v12756_v28, %v2340_v52  ;;  %v2761_v47 = vld [vmem:[#allocation2 + $0x11b] sm:$0xff] }
 0x24d   : > { %v3526_v24 = vmax.f32 %v3450_v3, 0.0  ;;  %v2384_v20 = vmul.f32 %v12756_v28, %v2341_v12  ;;  %v2975_v1 = vadd.f32 %v2934_v45, %v2850_v35  ;;  %v2467_v41 = vmul.f32 %v12960_v14, %v2424_v40 }
 0x24e   : > { %v3331_v38 = vpack.c.bf16 %v3308_v22, %v3307_v62  ;;  %v3527_v10 = vmax.f32 %v3453_v50, 0.0  ;;  %v2976_v46 = vadd.f32 %v2935_v49, %v2851_v32  ;;  %v2468_v13 = vmul.f32 %v12960_v14, %v2425_v30  ;;  %v2344_v50 = vld [vmem:[#allocation2 + $0x120] sm:$0xff]  ;;  %v2345_v32 = vld [vmem:[#allocation2 + $0x128] sm:$0xff] }
 0x24f   : > { %v3562_v58 = vmin.f32 %v3526_v24, 6.0  ;;  %v2592_v53 = vmul.f32 %v12972_v11, %v13060_v5  ;;  %v3061_v28 = vadd.f32 %v3020_v55, %v2975_v1  ;;  %v2508_v2 = vadd.f32 %v2467_v41, %v2383_v9  ;;  %v2760_v55 = vld [vmem:[#allocation2 + $0x113] sm:$0xff]  ;;  %v2429_v24 = vld [vmem:[#allocation2 + $0x129] sm:$0xff] }
 0x250   : > { %3496 = vmatmul.bf16.vlgmr.msra.gmra.mxu2 %v3331_v38  ;;  %v13235_v29 = vmin.f32 %v3527_v10, 6.0  ;;  %v2593_v45 = vmul.f32 %v12972_v11, %v13063_v15  ;;  %v3062_v36 = vadd.f32 %v3021_v7, %v2976_v46  ;;  %v2509_v49 = vadd.f32 %v2468_v13, %v2384_v20  ;;  %v10009_v7 = vld [vmem:[#allocation3 + $0x5a] sm:$0xff] }
 0x251   : > { %3601 = vst [vmem:[#allocation3 + $0xae] sm:$0xf] %v3562_v58  ;;  %v2678_v44 = vmul.f32 %v13073_v59, %v13129_v16  ;;  %v2679_v5 = vmul.f32 %v13073_v59, %v13131_v34  ;;  %v6387_v52 = vmul.f32 %v10008_v31, %v13227_v19  ;;  %v3186_v12 = vadd.f32 %v3145_v33, %v3061_v28  ;;  %v10010_v9 = vld [vmem:[#allocation3 + $0x5b] sm:$0xff] }
 0x252   : > { %3602 = vst [vmem:[#allocation3 + $0xb0] sm:$0xc0] %v3562_v58  ;;  %v2633_v15 = vadd.f32 %v2592_v53, %v2508_v2  ;;  %v6330_v3 = vadd.f32 %v13101_v21, %v13106_v54  ;;  %v6281_v40 = vmul.f32 %v10009_v7, %v16019_v43  ;;  %v3187_v62 = vadd.f32 %v3146_v61, %v3062_v36  ;;  %v9689_v21 = vld [vmem:[%s16020_s6 + $0x10] sm:$0xff]  ;;  %v3096_v10 = vld [vmem:[#allocation2 + $0x125] sm:$0xff] }
 0x253   : > { %3603 = vst [vmem:[#allocation3 + $0xb8] sm:$0xff] %v13235_v29  ;;  %v2634_v16 = vadd.f32 %v2593_v45, %v2509_v49  ;;  %v3311_v22 = vadd.f32 %v3270_v18, %v3186_v12  ;;  %v2803_v35 = vmul.f32 %v13090_v23, %v2760_v55  ;;  %v2928_v33 = vmul.f32 %v13096_v25, %v13082_v48  ;;  %v2428_v18 = vld [vmem:[#allocation2 + $0x121] sm:$0xff]  ;;  %v13264_v41 = vpop.f32.mrf.mxu1  ;;  %v3097_v13 = vld [vmem:[#allocation2 + $0x12d] sm:$0xff] }
 0x254   : > { %v2719_v34 = vadd.f32 %v2678_v44, %v2633_v15  ;;  %v6331_v54 = vadd.f32 %v6281_v40, %v13108_v0  ;;  %v3312_v43 = vadd.f32 %v3271_v60, %v3187_v62  ;;  %v2804_v30 = vmul.f32 %v13090_v23, %v2761_v47  ;;  %v13269_v0 = vld [vmem:[%s15956_s0 + $0x18] ss:$0 sm:$0xff]  ;;  %v3221_v28 = vld [vmem:[#allocation2 + $0x126] sm:$0xff]  ;;  %6734 = vmatpush.bf16.msrb.mxu2 %v9689_v21  ;;  %v3222_v15 = vld [vmem:[#allocation2 + $0x12e] sm:$0xff] }
 0x255   : > { %v2720_v61 = vadd.f32 %v2679_v5, %v2634_v16  ;;  %v6388_v20 = vmul.f32 %v10010_v9, %v13227_v19  ;;  %v2929_v48 = vmul.f32 %v13096_v25, %v13084_v27  ;;  %v3014_v1 = vmul.f32 %v13113_v57, %v13159_v26  ;;  %v10011_v27 = vld [vmem:[%s15954_s5] ss:$0 sm:$0xff]  ;;  %v9688_v36 = vld [vmem:[%s16020_s6 + $0x8] sm:$0xff]  ;;  %v2764_v16 = vld [vmem:[#allocation2 + $0x133] sm:$0xff] }
 0x256   : > { %v2844_v38 = vadd.f32 %v2803_v35, %v2719_v34  ;;  %v3333_v60 = vpack.c.bf16 %v3312_v43, %v3311_v22  ;;  %v3015_v58 = vmul.f32 %v13113_v57, %v13163_v56  ;;  %v2387_v53 = vmul.f32 %v10011_v27, %v2344_v50  ;;  %v10012_v44 = vld [vmem:[#allocation3 + $0x5c] sm:$0xff]  ;;  %v16027_v35 = vld [vmem:[#allocation21_spill] sm:$0xff] }
 0x257   : > { %v2845_v46 = vadd.f32 %v2804_v30, %v2720_v61  ;;  %v2388_v2 = vmul.f32 %v10011_v27, %v2345_v32  ;;  %v2471_v45 = vmul.f32 %v12960_v14, %v2428_v18  ;;  %v2472_v42 = vmul.f32 %v12960_v14, %v2429_v24  ;;  %v2765_v50 = vld [vmem:[#allocation2 + $0x13b] sm:$0xff]  ;;  %v16028_v21 = vld [vmem:[#allocation27_spill] sm:$0xff] }
 0x258   : > { %v2969_v26 = vadd.f32 %v2928_v33, %v2844_v38  ;;  %v13281_v49 = vadd.f32 %v6387_v52, %v6330_v3  ;;  %v6438_v56 = vadd.f32 %v6388_v20, %v6331_v54  ;;  %v6493_v5 = vmul.f32 %v10012_v44, %v13269_v0  ;;  %3504 = vmatmul.bf16.vlgmr.msrb.gmra.mxu3 %v3333_v60  ;;  %v16026_v3 = vld [vmem:[#allocation36_spill] sm:$0xff]  ;;  %v16029_v43 = vld [vmem:[#allocation35_spill] sm:$0xff]  ;;  %v3100_v60 = vld [vmem:[#allocation2 + $0x145] sm:$0xff] }
 0x259   : > { %v3139_v55 = vmul.f32 %v13125_v17, %v3096_v10  ;;  %v6392_v31 = vmul.f32 %v13227_v19, %v12844_v63  ;;  %v2970_v12 = vadd.f32 %v2929_v48, %v2845_v46  ;;  %v3140_v14 = vmul.f32 %v13125_v17, %v3097_v13  ;;  %6735 = vmatpush.bf16.msrb.mxu2 %v9688_v36  ;;  %v16030_v9 = vld [vmem:[#allocation31_spill] sm:$0xff] }
 0x25a   : > { %v2597_v47 = vmul.f32 %v12972_v11, %v13151_v6  ;;  %v6393_v52 = vmul.f32 %v13227_v19, %v12847_v37  ;;  %v6497_v7 = vmul.f32 %v13269_v0, %v16026_v3  ;;  %v3055_v40 = vadd.f32 %v3014_v1, %v2969_v26  ;;  %v9687_v6 = vld [vmem:[%s16020_s6] sm:$0xff]  ;;  %v16031_v1 = vld [vmem:[#allocation19_spill] sm:$0xff]  ;;  %s9332_s6 = sshll.u32 %s834_s7, 3 }
 0x25b   : > { %v3264_v62 = vmul.f32 %v13141_v39, %v3221_v28  ;;  %v3056_v22 = vadd.f32 %v3015_v58, %v2970_v12  ;;  %v2512_v34 = vadd.f32 %v2471_v45, %v2387_v53  ;;  %v2513_v63 = vadd.f32 %v2472_v42, %v2388_v2  ;;  %v3459_v24 = vpop.f32.mrf.mxu1  ;;  %v3101_v53 = vld [vmem:[#allocation2 + $0x14d] sm:$0xff]  ;;  %v16033_v28 = vld [vmem:[#allocation37_spill] sm:$0xff] }
 0x25c   : > { %v2596_v33 = vmul.f32 %v12972_v11, %v16027_v35  ;;  %v3180_v37 = vadd.f32 %v3139_v55, %v3055_v40  ;;  %v3265_v19 = vmul.f32 %v13141_v39, %v3222_v15  ;;  %v2682_v54 = vmul.f32 %v13073_v59, %v16028_v21  ;;  %v3225_v26 = vld [vmem:[#allocation2 + $0x146] sm:$0xff]  ;;  %v3226_v15 = vld [vmem:[#allocation2 + $0x14e] sm:$0xff] }
 0x25d   : > { %v2683_v61 = vmul.f32 %v13073_v59, %v16029_v43  ;;  %v3181_v30 = vadd.f32 %v3140_v14, %v3056_v22  ;;  %v2638_v18 = vadd.f32 %v2597_v47, %v2513_v63  ;;  %v2807_v11 = vmul.f32 %v13090_v23, %v2764_v16  ;;  %v16032_v59 = vld [vmem:[#allocation23_spill] sm:$0xff]  ;;  %6736 = vmatpush.bf16.msrb.mxu2 %v9687_v6  ;;  %v16034_v45 = vld [vmem:[#allocation17_spill] sm:$0xff] }
 0x25e   : > { %v2637_v32 = vadd.f32 %v2596_v33, %v2512_v34  ;;  %v6498_v20 = vmul.f32 %v13269_v0, %v16030_v9  ;;  %v3305_v38 = vadd.f32 %v3264_v62, %v3180_v37  ;;  %v2808_v48 = vmul.f32 %v13090_v23, %v2765_v50  ;;  %v10014_v3 = vld [vmem:[#allocation3 + $0x54] sm:$0xff] }
 0x25f   : > { %v2932_v10 = vmul.f32 %v13096_v25, %v16031_v1  ;;  %v3306_v46 = vadd.f32 %v3265_v19, %v3181_v30  ;;  %v2724_v13 = vadd.f32 %v2683_v61, %v2638_v18  ;;  %v2933_v27 = vmul.f32 %v13096_v25, %v16032_v59  ;;  %v4202_v30 = vld [vmem:[#allocation3 + $0x8c] sm:$0xff]  ;;  %v16036_v9 = vld [vmem:[#allocation30_spill] sm:$0xff] }
 0x260   : > { %v2723_v58 = vadd.f32 %v2682_v54, %v2637_v32  ;;  %v6442_v2 = vadd.f32 %v6392_v31, %v16033_v28  ;;  %v6443_v42 = vadd.f32 %v6393_v52, %v16034_v45  ;;  %v3018_v23 = vmul.f32 %v13113_v57, %v13196_v4  ;;  %v13325_v31 = vld [vmem:[%s15959_s10] ss:$0 sm:$0xff]  ;;  %v13372_v28 = vld [vmem:[%s15956_s0 + $0x5] ss:$0 sm:$0xff]  ;;  %v13378_v45 = vld [vmem:[%s15956_s0 + $0x2] ss:$0 sm:$0xff] }
 0x261   : > { %v3019_v36 = vmul.f32 %v13113_v57, %v13204_v51  ;;  %v3330_v44 = vpack.c.bf16 %v3306_v46, %v3305_v38  ;;  %v2849_v12 = vadd.f32 %v2808_v48, %v2724_v13  ;;  %v3143_v14 = vmul.f32 %v13125_v17, %v3100_v60  ;;  %v13343_v18 = vld [vmem:[#allocation3 + $0x90] sm:$0xff]  ;;  %v13363_v60 = vld [vmem:[%s15956_s0 + $0x10] ss:$0 sm:$0xff] }
 0x262   : > { %v2848_v55 = vadd.f32 %v2807_v11, %v2723_v58  ;;  %v3144_v25 = vmul.f32 %v13125_v17, %v3101_v53  ;;  %v3268_v47 = vmul.f32 %v13141_v39, %v3225_v26  ;;  %v3455_v4 = vadd.f32 %v13325_v31, %v13230_v8  ;;  %v4456_v11 = vld [vmem:[#allocation3 + $0x8d] sm:$0xff] }
 0x263   : > { %v3458_v57 = vadd.f32 %v13325_v31, %v13264_v41  ;;  %3491 = vmatmul.bf16.gmra.mxu1 %v3330_v44  ;;  %v2974_v52 = vadd.f32 %v2933_v27, %v2849_v12  ;;  %v6492_v40 = vmul.f32 %v10014_v3, %v13269_v0  ;;  %v6543_v17 = vadd.f32 %v6493_v5, %v6438_v56  ;;  %v3462_v41 = vpop.f32.mrf.mxu1  ;;  %v13349_v38 = vld [vmem:[%s15956_s0] ss:$0 sm:$0xff]  ;;  %v13354_v48 = vld [vmem:[%s15956_s0 + $0x1] ss:$0 sm:$0xff]  ;;  %v16037_v58 = vld [vmem:[#allocation16_spill] sm:$0xff] }
 0x264   : > { %v2973_v51 = vadd.f32 %v2932_v10, %v2848_v55  ;;  %v3269_v62 = vmul.f32 %v13141_v39, %v3226_v15  ;;  %v3528_v16 = vmax.f32 %v3455_v4, 0.0  ;;  %v6547_v34 = vadd.f32 %v6497_v7, %v6442_v2  ;;  %v4608_v27 = vld [vmem:[#allocation3 + $0x8e] sm:$0xff]  ;;  %v13389_v55 = vld [vmem:[%s15956_s0 + $0x6] ss:$0 sm:$0xff] }
 0x265   : > { %v3529_v22 = vmax.f32 %v3458_v57, 0.0  ;;  %v3060_v35 = vadd.f32 %v3019_v36, %v2974_v52  ;;  %v6542_v33 = vadd.f32 %v6492_v40, %v13281_v49  ;;  %6593 = vst [vmem:[#allocation6 + $0x8] sm:$0xff] %v6543_v17  ;;  %v3460_v8 = vadd.f32 %v13325_v31, %v3459_v24  ;;  %v13383_v36 = vld [vmem:[%s15956_s0 + $0x11] ss:$0 sm:$0xff]  ;;  %v13396_v3 = vld [vmem:[%s15956_s0 + $0x3] ss:$0 sm:$0xff] }
 0x266   : > { %v3059_v63 = vadd.f32 %v3018_v23, %v2973_v51  ;;  %v3564_v50 = vmin.f32 %v3528_v16, 6.0  ;;  %v6548_v37 = vadd.f32 %v6498_v20, %v6443_v42  ;;  %6597 = vst [vmem:[#allocation6 + $0x28] sm:$0xff] %v6547_v34  ;;  %v3463_v0 = vadd.f32 %v13325_v31, %v3462_v41  ;;  %v16038_v51 = vld [vmem:[#allocation38_spill] sm:$0xff]  ;;  %v13401_v40 = vld [vmem:[%s15956_s0 + $0x4] ss:$0 sm:$0xff] }
 0x267   : > { %v13335_v6 = vmin.f32 %v3529_v22, 6.0  ;;  %v3185_v39 = vadd.f32 %v3144_v25, %v3060_v35  ;;  %6592 = vst [vmem:[#allocation6] sm:$0xff] %v6542_v33  ;;  %v3530_v5 = vmax.f32 %v3460_v8, 0.0  ;;  %v5546_v20 = vmul.f32 %v16036_v9, %v4202_v30  ;;  %v13406_v17 = vld [vmem:[%s15956_s0 + $0x12] ss:$0 sm:$0xff]  ;;  %v13416_v34 = vld [vmem:[#allocation3 + $0x98] sm:$0xff] }
 0x268   : > { %v3184_v56 = vadd.f32 %v3143_v14, %v3059_v63  ;;  %3604 = vst [vmem:[#allocation3 + $0xc0] sm:$0x3f] %v3564_v50  ;;  %v3531_v7 = vmax.f32 %v3463_v0, 0.0  ;;  %v5653_v46 = vmul.f32 %v13363_v60, %v4456_v11  ;;  %v4356_v2 = vmul.f32 %v13372_v28, %v4202_v30  ;;  %v4760_v14 = vld [vmem:[#allocation3 + $0x8f] sm:$0xff]  ;;  %v13412_v16 = vld [vmem:[%s15956_s0 + $0x13] ss:$0 sm:$0xff] }
 0x269   : > { %v3310_v21 = vadd.f32 %v3269_v62, %v3185_v39  ;;  %3605 = vst [vmem:[#allocation3 + $0xca] sm:$0xff] %v13335_v6  ;;  %v13339_v49 = vmin.f32 %v3530_v5, 6.0  ;;  %v5596_v13 = vadd.f32 %v5546_v20, %v16037_v58  ;;  %v5760_v44 = vmul.f32 %v13383_v36, %v4608_v27  ;;  %v4457_v33 = vld [vmem:[#allocation3 + $0x95] sm:$0xff]  ;;  %v13419_v50 = vld [vmem:[#allocation3 + $0xa0] sm:$0xff]  ;;  %v13423_v0 = vld [vmem:[#allocation3 + $0xa8] sm:$0xff] }
 0x26a   : > { %v3309_v19 = vadd.f32 %v3268_v47, %v3184_v56  ;;  %6598 = vst [vmem:[#allocation6 + $0x30] sm:$0xff] %v6548_v37  ;;  %v3567_v54 = vmin.f32 %v3531_v7, 6.0  ;;  %v4508_v12 = vmul.f32 %v13389_v55, %v4456_v11  ;;  %v4406_v52 = vadd.f32 %v4356_v2, %v16038_v51  ;;  %v13421_v37 = vld [vmem:[#allocation3 + $0xa1] sm:$0xff]  ;;  %v13425_v56 = vld [vmem:[#allocation3 + $0xa9] sm:$0xff]  ;;  %v13446_v11 = vld [vmem:[%s15956_s0 + $0x8] ss:$0 sm:$0xff] }
 0x26b   : > { %16035 = vst [vmem:[#allocation24_spill] sm:$0xff] %v13339_v49  ;;  %v3464_v61 = vpop.f32.mrf.mxu1  ;;  %v5703_v26 = vadd.f32 %v5653_v46, %v5596_v13  ;;  %v5867_v62 = vmul.f32 %v13406_v17, %v4760_v14  ;;  %v5972_v22 = vmul.f32 %v13412_v16, %v13343_v18  ;;  %v4509_v5 = vmul.f32 %v13389_v55, %v4457_v33  ;;  %v4609_v46 = vld [vmem:[#allocation3 + $0x96] sm:$0xff]  ;;  %v13455_v58 = vld [vmem:[#allocation3 + $0xa2] sm:$0xff]  ;;  %v13471_v51 = vld [vmem:[#allocation3 + $0xab] sm:$0xff] }
 0x26c   : > { %v3332_v43 = vpack.c.bf16 %v3310_v21, %v3309_v19  ;;  %3606 = vst [vmem:[#allocation3 + $0xd2] sm:$0xff] %v13339_v49  ;;  %v3465_v32 = vadd.f32 %v13325_v31, %v3464_v61  ;;  %v4558_v35 = vadd.f32 %v4508_v12, %v4406_v52  ;;  %v3801_v7 = vmul.f32 %v13354_v48, %v13421_v37  ;;  %v16041_v13 = vld [vmem:[#allocation33_spill] sm:$0xff] }
 0x26d   : > { %3607 = vst [vmem:[#allocation3 + $0xdc] sm:$0xfc] %v3567_v54  ;;  %v5810_v4 = vadd.f32 %v5760_v44, %v5703_v26  ;;  %v3699_v21 = vmul.f32 %v13349_v38, %v13419_v50  ;;  %v13435_v54 = vld [vmem:[%s15956_s0 + $0x7] ss:$0 sm:$0xff]  ;;  %v5654_v61 = vmul.f32 %v13363_v60, %v4457_v33  ;;  %v3802_v30 = vmul.f32 %v13354_v48, %v13425_v56  ;;  %v16042_v26 = vld [vmem:[#allocation34_spill] sm:$0xff] }
 0x26e   : > { %3501 = vmatmul.bf16.gmra.mxu2 %v3332_v43  ;;  %v3532_v24 = vmax.f32 %v3465_v32, 0.0  ;;  %v6642_v15 = vld [vmem:[#allocation6] ss:$2 sm:$0xff]  ;;  %16039 = vst [vmem:[#allocation25_spill] sm:$0xff] %v13435_v54  ;;  %v4660_v43 = vmul.f32 %v13435_v54, %v4608_v27  ;;  %v3700_v32 = vmul.f32 %v13349_v38, %v13423_v0  ;;  %v3953_v44 = vmul.f32 %v13378_v45, %v13455_v58 }
 0x26f   : > { %v13358_v10 = vld [vmem:[#allocation3 + $0xc0] sm:$0xff]  ;;  %v5917_v41 = vadd.f32 %v5867_v62, %v5810_v4  ;;  %v3851_v27 = vadd.f32 %v3801_v7, %v3699_v21  ;;  %v5704_v2 = vadd.f32 %v5654_v61, %v16042_v26  ;;  %v4761_v12 = vld [vmem:[#allocation3 + $0x97] sm:$0xff]  ;;  %v13485_v7 = vld [vmem:[#allocation3 + $0xac] sm:$0xff] }
 0x270   : > { %v13356_v1 = vmin.f32 %v3532_v24, 6.0  ;;  %v13449_v24 = vmul.f32 %v13446_v11, %v4760_v14  ;;  %v13451_v9 = vadd.f32 %v4660_v43, %v4558_v35  ;;  %v5761_v14 = vmul.f32 %v13383_v36, %v4609_v46  ;;  %v13473_v52 = vld [vmem:[#allocation3 + $0xbc] sm:$0xff]  ;;  %v13494_v61 = vld [vmem:[%s15956_s0 + $0x14] ss:$0 sm:$0xff] }
 0x271   : > { %v6644_v42 = vld [vmem:[#allocation6 + $0x28] ss:$2 sm:$0xff]  ;;  %v13453_v20 = vadd.f32 %v5972_v22, %v5917_v41  ;;  %v5868_v35 = vmul.f32 %v13406_v17, %v4761_v12 }
 0x272   : > { %3608 = vst [vmem:[#allocation3 + $0xe4] sm:$0xff] %v13356_v1  ;;  %v6657_v57 = vpack.c.bf16 %v6644_v42, %v6642_v15  ;;  %v3852_v42 = vadd.f32 %v3802_v30, %v3700_v32  ;;  %v5973_v15 = vmul.f32 %v13412_v16, %v13416_v34  ;;  %v5811_v62 = vadd.f32 %v5761_v14, %v5704_v2  ;;  %v13481_v41 = vld [vmem:[#allocation3 + $0xa4] sm:$0xff]  ;;  %v13523_v14 = vld [vmem:[#allocation3 + $0xb5] sm:$0xff] }
 0x273   : > { %v3467_v59 = vpop.f32.mrf.mxu1  ;;  %16040 = vst [vmem:[#allocation18_spill] sm:$0xff] %v13453_v20  ;;  %v13489_v43 = vld [vmem:[#allocation3 + $0xcc] sm:$0xff]  ;;  %v13498_v30 = vmul.f32 %v13494_v61, %v13419_v50  ;;  %v13503_v32 = vld [vmem:[%s15956_s0 + $0x15] ss:$0 sm:$0xff]  ;;  %v3958_v20 = vmul.f32 %v13378_v45, %v13335_v6 }
 0x274   : > { %v3468_v53 = vadd.f32 %v13325_v31, %v3467_v59  ;;  %v4559_v59 = vadd.f32 %v4509_v5, %v16041_v13  ;;  %v5918_v21 = vadd.f32 %v5868_v35, %v5811_v62  ;;  %16044 = vst [vmem:[#allocation29_spill] sm:$0xff] %v13503_v32  ;;  %v13509_v13 = vld [vmem:[#allocation3 + $0xd4] sm:$0xff]  ;;  %v13533_v62 = vmul.f32 %v13503_v32, %v13425_v56  ;;  %v13539_v35 = vld [vmem:[#allocation3 + $0xc8] sm:$0xff] }
 0x275   : > { %16043 = vst [vmem:[#allocation28_spill] sm:$0xff] %v13498_v30 }
 0x276   : > { %v3533_v23 = vmax.f32 %v3468_v53, 0.0  ;;  %v13458_v53 = vld [vmem:[#allocation3 + $0xaa] sm:$0xff]  ;;  %16048 = vst [vmem:[#allocation22_spill] sm:$0xff] %v13533_v62  ;;  %v13563_v62 = vld [vmem:[#allocation3 + $0xbf] sm:$0xff] }
 0x277   : > { %v4818_v30 = vmul.f32 %v13446_v11, %v13563_v62 }
 0x278   : > { %v3569_v25 = vmin.f32 %v3533_v23, 6.0  ;;  %v4661_v23 = vmul.f32 %v13435_v54, %v4609_v46  ;;  %v13507_v46 = vmul.f32 %v13503_v32, %v13421_v37 }
 0x27a   : > { %3609 = vst [vmem:[#allocation3 + $0xec] sm:$0x3] %v3569_v25  ;;  %v4711_v4 = vadd.f32 %v4661_v23, %v4559_v59  ;;  %v4257_v59 = vmul.f32 %v13401_v40, %v13481_v41  ;;  %v13519_v23 = vadd.f32 %v5973_v15, %v5918_v21  ;;  %v4513_v15 = vmul.f32 %v13389_v55, %v13523_v14 }
 0x27b   : > { %v3469_v63 = vpop.f32.mrf.mxu1  ;;  %3610 = vst [vmem:[#allocation3 + $0xee] sm:$0xf0] %v3569_v25  ;;  %v3954_v25 = vmul.f32 %v13378_v45, %v13458_v53 }
 0x27c   : > { %v3470_v8 = vadd.f32 %v13325_v31, %v3469_v63  ;;  %v4813_v63 = vmul.f32 %v13446_v11, %v4761_v12  ;;  %16045 = vst [vmem:[#allocation20_spill] sm:$0xff] %v13507_v46 }
 0x27d   : > { %v4004_v22 = vadd.f32 %v3954_v25, %v3852_v42  ;;  %v4362_v42 = vmul.f32 %v13372_v28, %v13473_v52  ;;  %16046 = vst [vmem:[#allocation32_spill] sm:$0xff] %v13519_v23  ;;  %v13527_v25 = vmul.f32 %v13494_v61, %v13423_v0 }
 0x27e   : > { %6737 = vmatmul.bf16.vlgmr.msrb.gmra.mxu2 %v6657_v57  ;;  %v3534_v39 = vmax.f32 %v3470_v8, 0.0  ;;  %v4003_v57 = vadd.f32 %v3953_v44, %v3851_v27  ;;  %v4106_v8 = vmul.f32 %v13396_v3, %v13471_v51  ;;  %v4258_v27 = vmul.f32 %v13401_v40, %v13485_v7  ;;  %v13521_v44 = vld [vmem:[#allocation3 + $0xd0] sm:$0xff] }
 0x27f   : > { %16047 = vst [vmem:[#allocation26_spill] sm:$0xff] %v13527_v25  ;;  %v3959_v25 = vmul.f32 %v13378_v45, %v13339_v49 }
 0x280   : > { %v2183_v47 = vpop.f32.mrf.mxu3  ;;  %v3570_v19 = vmin.f32 %v3534_v39, 6.0  ;;  %v13483_v39 = vadd.f32 %v4813_v63, %v4711_v4  ;;  %v13535_v63 = vld [vmem:[#allocation3 + $0xd1] sm:$0xff] }
 0x281   : > { %v13469_v47 = vld [vmem:[#allocation3 + $0xa3] sm:$0xff]  ;;  %16049 = vst [vmem:[#allocation36_spill] sm:$0xff] %v13535_v63 }
 0x282   : > { %3611 = vst [vmem:[#allocation3 + $0xf6] sm:$0xff] %v3570_v19  ;;  %v4105_v33 = vmul.f32 %v13396_v3, %v13469_v47  ;;  %v13487_v19 = vld [vmem:[#allocation3 + $0xb4] sm:$0xff] }
 0x283   : > { %v4361_v26 = vmul.f32 %v13372_v28, %v13487_v19 }
 0x284   : > { %v4155_v5 = vadd.f32 %v4105_v33, %v4003_v57  ;;  %v13529_v57 = vld [vmem:[#allocation3 + $0xbd] sm:$0xff]  ;;  %v3705_v33 = vmul.f32 %v13349_v38, %v13521_v44 }
 0x286   : > { %v4307_v2 = vadd.f32 %v4257_v59, %v4155_v5  ;;  %v4514_v5 = vmul.f32 %v13389_v55, %v13529_v57  ;;  %v13549_v59 = vld [vmem:[#allocation3 + $0xbe] sm:$0xff] }
 0x288   : > { %v2184_v31 = vpop.f32.mrf.mxu3  ;;  %v4411_v4 = vadd.f32 %v4361_v26, %v4307_v2  ;;  %v3704_v2 = vmul.f32 %v13349_v38, %v13539_v35 }
 0x289   : > { %v4156_v31 = vadd.f32 %v4106_v8, %v4004_v22  ;;  %v13543_v8 = vld [vmem:[#allocation3 + $0xc9] sm:$0xff] }
 0x28a   : > { %v4563_v21 = vadd.f32 %v4513_v15, %v4411_v4  ;;  %v4666_v4 = vmul.f32 %v13435_v54, %v13549_v59  ;;  %v13561_v15 = vld [vmem:[#allocation3 + $0xb7] sm:$0xff] }
 0x28b   : > { %v4308_v12 = vadd.f32 %v4258_v27, %v4156_v31  ;;  %v13547_v31 = vld [vmem:[#allocation3 + $0xb6] sm:$0xff]  ;;  %v3807_v27 = vmul.f32 %v13354_v48, %v13535_v63  ;;  %v4817_v23 = vmul.f32 %v13446_v11, %v13561_v15 }
 0x28d   : > { %v4412_v22 = vadd.f32 %v4362_v42, %v4308_v12  ;;  %v3806_v42 = vmul.f32 %v13354_v48, %v13543_v8  ;;  %v4665_v12 = vmul.f32 %v13435_v54, %v13547_v31  ;;  %v3857_v46 = vadd.f32 %v3807_v27, %v3705_v33  ;;  %v13575_v54 = vld [vmem:[#allocation3 + $0xd3] sm:$0xff] }
 0x28e   : > { %16050 = vst [vmem:[#allocation21_spill] sm:$0xff] %v13575_v54 }
 0x28f   : > { %v4564_v26 = vadd.f32 %v4514_v5, %v4412_v22  ;;  %v4715_v32 = vadd.f32 %v4665_v12, %v4563_v21  ;;  %v3856_v22 = vadd.f32 %v3806_v42, %v3704_v2  ;;  %v13565_v5 = vld [vmem:[#allocation3 + $0xcb] sm:$0xff]  ;;  %v4009_v21 = vadd.f32 %v3959_v25, %v3857_v46  ;;  %v13584_v42 = vld [vmem:[%s15956_s0 + $0xc] ss:$0 sm:$0xff]  ;;  %v13612_v25 = vld [vmem:[%s15956_s0 + $0x9] ss:$0 sm:$0xff] }
 0x290   : > { %v4110_v27 = vmul.f32 %v13396_v3, %v13565_v5  ;;  %16052 = vst [vmem:[#allocation35_spill] sm:$0xff] %v13584_v42 }
 0x291   : > { %v4716_v63 = vadd.f32 %v4666_v4, %v4564_v26  ;;  %v4867_v26 = vadd.f32 %v4817_v23, %v4715_v32  ;;  %v4008_v12 = vadd.f32 %v3958_v20, %v3856_v22  ;;  %v4111_v4 = vmul.f32 %v13396_v3, %v13575_v54  ;;  %v13596_v32 = vld [vmem:[%s15956_s0 + $0x16] ss:$0 sm:$0xff]  ;;  %v13605_v20 = vld [vmem:[%s15956_s0 + $0xb] ss:$0 sm:$0xff] }
 0x292   : > { %v4862_v23 = vadd.f32 %v13449_v24, %v13451_v9  ;;  %v5128_v49 = vmul.f32 %v13605_v20, %v13421_v37  ;;  %v5235_v37 = vmul.f32 %v13584_v42, %v13455_v58 }
 0x293   : > { %v13579_v2 = vadd.f32 %v4818_v30, %v4716_v63  ;;  %v13598_v30 = vadd.f32 %v4110_v27, %v4008_v12  ;;  %v13600_v46 = vadd.f32 %v4111_v4, %v4009_v21  ;;  %v4917_v63 = vmul.f32 %v13612_v25, %v13343_v18  ;;  %v13621_v27 = vld [vmem:[%s15956_s0 + $0xa] ss:$0 sm:$0xff] }
 0x294   : > { %v4918_v21 = vmul.f32 %v13612_v25, %v13416_v34  ;;  %v5021_v24 = vmul.f32 %v13621_v27, %v13419_v50  ;;  %v5022_v9 = vmul.f32 %v13621_v27, %v13423_v0  ;;  %v4922_v12 = vmul.f32 %v13612_v25, %v13235_v29  ;;  %v13639_v0 = vld [vmem:[%s15956_s0 + $0xe] ss:$0 sm:$0xff] }
 0x295   : > { %16051 = vst [vmem:[#allocation27_spill] sm:$0xff] %v13579_v2  ;;  %v4967_v4 = vadd.f32 %v4917_v63, %v4862_v23  ;;  %v5026_v34 = vmul.f32 %v13621_v27, %v13539_v35  ;;  %v5129_v50 = vmul.f32 %v13605_v20, %v13425_v56  ;;  %v13644_v63 = vld [vmem:[%s15956_s0 + $0xf] ss:$0 sm:$0xff]  ;;  %v5236_v56 = vmul.f32 %v13584_v42, %v13458_v53 }
 0x296   : > { %v4968_v18 = vadd.f32 %v4918_v21, %v13483_v39  ;;  %v4972_v54 = vadd.f32 %v4922_v12, %v4867_v26  ;;  %v5133_v26 = vmul.f32 %v13605_v20, %v13543_v8 }
 0x298   : > { %v5072_v2 = vadd.f32 %v5022_v9, %v4968_v18  ;;  %v5076_v29 = vadd.f32 %v5026_v34, %v4972_v54 }
 0x29a   : > { %v5179_v39 = vadd.f32 %v5129_v50, %v5072_v2  ;;  %v5183_v21 = vadd.f32 %v5133_v26, %v5076_v29  ;;  %v4212_v2 = vld [vmem:[#allocation3 + $0xdc] sm:$0xff]  ;;  %v13662_v50 = vld [vmem:[#allocation3 + $0xf1] sm:$0xff]  ;;  %v4263_v26 = vmul.f32 %v13401_v40, %v13509_v13 }
 0x29b   : > { %16055 = vst [vmem:[#allocation23_spill] sm:$0xff] %v13662_v50 }
 0x29c   : > { %v5286_v9 = vadd.f32 %v5236_v56, %v5179_v39  ;;  %v4262_v39 = vmul.f32 %v13401_v40, %v13489_v43  ;;  %v5447_v56 = vmul.f32 %v13639_v0, %v13481_v41  ;;  %v5551_v40 = vmul.f32 %v13644_v63, %v13487_v19 }
 0x2a6   : > { %v2186_v33 = vpop.f32.mrf.mxu3 }
 0x2a7   : > { %v13591_v33 = vld [vmem:[%s15956_s0 + $0xd] ss:$0 sm:$0xff] }
 0x2a8   : > { %16053 = vst [vmem:[#allocation31_spill] sm:$0xff] %v13591_v33  ;;  %v5342_v54 = vmul.f32 %v13591_v33, %v13469_v47  ;;  %v5343_v12 = vmul.f32 %v13591_v33, %v13471_v51 }
 0x2ae   : > { %v2187_v22 = vpop.f32.mrf.mxu3 }
 0x2af   : > { %v5071_v22 = vadd.f32 %v5021_v24, %v4967_v4  ;;  %v5347_v4 = vmul.f32 %v13591_v33, %v13565_v5 }
 0x2b1   : > { %v5178_v23 = vadd.f32 %v5128_v49, %v5071_v22  ;;  %v5240_v49 = vmul.f32 %v13584_v42, %v13335_v6  ;;  %v13660_v22 = vld [vmem:[#allocation3 + $0xf0] sm:$0xff] }
 0x2b2   : > { %16054 = vst [vmem:[#allocation19_spill] sm:$0xff] %v13660_v22 }
 0x2b3   : > { %v5285_v24 = vadd.f32 %v5235_v37, %v5178_v23  ;;  %v5290_v34 = vadd.f32 %v5240_v49, %v5183_v21  ;;  %v5393_v23 = vadd.f32 %v5343_v12, %v5286_v9  ;;  %v3709_v21 = vmul.f32 %v13349_v38, %v13660_v22  ;;  %v13678_v12 = vld [vmem:[#allocation3 + $0xf2] sm:$0xff] }
 0x2b4   : > { %v5452_v9 = vmul.f32 %v13639_v0, %v13489_v43  ;;  %v5556_v38 = vmul.f32 %v13644_v63, %v4212_v2 }
 0x2b5   : > { %v5392_v29 = vadd.f32 %v5342_v54, %v5285_v24  ;;  %v5397_v37 = vadd.f32 %v5347_v4, %v5290_v34  ;;  %v3811_v24 = vmul.f32 %v13354_v48, %v13662_v50  ;;  %v5552_v4 = vmul.f32 %v13644_v63, %v13473_v52  ;;  %v13684_v34 = vld [vmem:[#allocation3 + $0xf3] sm:$0xff] }
 0x2b6   : > { %v13693_v19 = vmul.f32 %v13396_v3, %v13684_v34  ;;  %v5658_v52 = vmul.f32 %v13363_v60, %v13523_v14  ;;  %v4366_v3 = vmul.f32 %v13372_v28, %v4212_v2  ;;  %v5766_v14 = vmul.f32 %v13383_v36, %v13549_v59 }
 0x2b7   : > { %v5497_v49 = vadd.f32 %v5447_v56, %v5392_v29  ;;  %v5502_v33 = vadd.f32 %v5452_v9, %v5397_v37  ;;  %v3861_v48 = vadd.f32 %v3811_v24, %v3709_v21  ;;  %v3963_v29 = vmul.f32 %v13378_v45, %v13678_v12  ;;  %v13708_v9 = vld [vmem:[#allocation3 + $0xf4] sm:$0xff] }
 0x2b8   : > { %v5659_v37 = vmul.f32 %v13363_v60, %v13529_v57  ;;  %v4312_v21 = vadd.f32 %v4262_v39, %v13598_v30  ;;  %v4313_v45 = vadd.f32 %v4263_v26, %v13600_v46  ;;  %v5765_v24 = vmul.f32 %v13383_v36, %v13547_v31 }
 0x2b9   : > { %v5601_v50 = vadd.f32 %v5551_v40, %v5497_v49  ;;  %v13699_v56 = vadd.f32 %v3963_v29, %v3861_v48  ;;  %v4367_v60 = vmul.f32 %v13372_v28, %v13356_v1  ;;  %v5872_v46 = vmul.f32 %v13406_v17, %v13561_v15  ;;  %v10038_v28 = vld [vmem:[#allocation3 + $0xb8] sm:$0xff]  ;;  %v16058_v29 = vld [vmem:[#allocation28_spill] sm:$0xff] }
 0x2ba   : > { %v5873_v31 = vmul.f32 %v13406_v17, %v13563_v62  ;;  %v4416_v2 = vadd.f32 %v4366_v3, %v4312_v21  ;;  %v5977_v26 = vmul.f32 %v10038_v28, %v13412_v16  ;;  %v5978_v15 = vmul.f32 %v13412_v16, %v13358_v10  ;;  %v16061_v16 = vld [vmem:[#allocation29_spill] sm:$0xff]  ;;  %v16062_v3 = vld [vmem:[#allocation36_spill] sm:$0xff] }
 0x2bb   : > { %v2189_v18 = vpop.f32.mrf.mxu3  ;;  %v13719_v36 = vadd.f32 %v4367_v60, %v4313_v45  ;;  %v6081_v17 = vmul.f32 %v13494_v61, %v13539_v35  ;;  %v6082_v62 = vmul.f32 %v13494_v61, %v13521_v44  ;;  %v6188_v45 = vmul.f32 %v16061_v16, %v13543_v8  ;;  %v16064_v60 = vld [vmem:[#allocation22_spill] sm:$0xff] }
 0x2bc   : > { %v5448_v18 = vmul.f32 %v13639_v0, %v13485_v7  ;;  %v6189_v35 = vmul.f32 %v16061_v16, %v16062_v3  ;;  %v6295_v8 = vmul.f32 %v13596_v32, %v13335_v6  ;;  %v6891_v16 = vld [vmem:[#allocation4 + $0x7a] sm:$0xff] }
 0x2be   : > { %v5498_v54 = vadd.f32 %v5448_v18, %v5393_v23  ;;  %v13689_v23 = vadd.f32 %v5556_v38, %v5502_v33  ;;  %v4466_v33 = vld [vmem:[#allocation3 + $0xdd] sm:$0xff]  ;;  %v16056_v38 = vld [vmem:[#allocation25_spill] sm:$0xff] }
 0x2c0   : > { %v5602_v22 = vadd.f32 %v5552_v4, %v5498_v54  ;;  %v4618_v54 = vld [vmem:[#allocation3 + $0xde] sm:$0xff] }
 0x2c1   : > { %v4670_v48 = vmul.f32 %v16056_v38, %v4618_v54 }
 0x2c2   : > { %v5709_v18 = vadd.f32 %v5659_v37, %v5602_v22  ;;  %v4518_v22 = vmul.f32 %v13389_v55, %v4466_v33  ;;  %v16059_v37 = vld [vmem:[#allocation32_spill] sm:$0xff] }
 0x2c3   : > { %v2190_v42 = vpop.f32.mrf.mxu3 }
 0x2c4   : > { %v5708_v42 = vadd.f32 %v5658_v52, %v5601_v50  ;;  %v5816_v30 = vadd.f32 %v5766_v14, %v5709_v18  ;;  %v13715_v50 = vld [vmem:[#allocation3 + $0xe5] sm:$0xff]  ;;  %v4568_v49 = vadd.f32 %v4518_v22, %v4416_v2  ;;  %v6291_v2 = vmul.f32 %v13596_v32, %v13458_v53 }
 0x2c5   : > { %v13723_v1 = vmul.f32 %v13389_v55, %v13715_v50  ;;  %v16057_v55 = vld [vmem:[#allocation18_spill] sm:$0xff]  ;;  %v16063_v14 = vld [vmem:[#allocation20_spill] sm:$0xff] }
 0x2c6   : > { %v5815_v57 = vadd.f32 %v5765_v24, %v5708_v42  ;;  %v5923_v59 = vadd.f32 %v5873_v31, %v5816_v30  ;;  %v6126_v52 = vadd.f32 %v16058_v29, %v16057_v55  ;;  %v16060_v42 = vld [vmem:[#allocation26_spill] sm:$0xff]  ;;  %v4720_v33 = vadd.f32 %v4670_v48, %v4568_v49 }
 0x2c7   : > { %v6127_v18 = vadd.f32 %v16060_v42, %v16059_v37  ;;  %v4770_v24 = vld [vmem:[#allocation3 + $0xdf] sm:$0xff]  ;;  %v6836_v42 = vld [vmem:[#allocation4 + $0x81] sm:$0xff] }
 0x2c8   : > { %v5922_v39 = vadd.f32 %v5872_v46, %v5815_v57  ;;  %v6028_v4 = vadd.f32 %v5978_v15, %v5923_v59  ;;  %v6233_v61 = vadd.f32 %v16063_v14, %v6126_v52  ;;  %v6290_v46 = vmul.f32 %v13596_v32, %v13455_v58  ;;  %v6892_v14 = vld [vmem:[#allocation4 + $0x82] sm:$0xff] }
 0x2c9   : > { %v6234_v57 = vadd.f32 %v16064_v60, %v6127_v18  ;;  %v4822_v31 = vmul.f32 %v13446_v11, %v4770_v24 }
 0x2ca   : > { %v6027_v40 = vadd.f32 %v5977_v26, %v5922_v39  ;;  %v6132_v10 = vadd.f32 %v6082_v62, %v6028_v4  ;;  %v16065_v39 = vld [vmem:[#allocation24_spill] sm:$0xff]  ;;  %v6340_v28 = vadd.f32 %v6290_v46, %v6233_v61  ;;  %v10039_v26 = vld [vmem:[%s15956_s0 + $0x17] ss:$0 sm:$0xff]  ;;  %v9867_v46 = vld [vmem:[%s16067_s27 + $0x4] ss:$0 sm:$0xff] }
 0x2cb   : > { %v6296_v59 = vmul.f32 %v13596_v32, %v16065_v39  ;;  %v6397_v15 = vmul.f32 %v10039_v26, %v13469_v47  ;;  %v6341_v49 = vadd.f32 %v6291_v2, %v6234_v57  ;;  %v6398_v11 = vmul.f32 %v10039_v26, %v13471_v51  ;;  %v10040_v32 = vld [vmem:[%s15956_s0 + $0x18] ss:$0 sm:$0xff]  ;;  %v9863_v51 = vld [vmem:[%s16067_s27] ss:$0 sm:$0xff] }
 0x2cc   : > { %v6131_v21 = vadd.f32 %v6081_v17, %v6027_v40  ;;  %v6239_v30 = vadd.f32 %v6189_v35, %v6132_v10  ;;  %v6402_v53 = vmul.f32 %v10039_v26, %v13565_v5  ;;  %v16066_v40 = vld [vmem:[#allocation21_spill] sm:$0xff]  ;;  %v6502_v17 = vmul.f32 %v10040_v32, %v13481_v41  ;;  %v6835_v41 = vld [vmem:[#allocation4 + $0x79] sm:$0xff] }
 0x2cd   : > { %v6403_v4 = vmul.f32 %v10039_v26, %v16066_v40  ;;  %v6447_v6 = vadd.f32 %v6397_v15, %v6340_v28  ;;  %v6503_v62 = vmul.f32 %v10040_v32, %v13485_v7  ;;  %v6448_v38 = vadd.f32 %v6398_v11, %v6341_v49  ;;  %v9864_v5 = vld [vmem:[%s16067_s27 + $0x1] ss:$0 sm:$0xff]  ;;  %v7005_v49 = vld [vmem:[#allocation4 + $0x8c] sm:$0xff] }
 0x2ce   : > { %v6238_v22 = vadd.f32 %v6188_v45, %v6131_v21  ;;  %v6346_v54 = vadd.f32 %v6296_v59, %v6239_v30  ;;  %v6507_v55 = vmul.f32 %v10040_v32, %v13489_v43  ;;  %v6508_v52 = vmul.f32 %v10040_v32, %v13509_v13  ;;  %v13772_v21 = vld [vmem:[#allocation2] sm:$0xff]  ;;  %v7003_v59 = vld [vmem:[#allocation4 + $0x7c] sm:$0xff] }
 0x2cf   : > { %v6552_v37 = vadd.f32 %v6502_v17, %v6447_v6  ;;  %v6553_v7 = vadd.f32 %v6503_v62, %v6448_v38  ;;  %v6817_v43 = vmul.f32 %v13772_v21, %v9863_v51  ;;  %v6855_v10 = vmul.f32 %v9864_v5, %v6835_v41  ;;  %v9865_v45 = vld [vmem:[%s16067_s27 + $0x2] ss:$0 sm:$0xff]  ;;  %v9866_v13 = vld [vmem:[%s16067_s27 + $0x3] ss:$0 sm:$0xff]  ;;  %v13788_v17 = vld [vmem:[#allocation4 + $0x94] sm:$0xff] }
 0x2d0   : > { %v6345_v58 = vadd.f32 %v6295_v8, %v6238_v22  ;;  %v6453_v48 = vadd.f32 %v6403_v4, %v6346_v54  ;;  %v6856_v35 = vmul.f32 %v9864_v5, %v6836_v42  ;;  %v6911_v60 = vmul.f32 %v9865_v45, %v6891_v16  ;;  %v6947_v22 = vld [vmem:[#allocation4 + $0x7b] sm:$0xff]  ;;  %v6948_v30 = vld [vmem:[#allocation4 + $0x83] sm:$0xff]  ;;  %v9868_v54 = vld [vmem:[%s16067_s27 + $0x5] ss:$0 sm:$0xff] }
 0x2d1   : > { %6602 = vst [vmem:[#allocation6 + $0x50] sm:$0xff] %v6552_v37  ;;  %v6873_v61 = vadd.f32 %v6855_v10, %v6817_v43  ;;  %v6912_v57 = vmul.f32 %v9865_v45, %v6892_v14  ;;  %v6967_v8 = vmul.f32 %v9866_v13, %v6947_v22  ;;  %v6968_v39 = vmul.f32 %v9866_v13, %v6948_v30  ;;  %v7004_v15 = vld [vmem:[#allocation4 + $0x84] sm:$0xff]  ;;  %v10042_v4 = vld [vmem:[#allocation3 + $0xc0] sm:$0xff]  ;;  %v9870_v41 = vld [vmem:[%s16067_s27 + $0x7] ss:$0 sm:$0xff] }
 0x2d2   : > { %v6452_v47 = vadd.f32 %v6402_v53, %v6345_v58  ;;  %v6558_v24 = vadd.f32 %v6508_v52, %v6453_v48  ;;  %6603 = vst [vmem:[#allocation6 + $0x58] sm:$0xff] %v6553_v7  ;;  %v6874_v2 = vadd.f32 %v6856_v35, %v6817_v43  ;;  %v4872_v28 = vadd.f32 %v4822_v31, %v4720_v33  ;;  %v9869_v33 = vld [vmem:[%s16067_s27 + $0x6] ss:$0 sm:$0xff]  ;;  %v7098_v48 = vld [vmem:[#allocation4 + $0x85] sm:$0xff]  ;;  %v9871_v45 = vld [vmem:[%s16067_s27 + $0x8] ss:$0 sm:$0xff] }
 0x2d3   : > { %v6929_v26 = vadd.f32 %v6911_v60, %v6873_v61  ;;  %v7023_v58 = vmul.f32 %v9867_v46, %v7003_v59  ;;  %v7024_v53 = vmul.f32 %v9867_v46, %v7004_v15  ;;  %v4923_v6 = vmul.f32 %v10042_v4, %v13612_v25  ;;  %v7099_v52 = vld [vmem:[#allocation4 + $0x8d] sm:$0xff] }
 0x2d4   : > { %v6557_v18 = vadd.f32 %v6507_v55, %v6452_v47  ;;  %6608 = vst [vmem:[#allocation6 + $0x80] sm:$0xff] %v6558_v24  ;;  %v6930_v11 = vadd.f32 %v6912_v57, %v6874_v2  ;;  %v7062_v62 = vmul.f32 %v9868_v54, %v7004_v15  ;;  %v7063_v47 = vmul.f32 %v9868_v54, %v7005_v49  ;;  %v16068_v55 = vld [vmem:[#allocation27_spill] sm:$0xff]  ;;  %v7155_v10 = vld [vmem:[#allocation4 + $0x8e] sm:$0xff] }
 0x2d5   : > { %v6985_v32 = vadd.f32 %v6967_v8, %v6929_v26  ;;  %v4973_v51 = vadd.f32 %v4923_v6, %v16068_v55  ;;  %v5027_v5 = vmul.f32 %v13621_v27, %v13521_v44  ;;  %v7118_v37 = vmul.f32 %v9869_v33, %v7098_v48  ;;  %v7210_v13 = vld [vmem:[#allocation4 + $0x87] sm:$0xff]  ;;  %v7211_v22 = vld [vmem:[#allocation4 + $0x8f] sm:$0xff]  ;;  %v10043_v26 = vld [vmem:[#allocation3 + $0xe0] sm:$0xff] }
 0x2d6   : > { %6607 = vst [vmem:[#allocation6 + $0x78] sm:$0xff] %v6557_v18  ;;  %v6986_v38 = vadd.f32 %v6968_v39, %v6930_v11  ;;  %v7119_v7 = vmul.f32 %v9869_v33, %v7099_v52  ;;  %v7154_v18 = vld [vmem:[#allocation4 + $0x86] sm:$0xff]  ;;  %v7175_v14 = vmul.f32 %v9870_v41, %v7155_v10  ;;  %v7230_v30 = vmul.f32 %v9871_v45, %v7210_v13  ;;  %v9872_v46 = vld [vmem:[%s16067_s27 + $0x9] ss:$0 sm:$0xff]  ;;  %v16069_v11 = vld [vmem:[#allocation19_spill] sm:$0xff] }
 0x2d7   : > { %v7174_v16 = vmul.f32 %v9870_v41, %v7154_v18  ;;  %v5077_v61 = vadd.f32 %v5027_v5, %v4973_v51  ;;  %v7231_v8 = vmul.f32 %v9871_v45, %v7211_v22  ;;  %v7270_v59 = vmul.f32 %v13772_v21, %v9872_v46  ;;  %v9873_v6 = vld [vmem:[%s16067_s27 + $0xa] ss:$0 sm:$0xff]  ;;  %v10044_v5 = vld [vmem:[#allocation3 + $0xd2] sm:$0xff]  ;;  %v7413_v45 = vld [vmem:[#allocation4 + $0x9b] sm:$0xff] }
 0x2d8   : > { %v7042_v42 = vadd.f32 %v7024_v53, %v6986_v38  ;;  %v4927_v15 = vmul.f32 %v10043_v26, %v13612_v25  ;;  %v5134_v49 = vmul.f32 %v13605_v20, %v16062_v3  ;;  %v13811_v54 = vadd.f32 %v13723_v1, %v13719_v36  ;;  %v9874_v25 = vld [vmem:[%s16067_s27 + $0xb] ss:$0 sm:$0xff]  ;;  %v7331_v1 = vld [vmem:[#allocation4 + $0x99] sm:$0xff]  ;;  %v7454_v46 = vld [vmem:[#allocation4 + $0xa4] sm:$0xff] }
 0x2d9   : > { %v6646_v24 = vld [vmem:[#allocation6 + $0x50] ss:$2 sm:$0xff]  ;;  %v5031_v53 = vmul.f32 %v13621_v27, %v16069_v11  ;;  %v7330_v33 = vld [vmem:[#allocation4 + $0x91] sm:$0xff]  ;;  %v7308_v36 = vmul.f32 %v13772_v21, %v9873_v6  ;;  %v7351_v48 = vmul.f32 %v9874_v25, %v7331_v1  ;;  %v3472_v6 = vpop.f32.mrf.mxu1 }
 0x2da   : > { %v7081_v44 = vadd.f32 %v7063_v47, %v7042_v42  ;;  %v7350_v38 = vmul.f32 %v9874_v25, %v7330_v33  ;;  %v9875_v27 = vld [vmem:[%s16067_s27 + $0xc] ss:$0 sm:$0xff]  ;;  %v9876_v42 = vld [vmem:[%s16067_s27 + $0xd] ss:$0 sm:$0xff]  ;;  %v7453_v13 = vld [vmem:[#allocation4 + $0x9c] sm:$0xff] }
 0x2db   : > { %v3505_v29 = vpop.f32.mrf.mxu3  ;;  %v7371_v55 = vld [vmem:[#allocation4 + $0x92] sm:$0xff]  ;;  %v10045_v25 = vld [vmem:[#allocation3 + $0xe4] sm:$0xff] }
 0x2dc   : > { %v7041_v29 = vadd.f32 %v7023_v58, %v6985_v32  ;;  %v7137_v2 = vadd.f32 %v7119_v7, %v7081_v44  ;;  %v4977_v32 = vadd.f32 %v4927_v15, %v4872_v28  ;;  %v7391_v41 = vmul.f32 %v9875_v27, %v7371_v55  ;;  %v7532_v15 = vld [vmem:[#allocation4 + $0x9d] sm:$0xff]  ;;  %v9880_v33 = vld [vmem:[%s16067_s27 + $0x11] ss:$0 sm:$0xff]  ;;  %v7615_v55 = vld [vmem:[#allocation4 + $0xa7] sm:$0xff] }
 0x2dd   : > { %v6648_v35 = vld [vmem:[#allocation6 + $0x78] ss:$2 sm:$0xff]  ;;  %v7614_v1 = vld [vmem:[#allocation4 + $0x9f] sm:$0xff] }
 0x2de   : > { %v7080_v43 = vadd.f32 %v7062_v62, %v7041_v29  ;;  %v6658_v60 = vpack.c.bf16 %v6648_v35, %v6646_v24  ;;  %v7193_v58 = vadd.f32 %v7175_v14, %v7137_v2  ;;  %v5184_v62 = vadd.f32 %v5134_v49, %v5077_v61  ;;  %v16070_v29 = vld [vmem:[#allocation35_spill] sm:$0xff]  ;;  %v9877_v35 = vld [vmem:[%s16067_s27 + $0xe] ss:$0 sm:$0xff] }
 0x2df   : > { %v5081_v51 = vadd.f32 %v5031_v53, %v4977_v32  ;;  %v5241_v52 = vmul.f32 %v10044_v5, %v16070_v29  ;;  %v7433_v14 = vmul.f32 %v9876_v42, %v7413_v45  ;;  %v16071_v61 = vld [vmem:[#allocation23_spill] sm:$0xff]  ;;  %v7472_v2 = vmul.f32 %v9877_v35, %v13788_v17 }
 0x2e0   : > { %v7136_v57 = vadd.f32 %v7118_v37, %v7080_v43  ;;  %6742 = vmatmul.bf16.gmra.mxu2 %v6658_v60  ;;  %v7249_v3 = vadd.f32 %v7231_v8, %v7193_v58  ;;  %v7372_v37 = vld [vmem:[#allocation4 + $0x9a] sm:$0xff]  ;;  %v5138_v60 = vmul.f32 %v13605_v20, %v16071_v61  ;;  %v13837_v8 = vld [vmem:[#allocation4 + $0xac] sm:$0xff]  ;;  %v7473_v26 = vmul.f32 %v9877_v35, %v7453_v13 }
 0x2e1   : > { %v7392_v18 = vmul.f32 %v9875_v27, %v7372_v37  ;;  %v7412_v43 = vld [vmem:[#allocation4 + $0x93] sm:$0xff]  ;;  %v5291_v10 = vadd.f32 %v5241_v52, %v5184_v62  ;;  %v7533_v20 = vld [vmem:[#allocation4 + $0xa5] sm:$0xff] }
 0x2e2   : > { %v7192_v39 = vadd.f32 %v7174_v16, %v7136_v57  ;;  %v7289_v47 = vadd.f32 %v7270_v59, %v7249_v3  ;;  %v7432_v24 = vmul.f32 %v9876_v42, %v7412_v43  ;;  %v16072_v57 = vld [vmem:[#allocation31_spill] sm:$0xff]  ;;  %v7574_v3 = vld [vmem:[#allocation4 + $0xa6] sm:$0xff] }
 0x2e3   : > { %v3506_v31 = vpop.f32.mrf.mxu3  ;;  %v5348_v22 = vmul.f32 %v16072_v57, %v16066_v40  ;;  %v9879_v40 = vld [vmem:[%s16067_s27 + $0x10] ss:$0 sm:$0xff]  ;;  %v7573_v17 = vld [vmem:[#allocation4 + $0x9e] sm:$0xff]  ;;  %v9881_v5 = vld [vmem:[%s16067_s27 + $0x12] ss:$0 sm:$0xff]  ;;  %v7594_v52 = vmul.f32 %v9880_v33, %v7574_v3 }
 0x2e4   : > { %v7248_v4 = vadd.f32 %v7230_v30, %v7192_v39  ;;  %v7328_v7 = vadd.f32 %v7308_v36, %v7289_v47  ;;  %v9878_v39 = vld [vmem:[%s16067_s27 + $0xf] ss:$0 sm:$0xff]  ;;  %v7552_v62 = vmul.f32 %v9879_v40, %v7532_v15  ;;  %v7634_v37 = vmul.f32 %v9881_v5, %v7614_v1  ;;  %v13891_v1 = vld [vmem:[%s15956_s0 + $0x10] ss:$0 sm:$0xff] }
 0x2e5   : > { %v5398_v49 = vadd.f32 %v5348_v22, %v5291_v10  ;;  %v7511_v11 = vmul.f32 %v9878_v39, %v7453_v13  ;;  %v7635_v42 = vmul.f32 %v9881_v5, %v7615_v55  ;;  %v7734_v10 = vld [vmem:[#allocation4 + $0xa9] sm:$0xff]  ;;  %v7817_v15 = vld [vmem:[#allocation4 + $0xb3] sm:$0xff] }
 0x2e6   : > { %v7288_v31 = vadd.f32 %v7270_v59, %v7248_v4  ;;  %v7369_v44 = vadd.f32 %v7351_v48, %v7328_v7  ;;  %v7512_v4 = vmul.f32 %v9878_v39, %v7454_v46  ;;  %v7593_v48 = vmul.f32 %v9880_v33, %v7573_v17  ;;  %v9882_v7 = vld [vmem:[%s16067_s27 + $0x13] ss:$0 sm:$0xff]  ;;  %v4619_v33 = vld [vmem:[#allocation3 + $0xe6] sm:$0xff] }
 0x2e7   : > { %v13863_v61 = vmul.f32 %v13772_v21, %v9882_v7 }
 0x2e8   : > { %v7327_v28 = vadd.f32 %v7308_v36, %v7288_v31  ;;  %v7410_v59 = vadd.f32 %v7392_v18, %v7369_v44  ;;  %v7553_v36 = vmul.f32 %v9879_v40, %v7533_v20  ;;  %v5188_v18 = vadd.f32 %v5138_v60, %v5081_v51  ;;  %v9884_v44 = vld [vmem:[%s16067_s27 + $0x15] ss:$0 sm:$0xff]  ;;  %v9885_v51 = vld [vmem:[%s16067_s27 + $0x16] ss:$0 sm:$0xff]  ;;  %v9886_v20 = vld [vmem:[%s16067_s27 + $0x17] ss:$0 sm:$0xff] }
 0x2e9   : > { %16073 = vst [vmem:[#allocation37_spill] sm:$0xff] %v13863_v61  ;;  %v7754_v22 = vmul.f32 %v9884_v44, %v7734_v10 }
 0x2ea   : > { %v7368_v16 = vadd.f32 %v7350_v38, %v7327_v28  ;;  %v7451_v53 = vadd.f32 %v7433_v14, %v7410_v59  ;;  %v10046_v38 = vld [vmem:[#allocation3 + $0xd4] sm:$0xff] }
 0x2eb   : > { %v5453_v27 = vmul.f32 %v10046_v38, %v13639_v0  ;;  %v9883_v0 = vld [vmem:[%s16067_s27 + $0x14] ss:$0 sm:$0xff]  ;;  %v7775_v14 = vld [vmem:[#allocation4 + $0xaa] sm:$0xff]  ;;  %v5664_v38 = vmul.f32 %v13891_v1, %v13715_v50 }
 0x2ec   : > { %v7409_v30 = vadd.f32 %v7391_v41, %v7368_v16  ;;  %v7491_v31 = vadd.f32 %v7473_v26, %v7451_v53  ;;  %v7735_v16 = vld [vmem:[#allocation4 + $0xb1] sm:$0xff]  ;;  %v13869_v57 = vmul.f32 %v13772_v21, %v9883_v0  ;;  %v7795_v39 = vmul.f32 %v9885_v51, %v7775_v14 }
 0x2ed   : > { %v5503_v45 = vadd.f32 %v5453_v27, %v5398_v49  ;;  %v7816_v26 = vld [vmem:[#allocation4 + $0xab] sm:$0xff]  ;;  %v13876_v49 = vld [vmem:[%s15959_s10] ss:$0 sm:$0xff] }
 0x2ee   : > { %v7450_v58 = vadd.f32 %v7432_v24, %v7409_v30  ;;  %v7530_v29 = vadd.f32 %v7512_v4, %v7491_v31  ;;  %v5557_v24 = vmul.f32 %v10045_v25, %v13644_v63  ;;  %16074 = vst [vmem:[#allocation17_spill] sm:$0xff] %v13869_v57  ;;  %v7776_v63 = vld [vmem:[#allocation4 + $0xb2] sm:$0xff]  ;;  %v3474_v30 = vpop.f32.mrf.mxu1  ;;  %v7836_v25 = vmul.f32 %v9886_v20, %v7816_v26 }
 0x2ef   : > { %v3475_v40 = vadd.f32 %v13876_v49, %v3474_v30  ;;  %v4165_v30 = vadd.f32 %v13693_v19, %v13699_v56 }
 0x2f0   : > { %v7490_v32 = vadd.f32 %v7472_v2, %v7450_v58  ;;  %v7571_v41 = vadd.f32 %v7553_v36, %v7530_v29  ;;  %v7755_v2 = vmul.f32 %v9884_v44, %v7735_v16  ;;  %v3473_v58 = vadd.f32 %v13876_v49, %v3472_v6  ;;  %v9887_v6 = vld [vmem:[%s16067_s27 + $0x18] ss:$0 sm:$0xff]  ;;  %v13901_v29 = vld [vmem:[%s15956_s0 + $0x7] ss:$0 sm:$0xff] }
 0x2f1   : > { %v3536_v3 = vmax.f32 %v3475_v40, 0.0 }
 0x2f2   : > { %v7529_v47 = vadd.f32 %v7511_v11, %v7490_v32  ;;  %v7612_v35 = vadd.f32 %v7594_v52, %v7571_v41  ;;  %v7796_v11 = vmul.f32 %v9885_v51, %v7776_v63  ;;  %v3535_v4 = vmax.f32 %v3473_v58, 0.0  ;;  %v4771_v41 = vld [vmem:[#allocation3 + $0xe7] sm:$0xff]  ;;  %v13957_v58 = vld [vmem:[%s15956_s0] ss:$0 sm:$0xff] }
 0x2f3   : > { %v7837_v32 = vmul.f32 %v9886_v20, %v7817_v15  ;;  %v4671_v52 = vmul.f32 %v13901_v29, %v4619_v33  ;;  %v10059_v20 = vld [vmem:[#allocation3 + $0xe8] sm:$0xff] }
 0x2f4   : > { %v7570_v28 = vadd.f32 %v7552_v62, %v7529_v47  ;;  %v7653_v60 = vadd.f32 %v7635_v42, %v7612_v35  ;;  %v7857_v62 = vld [vmem:[#allocation4 + $0xb4] sm:$0xff]  ;;  %v3571_v36 = vmin.f32 %v3535_v4, 6.0  ;;  %v7876_v47 = vmul.f32 %v9887_v6, %v13837_v8 }
 0x2f5   : > { %v7877_v5 = vmul.f32 %v9887_v6, %v7857_v62  ;;  %v5607_v42 = vadd.f32 %v5557_v24, %v5503_v45  ;;  %v4721_v0 = vadd.f32 %v4671_v52, %v13811_v54  ;;  %v13924_v24 = vld [vmem:[%s15956_s0 + $0x9] ss:$0 sm:$0xff]  ;;  %v13929_v54 = vld [vmem:[%s15956_s0 + $0xd] ss:$0 sm:$0xff]  ;;  %v13984_v62 = vld [vmem:[%s15956_s0 + $0x2] ss:$0 sm:$0xff] }
 0x2f6   : > { %v7611_v43 = vadd.f32 %v7593_v48, %v7570_v28  ;;  %v7693_v59 = vadd.f32 %v13863_v61, %v7653_v60  ;;  %v13896_v48 = vmin.f32 %v3536_v3, 6.0  ;;  %3612 = vst [vmem:[#allocation3 + $0xfe] sm:$0xf] %v3571_v36  ;;  %v13907_v28 = vld [vmem:[%s15956_s0 + $0xc] ss:$0 sm:$0xff]  ;;  %v4928_v40 = vmul.f32 %v10059_v20, %v13924_v24 }
 0x2f7   : > { %v5245_v50 = vmul.f32 %v13907_v28, %v13678_v12  ;;  %3613 = vst [vmem:[#allocation3 + $0x100] sm:$0xc0] %v3571_v36  ;;  %v5714_v35 = vadd.f32 %v5664_v38, %v5607_v42  ;;  %v13917_v12 = vld [vmem:[%s15956_s0 + $0x4] ss:$0 sm:$0xff]  ;;  %v13942_v60 = vld [vmem:[%s15956_s0 + $0x12] ss:$0 sm:$0xff] }
 0x2f8   : > { %v7652_v13 = vadd.f32 %v7634_v37, %v7611_v43  ;;  %v7732_v53 = vadd.f32 %v13869_v57, %v7693_v59  ;;  %v3477_v37 = vpop.f32.mrf.mxu1  ;;  %3614 = vst [vmem:[#allocation3 + $0x108] sm:$0xff] %v13896_v48  ;;  %v4267_v45 = vmul.f32 %v13917_v12, %v13708_v9  ;;  %v13990_v3 = vld [vmem:[%s15956_s0 + $0x13] ss:$0 sm:$0xff] }
 0x2f9   : > { %v3478_v43 = vadd.f32 %v13876_v49, %v3477_v37  ;;  %v5295_v10 = vadd.f32 %v5245_v50, %v5188_v18  ;;  %v5352_v18 = vmul.f32 %v13929_v54, %v13684_v34  ;;  %v4932_v50 = vmul.f32 %v13924_v24, %v13896_v48  ;;  %v14016_v37 = vld [vmem:[%s15956_s0 + $0x3] ss:$0 sm:$0xff] }
 0x2fa   : > { %v7692_v46 = vadd.f32 %v13863_v61, %v7652_v13  ;;  %v7773_v31 = vadd.f32 %v7755_v2, %v7732_v53  ;;  %v13936_v13 = vld [vmem:[%s15956_s0 + $0x8] ss:$0 sm:$0xff]  ;;  %v13971_v53 = vld [vmem:[%s15956_s0 + $0xe] ss:$0 sm:$0xff]  ;;  %v4317_v52 = vadd.f32 %v4267_v45, %v4165_v30  ;;  %v14038_v30 = vld [vmem:[%s15956_s0 + $0x14] ss:$0 sm:$0xff] }
 0x2fb   : > { %v3537_v14 = vmax.f32 %v3478_v43, 0.0  ;;  %v4823_v51 = vmul.f32 %v13936_v13, %v4771_v41  ;;  %v5402_v2 = vadd.f32 %v5352_v18, %v5295_v10  ;;  %v5457_v4 = vmul.f32 %v13971_v53, %v13708_v9  ;;  %v10231_v61 = vld [vmem:[%s15954_s5 + $0x3] ss:$0 sm:$0xff] }
 0x2fc   : > { %v7731_v21 = vadd.f32 %v13869_v57, %v7692_v46  ;;  %v7814_v55 = vadd.f32 %v7796_v11, %v7773_v31  ;;  %v13964_v11 = vld [vmem:[%s15956_s0 + $0x1] ss:$0 sm:$0xff] }
 0x2fd   : > { %v3573_v63 = vmin.f32 %v3537_v14, 6.0  ;;  %v4873_v46 = vadd.f32 %v4823_v51, %v4721_v0  ;;  %v3760_v59 = vld [vmem:[#allocation3 + $0xf9] sm:$0xff]  ;;  %v5507_v31 = vadd.f32 %v5457_v4, %v5402_v2 }
 0x2fe   : > { %v7772_v17 = vadd.f32 %v7754_v22, %v7731_v21  ;;  %v7855_v7 = vadd.f32 %v7837_v32, %v7814_v55  ;;  %v13947_v22 = vld [vmem:[%s15956_s0 + $0x11] ss:$0 sm:$0xff]  ;;  %v3812_v19 = vmul.f32 %v13964_v11, %v3760_v59  ;;  %v14005_v55 = vld [vmem:[%s15956_s0 + $0xa] ss:$0 sm:$0xff]  ;;  %v14028_v0 = vld [vmem:[%s15956_s0 + $0xb] ss:$0 sm:$0xff] }
 0x2ff   : > { %v5771_v34 = vmul.f32 %v13947_v22, %v4619_v33  ;;  %v3912_v26 = vld [vmem:[#allocation3 + $0xfa] sm:$0xff]  ;;  %3615 = vst [vmem:[#allocation3 + $0x110] sm:$0x3f] %v3573_v63  ;;  %v4978_v9 = vadd.f32 %v4928_v40, %v4873_v46  ;;  %v13995_v33 = vld [vmem:[%s15956_s0 + $0x6] ss:$0 sm:$0xff]  ;;  %v4471_v18 = vld [vmem:[#allocation3 + $0x105] sm:$0xff] }
 0x300   : > { %v7813_v27 = vadd.f32 %v7795_v39, %v7772_v17  ;;  %v7895_v44 = vadd.f32 %v7877_v5, %v7855_v7  ;;  %v13952_v39 = vld [vmem:[#allocation3 + $0xf8] sm:$0xff]  ;;  %v5878_v17 = vmul.f32 %v13942_v60, %v4771_v41  ;;  %v3964_v6 = vmul.f32 %v13984_v62, %v3912_v26  ;;  %v3479_v45 = vpop.f32.mrf.mxu1  ;;  %v4623_v63 = vld [vmem:[#allocation3 + $0x106] sm:$0xff] }
 0x301   : > { %v5821_v15 = vadd.f32 %v5771_v34, %v5714_v35  ;;  %v3710_v21 = vmul.f32 %v13957_v58, %v13952_v39  ;;  %v4216_v56 = vld [vmem:[#allocation3 + $0xfc] sm:$0xff]  ;;  %v5032_v5 = vmul.f32 %v14005_v55, %v13952_v39  ;;  %v5246_v10 = vmul.f32 %v13907_v28, %v3912_v26 }
 0x302   : > { %v7854_v8 = vadd.f32 %v7836_v25, %v7813_v27  ;;  %7913 = vst [vmem:[#allocation6 + $0x80] sm:$0xff] %v7895_v44  ;;  %v13979_v25 = vld [vmem:[%s15956_s0 + $0x5] ss:$0 sm:$0xff]  ;;  %v14000_v27 = vmul.f32 %v13990_v3, %v10059_v20  ;;  %v14022_v7 = vld [vmem:[%s15956_s0 + $0xf] ss:$0 sm:$0xff]  ;;  %v4268_v43 = vmul.f32 %v13917_v12, %v4216_v56  ;;  %v5458_v14 = vmul.f32 %v13971_v53, %v4216_v56 }
 0x303   : > { %v3862_v32 = vadd.f32 %v3812_v19, %v3710_v21  ;;  %v13997_v36 = vadd.f32 %v5878_v17, %v5821_v15  ;;  %v5082_v42 = vadd.f32 %v5032_v5, %v4978_v9  ;;  %v4523_v2 = vmul.f32 %v13995_v33, %v4471_v18  ;;  %v14048_v17 = vld [vmem:[%s15956_s0 + $0x15] ss:$0 sm:$0xff] }
 0x304   : > { %v7894_v16 = vadd.f32 %v7876_v47, %v7854_v8  ;;  %v4064_v47 = vld [vmem:[#allocation3 + $0xfb] sm:$0xff]  ;;  %v5987_v8 = vmul.f32 %v13990_v3, %v13896_v48  ;;  %v5139_v48 = vmul.f32 %v14028_v0, %v3760_v59  ;;  %v4775_v59 = vld [vmem:[#allocation3 + $0x107] sm:$0xff]  ;;  %v4675_v19 = vmul.f32 %v13901_v29, %v4623_v63 }
 0x305   : > { %v4014_v38 = vadd.f32 %v3964_v6, %v3862_v32  ;;  %v4116_v41 = vmul.f32 %v14016_v37, %v4064_v47  ;;  %v5353_v44 = vmul.f32 %v13929_v54, %v4064_v47  ;;  %v5668_v20 = vmul.f32 %v13891_v1, %v4471_v18  ;;  %v14054_v47 = vld [vmem:[%s15956_s0 + $0x16] ss:$0 sm:$0xff] }
 0x306   : > { %7912 = vst [vmem:[#allocation6 + $0x78] sm:$0xff] %v7894_v16  ;;  %v4217_v16 = vld [vmem:[#allocation3 + $0x104] sm:$0xff]  ;;  %v5189_v51 = vadd.f32 %v5139_v48, %v5082_v42  ;;  %v4827_v4 = vmul.f32 %v13936_v13, %v4775_v59  ;;  %v5775_v6 = vmul.f32 %v13947_v22, %v4623_v63  ;;  %v4472_v48 = vld [vmem:[#allocation3 + $0x10d] sm:$0xff] }
 0x307   : > { %v4166_v35 = vadd.f32 %v4116_v41, %v4014_v38  ;;  %v4371_v34 = vmul.f32 %v13979_v25, %v4217_v16  ;;  %v5561_v26 = vmul.f32 %v14022_v7, %v4217_v16  ;;  %v5882_v41 = vmul.f32 %v13942_v60, %v4775_v59 }
 0x308   : > { %v5296_v15 = vadd.f32 %v5246_v10, %v5189_v51  ;;  %v3482_v5 = vpop.f32.mrf.mxu1  ;;  %v4624_v51 = vld [vmem:[#allocation3 + $0x10e] sm:$0xff]  ;;  %v4524_v63 = vmul.f32 %v13995_v33, %v4472_v48 }
 0x309   : > { %v4421_v46 = vadd.f32 %v4371_v34, %v4317_v52  ;;  %v5611_v56 = vadd.f32 %v5561_v26, %v5507_v31  ;;  %v4218_v31 = vld [vmem:[#allocation3 + $0x10c] sm:$0xff]  ;;  %v4318_v16 = vadd.f32 %v4268_v43, %v4166_v35  ;;  %v4676_v26 = vmul.f32 %v13901_v29, %v4624_v51 }
 0x30a   : > { %v5403_v9 = vadd.f32 %v5353_v44, %v5296_v15  ;;  %v4372_v18 = vmul.f32 %v13979_v25, %v4218_v31  ;;  %v3661_v15 = vld [vmem:[#allocation3 + $0x110] sm:$0xff]  ;;  %v6087_v43 = vmul.f32 %v14038_v30, %v13952_v39  ;;  %v14079_v39 = vld [vmem:[%s15956_s0 + $0x17] ss:$0 sm:$0xff] }
 0x30b   : > { %v4573_v21 = vadd.f32 %v4523_v2, %v4421_v46  ;;  %v5718_v32 = vadd.f32 %v5668_v20, %v5611_v56  ;;  %v4776_v46 = vld [vmem:[#allocation3 + $0x10f] sm:$0xff]  ;;  %v4933_v56 = vmul.f32 %v13924_v24, %v3661_v15 }
 0x30c   : > { %v4422_v34 = vadd.f32 %v4372_v18, %v4318_v16  ;;  %v4828_v59 = vmul.f32 %v13936_v13, %v4776_v46 }
 0x30d   : > { %v4725_v40 = vadd.f32 %v4675_v19, %v4573_v21  ;;  %v5825_v52 = vadd.f32 %v5775_v6, %v5718_v32  ;;  %v5508_v21 = vadd.f32 %v5458_v14, %v5403_v9  ;;  %v5562_v19 = vmul.f32 %v14022_v7, %v4218_v31 }
 0x30e   : > { %v4574_v2 = vadd.f32 %v4524_v63, %v4422_v34  ;;  %v5776_v6 = vmul.f32 %v13947_v22, %v4624_v51  ;;  %v5883_v9 = vmul.f32 %v13942_v60, %v4776_v46  ;;  %v5988_v31 = vmul.f32 %v13990_v3, %v3661_v15 }
 0x30f   : > { %v4877_v38 = vadd.f32 %v4827_v4, %v4725_v40  ;;  %v5932_v10 = vadd.f32 %v5882_v41, %v5825_v52  ;;  %v5612_v20 = vadd.f32 %v5562_v19, %v5508_v21  ;;  %v5669_v40 = vmul.f32 %v13891_v1, %v4472_v48 }
 0x310   : > { %v3484_v35 = vpop.f32.mrf.mxu1  ;;  %v3483_v48 = vadd.f32 %v13876_v49, %v3482_v5  ;;  %v6033_v15 = vadd.f32 %v14000_v27, %v13997_v36 }
 0x311   : > { %v14057_v42 = vadd.f32 %v4932_v50, %v4877_v38  ;;  %v14060_v44 = vadd.f32 %v5987_v8, %v5932_v10  ;;  %v4726_v50 = vadd.f32 %v4676_v26, %v4574_v2  ;;  %v5719_v32 = vadd.f32 %v5669_v40, %v5612_v20 }
 0x312   : > { %v3480_v38 = vadd.f32 %v13876_v49, %v3479_v45  ;;  %v3485_v10 = vadd.f32 %v13876_v49, %v3484_v35  ;;  %v14086_v45 = vld [vmem:[%s15956_s0 + $0x18] ss:$0 sm:$0xff]  ;;  %v3539_v34 = vmax.f32 %v3483_v48, 0.0 }
 0x313   : > { %v4878_v8 = vadd.f32 %v4828_v59, %v4726_v50  ;;  %v5826_v14 = vadd.f32 %v5776_v6, %v5719_v32  ;;  %v14101_v50 = vadd.f32 %v6087_v43, %v6033_v15 }
 0x314   : > { %v3538_v52 = vmax.f32 %v3480_v38, 0.0  ;;  %v3540_v63 = vmax.f32 %v3485_v10, 0.0  ;;  %v14094_v2 = vmin.f32 %v3539_v34, 6.0 }
 0x315   : > { %v14070_v4 = vadd.f32 %v4933_v56, %v4878_v8  ;;  %v5933_v41 = vadd.f32 %v5883_v9, %v5826_v14 }
 0x316   : > { %v14088_v16 = vmin.f32 %v3538_v52, 6.0  ;;  %v3576_v5 = vmin.f32 %v3540_v63, 6.0  ;;  %3617 = vst [vmem:[#allocation3 + $0x122] sm:$0xff] %v14094_v2  ;;  %v3969_v27 = vmul.f32 %v13984_v62, %v14094_v2  ;;  %v5251_v43 = vmul.f32 %v13907_v28, %v14094_v2 }
 0x317   : > { %v14090_v51 = vadd.f32 %v5988_v31, %v5933_v41 }
 0x318   : > { %v3487_v18 = vpop.f32.mrf.mxu1  ;;  %3616 = vst [vmem:[#allocation3 + $0x11a] sm:$0xff] %v14088_v16  ;;  %v3968_v56 = vmul.f32 %v13984_v62, %v14088_v16  ;;  %v5250_v36 = vmul.f32 %v13907_v28, %v14088_v16 }
 0x319   : > { %v3488_v46 = vadd.f32 %v13876_v49, %v3487_v18  ;;  %3618 = vst [vmem:[#allocation3 + $0x12c] sm:$0xfc] %v3576_v5 }
 0x31b   : > { %v3541_v26 = vmax.f32 %v3488_v46, 0.0 }
 0x31d   : > { %v14099_v59 = vmin.f32 %v3541_v26, 6.0  ;;  %v14125_v34 = vld [vmem:[#allocation3 + $0x123] sm:$0xff] }
 0x31e   : > { %v14127_v63 = vld [vmem:[#allocation3 + $0x124] sm:$0xff]  ;;  %v4121_v26 = vmul.f32 %v14016_v37, %v14125_v34 }
 0x31f   : > { %3619 = vst [vmem:[#allocation3 + $0x134] sm:$0xff] %v14099_v59  ;;  %v3662_v21 = vld [vmem:[#allocation3 + $0x118] sm:$0xff]  ;;  %v3663_v14 = vld [vmem:[#allocation3 + $0x120] sm:$0xff]  ;;  %v4273_v15 = vmul.f32 %v13917_v12, %v14127_v63 }
 0x320   : > { %v3764_v19 = vld [vmem:[#allocation3 + $0x119] sm:$0xff]  ;;  %v3714_v35 = vmul.f32 %v13957_v58, %v3662_v21  ;;  %v5036_v40 = vmul.f32 %v14005_v55, %v3662_v21  ;;  %v3765_v9 = vld [vmem:[#allocation3 + $0x121] sm:$0xff]  ;;  %v3715_v41 = vmul.f32 %v13957_v58, %v3663_v14  ;;  %v14130_v46 = vmul.f32 %v14038_v30, %v3662_v21 }
 0x321   : > { %v3816_v8 = vmul.f32 %v13964_v11, %v3764_v19  ;;  %v5143_v38 = vmul.f32 %v14028_v0, %v3764_v19  ;;  %v14117_v31 = vld [vmem:[#allocation3 + $0x11b] sm:$0xff]  ;;  %v3817_v62 = vmul.f32 %v13964_v11, %v3765_v9  ;;  %v14135_v11 = vmul.f32 %v14048_v17, %v3764_v19 }
 0x322   : > { %v5086_v6 = vadd.f32 %v5036_v40, %v14057_v42  ;;  %v4120_v28 = vmul.f32 %v14016_v37, %v14117_v31  ;;  %v14123_v10 = vld [vmem:[#allocation3 + $0x11c] sm:$0xff]  ;;  %v5357_v21 = vmul.f32 %v13929_v54, %v14117_v31  ;;  %v5358_v40 = vmul.f32 %v13929_v54, %v14125_v34 }
 0x323   : > { %v3866_v20 = vadd.f32 %v3816_v8, %v3714_v35  ;;  %v3867_v18 = vadd.f32 %v3817_v62, %v3715_v41  ;;  %v4272_v58 = vmul.f32 %v13917_v12, %v14123_v10  ;;  %v5037_v8 = vmul.f32 %v14005_v55, %v3663_v14 }
 0x324   : > { %v5193_v52 = vadd.f32 %v5143_v38, %v5086_v6  ;;  %v5462_v37 = vmul.f32 %v13971_v53, %v14123_v10  ;;  %v5463_v55 = vmul.f32 %v13971_v53, %v14127_v63  ;;  %v4222_v6 = vld [vmem:[#allocation3 + $0x12c] sm:$0xff]  ;;  %v6092_v38 = vmul.f32 %v14038_v30, %v3663_v14  ;;  %v3489_v14 = vpop.f32.mrf.mxu1 }
 0x325   : > { %v4018_v32 = vadd.f32 %v3968_v56, %v3866_v20  ;;  %v4019_v5 = vadd.f32 %v3969_v27, %v3867_v18  ;;  %v5087_v56 = vadd.f32 %v5037_v8, %v14070_v4  ;;  %v3497_v8 = vpop.f32.mrf.mxu2 }
 0x326   : > { %v5300_v48 = vadd.f32 %v5250_v36, %v5193_v52  ;;  %v5144_v36 = vmul.f32 %v14028_v0, %v3765_v9  ;;  %v6199_v0 = vmul.f32 %v14048_v17, %v3765_v9  ;;  %v4376_v52 = vmul.f32 %v13979_v25, %v4222_v6  ;;  %v3665_v41 = vld [vmem:[#allocation3 + $0x130] sm:$0xff] }
 0x327   : > { %v4170_v42 = vadd.f32 %v4120_v28, %v4018_v32  ;;  %v4171_v20 = vadd.f32 %v4121_v26, %v4019_v5  ;;  %v4476_v54 = vld [vmem:[#allocation3 + $0x12d] sm:$0xff] }
 0x328   : > { %v5407_v27 = vadd.f32 %v5357_v21, %v5300_v48  ;;  %v5194_v19 = vadd.f32 %v5144_v36, %v5087_v56  ;;  %v5566_v48 = vmul.f32 %v14022_v7, %v4222_v6  ;;  %v4628_v62 = vld [vmem:[#allocation3 + $0x12e] sm:$0xff]  ;;  %v5673_v21 = vmul.f32 %v13891_v1, %v4476_v54 }
 0x329   : > { %v4322_v35 = vadd.f32 %v4272_v58, %v4170_v42  ;;  %v4780_v28 = vld [vmem:[#allocation3 + $0x12f] sm:$0xff]  ;;  %v4680_v53 = vmul.f32 %v13901_v29, %v4628_v62  ;;  %v4937_v58 = vmul.f32 %v13924_v24, %v3665_v41  ;;  %v5780_v36 = vmul.f32 %v13947_v22, %v4628_v62 }
 0x32a   : > { %v5301_v12 = vadd.f32 %v5251_v43, %v5194_v19  ;;  %v5512_v32 = vadd.f32 %v5462_v37, %v5407_v27  ;;  %v4528_v43 = vmul.f32 %v13995_v33, %v4476_v54  ;;  %v4832_v5 = vmul.f32 %v13936_v13, %v4780_v28 }
 0x32b   : > { %v4426_v18 = vadd.f32 %v4376_v52, %v4322_v35  ;;  %v5887_v35 = vmul.f32 %v13942_v60, %v4780_v28  ;;  %v5992_v29 = vmul.f32 %v13990_v3, %v3665_v41  ;;  %v3490_v13 = vadd.f32 %v13876_v49, %v3489_v14  ;;  %v14176_v49 = vld [vmem:[%s15959_s10] ss:$0 sm:$0xff]  ;;  %s817_s10 = sand.u32 1, %s10337_s4  }
 0x32c   : > { %v5408_v4 = vadd.f32 %v5358_v40, %v5301_v12  ;;  %v5616_v26 = vadd.f32 %v5566_v48, %v5512_v32  ;;  %v4323_v37 = vadd.f32 %v4273_v15, %v4171_v20  ;;  %v4377_v12 = vmul.f32 %v13979_v25, %v14099_v59  ;;  %v3492_v1 = vpop.f32.mrf.mxu1  ;;  %s9330_s11 = sshll.u32 %s817_s10, 4 }
 0x32d   : > { %v4578_v42 = vadd.f32 %v4528_v43, %v4426_v18  ;;  %v3542_v32 = vmax.f32 %v3490_v13, 0.0  ;;  %v3499_v6 = vpop.f32.mrf.mxu2  ;;  %v5567_v54 = vmul.f32 %v14022_v7, %v14099_v59  ;;  %v3498_v3 = vadd.f32 %v14176_v49, %v3497_v8  ;;  %v10077_v8 = vld [vmem:[#allocation3 + $0xdd] sm:$0xff]  ;;  %s15724_s8 = scalar_lea.vmem [#allocation7], %s9330_s11 }
 0x32e   : > { %v5723_v27 = vadd.f32 %v5673_v21, %v5616_v26  ;;  %v4427_v22 = vadd.f32 %v4377_v12, %v4323_v37  ;;  %v5513_v60 = vadd.f32 %v5463_v55, %v5408_v4  ;;  %v3493_v25 = vadd.f32 %v14176_v49, %v3492_v1  ;;  %v10082_v37 = vld [vmem:[%s15956_s0 + $0x9] ss:$0 sm:$0xff]  ;;  %s9208_s2 = sshll.u32 %s15724_s8, 4  ;;  %s9209_s2 = int_to_ptr.vmem [resolvable:$true] %s9208_s2 }
 0x32f   : > { %v4730_v9 = vadd.f32 %v4680_v53, %v4578_v42  ;;  %v3578_v48 = vmin.f32 %v3542_v32, 6.0  ;;  %v3500_v15 = vadd.f32 %v14176_v49, %v3499_v6  ;;  %v6141_v20 = vadd.f32 %v14130_v46, %v14060_v44 }
 0x330   : > { %v5830_v40 = vadd.f32 %v5780_v36, %v5723_v27  ;;  %v5617_v55 = vadd.f32 %v5567_v54, %v5513_v60  ;;  %v3545_v4 = vmax.f32 %v3498_v3, 0.0  ;;  %v3543_v41 = vmax.f32 %v3493_v25, 0.0  ;;  %v14212_v27 = vld [vmem:[%s15956_s0 + $0x11] ss:$0 sm:$0xff] }
 0x331   : > { %v4882_v56 = vadd.f32 %v4832_v5, %v4730_v9  ;;  %3620 = vst [vmem:[#allocation3 + $0x13c] sm:$0x3] %v3578_v48  ;;  %v3546_v7 = vmax.f32 %v3500_v15, 0.0  ;;  %v6142_v59 = vadd.f32 %v6092_v38, %v14090_v51  ;;  %v6248_v18 = vadd.f32 %v14135_v11, %v6141_v20  ;;  %v10076_v9 = vld [vmem:[%s15956_s0 + $0x7] ss:$0 sm:$0xff] }
 0x332   : > { %v5937_v24 = vadd.f32 %v5887_v35, %v5830_v40  ;;  %3621 = vst [vmem:[#allocation3 + $0x13e] sm:$0xf0] %v3578_v48  ;;  %v14184_v62 = vmin.f32 %v3545_v4, 6.0  ;;  %v3579_v28 = vmin.f32 %v3543_v41, 6.0  ;;  %v6305_v5 = vmul.f32 %v14054_v47, %v14088_v16  ;;  %v14200_v16 = vld [vmem:[%s15956_s0 + $0x10] ss:$0 sm:$0xff] }
 0x333   : > { %v14163_v19 = vadd.f32 %v4937_v58, %v4882_v56  ;;  %v3582_v43 = vmin.f32 %v3546_v7, 6.0  ;;  %v6249_v53 = vadd.f32 %v6199_v0, %v6142_v59  ;;  %v6306_v44 = vmul.f32 %v14054_v47, %v14094_v2  ;;  %v14218_v40 = vld [vmem:[%s15956_s0 + $0x12] ss:$0 sm:$0xff]  ;;  %v14232_v15 = vld [vmem:[%s15956_s0 + $0x13] ss:$0 sm:$0xff] }
 0x334   : > { %v14169_v52 = vadd.f32 %v5992_v29, %v5937_v24  ;;  %3625 = vst [vmem:[#allocation3 + $0x158] sm:$0xff] %v14184_v62  ;;  %v14192_v51 = vadd.f32 %v6305_v5, %v6248_v18  ;;  %v5663_v21 = vmul.f32 %v10077_v8, %v14200_v16  ;;  %v10085_v4 = vld [vmem:[#allocation3 + $0xdf] sm:$0xff]  ;;  %v10090_v5 = vld [vmem:[#allocation3 + $0xf0] sm:$0xff] }
 0x335   : > { %v3502_v42 = vpop.f32.mrf.mxu2  ;;  %3622 = vst [vmem:[#allocation3 + $0x146] sm:$0xff] %v3579_v28  ;;  %v14194_v38 = vadd.f32 %v6306_v44, %v6249_v53  ;;  %v5877_v41 = vmul.f32 %v10085_v4, %v14218_v40  ;;  %v14245_v28 = vld [vmem:[%s15956_s0 + $0xa] ss:$0 sm:$0xff]  ;;  %v10089_v53 = vld [vmem:[#allocation3 + $0xe0] sm:$0xff]  ;;  %v6086_v44 = vmul.f32 %v10090_v5, %v14038_v30  ;;  %v14266_v30 = vld [vmem:[%s15956_s0 + $0xb] ss:$0 sm:$0xff] }
 0x336   : > { %3626 = vst [vmem:[#allocation3 + $0x160] sm:$0x3f] %v3582_v43  ;;  %v5713_v12 = vadd.f32 %v5663_v21, %v13689_v23  ;;  %v5982_v42 = vmul.f32 %v10089_v53, %v14232_v15  ;;  %v6518_v53 = vmul.f32 %v14086_v45, %v14127_v63  ;;  %v5997_v63 = vmul.f32 %v14232_v15, %v14184_v62  ;;  %v10109_v62 = vld [vmem:[%s15956_s0 + $0x15] ss:$0 sm:$0xff] }
 0x338   : > { %v3666_v46 = vld [vmem:[#allocation3 + $0x138] sm:$0xff] }
 0x339   : > { %v4477_v14 = vld [vmem:[#allocation3 + $0x135] sm:$0xff]  ;;  %v4938_v24 = vmul.f32 %v10082_v37, %v3666_v46  ;;  %v5993_v23 = vmul.f32 %v14232_v15, %v3666_v46 }
 0x33a   : > { %v4529_v11 = vmul.f32 %v13995_v33, %v4477_v14  ;;  %v4629_v0 = vld [vmem:[#allocation3 + $0x136] sm:$0xff]  ;;  %v5674_v29 = vmul.f32 %v14200_v16, %v4477_v14 }
 0x33b   : > { %v4781_v58 = vld [vmem:[#allocation3 + $0x137] sm:$0xff]  ;;  %v4681_v26 = vmul.f32 %v10076_v9, %v4629_v0  ;;  %v5781_v1 = vmul.f32 %v14212_v27, %v4629_v0 }
 0x33c   : > { %v4579_v2 = vadd.f32 %v4529_v11, %v4427_v22  ;;  %v10078_v33 = vld [vmem:[%s15956_s0 + $0x8] ss:$0 sm:$0xff]  ;;  %v5724_v32 = vadd.f32 %v5674_v29, %v5617_v55  ;;  %v10083_v22 = vld [vmem:[#allocation3 + $0xde] sm:$0xff]  ;;  %v5888_v54 = vmul.f32 %v14218_v40, %v4781_v58  ;;  %v14274_v37 = vld [vmem:[%s15956_s0 + $0xc] ss:$0 sm:$0xff] }
 0x33d   : > { %v3503_v56 = vpop.f32.mrf.mxu2  ;;  %v4833_v35 = vmul.f32 %v10078_v33, %v4781_v58  ;;  %v5770_v60 = vmul.f32 %v10083_v22, %v14212_v27  ;;  %v14235_v20 = vld [vmem:[#allocation3 + $0x144] sm:$0xff]  ;;  %v10094_v0 = vld [vmem:[#allocation3 + $0xf1] sm:$0xff] }
 0x33e   : > { %v4731_v36 = vadd.f32 %v4681_v26, %v4579_v2  ;;  %v5831_v48 = vadd.f32 %v5781_v1, %v5724_v32  ;;  %v14237_v55 = vld [vmem:[#allocation3 + $0x140] sm:$0xff]  ;;  %v6193_v58 = vmul.f32 %v10094_v0, %v14048_v17  ;;  %v10103_v32 = vld [vmem:[#allocation3 + $0xf3] sm:$0xff] }
 0x33f   : > { %v5820_v3 = vadd.f32 %v5770_v60, %v5713_v12  ;;  %v5041_v18 = vmul.f32 %v14245_v28, %v14237_v55  ;;  %v14252_v46 = vld [vmem:[#allocation3 + $0x160] sm:$0xff]  ;;  %v6407_v1 = vmul.f32 %v10103_v32, %v14079_v39 }
 0x340   : > { %v4883_v13 = vadd.f32 %v4833_v35, %v4731_v36  ;;  %v5938_v25 = vadd.f32 %v5888_v54, %v5831_v48  ;;  %v10095_v2 = vld [vmem:[#allocation3 + $0xf9] sm:$0xff]  ;;  %v3769_v21 = vld [vmem:[#allocation3 + $0x141] sm:$0xff]  ;;  %v3494_v48 = vpop.f32.mrf.mxu1  ;;  %v6412_v54 = vmul.f32 %v14079_v39, %v14117_v31 }
 0x341   : > { %v5927_v59 = vadd.f32 %v5877_v41, %v5820_v3  ;;  %v5091_v43 = vadd.f32 %v5041_v18, %v14163_v19  ;;  %v6194_v9 = vmul.f32 %v10095_v2, %v14048_v17  ;;  %v14259_v19 = vld [vmem:[%s15956_s0 + $0xf] ss:$0 sm:$0xff]  ;;  %v10099_v36 = vld [vmem:[#allocation3 + $0xf2] sm:$0xff]  ;;  %v3921_v29 = vld [vmem:[#allocation3 + $0x142] sm:$0xff]  ;;  %v6413_v3 = vmul.f32 %v14079_v39, %v14125_v34 }
 0x342   : > { %v14225_v6 = vadd.f32 %v4938_v24, %v4883_v13  ;;  %v14240_v7 = vadd.f32 %v5993_v23, %v5938_v25  ;;  %v14261_v26 = vld [vmem:[#allocation3 + $0x15c] sm:$0xff]  ;;  %v6300_v33 = vmul.f32 %v10099_v36, %v14054_v47  ;;  %v10105_v23 = vld [vmem:[#allocation3 + $0xf4] sm:$0xff] }
 0x343   : > { %v6032_v14 = vadd.f32 %v5982_v42, %v5927_v59  ;;  %v6244_v56 = vadd.f32 %v6194_v9, %v14101_v50  ;;  %v10100_v17 = vld [vmem:[#allocation3 + $0xfa] sm:$0xff]  ;;  %v5148_v50 = vmul.f32 %v14266_v30, %v3769_v21  ;;  %v6512_v4 = vmul.f32 %v10105_v23, %v14086_v45  ;;  %v4073_v34 = vld [vmem:[#allocation3 + $0x143] sm:$0xff] }
 0x344   : > { %v6301_v35 = vmul.f32 %v10100_v17, %v14054_v47  ;;  %v14279_v24 = vld [vmem:[%s15956_s0 + $0xd] ss:$0 sm:$0xff]  ;;  %v6462_v42 = vadd.f32 %v6412_v54, %v14192_v51  ;;  %v6463_v31 = vadd.f32 %v6413_v3, %v14194_v38  ;;  %v4786_v36 = vld [vmem:[#allocation3 + $0x15f] sm:$0xff]  ;;  %v14314_v17 = vmul.f32 %v10109_v62, %v3769_v21  ;;  %v14373_v62 = vld [vmem:[%s16067_s27 + $0x3] ss:$0 sm:$0xff] }
 0x345   : > { %v6136_v11 = vadd.f32 %v6086_v44, %v6032_v14  ;;  %v5198_v22 = vadd.f32 %v5148_v50, %v5091_v43  ;;  %v10104_v47 = vld [vmem:[#allocation3 + $0xfb] sm:$0xff]  ;;  %v6517_v43 = vmul.f32 %v14086_v45, %v14123_v10  ;;  %v5255_v44 = vmul.f32 %v14274_v37, %v3921_v29 }
 0x346   : > { %v6351_v12 = vadd.f32 %v6301_v35, %v6244_v56  ;;  %v6408_v60 = vmul.f32 %v10104_v47, %v14079_v39  ;;  %v10106_v59 = vld [vmem:[#allocation3 + $0xfc] sm:$0xff]  ;;  %v3495_v39 = vadd.f32 %v14176_v49, %v3494_v48  ;;  %v6568_v0 = vadd.f32 %v6518_v53, %v6463_v31  ;;  %v10108_v49 = vld [vmem:[%s15956_s0 + $0x14] ss:$0 sm:$0xff]  ;;  %v10110_v35 = vld [vmem:[%s15956_s0 + $0x16] ss:$0 sm:$0xff] }
 0x347   : > { %v6243_v8 = vadd.f32 %v6193_v58, %v6136_v11  ;;  %v6513_v18 = vmul.f32 %v10106_v59, %v14086_v45  ;;  %v6567_v11 = vadd.f32 %v6517_v43, %v6462_v42  ;;  %v10107_v10 = vld [vmem:[%s15956_s0 + $0xe] ss:$0 sm:$0xff]  ;;  %v5305_v45 = vadd.f32 %v5255_v44, %v5198_v22 }
 0x348   : > { %v6458_v41 = vadd.f32 %v6408_v60, %v6351_v12  ;;  %v3544_v58 = vmax.f32 %v3495_v39, 0.0  ;;  %v5362_v38 = vmul.f32 %v14279_v24, %v4073_v34  ;;  %v4482_v2 = vld [vmem:[#allocation3 + $0x15d] sm:$0xff]  ;;  %6618 = vst [vmem:[#allocation6 + $0xd0] sm:$0xff] %v6568_v0  ;;  %v5467_v9 = vmul.f32 %v10107_v10, %v14235_v20  ;;  %v14341_v34 = vld [vmem:[#allocation2] sm:$0xff] }
 0x349   : > { %v6350_v13 = vadd.f32 %v6300_v33, %v6243_v8  ;;  %6617 = vst [vmem:[#allocation6 + $0xc8] sm:$0xff] %v6567_v11  ;;  %v14309_v8 = vmul.f32 %v10108_v49, %v14237_v55  ;;  %v4634_v56 = vld [vmem:[#allocation3 + $0x15e] sm:$0xff]  ;;  %v5572_v20 = vmul.f32 %v14259_v19, %v14261_v26  ;;  %v14324_v55 = vmul.f32 %v14200_v16, %v4482_v2  ;;  %v10116_v2 = vld [vmem:[%s16067_s27 + $0x2] ss:$0 sm:$0xff] }
 0x34a   : > { %v6563_v14 = vadd.f32 %v6513_v18, %v6458_v41  ;;  %v3580_v51 = vmin.f32 %v3544_v58, 6.0  ;;  %v5412_v33 = vadd.f32 %v5362_v38, %v5305_v45  ;;  %v14327_v32 = vmul.f32 %v14212_v27, %v4634_v56  ;;  %v6876_v45 = vld [vmem:[#allocation4 + $0x2] sm:$0xff] }
 0x34b   : > { %v6457_v25 = vadd.f32 %v6407_v1, %v6350_v13  ;;  %v14319_v13 = vmul.f32 %v10110_v35, %v3921_v29  ;;  %v14330_v21 = vmul.f32 %v14218_v40, %v4786_v36  ;;  %v14337_v18 = vmul.f32 %v14232_v15, %v14252_v46  ;;  %v6738_v15 = vpop.f32.mrf.mxu2  ;;  %v6988_v36 = vld [vmem:[#allocation4 + $0x4] sm:$0xff] }
 0x34c   : > { %6613 = vst [vmem:[#allocation6 + $0xa8] sm:$0xff] %v6563_v14  ;;  %v5517_v39 = vadd.f32 %v5467_v9, %v5412_v33  ;;  %v6896_v9 = vmul.f32 %v10116_v2, %v6876_v45 }
 0x34d   : > { %v6562_v5 = vadd.f32 %v6512_v4, %v6457_v25  ;;  %3623 = vst [vmem:[#allocation3 + $0x14e] sm:$0xf] %v3580_v51 }
 0x34e   : > { %3624 = vst [vmem:[#allocation3 + $0x150] sm:$0xc0] %v3580_v51 }
 0x34f   : > { %6612 = vst [vmem:[#allocation6 + $0xa0] sm:$0xff] %v6562_v5 }
 0x350   : > { %v6652_v12 = vld [vmem:[#allocation6 + $0xc8] ss:$2 sm:$0xff] }
 0x353   : > { %v6740_v51 = vpop.f32.mrf.mxu2 }
 0x354   : > { %v3668_v22 = vld [vmem:[#allocation3 + $0x148] sm:$0xff] }
 0x355   : > { %v3770_v47 = vld [vmem:[#allocation3 + $0x149] sm:$0xff]  ;;  %v4227_v54 = vld [vmem:[#allocation3 + $0x154] sm:$0xff]  ;;  %v5042_v23 = vmul.f32 %v14245_v28, %v3668_v22 }
 0x356   : > { %v6650_v50 = vld [vmem:[#allocation6 + $0xa0] ss:$2 sm:$0xff]  ;;  %v3922_v29 = vld [vmem:[#allocation3 + $0x14a] sm:$0xff]  ;;  %v5149_v4 = vmul.f32 %v14266_v30, %v3770_v47  ;;  %v5571_v30 = vmul.f32 %v14259_v19, %v4227_v54  ;;  %v14381_v47 = vld [vmem:[%s16067_s27 + $0x4] ss:$0 sm:$0xff] }
 0x357   : > { %v6659_v1 = vpack.c.bf16 %v6652_v12, %v6650_v50  ;;  %v4074_v60 = vld [vmem:[#allocation3 + $0x14b] sm:$0xff]  ;;  %v4481_v26 = vld [vmem:[#allocation3 + $0x155] sm:$0xff]  ;;  %v5092_v41 = vadd.f32 %v5042_v23, %v14225_v6  ;;  %v5256_v43 = vmul.f32 %v14274_v37, %v3922_v29  ;;  %v7008_v29 = vmul.f32 %v14381_v47, %v6988_v36 }
 0x358   : > { %v4226_v48 = vld [vmem:[#allocation3 + $0x14c] sm:$0xff]  ;;  %v4633_v3 = vld [vmem:[#allocation3 + $0x156] sm:$0xff]  ;;  %v5363_v42 = vmul.f32 %v14279_v24, %v4074_v60  ;;  %v5621_v44 = vadd.f32 %v5571_v30, %v5517_v39  ;;  %v5678_v14 = vmul.f32 %v14200_v16, %v4481_v26  ;;  %v14387_v60 = vld [vmem:[%s16067_s27 + $0x5] ss:$0 sm:$0xff] }
 0x359   : > { %6747 = vmatmul.bf16.gmra.mxu2 %v6659_v1  ;;  %v4785_v25 = vld [vmem:[#allocation3 + $0x157] sm:$0xff]  ;;  %v5199_v59 = vadd.f32 %v5149_v4, %v5092_v41  ;;  %v5468_v5 = vmul.f32 %v10107_v10, %v4226_v48  ;;  %v5785_v37 = vmul.f32 %v14212_v27, %v4633_v3  ;;  %v9888_v10 = vld [vmem:[%s16075_s26] ss:$0 sm:$0xff]  ;;  %v14393_v54 = vld [vmem:[%s16067_s27 + $0x6] ss:$0 sm:$0xff] }
 0x35a   : > { %v5728_v46 = vadd.f32 %v5678_v14, %v5621_v44  ;;  %v5892_v24 = vmul.f32 %v14218_v40, %v4785_v25  ;;  %v6820_v19 = vld [vmem:[#allocation4 + $0x1] sm:$0xff]  ;;  %v6739_v49 = vadd.f32 %v9888_v10, %v6738_v15  ;;  %v7083_v50 = vld [vmem:[#allocation4 + $0xd] sm:$0xff]  ;;  %v6741_v41 = vadd.f32 %v9888_v10, %v6740_v51 }
 0x35b   : > { %v5306_v53 = vadd.f32 %v5256_v43, %v5199_v59  ;;  %v14357_v16 = vld [vmem:[%s16067_s27] ss:$0 sm:$0xff]  ;;  %v7139_v12 = vld [vmem:[#allocation4 + $0xe] sm:$0xff]  ;;  %v7103_v26 = vmul.f32 %v14393_v54, %v7083_v50 }
 0x35c   : > { %v5835_v11 = vadd.f32 %v5785_v37, %v5728_v46  ;;  %v6802_v27 = vmul.f32 %v14357_v16, %v14341_v34  ;;  %v6932_v40 = vld [vmem:[#allocation4 + $0x3] sm:$0xff]  ;;  %v6758_v56 = vmax.f32 %v6739_v49, 0.0  ;;  %v10121_v3 = vld [vmem:[%s16067_s27 + $0x7] ss:$0 sm:$0xff]  ;;  %v10123_v14 = vld [vmem:[%s16067_s27 + $0x9] ss:$0 sm:$0xff] }
 0x35d   : > { %v5413_v31 = vadd.f32 %v5363_v42, %v5306_v53  ;;  %v6952_v35 = vmul.f32 %v14373_v62, %v6932_v40  ;;  %v7159_v25 = vmul.f32 %v10121_v3, %v7139_v12  ;;  %v7195_v4 = vld [vmem:[#allocation4 + $0xf] sm:$0xff]  ;;  %v7255_v15 = vmul.f32 %v10123_v14, %v14341_v34 }
 0x35e   : > { %v5942_v0 = vadd.f32 %v5892_v24, %v5835_v11  ;;  %v14376_v1 = vmin.f32 %v6758_v56, 6.0  ;;  %v10124_v46 = vld [vmem:[%s16067_s27 + $0xc] ss:$0 sm:$0xff]  ;;  %v10126_v56 = vld [vmem:[%s16067_s27 + $0x16] ss:$0 sm:$0xff] }
 0x35f   : > { %v5518_v28 = vadd.f32 %v5468_v5, %v5413_v31  ;;  %v6759_v31 = vmax.f32 %v6741_v41, 0.0  ;;  %v10122_v5 = vld [vmem:[%s16067_s27 + $0x8] ss:$0 sm:$0xff]  ;;  %v10127_v50 = vld [vmem:[%s16067_s27 + $0xa] ss:$0 sm:$0xff] }
 0x360   : > { %v14349_v58 = vadd.f32 %v5997_v63, %v5942_v0  ;;  %v14364_v63 = vld [vmem:[%s16067_s27 + $0x1] ss:$0 sm:$0xff]  ;;  %16076 = vst [vmem:[#allocation30_spill] sm:$0xff] %v14376_v1  ;;  %v6899_v43 = vmul.f32 %v10116_v2, %v14376_v1  ;;  %v7215_v39 = vmul.f32 %v10122_v5, %v7195_v4  ;;  %v14414_v37 = vmul.f32 %v10124_v46, %v14376_v1  ;;  %v10130_v4 = vld [vmem:[%s16067_s27 + $0xe] ss:$0 sm:$0xff] }
 0x361   : > { %v14344_v6 = vadd.f32 %v5572_v20, %v5518_v28  ;;  %v6840_v38 = vmul.f32 %v14364_v63, %v6820_v19  ;;  %v6989_v20 = vld [vmem:[#allocation4 + $0xc] sm:$0xff]  ;;  %6774 = vst [vmem:[#allocation4 + $0x1a] sm:$0xff] %v14376_v1  ;;  %v14404_v44 = vmin.f32 %v6759_v31, 6.0  ;;  %v10125_v19 = vld [vmem:[%s16067_s27 + $0x11] ss:$0 sm:$0xff] }
 0x362   : > { %v7047_v48 = vmul.f32 %v14387_v60, %v6989_v20  ;;  %v14457_v31 = vld [vmem:[#allocation3 + $0x172] sm:$0xff] }
 0x363   : > { %v6858_v33 = vadd.f32 %v6840_v38, %v6802_v27  ;;  %v6743_v59 = vpop.f32.mrf.mxu2  ;;  %16077 = vst [vmem:[#allocation16_spill] sm:$0xff] %v14404_v44  ;;  %v14426_v45 = vmul.f32 %v10125_v19, %v14404_v44 }
 0x364   : > { %v6744_v53 = vadd.f32 %v9888_v10, %v6743_v59  ;;  %6775 = vst [vmem:[#allocation4 + $0x26] sm:$0xff] %v14404_v44  ;;  %v14420_v10 = vmul.f32 %v10121_v3, %v14404_v44  ;;  %v10129_v3 = vld [vmem:[%s16067_s27 + $0xd] ss:$0 sm:$0xff]  ;;  %v14453_v59 = vld [vmem:[#allocation3 + $0x171] sm:$0xff] }
 0x365   : > { %v6914_v22 = vadd.f32 %v6896_v9, %v6858_v33 }
 0x366   : > { %v6760_v28 = vmax.f32 %v6744_v53, 0.0 }
 0x367   : > { %v6970_v23 = vadd.f32 %v6952_v35, %v6914_v22 }
 0x368   : > { %v6768_v11 = vmin.f32 %v6760_v28, 6.0  ;;  %v6785_v49 = vld [vmem:[#allocation4 + $0x18] sm:$0xff] }
 0x369   : > { %v7026_v42 = vadd.f32 %v7008_v29, %v6970_v23  ;;  %v6823_v27 = vld [vmem:[#allocation4 + $0x19] sm:$0xff]  ;;  %v6805_v33 = vmul.f32 %v14357_v16, %v6785_v49  ;;  %v7294_v12 = vmul.f32 %v10127_v50, %v6785_v49 }
 0x36a   : > { %6776 = vst [vmem:[#allocation4 + $0x32] sm:$0xff] %v6768_v11  ;;  %v14428_v51 = vmul.f32 %v10116_v2, %v6768_v11  ;;  %v6935_v40 = vld [vmem:[#allocation4 + $0x1b] sm:$0xff]  ;;  %v14430_v9 = vmul.f32 %v10124_v46, %v6768_v11  ;;  %v14435_v36 = vmul.f32 %v10126_v56, %v6768_v11  ;;  %v6843_v35 = vmul.f32 %v14364_v63, %v6823_v27 }
 0x36b   : > { %v7065_v30 = vadd.f32 %v7047_v48, %v7026_v42  ;;  %v6955_v20 = vmul.f32 %v14373_v62, %v6935_v40  ;;  %v6991_v2 = vld [vmem:[#allocation4 + $0x1c] sm:$0xff]  ;;  %v10128_v48 = vld [vmem:[%s16067_s27 + $0xb] ss:$0 sm:$0xff]  ;;  %v6787_v28 = vld [vmem:[#allocation4 + $0x28] sm:$0xff] }
 0x36c   : > { %v7011_v22 = vmul.f32 %v14381_v47, %v6991_v2  ;;  %v6861_v23 = vadd.f32 %v6843_v35, %v6805_v33  ;;  %v7457_v41 = vmul.f32 %v10130_v4, %v6991_v2  ;;  %v14455_v42 = vld [vmem:[#allocation3 + $0x16a] sm:$0xff] }
 0x36d   : > { %v7121_v24 = vadd.f32 %v7103_v26, %v7065_v30  ;;  %v7335_v26 = vmul.f32 %v10128_v48, %v6823_v27  ;;  %v6992_v30 = vld [vmem:[#allocation4 + $0x24] sm:$0xff]  ;;  %v7258_v27 = vmul.f32 %v10123_v14, %v6787_v28 }
 0x36e   : > { %v7086_v46 = vld [vmem:[#allocation4 + $0x25] sm:$0xff] }
 0x36f   : > { %v7177_v38 = vadd.f32 %v7159_v25, %v7121_v24  ;;  %v7417_v25 = vmul.f32 %v10129_v3, %v6935_v40  ;;  %v7050_v24 = vmul.f32 %v14387_v60, %v6992_v30  ;;  %v7106_v19 = vmul.f32 %v14393_v54, %v7086_v46  ;;  %v7198_v49 = vld [vmem:[#allocation4 + $0x27] sm:$0xff]  ;;  %v10133_v54 = vld [vmem:[%s16067_s27 + $0x12] ss:$0 sm:$0xff] }
 0x370   : > { %v7218_v33 = vmul.f32 %v10122_v5, %v7198_v49  ;;  %v7619_v14 = vmul.f32 %v10133_v54, %v7198_v49  ;;  %v10134_v5 = vld [vmem:[%s16067_s27 + $0x13] ss:$0 sm:$0xff] }
 0x371   : > { %v7233_v29 = vadd.f32 %v7215_v39, %v7177_v38  ;;  %v6917_v39 = vadd.f32 %v6899_v43, %v6861_v23  ;;  %v6788_v40 = vld [vmem:[#allocation4 + $0x30] sm:$0xff]  ;;  %v10132_v43 = vld [vmem:[%s16067_s27 + $0x10] ss:$0 sm:$0xff] }
 0x372   : > { %v6826_v38 = vld [vmem:[#allocation4 + $0x31] sm:$0xff]  ;;  %v7537_v2 = vmul.f32 %v10132_v43, %v7086_v46  ;;  %v6808_v23 = vmul.f32 %v14357_v16, %v6788_v40 }
 0x373   : > { %v7273_v53 = vadd.f32 %v7255_v15, %v7233_v29  ;;  %v6973_v56 = vadd.f32 %v6955_v20, %v6917_v39  ;;  %v10131_v15 = vld [vmem:[%s16067_s27 + $0xf] ss:$0 sm:$0xff]  ;;  %v7659_v20 = vmul.f32 %v10134_v5, %v6787_v28  ;;  %v6846_v39 = vmul.f32 %v14364_v63, %v6826_v38  ;;  %v10135_v28 = vld [vmem:[%s16067_s27 + $0x14] ss:$0 sm:$0xff]  ;;  %v10136_v63 = vld [vmem:[%s16067_s27 + $0x15] ss:$0 sm:$0xff] }
 0x374   : > { %v7496_v35 = vmul.f32 %v10131_v15, %v6992_v30  ;;  %v6994_v60 = vld [vmem:[#allocation4 + $0x34] sm:$0xff]  ;;  %v7338_v15 = vmul.f32 %v10128_v48, %v6826_v38  ;;  %v7698_v16 = vmul.f32 %v10135_v28, %v6788_v40 }
 0x375   : > { %v7312_v11 = vadd.f32 %v7294_v12, %v7273_v53  ;;  %v6938_v12 = vld [vmem:[#allocation4 + $0x33] sm:$0xff]  ;;  %v7029_v53 = vadd.f32 %v7011_v22, %v6973_v56  ;;  %v7014_v46 = vmul.f32 %v14381_v47, %v6994_v60  ;;  %v6864_v54 = vadd.f32 %v6846_v39, %v6808_v23  ;;  %v10137_v47 = vld [vmem:[%s16067_s27 + $0x17] ss:$0 sm:$0xff]  ;;  %v4078_v56 = vld [vmem:[#allocation3 + $0x16b] sm:$0xff] }
 0x376   : > { %v6958_v30 = vmul.f32 %v14373_v62, %v6938_v12  ;;  %v7420_v43 = vmul.f32 %v10129_v3, %v6938_v12  ;;  %v7460_v0 = vmul.f32 %v10130_v4, %v6994_v60  ;;  %v7739_v62 = vmul.f32 %v10136_v63, %v6826_v38  ;;  %v4079_v38 = vld [vmem:[#allocation3 + $0x173] sm:$0xff] }
 0x377   : > { %v7353_v29 = vadd.f32 %v7335_v26, %v7312_v11  ;;  %v7297_v11 = vmul.f32 %v10127_v50, %v6788_v40  ;;  %v7068_v49 = vadd.f32 %v7050_v24, %v7029_v53  ;;  %v10138_v50 = vld [vmem:[%s16067_s27 + $0x18] ss:$0 sm:$0xff]  ;;  %v6920_v4 = vadd.f32 %v14428_v51, %v6864_v54 }
 0x378   : > { %v7861_v48 = vmul.f32 %v10138_v50, %v6994_v60 }
 0x379   : > { %v7394_v26 = vadd.f32 %v14414_v37, %v7353_v29  ;;  %v7821_v37 = vmul.f32 %v10137_v47, %v6938_v12  ;;  %v7124_v3 = vadd.f32 %v7106_v19, %v7068_v49  ;;  %v6976_v40 = vadd.f32 %v6958_v30, %v6920_v4 }
 0x37b   : > { %v7435_v22 = vadd.f32 %v7417_v25, %v7394_v26  ;;  %v7180_v25 = vadd.f32 %v14420_v10, %v7124_v3  ;;  %v14492_v23 = vadd.f32 %v7014_v46, %v6976_v40 }
 0x37d   : > { %v7475_v24 = vadd.f32 %v7457_v41, %v7435_v22  ;;  %v7236_v5 = vadd.f32 %v7218_v33, %v7180_v25 }
 0x37f   : > { %v7514_v29 = vadd.f32 %v7496_v35, %v7475_v24  ;;  %v7276_v12 = vadd.f32 %v7258_v27, %v7236_v5  ;;  %v10166_v5 = vld [vmem:[#allocation3 + $0x143] sm:$0xff] }
 0x381   : > { %v7555_v53 = vadd.f32 %v7537_v2, %v7514_v29  ;;  %v7315_v26 = vadd.f32 %v7297_v11, %v7276_v12  ;;  %v5729_v2 = vadd.f32 %v14324_v55, %v14344_v6  ;;  %v10159_v55 = vld [vmem:[%s15956_s0 + $0x16] ss:$0 sm:$0xff]  ;;  %v14517_v6 = vld [vmem:[#allocation2] sm:$0xff] }
 0x382   : > { %v6316_v3 = vmul.f32 %v10159_v55, %v14457_v31  ;;  %v10167_v12 = vld [vmem:[#allocation3 + $0x14b] sm:$0xff] }
 0x383   : > { %v7596_v39 = vadd.f32 %v14426_v45, %v7555_v53  ;;  %v7356_v60 = vadd.f32 %v7338_v15, %v7315_v26  ;;  %v10152_v45 = vld [vmem:[%s15956_s0 + $0x14] ss:$0 sm:$0xff]  ;;  %v5836_v11 = vadd.f32 %v14327_v32, %v5729_v2  ;;  %v10163_v32 = vld [vmem:[%s15956_s0 + $0x17] ss:$0 sm:$0xff] }
 0x384   : > { %v6101_v27 = vmul.f32 %v10152_v45, %v14341_v34  ;;  %v6146_v34 = vadd.f32 %v14309_v8, %v14169_v52  ;;  %v10165_v52 = vld [vmem:[#allocation3 + $0x169] sm:$0xff]  ;;  %v6423_v29 = vmul.f32 %v10163_v32, %v4079_v38  ;;  %v6417_v53 = vmul.f32 %v10166_v5, %v10163_v32 }
 0x385   : > { %v7637_v28 = vadd.f32 %v7619_v14, %v7596_v39  ;;  %v7397_v51 = vadd.f32 %v14430_v9, %v7356_v60  ;;  %v10155_v9 = vld [vmem:[#allocation3 + $0x148] sm:$0xff]  ;;  %v5943_v15 = vadd.f32 %v14330_v21, %v5836_v11  ;;  %v6102_v21 = vmul.f32 %v14517_v6, %v10152_v45 }
 0x386   : > { %v6097_v14 = vmul.f32 %v10155_v9, %v10152_v45 }
 0x387   : > { %v7677_v19 = vadd.f32 %v7659_v20, %v7637_v28  ;;  %v7438_v49 = vadd.f32 %v7420_v43, %v7397_v51  ;;  %v10157_v20 = vld [vmem:[#allocation3 + $0x149] sm:$0xff]  ;;  %v6048_v43 = vadd.f32 %v14337_v18, %v5943_v15  ;;  %v6151_v18 = vadd.f32 %v6101_v27, %v14349_v58 }
 0x388   : > { %v6147_v54 = vadd.f32 %v6097_v14, %v14240_v7  ;;  %v6422_v58 = vmul.f32 %v10163_v32, %v4078_v56  ;;  %v10169_v28 = vld [vmem:[#allocation3 + $0x16c] sm:$0xff]  ;;  %v10171_v51 = vld [vmem:[#allocation3 + $0x144] sm:$0xff] }
 0x389   : > { %v7716_v41 = vadd.f32 %v7698_v16, %v7677_v19  ;;  %v14496_v30 = vadd.f32 %v7460_v0, %v7438_v49  ;;  %v10156_v0 = vld [vmem:[%s15956_s0 + $0x15] ss:$0 sm:$0xff]  ;;  %v10162_v16 = vld [vmem:[#allocation3 + $0x14a] sm:$0xff]  ;;  %v6152_v63 = vadd.f32 %v6102_v21, %v6048_v43  ;;  %v6745_v49 = vpop.f32.mrf.mxu2  ;;  %v14549_v21 = vld [vmem:[%s16067_s27 + $0x5] ss:$0 sm:$0xff] }
 0x38a   : > { %v6311_v22 = vmul.f32 %v10162_v16, %v10159_v55  ;;  %v6208_v8 = vmul.f32 %v10165_v52, %v10156_v0  ;;  %v6209_v7 = vmul.f32 %v10156_v0, %v14453_v59  ;;  %v6418_v59 = vmul.f32 %v10167_v12, %v10163_v32  ;;  %v10172_v56 = vld [vmem:[#allocation3 + $0x14c] sm:$0xff] }
 0x38b   : > { %v7757_v10 = vadd.f32 %v7739_v62, %v7716_v41  ;;  %v6253_v62 = vadd.f32 %v14314_v17, %v6146_v34  ;;  %v14535_v27 = vld [vmem:[%s16075_s26] ss:$0 sm:$0xff] }
 0x38c   : > { %v6259_v50 = vadd.f32 %v6209_v7, %v6152_v63  ;;  %v6746_v2 = vadd.f32 %v14535_v27, %v6745_v49 }
 0x38d   : > { %v7798_v35 = vadd.f32 %v14435_v36, %v7757_v10  ;;  %v6204_v36 = vmul.f32 %v10157_v20, %v10156_v0  ;;  %v6360_v4 = vadd.f32 %v14319_v13, %v6253_v62  ;;  %v10170_v13 = vld [vmem:[#allocation3 + $0x174] sm:$0xff] }
 0x38e   : > { %v6366_v40 = vadd.f32 %v6316_v3, %v6259_v50  ;;  %v6761_v14 = vmax.f32 %v6746_v2, 0.0  ;;  %v14568_v50 = vld [vmem:[%s16067_s27] ss:$0 sm:$0xff]  ;;  %v14574_v3 = vld [vmem:[%s16067_s27 + $0x1] ss:$0 sm:$0xff] }
 0x38f   : > { %v7839_v33 = vadd.f32 %v7821_v37, %v7798_v35  ;;  %v6254_v47 = vadd.f32 %v6204_v36, %v6147_v54  ;;  %v6258_v37 = vadd.f32 %v6208_v8, %v6151_v18  ;;  %v6467_v39 = vadd.f32 %v6417_v53, %v6360_v4  ;;  %v14555_v8 = vld [vmem:[%s16067_s27 + $0xf] ss:$0 sm:$0xff]  ;;  %v14587_v53 = vld [vmem:[%s16067_s27 + $0x7] ss:$0 sm:$0xff] }
 0x390   : > { %v6473_v60 = vadd.f32 %v6423_v29, %v6366_v40  ;;  %v6769_v15 = vmin.f32 %v6761_v14, 6.0 }
 0x391   : > { %v7879_v46 = vadd.f32 %v7861_v48, %v7839_v33  ;;  %v6315_v48 = vmul.f32 %v10159_v55, %v14455_v42  ;;  %v6361_v24 = vadd.f32 %v6311_v22, %v6254_v47  ;;  %v10168_v42 = vld [vmem:[%s15956_s0 + $0x18] ss:$0 sm:$0xff]  ;;  %v14562_v47 = vld [vmem:[%s16067_s27 + $0x6] ss:$0 sm:$0xff]  ;;  %s9751_s0 = sshll.u32 %s10511_s9, 4 }
 0x392   : > { %v6527_v31 = vmul.f32 %v10169_v28, %v10168_v42  ;;  %v6528_v19 = vmul.f32 %v10170_v13, %v10168_v42  ;;  %v6522_v41 = vmul.f32 %v10171_v51, %v10168_v42  ;;  %v6523_v38 = vmul.f32 %v10172_v56, %v10168_v42  ;;  %6777 = vst [vmem:[#allocation4 + $0x3e] sm:$0xff] %v6769_v15  ;;  %v14612_v51 = vld [vmem:[%s16067_s27 + $0x3] ss:$0 sm:$0xff]  ;;  %v14618_v56 = vld [vmem:[%s16067_s27 + $0x9] ss:$0 sm:$0xff] }
 0x393   : > { %7897 = vst [vmem:[#allocation6] sm:$0xff] %v7879_v46  ;;  %v6365_v25 = vadd.f32 %v6315_v48, %v6258_v37  ;;  %v6468_v17 = vadd.f32 %v6418_v59, %v6361_v24  ;;  %v7165_v12 = vmul.f32 %v14587_v53, %v6769_v15 }
 0x394   : > { %v6572_v10 = vadd.f32 %v6522_v41, %v6467_v39  ;;  %v6578_v46 = vadd.f32 %v6528_v19, %v6473_v60  ;;  %v14606_v60 = vld [vmem:[%s16067_s27 + $0x8] ss:$0 sm:$0xff] }
 0x395   : > { %v6472_v26 = vadd.f32 %v6422_v58, %v6365_v25  ;;  %v6573_v35 = vadd.f32 %v6523_v38, %v6468_v17  ;;  %v14581_v25 = vld [vmem:[%s16067_s27 + $0x10] ss:$0 sm:$0xff] }
 0x396   : > { %6622 = vst [vmem:[#allocation6 + $0xf0] sm:$0xff] %v6572_v10  ;;  %v14624_v10 = vld [vmem:[%s16067_s27 + $0x12] ss:$0 sm:$0xff] }
 0x397   : > { %v6577_v33 = vadd.f32 %v6527_v31, %v6472_v26  ;;  %6623 = vst [vmem:[#allocation6 + $0xf8] sm:$0xff] %v6573_v35  ;;  %v14600_v26 = vld [vmem:[%s16067_s27 + $0x11] ss:$0 sm:$0xff] }
 0x398   : > { %6628 = vst [vmem:[#allocation6 + $0x120] sm:$0xff] %v6578_v46  ;;  %v7581_v42 = vmul.f32 %v14600_v26, %v6769_v15 }
 0x399   : > { %6627 = vst [vmem:[#allocation6 + $0x118] sm:$0xff] %v6577_v33  ;;  %v6995_v22 = vld [vmem:[#allocation4 + $0x3c] sm:$0xff] }
 0x39a   : > { %v7089_v32 = vld [vmem:[#allocation4 + $0x3d] sm:$0xff]  ;;  %v7053_v18 = vmul.f32 %v14549_v21, %v6995_v22  ;;  %v7499_v7 = vmul.f32 %v14555_v8, %v6995_v22 }
 0x39b   : > { %v7109_v37 = vmul.f32 %v14562_v47, %v7089_v32  ;;  %v7201_v4 = vld [vmem:[#allocation4 + $0x3f] sm:$0xff]  ;;  %v7540_v40 = vmul.f32 %v14581_v25, %v7089_v32  ;;  %v14654_v32 = vld [vmem:[%s16067_s27 + $0xb] ss:$0 sm:$0xff] }
 0x39c   : > { %v7071_v62 = vadd.f32 %v7053_v18, %v14492_v23  ;;  %v7517_v24 = vadd.f32 %v7499_v7, %v14496_v30  ;;  %v6790_v29 = vld [vmem:[#allocation4 + $0x40] sm:$0xff]  ;;  %v14593_v30 = vld [vmem:[%s16067_s27 + $0x2] ss:$0 sm:$0xff]  ;;  %v7221_v13 = vmul.f32 %v14606_v60, %v7201_v4  ;;  %v7622_v35 = vmul.f32 %v14624_v10, %v7201_v4 }
 0x39d   : > { %v7261_v38 = vmul.f32 %v14618_v56, %v6790_v29 }
 0x39e   : > { %v6654_v0 = vld [vmem:[#allocation6 + $0xf0] ss:$2 sm:$0xff]  ;;  %v7127_v5 = vadd.f32 %v7109_v37, %v7071_v62  ;;  %v7558_v17 = vadd.f32 %v7540_v40, %v7517_v24  ;;  %v14660_v62 = vld [vmem:[%s16067_s27 + $0x15] ss:$0 sm:$0xff]  ;;  %v14673_v24 = vld [vmem:[%s16067_s27 + $0x16] ss:$0 sm:$0xff] }
 0x3a0   : > { %v6656_v20 = vld [vmem:[#allocation6 + $0x118] ss:$2 sm:$0xff]  ;;  %v7183_v31 = vadd.f32 %v7165_v12, %v7127_v5  ;;  %v7599_v49 = vadd.f32 %v7581_v42, %v7558_v17 }
 0x3a1   : > { %v6660_v11 = vpack.c.bf16 %v6656_v20, %v6654_v0  ;;  %v14642_v20 = vld [vmem:[%s16067_s27 + $0x13] ss:$0 sm:$0xff] }
 0x3a2   : > { %v7239_v33 = vadd.f32 %v7221_v13, %v7183_v31  ;;  %v7640_v0 = vadd.f32 %v7622_v35, %v7599_v49 }
 0x3a3   : > { %6752 = vmatmul.bf16.gmra.mxu2 %v6660_v11  ;;  %v14648_v11 = vld [vmem:[%s16067_s27 + $0x14] ss:$0 sm:$0xff] }
 0x3dc   : > { %v6748_v45 = vpop.f32.mrf.mxu2 }
 0x3dd   : > { %v6749_v9 = vadd.f32 %v14535_v27, %v6748_v45  ;;  %v14630_v45 = vld [vmem:[%s16067_s27 + $0x4] ss:$0 sm:$0xff] }
 0x3df   : > { %v6762_v36 = vmax.f32 %v6749_v9, 0.0  ;;  %v14636_v9 = vld [vmem:[%s16067_s27 + $0xa] ss:$0 sm:$0xff] }
 0x3e1   : > { %v14539_v43 = vmin.f32 %v6762_v36, 6.0  ;;  %v7662_v36 = vmul.f32 %v14642_v20, %v6790_v29 }
 0x3e3   : > { %6778 = vst [vmem:[#allocation4 + $0x4a] sm:$0xff] %v14539_v43  ;;  %v6905_v39 = vmul.f32 %v14593_v30, %v14539_v43  ;;  %v7783_v40 = vmul.f32 %v14673_v24, %v14539_v43 }
 0x3e4   : > { %v6750_v34 = vpop.f32.mrf.mxu2 }
 0x3e5   : > { %v6751_v54 = vadd.f32 %v14535_v27, %v6750_v34  ;;  %v7279_v34 = vadd.f32 %v7261_v38, %v7239_v33 }
 0x3e7   : > { %v6763_v55 = vmax.f32 %v6751_v54, 0.0 }
 0x3e9   : > { %v14543_v16 = vmin.f32 %v6763_v55, 6.0  ;;  %v7680_v55 = vadd.f32 %v7662_v36, %v7640_v0 }
 0x3ea   : > { %v6791_v63 = vld [vmem:[#allocation4 + $0x48] sm:$0xff] }
 0x3eb   : > { %6779 = vst [vmem:[#allocation4 + $0x56] sm:$0xff] %v14543_v16  ;;  %v6829_v52 = vld [vmem:[#allocation4 + $0x49] sm:$0xff]  ;;  %v6811_v48 = vmul.f32 %v14568_v50, %v6791_v63  ;;  %v7300_v14 = vmul.f32 %v14636_v9, %v6791_v63  ;;  %v7701_v15 = vmul.f32 %v14648_v11, %v6791_v63 }
 0x3ec   : > { %v6849_v23 = vmul.f32 %v14574_v3, %v6829_v52  ;;  %v6941_v58 = vld [vmem:[#allocation4 + $0x4b] sm:$0xff]  ;;  %v7341_v18 = vmul.f32 %v14654_v32, %v6829_v52  ;;  %v7742_v37 = vmul.f32 %v14660_v62, %v6829_v52  ;;  %v14680_v52 = vld [vmem:[%s16067_s27 + $0xd] ss:$0 sm:$0xff] }
 0x3ed   : > { %v6997_v28 = vld [vmem:[#allocation4 + $0x4c] sm:$0xff]  ;;  %v6961_v41 = vmul.f32 %v14612_v51, %v6941_v58  ;;  %v7318_v22 = vadd.f32 %v7300_v14, %v7279_v34  ;;  %v7719_v7 = vadd.f32 %v7701_v15, %v7680_v55  ;;  %v7423_v5 = vmul.f32 %v14680_v52, %v6941_v58 }
 0x3ee   : > { %v6867_v59 = vadd.f32 %v6849_v23, %v6811_v48  ;;  %v7017_v2 = vmul.f32 %v14630_v45, %v6997_v28  ;;  %v14666_v48 = vld [vmem:[%s16067_s27 + $0xc] ss:$0 sm:$0xff]  ;;  %v10199_v34 = vld [vmem:[#allocation4 + $0x89] sm:$0xff] }
 0x3ef   : > { %v7359_v63 = vadd.f32 %v7341_v18, %v7318_v22  ;;  %v7382_v23 = vmul.f32 %v14666_v48, %v14539_v43  ;;  %v7760_v4 = vadd.f32 %v7742_v37, %v7719_v7  ;;  %v14692_v43 = vld [vmem:[%s16067_s27 + $0x18] ss:$0 sm:$0xff]  ;;  %v14707_v18 = vld [vmem:[#allocation4 + $0x8a] sm:$0xff] }
 0x3f0   : > { %v6923_v19 = vadd.f32 %v6905_v39, %v6867_v59  ;;  %v14686_v59 = vld [vmem:[%s16067_s27 + $0x17] ss:$0 sm:$0xff]  ;;  %v7864_v31 = vmul.f32 %v14692_v43, %v6997_v28  ;;  %16078 = vst [vmem:[#allocation38_spill] sm:$0xff] %v14707_v18  ;;  %v14709_v7 = vld [vmem:[#allocation4 + $0x8b] sm:$0xff] }
 0x3f1   : > { %v7400_v29 = vadd.f32 %v7382_v23, %v7359_v63  ;;  %v7801_v12 = vadd.f32 %v7783_v40, %v7760_v4  ;;  %v7824_v39 = vmul.f32 %v14686_v59, %v6941_v58  ;;  %16079 = vst [vmem:[#allocation33_spill] sm:$0xff] %v14709_v7  ;;  %v14711_v37 = vld [vmem:[#allocation4 + $0x8c] sm:$0xff] }
 0x3f2   : > { %v6979_v46 = vadd.f32 %v6961_v41, %v6923_v19  ;;  %v14698_v19 = vld [vmem:[%s16067_s27 + $0xe] ss:$0 sm:$0xff]  ;;  %16080 = vst [vmem:[#allocation34_spill] sm:$0xff] %v14711_v37  ;;  %v6793_v4 = vld [vmem:[#allocation4 + $0x58] sm:$0xff] }
 0x3f3   : > { %v7441_v17 = vadd.f32 %v7423_v5, %v7400_v29  ;;  %v7842_v42 = vadd.f32 %v7824_v39, %v7801_v12  ;;  %v7463_v41 = vmul.f32 %v14698_v19, %v6997_v28  ;;  %v6998_v58 = vld [vmem:[#allocation4 + $0x54] sm:$0xff] }
 0x3f4   : > { %v7035_v54 = vadd.f32 %v7017_v2, %v6979_v46  ;;  %v7056_v49 = vmul.f32 %v14549_v21, %v6998_v58  ;;  %v6792_v35 = vld [vmem:[#allocation4 + $0x50] sm:$0xff]  ;;  %v7502_v46 = vmul.f32 %v14555_v8, %v6998_v58  ;;  %v6831_v12 = vld [vmem:[#allocation4 + $0x59] sm:$0xff] }
 0x3f5   : > { %v7882_v13 = vadd.f32 %v7864_v31, %v7842_v42  ;;  %v7481_v38 = vadd.f32 %v7463_v41, %v7441_v17  ;;  %v6830_v33 = vld [vmem:[#allocation4 + $0x51] sm:$0xff]  ;;  %v6812_v14 = vmul.f32 %v14568_v50, %v6792_v35  ;;  %v7168_v17 = vmul.f32 %v14587_v53, %v14543_v16 }
 0x3f6   : > { %v7092_v2 = vld [vmem:[#allocation4 + $0x55] sm:$0xff]  ;;  %v6850_v0 = vmul.f32 %v14574_v3, %v6830_v33  ;;  %v7074_v36 = vadd.f32 %v7056_v49, %v7035_v54  ;;  %v7584_v42 = vmul.f32 %v14600_v26, %v14543_v16  ;;  %v6813_v31 = vmul.f32 %v14568_v50, %v6793_v4 }
 0x3f7   : > { %7900 = vst [vmem:[#allocation6 + $0x18] sm:$0xff] %v7882_v13  ;;  %v7520_v15 = vadd.f32 %v7502_v46, %v7481_v38  ;;  %v7112_v55 = vmul.f32 %v14562_v47, %v7092_v2  ;;  %v7543_v28 = vmul.f32 %v14581_v25, %v7092_v2  ;;  %v6886_v63 = vld [vmem:[#allocation4 + $0x52] sm:$0xff]  ;;  %v6851_v33 = vmul.f32 %v14574_v3, %v6831_v12 }
 0x3f8   : > { %v6868_v40 = vadd.f32 %v6850_v0, %v6812_v14  ;;  %v6906_v39 = vmul.f32 %v14593_v30, %v6886_v63  ;;  %v6942_v13 = vld [vmem:[#allocation4 + $0x53] sm:$0xff]  ;;  %v14725_v2 = vmul.f32 %v10199_v34, %v14660_v62 }
 0x3f9   : > { %v7130_v29 = vadd.f32 %v7112_v55, %v7074_v36  ;;  %v7561_v54 = vadd.f32 %v7543_v28, %v7520_v15  ;;  %v7204_v41 = vld [vmem:[#allocation4 + $0x57] sm:$0xff]  ;;  %v6962_v14 = vmul.f32 %v14612_v51, %v6942_v13 }
 0x3fa   : > { %v6924_v49 = vadd.f32 %v6906_v39, %v6868_v40  ;;  %16082 = vst [vmem:[#allocation18_spill] sm:$0xff] %v14725_v2  ;;  %v7224_v16 = vmul.f32 %v14606_v60, %v7204_v41  ;;  %v7625_v50 = vmul.f32 %v14624_v10, %v7204_v41  ;;  %v6887_v36 = vld [vmem:[#allocation4 + $0x5a] sm:$0xff] }
 0x3fb   : > { %v7186_v35 = vadd.f32 %v7168_v17, %v7130_v29  ;;  %v7602_v46 = vadd.f32 %v7584_v42, %v7561_v54  ;;  %v14732_v40 = vld [vmem:[#allocation4 + $0x7d] sm:$0xff]  ;;  %v6907_v29 = vmul.f32 %v14593_v30, %v6887_v36  ;;  %v7264_v54 = vmul.f32 %v14618_v56, %v6793_v4 }
 0x3fc   : > { %v6980_v55 = vadd.f32 %v6962_v14, %v6924_v49  ;;  %v14734_v34 = vld [vmem:[#allocation4 + $0x76] sm:$0xff]  ;;  %v14739_v39 = vld [vmem:[#allocation4 + $0x7e] sm:$0xff] }
 0x3fd   : > { %v7242_v28 = vadd.f32 %v7224_v16, %v7186_v35  ;;  %v7643_v3 = vadd.f32 %v7625_v50, %v7602_v46  ;;  %v14743_v17 = vld [vmem:[#allocation4 + $0x7f] sm:$0xff] }
 0x3fe   : > { %v14753_v35 = vld [vmem:[#allocation4 + $0x7c] sm:$0xff] }
 0x3ff   : > { %v14747_v13 = vadd.f32 %v7264_v54, %v7242_v28  ;;  %16084 = vst [vmem:[#allocation32_spill] sm:$0xff] %v14753_v35 }
 0x426   : > { %v6753_v22 = vpop.f32.mrf.mxu2 }
 0x427   : > { %v6754_v23 = vadd.f32 %v14535_v27, %v6753_v22  ;;  %v6869_v22 = vadd.f32 %v6851_v33, %v6813_v31 }
 0x429   : > { %v6764_v5 = vmax.f32 %v6754_v23, 0.0  ;;  %v7018_v23 = vmul.f32 %v14630_v45, %v6998_v58  ;;  %v6925_v58 = vadd.f32 %v6907_v29, %v6869_v22  ;;  %v14763_v22 = vld [vmem:[#allocation4 + $0x81] sm:$0xff] }
 0x42b   : > { %v14720_v38 = vmin.f32 %v6764_v5, 6.0  ;;  %v7665_v5 = vmul.f32 %v14642_v20, %v6793_v4  ;;  %v7036_v42 = vadd.f32 %v7018_v23, %v6980_v55 }
 0x42d   : > { %16081 = vst [vmem:[#allocation25_spill] sm:$0xff] %v14720_v38  ;;  %v14749_v41 = vadd.f32 %v7665_v5, %v7643_v3  ;;  %v14760_v55 = vmul.f32 %v14666_v48, %v14720_v38  ;;  %v14765_v3 = vld [vmem:[#allocation4 + $0x82] sm:$0xff] }
 0x42e   : > { %6780 = vst [vmem:[#allocation4 + $0x62] sm:$0xff] %v14720_v38  ;;  %v6755_v0 = vpop.f32.mrf.mxu2 }
 0x42f   : > { %v6756_v15 = vadd.f32 %v14535_v27, %v6755_v0  ;;  %v14741_v27 = vld [vmem:[#allocation4 + $0x77] sm:$0xff]  ;;  %16083 = vst [vmem:[#allocation28_spill] sm:$0xff] %v14749_v41 }
 0x431   : > { %v6765_v63 = vmax.f32 %v6756_v15, 0.0  ;;  %v2432_v15 = vld [vmem:[#allocation2 + $0x141] sm:$0xff] }
 0x433   : > { %v6773_v12 = vmin.f32 %v6765_v63, 6.0 }
 0x435   : > { %v14745_v31 = vld [vmem:[#allocation4 + $0x5c] sm:$0xff]  ;;  %6781 = vst [vmem:[#allocation4 + $0x6e] sm:$0xff] %v6773_v12  ;;  %v7094_v46 = vld [vmem:[#allocation4 + $0x65] sm:$0xff]  ;;  %v14793_v37 = vmul.f32 %v14600_v26, %v6773_v12 }
 0x436   : > { %v6943_v30 = vld [vmem:[#allocation4 + $0x5b] sm:$0xff]  ;;  %v7057_v49 = vmul.f32 %v14549_v21, %v14745_v31  ;;  %v7150_v50 = vld [vmem:[#allocation4 + $0x66] sm:$0xff]  ;;  %v14768_v63 = vmul.f32 %v14562_v47, %v7094_v46 }
 0x437   : > { %v7093_v4 = vld [vmem:[#allocation4 + $0x5d] sm:$0xff]  ;;  %v6963_v28 = vmul.f32 %v14612_v51, %v6943_v30  ;;  %v10225_v30 = vld [vmem:[%s15954_s5] ss:$0 sm:$0xff]  ;;  %16085 = vst [vmem:[#allocation26_spill] sm:$0xff] %v14793_v37  ;;  %v10232_v12 = vld [vmem:[%s15954_s5 + $0x4] ss:$0 sm:$0xff] }
 0x438   : > { %v14755_v33 = vld [vmem:[#allocation4 + $0x60] sm:$0xff]  ;;  %v7075_v16 = vadd.f32 %v7057_v49, %v7036_v42  ;;  %v7113_v0 = vmul.f32 %v14562_v47, %v7093_v4  ;;  %v14776_v42 = vmul.f32 %v14587_v53, %v7150_v50  ;;  %v2391_v47 = vmul.f32 %v10225_v30, %v14517_v6  ;;  %v10226_v49 = vld [vmem:[%s15954_s5 + $0x1] ss:$0 sm:$0xff]  ;;  %v10229_v30 = vld [vmem:[%s15954_s5 + $0x2] ss:$0 sm:$0xff] }
 0x439   : > { %v7149_v14 = vld [vmem:[#allocation4 + $0x5e] sm:$0xff]  ;;  %v7265_v54 = vmul.f32 %v14618_v56, %v14755_v33  ;;  %v2475_v4 = vmul.f32 %v10226_v49, %v2432_v15  ;;  %v10230_v15 = vld [vmem:[#allocation2 + $0x142] sm:$0xff] }
 0x43a   : > { %v7205_v36 = vld [vmem:[#allocation4 + $0x5f] sm:$0xff]  ;;  %v7131_v23 = vadd.f32 %v7113_v0, %v7075_v16  ;;  %v7169_v29 = vmul.f32 %v14587_v53, %v7149_v14 }
 0x43b   : > { %v14773_v5 = vld [vmem:[#allocation4 + $0x61] sm:$0xff]  ;;  %v7225_v51 = vmul.f32 %v14606_v60, %v7205_v36  ;;  %v2516_v18 = vadd.f32 %v2475_v4, %v2391_v47 }
 0x43c   : > { %v7187_v46 = vadd.f32 %v7169_v29, %v7131_v23  ;;  %v14786_v14 = vld [vmem:[#allocation4 + $0x83] sm:$0xff]  ;;  %v2643_v53 = vld [vmem:[#allocation2 + $0x152] sm:$0xff]  ;;  %v6796_v1 = vld [vmem:[#allocation4 + $0x70] sm:$0xff]  ;;  %v14798_v23 = vmul.f32 %v10230_v15, %v10229_v30 }
 0x43d   : > { %v14788_v16 = vld [vmem:[#allocation4 + $0x84] sm:$0xff]  ;;  %v2768_v0 = vld [vmem:[#allocation2 + $0x153] sm:$0xff]  ;;  %v6834_v49 = vld [vmem:[#allocation4 + $0x71] sm:$0xff]  ;;  %v14803_v38 = vmul.f32 %v10231_v61, %v2643_v53  ;;  %v14819_v53 = vadd.f32 %v6963_v28, %v6925_v58 }
 0x43e   : > { %v14790_v50 = vld [vmem:[#allocation4 + $0x63] sm:$0xff]  ;;  %v7243_v29 = vadd.f32 %v7225_v51, %v7187_v46  ;;  %v6890_v7 = vld [vmem:[#allocation4 + $0x72] sm:$0xff]  ;;  %v14808_v37 = vmul.f32 %v10232_v12, %v2768_v0  ;;  %v14812_v51 = vmul.f32 %v14581_v25, %v14732_v40  ;;  %v14823_v0 = vmul.f32 %v14630_v45, %v14745_v31 }
 0x43f   : > { %v6795_v36 = vld [vmem:[#allocation4 + $0x68] sm:$0xff]  ;;  %v6946_v30 = vld [vmem:[#allocation4 + $0x73] sm:$0xff]  ;;  %v9702_v61 = vld [vmem:[%s16087_s3 + $0x38] sm:$0xff] }
 0x440   : > { %v6833_v44 = vld [vmem:[#allocation4 + $0x69] sm:$0xff]  ;;  %16086 = vst [vmem:[#allocation29_spill] sm:$0xff] %v14812_v51  ;;  %v7283_v46 = vadd.f32 %v7265_v54, %v7243_v29  ;;  %v7002_v47 = vld [vmem:[#allocation4 + $0x74] sm:$0xff]  ;;  %v14826_v40 = vmul.f32 %v14618_v56, %v6795_v36  ;;  %v7304_v54 = vmul.f32 %v14636_v9, %v6795_v36  ;;  %8000 = vmatpush.bf16.msra.mxu3 %v9702_v61 }
 0x441   : > { %v6889_v2 = vld [vmem:[#allocation4 + $0x6a] sm:$0xff]  ;;  %v7096_v12 = vld [vmem:[#allocation4 + $0x75] sm:$0xff]  ;;  %v7345_v51 = vmul.f32 %v14654_v32, %v6833_v44  ;;  %v14838_v56 = vmul.f32 %v14636_v9, %v6796_v1  ;;  %v14841_v36 = vmul.f32 %v14654_v32, %v6834_v49  ;;  %v7506_v49 = vmul.f32 %v14555_v8, %v7002_v47 }
 0x442   : > { %v6945_v57 = vld [vmem:[#allocation4 + $0x6b] sm:$0xff]  ;;  %v7322_v29 = vadd.f32 %v7304_v54, %v7283_v46  ;;  %v9701_v58 = vld [vmem:[%s16087_s3 + $0x30] sm:$0xff]  ;;  %v7386_v31 = vmul.f32 %v14666_v48, %v6889_v2  ;;  %v14844_v46 = vmul.f32 %v14666_v48, %v6890_v7  ;;  %v14848_v54 = vmul.f32 %v14680_v52, %v6946_v30 }
 0x443   : > { %v14814_v15 = vld [vmem:[#allocation4 + $0x6c] sm:$0xff]  ;;  %v7427_v61 = vmul.f32 %v14680_v52, %v6945_v57  ;;  %v7547_v57 = vmul.f32 %v14581_v25, %v7096_v12  ;;  %v7588_v30 = vmul.f32 %v14600_v26, %v14734_v34  ;;  %v14882_v34 = vmul.f32 %v14642_v20, %v6796_v1 }
 0x444   : > { %v7095_v4 = vld [vmem:[#allocation4 + $0x6d] sm:$0xff]  ;;  %v7363_v45 = vadd.f32 %v7345_v51, %v7322_v29  ;;  %8001 = vmatpush.bf16.msra.mxu3 %v9701_v58  ;;  %v7467_v2 = vmul.f32 %v14698_v19, %v14814_v15  ;;  %v14867_v51 = vmul.f32 %v14600_v26, %v14739_v39  ;;  %v7669_v26 = vmul.f32 %v14642_v20, %v14517_v6 }
 0x445   : > { %v7206_v41 = vld [vmem:[#allocation4 + $0x67] sm:$0xff]  ;;  %v7207_v35 = vld [vmem:[#allocation4 + $0x6f] sm:$0xff]  ;;  %v14860_v7 = vmul.f32 %v14581_v25, %v7095_v4  ;;  %v14876_v4 = vmul.f32 %v14624_v10, %v14743_v17  ;;  %v14888_v39 = vmul.f32 %v14648_v11, %v14517_v6  ;;  %v7790_v17 = vmul.f32 %v14765_v3, %v14673_v24 }
 0x446   : > { %v14834_v28 = vmul.f32 %v14606_v60, %v7206_v41  ;;  %v7404_v44 = vadd.f32 %v7386_v31, %v7363_v45  ;;  %v9700_v60 = vld [vmem:[%s16087_s3 + $0x28] sm:$0xff]  ;;  %v14856_v41 = vmul.f32 %v14698_v19, %v7002_v47  ;;  %v14870_v29 = vmul.f32 %v14624_v10, %v7207_v35  ;;  %v9699_v25 = vld [vmem:[%s16087_s3 + $0x20] sm:$0xff]  ;;  %v10234_v31 = vld [vmem:[#allocation2 + $0x154] sm:$0xff] }
 0x447   : > { %v7629_v47 = vmul.f32 %v14624_v10, %v14741_v27  ;;  %v2979_v35 = vld [vmem:[#allocation2 + $0x164] sm:$0xff]  ;;  %v7749_v10 = vmul.f32 %v14763_v22, %v14660_v62  ;;  %v7831_v1 = vmul.f32 %v14786_v14, %v14686_v59  ;;  %v2641_v20 = vadd.f32 %v14798_v23, %v2516_v18  ;;  %v9698_v18 = vld [vmem:[%s16087_s3 + $0x18] sm:$0xff] }
 0x448   : > { %v7445_v48 = vadd.f32 %v7427_v61, %v7404_v44  ;;  %8002 = vmatpush.bf16.msra.mxu3 %v9700_v60  ;;  %v3104_v27 = vld [vmem:[#allocation2 + $0x165] sm:$0xff]  ;;  %v14900_v61 = vld [vmem:[#allocation4 + $0x64] sm:$0xff] }
 0x449   : > { %v3229_v45 = vld [vmem:[#allocation2 + $0x166] sm:$0xff]  ;;  %v10233_v6 = vld [vmem:[%s15954_s5 + $0x5] ss:$0 sm:$0xff]  ;;  %v2727_v23 = vadd.f32 %v14803_v38, %v2641_v20 }
 0x44a   : > { %v7485_v58 = vadd.f32 %v7467_v2, %v7445_v48  ;;  %v2936_v44 = vmul.f32 %v10234_v31, %v10233_v6  ;;  %v10235_v22 = vld [vmem:[%s15954_s5 + $0x6] ss:$0 sm:$0xff]  ;;  %v10236_v14 = vld [vmem:[%s15954_s5 + $0x7] ss:$0 sm:$0xff]  ;;  %v9696_v6 = vld [vmem:[%s16087_s3 + $0x8] sm:$0xff] }
 0x44b   : > { %v3022_v3 = vmul.f32 %v10235_v22, %v2979_v35  ;;  %v3147_v2 = vmul.f32 %v10236_v14, %v3104_v27  ;;  %v2852_v35 = vadd.f32 %v14808_v37, %v2727_v23  ;;  %v7058_v27 = vmul.f32 %v14549_v21, %v14900_v61  ;;  %v10238_v22 = vld [vmem:[#allocation4 + $0x79] sm:$0xff] }
 0x44c   : > { %v7524_v12 = vadd.f32 %v7506_v49, %v7485_v58  ;;  %8003 = vmatpush.bf16.msra.mxu3 %v9699_v25  ;;  %v10237_v49 = vld [vmem:[%s15954_s5 + $0x8] ss:$0 sm:$0xff]  ;;  %v9697_v58 = vld [vmem:[%s16087_s3 + $0x10] sm:$0xff]  ;;  %v7037_v25 = vadd.f32 %v14823_v0, %v14819_v53  ;;  %v7344_v37 = vmul.f32 %v14654_v32, %v14773_v5  ;;  %s16165_s5 = sld [smem:[#allocation65_spill]] }
 0x44d   : > { %v3272_v48 = vmul.f32 %v10237_v49, %v3229_v45  ;;  %v2977_v20 = vadd.f32 %v2936_v44, %v2852_v35  ;;  %v7466_v49 = vmul.f32 %v14698_v19, %v14900_v61  ;;  %v16089_v35 = vld [vmem:[#allocation28_spill] sm:$0xff] }
 0x44e   : > { %v7565_v60 = vadd.f32 %v7547_v57, %v7524_v12  ;;  %v7303_v12 = vmul.f32 %v14636_v9, %v14755_v33  ;;  %v7076_v45 = vadd.f32 %v7058_v27, %v7037_v25  ;;  %v7871_v9 = vmul.f32 %v14788_v16, %v14692_v43 }
 0x44f   : > { %v3063_v53 = vadd.f32 %v3022_v3, %v2977_v20  ;;  %v7426_v16 = vmul.f32 %v14680_v52, %v14790_v50  ;;  %v7505_v52 = vmul.f32 %v14555_v8, %v14814_v15  ;;  %v7745_v27 = vmul.f32 %v14660_v62, %v14773_v5  ;;  %v16090_v20 = vld [vmem:[#allocation25_spill] sm:$0xff] }
 0x450   : > { %v7606_v57 = vadd.f32 %v7588_v30, %v7565_v60  ;;  %8004 = vmatpush.bf16.msra.mxu3 %v9698_v18  ;;  %v7321_v31 = vadd.f32 %v7303_v12, %v14747_v13  ;;  %v7132_v21 = vadd.f32 %v14768_v63, %v7076_v45  ;;  %v9695_v13 = vld [vmem:[%s16087_s3] sm:$0xff]  ;;  %v10239_v18 = vld [vmem:[#allocation4 + $0x7a] sm:$0xff]  ;;  %v7827_v5 = vmul.f32 %v14686_v59, %v14790_v50 }
 0x451   : > { %v14982_v50 = vld [vmem:[%s16092_s13 + $0x1] ss:$0 sm:$0xff] }
 0x452   : > { %v7647_v38 = vadd.f32 %v7629_v47, %v7606_v57  ;;  %v7362_v47 = vadd.f32 %v7344_v37, %v7321_v31  ;;  %v7188_v44 = vadd.f32 %v14776_v42, %v7132_v21  ;;  %s9207_s3 = scalar_lea.hbm %s16165_s5, %s9751_s0 }
 0x453   : > { %s9210_s11 = sshll.u32 %s9207_s3, 4  ;;  %s9211_s11 = int_to_ptr.hbm [resolvable:$true] %s9210_s11 }
 0x454   : > { %v7687_v30 = vadd.f32 %v7669_v26, %v7647_v38  ;;  %8005 = vmatpush.bf16.msra.mxu3 %v9697_v58  ;;  %v3188_v26 = vadd.f32 %v3147_v2, %v3063_v53  ;;  %v7403_v32 = vadd.f32 %v14760_v55, %v7362_v47  ;;  %v7244_v63 = vadd.f32 %v14834_v28, %v7188_v44  ;;  %v16093_v53 = vld [vmem:[#allocation29_spill] sm:$0xff]  ;;  %s10297_s7 = sshra.s32 %s9211_s11, 4  ;;  %s10298_s7 = int_to_ptr.hbm [resolvable:$true] %s10297_s7 }
 0x455   : > { %v7704_v58 = vmul.f32 %v14648_v11, %v14755_v33  ;;  %v7789_v11 = vmul.f32 %v10239_v18, %v14673_v24  ;;  %v14999_v44 = vld [vmem:[%s16092_s13 + $0x2] ss:$0 sm:$0xff]  ;;  %v15018_v18 = vld [vmem:[#allocation5 + $0x33] sm:$0xff]  ;;  %p10304_p1 = scmp.lt.s32.totalorder %s10298_s7, %s16165_s5 }
 0x456   : > { %v7726_v0 = vadd.f32 %v14888_v39, %v7687_v30  ;;  %v3313_v3 = vadd.f32 %v3272_v48, %v3188_v26  ;;  %v7284_v42 = vadd.f32 %v14826_v40, %v7244_v63  ;;  %v7444_v23 = vadd.f32 %v7426_v16, %v7403_v32  ;;  %v10240_v48 = vld [vmem:[#allocation4 + $0x7b] sm:$0xff]  ;;  %16096 = vst [vmem:[#allocation22_spill] sm:$0xff] %v15018_v18  ;;  %v15020_v16 = vld [vmem:[#allocation5 + $0x3b] sm:$0xff] }
 0x457   : > { %v16088_v40 = vld [vmem:[#allocation32_spill] sm:$0xff] }
 0x458   : > { %v7767_v60 = vadd.f32 %v7749_v10, %v7726_v0  ;;  %8006 = vmatpush.bf16.msra.mxu3 %v9696_v6  ;;  %v3334_v2 = vpack.c.bf16 %v3313_v3, %v3313_v3  ;;  %v7323_v55 = vadd.f32 %v14838_v56, %v7284_v42  ;;  %v7484_v28 = vadd.f32 %v7466_v49, %v7444_v23  ;;  %v15008_v3 = vld [vmem:[#allocation5 + $0x3a] sm:$0xff] }
 0x459   : > { %v7722_v56 = vadd.f32 %v7704_v58, %v16089_v35  ;;  %v7870_v37 = vmul.f32 %v16088_v40, %v14692_v43  ;;  %v15029_v23 = vld [vmem:[#allocation5 + $0x34] sm:$0xff]  ;;  %v16098_v49 = vld [vmem:[#allocation37_spill] sm:$0xff] }
 0x45a   : > { %v7808_v14 = vadd.f32 %v7790_v17, %v7767_v60  ;;  %3507 = vmatmul.bf16.gmra.mxu3 %v3334_v2  ;;  %v7364_v17 = vadd.f32 %v14841_v36, %v7323_v55  ;;  %v7523_v25 = vadd.f32 %v7505_v52, %v7484_v28  ;;  %v7748_v36 = vmul.f32 %v10238_v22, %v14660_v62  ;;  %v15005_v22 = vld [vmem:[#allocation5 + $0x32] sm:$0xff]  ;;  %v15025_v2 = vld [vmem:[%s16092_s13 + $0x4] ss:$0 sm:$0xff] }
 0x45b   : > { %v7763_v12 = vadd.f32 %v7745_v27, %v7722_v56  ;;  %v7830_v62 = vmul.f32 %v10240_v48, %v14686_v59  ;;  %16095 = vst [vmem:[#allocation20_spill] sm:$0xff] %v15005_v22  ;;  %v8082_v63 = vmul.f32 %v14999_v44, %v15005_v22  ;;  %v8134_v28 = vmul.f32 %v15025_v2, %v15029_v23  ;;  %v16100_v58 = vld [vmem:[#allocation17_spill] sm:$0xff] }
 0x45c   : > { %v7849_v10 = vadd.f32 %v7831_v1, %v7808_v14  ;;  %8007 = vmatpush.bf16.msra.mxu3 %v9695_v13  ;;  %v7507_v1 = vmul.f32 %v16088_v40, %v14555_v8  ;;  %v7405_v19 = vadd.f32 %v14844_v46, %v7364_v17  ;;  %v7564_v15 = vadd.f32 %v14860_v7, %v7523_v25  ;;  %v16091_v46 = vld [vmem:[#allocation26_spill] sm:$0xff]  ;;  %v15003_v13 = vld [vmem:[#allocation5 + $0x39] sm:$0xff]  ;;  %v15015_v14 = vld [vmem:[%s16092_s13 + $0x3] ss:$0 sm:$0xff] }
 0x45d   : > { %v7786_v8 = vmul.f32 %v14673_v24, %v16090_v20  ;;  %16097 = vst [vmem:[#allocation24_spill] sm:$0xff] %v15029_v23  ;;  %v16099_v17 = vld [vmem:[#allocation38_spill] sm:$0xff] }
 0x45e   : > { %v7889_v57 = vadd.f32 %v7871_v9, %v7849_v10  ;;  %v7446_v38 = vadd.f32 %v14848_v54, %v7405_v19  ;;  %v7605_v45 = vadd.f32 %v16091_v46, %v7564_v15  ;;  %v14972_v54 = vld [vmem:[%s16092_s13] ss:$0 sm:$0xff]  ;;  %v14986_v9 = vld [vmem:[#allocation5 + $0x31] sm:$0xff]  ;;  %v8108_v10 = vmul.f32 %v15015_v14, %v15018_v18  ;;  %v16102_v15 = vld [vmem:[#allocation18_spill] sm:$0xff] }
 0x45f   : > { %v7804_v30 = vadd.f32 %v7786_v8, %v7763_v12  ;;  %16094 = vst [vmem:[#allocation36_spill] sm:$0xff] %v14986_v9  ;;  %v8056_v26 = vmul.f32 %v14982_v50, %v14986_v9  ;;  %v7791_v52 = vmul.f32 %v16099_v17, %v14673_v24  ;;  %v15058_v24 = vld [vmem:[%s16092_s13 + $0x7] ss:$0 sm:$0xff]  ;;  %v15071_v46 = vld [vmem:[%s16092_s13 + $0x8] ss:$0 sm:$0xff]  ;;  %v15114_v17 = vld [vmem:[#allocation5 + $0x4a] sm:$0xff] }
 0x460   : > { %7907 = vst [vmem:[#allocation6 + $0x50] sm:$0xff] %v7889_v57  ;;  %v7486_v33 = vadd.f32 %v14856_v41, %v7446_v38  ;;  %v7646_v6 = vadd.f32 %v14870_v29, %v7605_v45  ;;  %v7867_v41 = vmul.f32 %v14692_v43, %v14900_v61  ;;  %v14988_v29 = vld [vmem:[#allocation2] sm:$0xff]  ;;  %v16103_v45 = vld [vmem:[#allocation34_spill] sm:$0xff] }
 0x461   : > { %v7845_v31 = vadd.f32 %v7827_v5, %v7804_v30  ;;  %v14992_v61 = vmul.f32 %v14988_v29, %v14972_v54  ;;  %v15037_v57 = vld [vmem:[#allocation5 + $0x3c] sm:$0xff]  ;;  %v7872_v30 = vmul.f32 %v16103_v45, %v14692_v43  ;;  %v15146_v45 = vld [vmem:[%s16092_s13 + $0x10] ss:$0 sm:$0xff] }
 0x462   : > { %v7525_v7 = vadd.f32 %v7507_v1, %v7486_v33  ;;  %v7686_v0 = vadd.f32 %v14882_v34, %v7646_v6  ;;  %v15046_v1 = vld [vmem:[%s16092_s13 + $0x6] ss:$0 sm:$0xff]  ;;  %v8191_v33 = vmul.f32 %v15058_v24, %v15008_v3  ;;  %v15082_v6 = vld [vmem:[%s16092_s13 + $0x9] ss:$0 sm:$0xff] }
 0x463   : > { %v7885_v47 = vadd.f32 %v7867_v41, %v7845_v31  ;;  %v8064_v32 = vadd.f32 %v8056_v26, %v14992_v61  ;;  %v8172_v27 = vmul.f32 %v15046_v1, %v15003_v13  ;;  %v15063_v8 = vld [vmem:[#allocation5 + $0x41] sm:$0xff]  ;;  %v8229_v43 = vmul.f32 %v15082_v6, %v15037_v57  ;;  %v15093_v26 = vld [vmem:[%s16092_s13 + $0xa] ss:$0 sm:$0xff] }
 0x464   : > { %v7566_v21 = vadd.f32 %v16093_v53, %v7525_v7  ;;  %v7725_v34 = vadd.f32 %v14888_v39, %v7686_v0  ;;  %v8210_v7 = vmul.f32 %v15071_v46, %v15020_v16  ;;  %v15084_v41 = vld [vmem:[#allocation5 + $0x43] sm:$0xff] }
 0x465   : > { %7903 = vst [vmem:[#allocation6 + $0x30] sm:$0xff] %v7885_v47  ;;  %v8090_v42 = vadd.f32 %v8082_v63, %v8064_v32  ;;  %v15088_v0 = vld [vmem:[#allocation5 + $0x44] sm:$0xff] }
 0x466   : > { %v7607_v60 = vadd.f32 %v14867_v51, %v7566_v21  ;;  %v7766_v39 = vadd.f32 %v7748_v36, %v7725_v34  ;;  %v16101_v36 = vld [vmem:[#allocation33_spill] sm:$0xff] }
 0x467   : > { %v8116_v40 = vadd.f32 %v8108_v10, %v8090_v42  ;;  %v7832_v38 = vmul.f32 %v16101_v36, %v14686_v59  ;;  %v15075_v59 = vld [vmem:[#allocation5 + $0x42] sm:$0xff]  ;;  %v15109_v42 = vld [vmem:[%s16092_s13 + $0xc] ss:$0 sm:$0xff]  ;;  %v15130_v36 = vld [vmem:[%s16092_s13 + $0xe] ss:$0 sm:$0xff] }
 0x468   : > { %v7648_v51 = vadd.f32 %v14876_v4, %v7607_v60  ;;  %v15034_v4 = vld [vmem:[%s16092_s13 + $0x5] ss:$0 sm:$0xff]  ;;  %v7807_v48 = vadd.f32 %v7789_v11, %v7766_v39  ;;  %v15098_v60 = vld [vmem:[%s16092_s13 + $0xb] ss:$0 sm:$0xff] }
 0x469   : > { %v8142_v35 = vadd.f32 %v8134_v28, %v8116_v40  ;;  %v15051_v56 = vmul.f32 %v14988_v29, %v15034_v4  ;;  %v8267_v39 = vmul.f32 %v15098_v60, %v15063_v8  ;;  %v7915_v10 = vld [vmem:[#allocation6] ss:$2 sm:$0xf]  ;;  %v15121_v40 = vld [vmem:[%s16092_s13 + $0xd] ss:$0 sm:$0xff] }
 0x46a   : > { %v7688_v55 = vadd.f32 %v16098_v49, %v7648_v51  ;;  %v7848_v25 = vadd.f32 %v7830_v62, %v7807_v48  ;;  %v15102_v51 = vmul.f32 %v14988_v29, %v15093_v26 }
 0x46b   : > { %v8161_v11 = vadd.f32 %v15051_v56, %v8142_v35 }
 0x46c   : > { %v7727_v19 = vadd.f32 %v16100_v58, %v7688_v55  ;;  %v7888_v20 = vadd.f32 %v7870_v37, %v7848_v25  ;;  %v7917_v37 = vld [vmem:[#allocation6 + $0x18] ss:$2 sm:$0xf]  ;;  %v15111_v55 = vld [vmem:[#allocation5 + $0x49] sm:$0xff] }
 0x46d   : > { %v8180_v62 = vadd.f32 %v8172_v27, %v8161_v11  ;;  %v7923_v34 = vrot.slane %v7917_v37, 4  ;;  %v7919_v48 = vld [vmem:[#allocation6 + $0x30] ss:$2 sm:$0xf]  ;;  %v8305_v27 = vmul.f32 %v15121_v40, %v15084_v41 }
 0x46e   : > { %v7768_v12 = vadd.f32 %v16102_v15, %v7727_v19  ;;  %7906 = vst [vmem:[#allocation6 + $0x48] sm:$0xff] %v7888_v20  ;;  %v15136_v20 = vld [vmem:[#allocation5 + $0x4c] sm:$0xff] }
 0x46f   : > { %v8199_v53 = vadd.f32 %v8191_v33, %v8180_v62  ;;  %v7929_v58 = vsel %vm7928_vm0, %v7915_v10, %v7923_v34  ;;  %16104 = vst [vmem:[#allocation21_spill] sm:$0xff] %v15136_v20  ;;  %v15141_v33 = vld [vmem:[%s16092_s13 + $0xf] ss:$0 sm:$0xff]  ;;  %v8372_v37 = vld [vmem:[#allocation5 + $0x52] sm:$0xff] }
 0x470   : > { %v7809_v5 = vadd.f32 %v7791_v52, %v7768_v12  ;;  %v8286_v52 = vmul.f32 %v15109_v42, %v15075_v59  ;;  %v8324_v12 = vmul.f32 %v15130_v36, %v15088_v0  ;;  %v15150_v62 = vmul.f32 %v14988_v29, %v15141_v33 }
 0x471   : > { %v8218_v47 = vadd.f32 %v8210_v7, %v8199_v53  ;;  %v8362_v7 = vmul.f32 %v15146_v45, %v15111_v55 }
 0x472   : > { %v7850_v31 = vadd.f32 %v7832_v38, %v7809_v5  ;;  %v15132_v38 = vld [vmem:[#allocation5 + $0x4b] sm:$0xff]  ;;  %16105 = vst [vmem:[#allocation27_spill] sm:$0xff] %v15150_v62 }
 0x473   : > { %v8237_v63 = vadd.f32 %v8229_v43, %v8218_v47  ;;  %v8391_v47 = vld [vmem:[#allocation5 + $0x53] sm:$0xff] }
 0x474   : > { %v7890_v21 = vadd.f32 %v7872_v30, %v7850_v31  ;;  %v8353_v30 = vld [vmem:[#allocation5 + $0x51] sm:$0xff] }
 0x475   : > { %v7921_v32 = vld [vmem:[#allocation6 + $0x48] ss:$2 sm:$0xf]  ;;  %v8256_v28 = vadd.f32 %v15102_v51, %v8237_v63  ;;  %v15157_v31 = vld [vmem:[%s16092_s13 + $0x11] ss:$0 sm:$0xff] }
 0x476   : > { %7908 = vst [vmem:[#allocation6 + $0x58] sm:$0xff] %v7890_v21  ;;  %v7926_v49 = vrot.slane %v7921_v32, 4  ;;  %v8381_v43 = vmul.f32 %v15157_v31, %v15114_v17  ;;  %v15165_v21 = vld [vmem:[%s16092_s13 + $0x12] ss:$0 sm:$0xff]  ;;  %v15172_v63 = vld [vmem:[%s16092_s13 + $0x13] ss:$0 sm:$0xff] }
 0x477   : > { %v8275_v35 = vadd.f32 %v8267_v39, %v8256_v28  ;;  %16106 = vst [vmem:[#allocation19_spill] sm:$0xff] %v15157_v31  ;;  %v8400_v32 = vmul.f32 %v15165_v21, %v15132_v38  ;;  %v8410_v39 = vld [vmem:[#allocation5 + $0x54] sm:$0xff] }
 0x478   : > { %v7930_v19 = vsel %vm7928_vm0, %v7919_v48, %v7926_v49  ;;  %16107 = vst [vmem:[#allocation35_spill] sm:$0xff] %v15165_v21  ;;  %v8419_v49 = vmul.f32 %v15172_v63, %v15136_v20  ;;  %v15179_v28 = vld [vmem:[%s16092_s13 + $0x14] ss:$0 sm:$0xff] }
 0x479   : > { %v7931_v25 = vpack.c.bf16 %v7930_v19, %v7929_v58  ;;  %v8294_v15 = vadd.f32 %v8286_v52, %v8275_v35  ;;  %16108 = vst [vmem:[#allocation23_spill] sm:$0xff] %v15172_v63  ;;  %v15184_v52 = vld [vmem:[%s16092_s13 + $0x15] ss:$0 sm:$0xff]  ;;  %v15188_v19 = vmul.f32 %v14988_v29, %v15179_v28  ;;  %v15194_v35 = vld [vmem:[%s16092_s13 + $0x16] ss:$0 sm:$0xff] }
 0x47a   : > { %16109 = vst [vmem:[#allocation31_spill] sm:$0xff] %v15179_v28 }
 0x47b   : > { %8008 = vmatmul.bf16.vlgmr.msra.gmra.mxu3 %v7931_v25  ;;  %v8313_v11 = vadd.f32 %v8305_v27, %v8294_v15  ;;  %16110 = vst [vmem:[#allocation32_spill] sm:$0xff] %v15184_v52  ;;  %v8457_v25 = vmul.f32 %v15184_v52, %v8353_v30  ;;  %v8476_v15 = vmul.f32 %v15194_v35, %v8372_v37  ;;  %v15207_v30 = vld [vmem:[%s16092_s13 + $0x18] ss:$0 sm:$0xff] }
 0x47c   : > { %16111 = vst [vmem:[#allocation28_spill] sm:$0xff] %v15188_v19 }
 0x47d   : > { %v8332_v5 = vadd.f32 %v8324_v12, %v8313_v11  ;;  %16112 = vst [vmem:[#allocation25_spill] sm:$0xff] %v15194_v35  ;;  %v15201_v12 = vld [vmem:[%s16092_s13 + $0x17] ss:$0 sm:$0xff]  ;;  %s10299_s13 = scalar_lea.hbm %s10298_s7, 16 }
 0x47e   : > { %16113 = vst [vmem:[#allocation26_spill] sm:$0xff] %v15201_v12  ;;  %v8495_v29 = vmul.f32 %v15201_v12, %v8391_v47  ;;  %p10300_p12 = scmp.ne.s32.totalorder %s10298_s7, %s10299_s13 }
 0x47f   : > { %v8351_v53 = vadd.f32 %v15150_v62, %v8332_v5  ;;  %16114 = vst [vmem:[#allocation29_spill] sm:$0xff] %v15207_v30 }
 0x480   : > { %p10301_p13 = pnand %p10300_p12, %p10528_p5 }
 0x481   : > { %v8370_v34 = vadd.f32 %v8362_v7, %v8351_v53  ;;  %v8514_v7 = vmul.f32 %v15207_v30, %v8410_v39  ;;  %v9914_v39 = vld [vmem:[%s16115_s12] ss:$0 sm:$0xff]  ;;  %s836_s12 = scalar_lea.vmem %s15794_s25, %s9332_s6 }
 0x482   : > { %p10302_p0 = pneg %p10301_p13 }
 0x483   : > { %v8389_v10 = vadd.f32 %v8381_v43, %v8370_v34 }
 0x485   : > { %v8408_v48 = vadd.f32 %v8400_v32, %v8389_v10  ;;  %v8040_v32 = vld [vmem:[#allocation5 + $0x1] sm:$0xff] }
 0x486   : > { %v8050_v10 = vmul.f32 %v14982_v50, %v8040_v32 }
 0x487   : > { %v8427_v58 = vadd.f32 %v8419_v49, %v8408_v48  ;;  %v8066_v49 = vld [vmem:[#allocation5 + $0x2] sm:$0xff] }
 0x488   : > { %v8058_v48 = vadd.f32 %v8050_v10, %v14992_v61  ;;  %v8076_v47 = vmul.f32 %v14999_v44, %v8066_v49 }
 0x489   : > { %v8446_v27 = vadd.f32 %v15188_v19, %v8427_v58  ;;  %v8092_v58 = vld [vmem:[#allocation5 + $0x3] sm:$0xff] }
 0x48b   : > { %v8465_v11 = vadd.f32 %v8457_v25, %v8446_v27  ;;  %v8084_v25 = vadd.f32 %v8076_v47, %v8058_v48  ;;  %v8102_v27 = vmul.f32 %v15015_v14, %v8092_v58  ;;  %v8067_v48 = vld [vmem:[#allocation5 + $0xa] sm:$0xff]  ;;  %v15226_v47 = vmul.f32 %v15130_v36, %v15037_v57 }
 0x48d   : > { %v8484_v5 = vadd.f32 %v8476_v15, %v8465_v11  ;;  %v8118_v15 = vld [vmem:[#allocation5 + $0x4] sm:$0xff]  ;;  %v8110_v11 = vadd.f32 %v8102_v27, %v8084_v25  ;;  %16117 = vst [vmem:[#allocation38_spill] sm:$0xff] %v15226_v47  ;;  %v15231_v25 = vmul.f32 %v15146_v45, %v15063_v8  ;;  %v15235_v27 = vmul.f32 %v15157_v31, %v15075_v59 }
 0x48e   : > { %v15246_v8 = vmul.f32 %v15172_v63, %v15088_v0  ;;  %v15250_v59 = vmul.f32 %v15184_v52, %v15111_v55 }
 0x48f   : > { %v8503_v53 = vadd.f32 %v8495_v29, %v8484_v5  ;;  %v8128_v29 = vmul.f32 %v15025_v2, %v8118_v15  ;;  %16118 = vst [vmem:[#allocation17_spill] sm:$0xff] %v15231_v25  ;;  %v15239_v15 = vmul.f32 %v15165_v21, %v15084_v41  ;;  %v15254_v41 = vmul.f32 %v15194_v35, %v15114_v17 }
 0x490   : > { %16119 = vst [vmem:[#allocation33_spill] sm:$0xff] %v15235_v27  ;;  %v15272_v17 = vmul.f32 %v15058_v24, %v15005_v22 }
 0x491   : > { %v8522_v43 = vadd.f32 %v8514_v7, %v8503_v53  ;;  %v8136_v53 = vadd.f32 %v8128_v29, %v8110_v11  ;;  %16120 = vst [vmem:[#allocation18_spill] sm:$0xff] %v15239_v15 }
 0x492   : > { %16121 = vst [vmem:[#allocation34_spill] sm:$0xff] %v15246_v8 }
 0x493   : > { %8530 = vst [vmem:[#allocation6 + $0x30] sm:$0xff] %v8522_v43  ;;  %v8155_v10 = vadd.f32 %v15051_v56, %v8136_v53  ;;  %v8185_v53 = vmul.f32 %v15058_v24, %v8067_v48 }
 0x494   : > { %16122 = vst [vmem:[#allocation39_spill] sm:$0xff] %v15250_v59  ;;  %v15301_v59 = vmul.f32 %v15109_v42, %v15008_v3 }
 0x495   : > { %16123 = vst [vmem:[#allocation40_spill] sm:$0xff] %v15254_v41 }
 0x4dd   : > { %v3508_v37 = vpop.f32.mrf.mxu3 }
 0x4de   : > { %v8041_v37 = vld [vmem:[#allocation5 + $0x9] sm:$0xff] }
 0x4df   : > { %v8051_v32 = vmul.f32 %v14982_v50, %v8041_v37  ;;  %v8166_v49 = vmul.f32 %v15046_v1, %v8041_v37 }
 0x4e1   : > { %v8059_v29 = vadd.f32 %v8051_v32, %v14992_v61  ;;  %v15258_v61 = vmul.f32 %v15201_v12, %v15132_v38 }
 0x4e3   : > { %16124 = vst [vmem:[#allocation41_spill] sm:$0xff] %v15258_v61  ;;  %v15295_v61 = vmul.f32 %v15098_v60, %v15003_v13 }
 0x4e5   : > { %v3509_v34 = vpop.f32.mrf.mxu3 }
 0x4fe   : > { %v8009_v5 = vpop.f32.mrf.mxu3 }
 0x4ff   : > { %v8010_v7 = vadd.f32 %v9914_v39, %v8009_v5  ;;  %v8077_v5 = vmul.f32 %v14999_v44, %v8067_v48  ;;  %v15268_v48 = vmul.f32 %v15046_v1, %v14986_v9 }
 0x501   : > { %v8014_v43 = vmax.f32 %v8010_v7, 0.0  ;;  %v8174_v7 = vadd.f32 %v8166_v49, %v8155_v10  ;;  %v8085_v49 = vadd.f32 %v8077_v5, %v8059_v29  ;;  %v15281_v29 = vmul.f32 %v15071_v46, %v15018_v18 }
 0x502   : > { %v15285_v5 = vmul.f32 %v15082_v6, %v15029_v23 }
 0x503   : > { %v15218_v34 = vmin.f32 %v8014_v43, 6.0  ;;  %v8193_v55 = vadd.f32 %v8185_v53, %v8174_v7 }
 0x505   : > { %16116 = vst [vmem:[#allocation37_spill] sm:$0xff] %v15218_v34 }
 0x506   : > { %8018 = vst [vmem:[#allocation5 + $0x12] sm:$0xf] %v15218_v34  ;;  %v8011_v58 = vpop.f32.mrf.mxu3 }
 0x507   : > { %8019 = vst [vmem:[#allocation5 + $0x16] sm:$0xf0] %v15218_v34  ;;  %v8012_v11 = vadd.f32 %v9914_v39, %v8011_v58  ;;  %v15262_v39 = vmul.f32 %v15207_v30, %v15037_v57 }
 0x509   : > { %v8015_v43 = vmax.f32 %v8012_v11, 0.0  ;;  %16125 = vst [vmem:[#allocation42_spill] sm:$0xff] %v15262_v39 }
 0x50b   : > { %v15264_v37 = vmin.f32 %v8015_v43, 6.0 }
 0x50d   : > { %16126 = vst [vmem:[#allocation43_spill] sm:$0xff] %v15264_v37  ;;  %v8024_v0 = vld [vmem:[#allocation5 + $0x10] sm:$0xff] }
 0x50e   : > { %v8042_v32 = vld [vmem:[#allocation5 + $0x11] sm:$0xff]  ;;  %v8034_v57 = vmul.f32 %v14972_v54, %v8024_v0  ;;  %8020 = vst [vmem:[#allocation5 + $0x22] sm:$0xf] %v15264_v37  ;;  %v8148_v12 = vmul.f32 %v15034_v4, %v8024_v0  ;;  %v15313_v3 = vld [vmem:[#allocation5 + $0x19] sm:$0xff]  ;;  %v8242_v28 = vmul.f32 %v15093_v26, %v8024_v0 }
 0x50f   : > { %v8068_v10 = vld [vmem:[#allocation5 + $0x12] sm:$0xff]  ;;  %v8052_v58 = vmul.f32 %v14982_v50, %v8042_v32  ;;  %8021 = vst [vmem:[#allocation5 + $0x26] sm:$0xf0] %v15264_v37  ;;  %v8167_v8 = vmul.f32 %v15046_v1, %v8042_v32  ;;  %v15323_v23 = vld [vmem:[#allocation5 + $0x1a] sm:$0xff]  ;;  %v8261_v18 = vmul.f32 %v15098_v60, %v8042_v32 }
 0x510   : > { %v15274_v38 = vld [vmem:[#allocation5 + $0x18] sm:$0xff]  ;;  %v8093_v11 = vld [vmem:[#allocation5 + $0xb] sm:$0xff]  ;;  %v8078_v41 = vmul.f32 %v14999_v44, %v8068_v10  ;;  %v15337_v0 = vmul.f32 %v15109_v42, %v8068_v10  ;;  %v8079_v25 = vmul.f32 %v14999_v44, %v15323_v23 }
 0x511   : > { %16127 = vst [vmem:[#allocation44_spill] sm:$0xff] %v15274_v38  ;;  %v15287_v7 = vld [vmem:[#allocation5 + $0x13] sm:$0xff]  ;;  %v8103_v53 = vmul.f32 %v15015_v14, %v8093_v11  ;;  %v8060_v34 = vadd.f32 %v8052_v58, %v8034_v57  ;;  %v8035_v35 = vmul.f32 %v14972_v54, %v15274_v38  ;;  %v8204_v37 = vmul.f32 %v15071_v46, %v8093_v11 }
 0x512   : > { %v8119_v43 = vld [vmem:[#allocation5 + $0xc] sm:$0xff]  ;;  %v15290_v39 = vld [vmem:[#allocation5 + $0x14] sm:$0xff]  ;;  %v8104_v13 = vmul.f32 %v15015_v14, %v15287_v7  ;;  %v8149_v58 = vmul.f32 %v15034_v4, %v15274_v38 }
 0x513   : > { %16128 = vst [vmem:[#allocation45_spill] sm:$0xff] %v15290_v39  ;;  %v8111_v30 = vadd.f32 %v8103_v53, %v8085_v49  ;;  %v8129_v20 = vmul.f32 %v15025_v2, %v8119_v43  ;;  %v8086_v52 = vadd.f32 %v8078_v41, %v8060_v34  ;;  %v8130_v57 = vmul.f32 %v15025_v2, %v15290_v39 }
 0x514   : > { %v8186_v49 = vmul.f32 %v15058_v24, %v8068_v10  ;;  %v8212_v53 = vadd.f32 %v8204_v37, %v8193_v55  ;;  %v8205_v34 = vmul.f32 %v15071_v46, %v15287_v7  ;;  %v8223_v41 = vmul.f32 %v15082_v6, %v8119_v43 }
 0x515   : > { %v8137_v19 = vadd.f32 %v8129_v20, %v8111_v30  ;;  %v8224_v11 = vmul.f32 %v15082_v6, %v15290_v39  ;;  %v8112_v15 = vadd.f32 %v8104_v13, %v8086_v52  ;;  %v8243_v20 = vmul.f32 %v15093_v26, %v15274_v38  ;;  %v15327_v30 = vld [vmem:[#allocation5 + $0x20] sm:$0xff] }
 0x516   : > { %v15329_v37 = vld [vmem:[#allocation5 + $0x21] sm:$0xff]  ;;  %v8053_v55 = vmul.f32 %v14982_v50, %v15313_v3  ;;  %v15341_v52 = vld [vmem:[#allocation5 + $0x29] sm:$0xff]  ;;  %v8231_v13 = vadd.f32 %v8223_v41, %v8212_v53 }
 0x517   : > { %v8156_v63 = vadd.f32 %v8148_v12, %v8137_v19  ;;  %v15333_v43 = vld [vmem:[#allocation5 + $0x22] sm:$0xff]  ;;  %v15343_v19 = vld [vmem:[#allocation5 + $0x2a] sm:$0xff]  ;;  %v8055_v39 = vmul.f32 %v14982_v50, %v15341_v52  ;;  %v8138_v31 = vadd.f32 %v8130_v57, %v8112_v15 }
 0x518   : > { %v15339_v27 = vld [vmem:[#allocation5 + $0x28] sm:$0xff]  ;;  %v15349_v21 = vld [vmem:[#allocation5 + $0x1b] sm:$0xff]  ;;  %v8061_v10 = vadd.f32 %v8053_v55, %v8035_v35  ;;  %v8250_v9 = vadd.f32 %v8242_v28, %v8231_v13  ;;  %v15377_v28 = vmul.f32 %v15121_v40, %v15287_v7 }
 0x519   : > { %v8175_v12 = vadd.f32 %v8167_v8, %v8156_v63  ;;  %v8037_v38 = vmul.f32 %v14972_v54, %v15339_v27  ;;  %v15351_v32 = vld [vmem:[#allocation5 + $0x23] sm:$0xff]  ;;  %v15355_v22 = vld [vmem:[#allocation5 + $0x2b] sm:$0xff]  ;;  %v8081_v8 = vmul.f32 %v14999_v44, %v15343_v19  ;;  %v8105_v41 = vmul.f32 %v15015_v14, %v15349_v21 }
 0x51a   : > { %v15359_v54 = vld [vmem:[#allocation5 + $0x1c] sm:$0xff]  ;;  %v15361_v53 = vld [vmem:[#allocation5 + $0x24] sm:$0xff]  ;;  %v8087_v50 = vadd.f32 %v8079_v25, %v8061_v10  ;;  %v15365_v35 = vld [vmem:[#allocation5 + $0x2c] sm:$0xff]  ;;  %v8107_v15 = vmul.f32 %v15015_v14, %v15355_v22  ;;  %v8150_v10 = vmul.f32 %v15034_v4, %v15327_v30  ;;  %v8187_v4 = vmul.f32 %v15058_v24, %v15323_v23 }
 0x51b   : > { %v8194_v62 = vadd.f32 %v8186_v49, %v8175_v12  ;;  %v8063_v63 = vadd.f32 %v8055_v39, %v8037_v38  ;;  %v8131_v44 = vmul.f32 %v15025_v2, %v15359_v54  ;;  %v8157_v38 = vadd.f32 %v8149_v58, %v8138_v31 }
 0x51c   : > { %v8113_v39 = vadd.f32 %v8105_v41, %v8087_v50  ;;  %v8133_v25 = vmul.f32 %v15025_v2, %v15365_v35  ;;  %v8169_v31 = vmul.f32 %v15046_v1, %v15329_v37  ;;  %v8226_v41 = vmul.f32 %v15082_v6, %v15361_v53 }
 0x51d   : > { %v8213_v55 = vadd.f32 %v8205_v34, %v8194_v62  ;;  %v8089_v47 = vadd.f32 %v8081_v8, %v8063_v63  ;;  %v8269_v62 = vadd.f32 %v8261_v18, %v8250_v9  ;;  %v8168_v34 = vmul.f32 %v15046_v1, %v15313_v3 }
 0x51e   : > { %v8139_v12 = vadd.f32 %v8131_v44, %v8113_v39  ;;  %v8188_v18 = vmul.f32 %v15058_v24, %v15333_v43  ;;  %v8206_v63 = vmul.f32 %v15071_v46, %v15349_v21  ;;  %v8207_v1 = vmul.f32 %v15071_v46, %v15351_v32 }
 0x51f   : > { %v8232_v57 = vadd.f32 %v8224_v11, %v8213_v55  ;;  %v8115_v49 = vadd.f32 %v8107_v15, %v8089_v47  ;;  %v8176_v58 = vadd.f32 %v8168_v34, %v8157_v38  ;;  %v8245_v55 = vmul.f32 %v15093_v26, %v15339_v27 }
 0x520   : > { %v8158_v13 = vadd.f32 %v8150_v10, %v8139_v12  ;;  %v8262_v39 = vmul.f32 %v15098_v60, %v15313_v3  ;;  %v8281_v38 = vmul.f32 %v15109_v42, %v15323_v23  ;;  %v8283_v12 = vmul.f32 %v15109_v42, %v15343_v19 }
 0x521   : > { %v8141_v14 = vadd.f32 %v8133_v25, %v8115_v49  ;;  %v8251_v47 = vadd.f32 %v8243_v20, %v8232_v57  ;;  %v8195_v11 = vadd.f32 %v8187_v4, %v8176_v58  ;;  %v8300_v10 = vmul.f32 %v15121_v40, %v15349_v21 }
 0x522   : > { %v8177_v9 = vadd.f32 %v8169_v31, %v8158_v13  ;;  %v8301_v13 = vmul.f32 %v15121_v40, %v15351_v32 }
 0x523   : > { %v8160_v2 = vadd.f32 %v15051_v56, %v8141_v14  ;;  %v8225_v56 = vmul.f32 %v15082_v6, %v15359_v54  ;;  %v8214_v50 = vadd.f32 %v8206_v63, %v8195_v11  ;;  %v8264_v6 = vmul.f32 %v15098_v60, %v15341_v52 }
 0x524   : > { %v8196_v20 = vadd.f32 %v8188_v18, %v8177_v9  ;;  %v8319_v18 = vmul.f32 %v15130_v36, %v15359_v54 }
 0x525   : > { %v8179_v7 = vadd.f32 %v15268_v48, %v8160_v2  ;;  %v8244_v48 = vmul.f32 %v15093_v26, %v15327_v30  ;;  %v8233_v46 = vadd.f32 %v8225_v56, %v8214_v50  ;;  %v8270_v26 = vadd.f32 %v8262_v39, %v8251_v47 }
 0x526   : > { %v8215_v24 = vadd.f32 %v8207_v1, %v8196_v20  ;;  %v8302_v47 = vmul.f32 %v15121_v40, %v15355_v22  ;;  %v8321_v1 = vmul.f32 %v15130_v36, %v15365_v35  ;;  %v8338_v56 = vmul.f32 %v15141_v33, %v15327_v30 }
 0x527   : > { %v8198_v8 = vadd.f32 %v15272_v17, %v8179_v7  ;;  %v8263_v17 = vmul.f32 %v15098_v60, %v15329_v37  ;;  %v8252_v49 = vadd.f32 %v8244_v48, %v8233_v46  ;;  %v9710_v60 = vld [vmem:[%s16129_s14 + $0x38] sm:$0xff]  ;;  %v8320_v7 = vmul.f32 %v15130_v36, %v15361_v53 }
 0x528   : > { %v8234_v44 = vadd.f32 %v8226_v41, %v8215_v24  ;;  %8609 = vmatpush.bf16.msrb.mxu3 %v9710_v60  ;;  %v8357_v48 = vmul.f32 %v15146_v45, %v15329_v37  ;;  %v8358_v39 = vmul.f32 %v15146_v45, %v15341_v52 }
 0x529   : > { %v8217_v15 = vadd.f32 %v15281_v29, %v8198_v8  ;;  %v8282_v29 = vmul.f32 %v15109_v42, %v15333_v43  ;;  %v8271_v34 = vadd.f32 %v8263_v17, %v8252_v49  ;;  %v9709_v42 = vld [vmem:[%s16129_s14 + $0x30] sm:$0xff]  ;;  %v16131_v17 = vld [vmem:[#allocation36_spill] sm:$0xff] }
 0x52a   : > { %v8253_v25 = vadd.f32 %v8245_v55, %v8234_v44  ;;  %v16130_v55 = vld [vmem:[#allocation38_spill] sm:$0xff]  ;;  %v8359_v44 = vmul.f32 %v15146_v45, %v16131_v17 }
 0x52b   : > { %v8236_v57 = vadd.f32 %v15285_v5, %v8217_v15  ;;  %v8289_v5 = vadd.f32 %v8281_v38, %v8270_v26  ;;  %v8290_v58 = vadd.f32 %v8282_v29, %v8271_v34  ;;  %v9707_v38 = vld [vmem:[%s16129_s14 + $0x20] sm:$0xff]  ;;  %v16133_v26 = vld [vmem:[#allocation19_spill] sm:$0xff] }
 0x52c   : > { %v8272_v31 = vadd.f32 %v8264_v6, %v8253_v25  ;;  %8610 = vmatpush.bf16.msrb.mxu3 %v9709_v42  ;;  %v8376_v29 = vmul.f32 %v16133_v26, %v15333_v43  ;;  %v8377_v25 = vmul.f32 %v16133_v26, %v15343_v19  ;;  %v16135_v34 = vld [vmem:[#allocation17_spill] sm:$0xff]  ;;  %v16136_v42 = vld [vmem:[#allocation35_spill] sm:$0xff] }
 0x52d   : > { %v8255_v14 = vadd.f32 %v15102_v51, %v8236_v57  ;;  %v8304_v51 = vmul.f32 %v15121_v40, %v15020_v16  ;;  %v8308_v4 = vadd.f32 %v8300_v10, %v8289_v5  ;;  %v8309_v63 = vadd.f32 %v8301_v13, %v8290_v58  ;;  %v9708_v16 = vld [vmem:[%s16129_s14 + $0x28] sm:$0xff]  ;;  %v16134_v10 = vld [vmem:[#allocation20_spill] sm:$0xff] }
 0x52e   : > { %v8291_v9 = vadd.f32 %v8283_v12, %v8272_v31  ;;  %v8288_v40 = vadd.f32 %v15337_v0, %v8269_v62  ;;  %v16132_v0 = vld [vmem:[#allocation27_spill] sm:$0xff]  ;;  %v8378_v60 = vmul.f32 %v16133_v26, %v16134_v10  ;;  %v8396_v58 = vmul.f32 %v16136_v42, %v15355_v22  ;;  %v10271_v10 = vld [vmem:[#allocation5 + $0x39] sm:$0xff] }
 0x52f   : > { %v8274_v2 = vadd.f32 %v15295_v61, %v8255_v14  ;;  %v8327_v61 = vadd.f32 %v8319_v18, %v8308_v4  ;;  %v8328_v50 = vadd.f32 %v8320_v7, %v8309_v63  ;;  %v16137_v4 = vld [vmem:[#allocation45_spill] sm:$0xff]  ;;  %v16139_v7 = vld [vmem:[#allocation22_spill] sm:$0xff] }
 0x530   : > { %v8310_v20 = vadd.f32 %v8302_v47, %v8291_v9  ;;  %8611 = vmatpush.bf16.msrb.mxu3 %v9708_v16  ;;  %v8307_v14 = vadd.f32 %v15377_v28, %v8288_v40  ;;  %v8318_v9 = vmul.f32 %v15130_v36, %v16137_v4  ;;  %v16138_v28 = vld [vmem:[#allocation33_spill] sm:$0xff]  ;;  %v16141_v40 = vld [vmem:[#allocation18_spill] sm:$0xff] }
 0x531   : > { %v8293_v11 = vadd.f32 %v15301_v59, %v8274_v2  ;;  %v8339_v59 = vmul.f32 %v15141_v33, %v15339_v27  ;;  %v8346_v24 = vadd.f32 %v8338_v56, %v8327_v61  ;;  %v8395_v2 = vmul.f32 %v16136_v42, %v15351_v32  ;;  %v10272_v4 = vld [vmem:[#allocation5 + $0x3a] sm:$0xff] }
 0x532   : > { %v8329_v41 = vadd.f32 %v8321_v1, %v8310_v20  ;;  %v16140_v20 = vld [vmem:[#allocation23_spill] sm:$0xff]  ;;  %v8326_v36 = vadd.f32 %v8318_v9, %v8307_v14  ;;  %v16149_v14 = vld [vmem:[#allocation29_spill] sm:$0xff] }
 0x533   : > { %v8312_v8 = vadd.f32 %v8304_v51, %v8293_v11  ;;  %v8347_v46 = vadd.f32 %v8339_v59, %v8328_v50  ;;  %v8365_v6 = vadd.f32 %v8357_v48, %v8346_v24  ;;  %v9706_v51 = vld [vmem:[%s16129_s14 + $0x18] sm:$0xff]  ;;  %v8397_v11 = vmul.f32 %v16136_v42, %v16139_v7  ;;  %v16143_v48 = vld [vmem:[#allocation31_spill] sm:$0xff]  ;;  %v16152_v7 = vld [vmem:[#allocation26_spill] sm:$0xff] }
 0x534   : > { %v8348_v62 = vadd.f32 %v16132_v0, %v8329_v41  ;;  %8612 = vmatpush.bf16.msrb.mxu3 %v9707_v38  ;;  %v8414_v61 = vmul.f32 %v16140_v20, %v15361_v53  ;;  %v8415_v56 = vmul.f32 %v16140_v20, %v15365_v35  ;;  %v16142_v50 = vld [vmem:[#allocation24_spill] sm:$0xff] }
 0x535   : > { %v8331_v15 = vadd.f32 %v16130_v55, %v8312_v8  ;;  %v8366_v49 = vadd.f32 %v8358_v39, %v8347_v46  ;;  %v8384_v13 = vadd.f32 %v8376_v29, %v8365_v6  ;;  %v8416_v59 = vmul.f32 %v16140_v20, %v16142_v50  ;;  %v16144_v46 = vld [vmem:[#allocation44_spill] sm:$0xff]  ;;  %v16154_v50 = vld [vmem:[#allocation37_spill] sm:$0xff] }
 0x536   : > { %v8367_v12 = vadd.f32 %v8359_v44, %v8348_v62  ;;  %v8433_v55 = vmul.f32 %v16143_v48, %v15339_v27  ;;  %v8337_v39 = vmul.f32 %v15141_v33, %v16144_v46  ;;  %v16145_v44 = vld [vmem:[#allocation34_spill] sm:$0xff]  ;;  %v16146_v6 = vld [vmem:[#allocation28_spill] sm:$0xff]  ;;  %v16148_v33 = vld [vmem:[#allocation21_spill] sm:$0xff] }
 0x537   : > { %v8350_v57 = vadd.f32 %v16132_v0, %v8331_v15  ;;  %v8385_v31 = vadd.f32 %v8377_v25, %v8366_v49  ;;  %v8403_v63 = vadd.f32 %v8395_v2, %v8384_v13  ;;  %v9705_v15 = vld [vmem:[%s16129_s14 + $0x10] sm:$0xff] }
 0x538   : > { %v8386_v47 = vadd.f32 %v8378_v60, %v8367_v12  ;;  %8613 = vmatpush.bf16.msrb.mxu3 %v9706_v51  ;;  %v10270_v29 = vld [vmem:[#allocation5 + $0x31] sm:$0xff] }
 0x539   : > { %v8369_v5 = vadd.f32 %v16135_v34, %v8350_v57  ;;  %v8404_v1 = vadd.f32 %v8396_v58, %v8385_v31  ;;  %v8422_v41 = vadd.f32 %v8414_v61, %v8403_v63  ;;  %v16147_v57 = vld [vmem:[#allocation32_spill] sm:$0xff]  ;;  %v8513_v34 = vmul.f32 %v16149_v14, %v16148_v33  ;;  %v16150_v31 = vld [vmem:[#allocation25_spill] sm:$0xff]  ;;  %v16151_v58 = vld [vmem:[#allocation39_spill] sm:$0xff] }
 0x53a   : > { %v8405_v16 = vadd.f32 %v8397_v11, %v8386_v47  ;;  %v8452_v49 = vmul.f32 %v16147_v57, %v15341_v52  ;;  %v8453_v27 = vmul.f32 %v10270_v29, %v16147_v57  ;;  %v8454_v60 = vmul.f32 %v10271_v10, %v16147_v57  ;;  %v9704_v52 = vld [vmem:[%s16129_s14 + $0x8] sm:$0xff]  ;;  %v10273_v63 = vld [vmem:[#allocation5 + $0x3b] sm:$0xff] }
 0x53b   : > { %v8388_v18 = vadd.f32 %v16138_v28, %v8369_v5  ;;  %v8423_v24 = vadd.f32 %v8415_v56, %v8404_v1  ;;  %v8441_v62 = vadd.f32 %v8433_v55, %v8422_v41  ;;  %v8345_v5 = vadd.f32 %v8337_v39, %v8326_v36  ;;  %v16153_v56 = vld [vmem:[#allocation40_spill] sm:$0xff]  ;;  %v16156_v41 = vld [vmem:[#allocation41_spill] sm:$0xff] }
 0x53c   : > { %v8424_v17 = vadd.f32 %v8416_v59, %v8405_v16  ;;  %v8471_v47 = vmul.f32 %v16150_v31, %v15343_v19  ;;  %8614 = vmatpush.bf16.msrb.mxu3 %v9705_v15  ;;  %v8473_v9 = vmul.f32 %v10272_v4, %v16150_v31  ;;  %v8356_v28 = vmul.f32 %v15146_v45, %v15313_v3  ;;  %v16155_v59 = vld [vmem:[#allocation43_spill] sm:$0xff]  ;;  %v9703_v45 = vld [vmem:[%s16129_s14] sm:$0xff]  ;;  %v9726_v55 = vld [vmem:[%s16157_s17 + $0x38] sm:$0xff] }
 0x53d   : > { %v8407_v8 = vadd.f32 %v16141_v40, %v8388_v18  ;;  %v8442_v38 = vadd.f32 %v16146_v6, %v8423_v24  ;;  %v8460_v13 = vadd.f32 %v8452_v49, %v8441_v62  ;;  %v8490_v11 = vmul.f32 %v16152_v7, %v15355_v22  ;;  %v10274_v39 = vld [vmem:[#allocation5 + $0x32] sm:$0xff]  ;;  %v16158_v62 = vld [vmem:[#allocation42_spill] sm:$0xff] }
 0x53e   : > { %v8443_v25 = vadd.f32 %v16146_v6, %v8424_v17  ;;  %v8492_v19 = vmul.f32 %v10273_v63, %v16152_v7  ;;  %v8706_v36 = vpack.c.bf16 %v16155_v59, %v16154_v50  ;;  %v8364_v22 = vadd.f32 %v8356_v28, %v8345_v5  ;;  %v9712_v63 = vld [vmem:[%s16159_s16 + $0x8] sm:$0xff]  ;;  %v9741_v59 = vld [vmem:[%s15790_s21 + $0x30] sm:$0xff] }
 0x53f   : > { %v8426_v0 = vadd.f32 %v16145_v44, %v8407_v8  ;;  %v8479_v18 = vadd.f32 %v8471_v47, %v8460_v13  ;;  %v8461_v1 = vadd.f32 %v8453_v27, %v8442_v38  ;;  %v8509_v8 = vmul.f32 %v16149_v14, %v15365_v35  ;;  %v10275_v44 = vld [vmem:[#allocation5 + $0x33] sm:$0xff] }
 0x540   : > { %v8462_v2 = vadd.f32 %v8454_v60, %v8443_v25  ;;  %8615 = vmatpush.bf16.msrb.mxu3 %v9704_v52  ;;  %v8375_v15 = vmul.f32 %v16133_v26, %v15323_v23  ;;  %v8394_v35 = vmul.f32 %v16136_v42, %v15349_v21  ;;  %v8472_v17 = vmul.f32 %v10274_v39, %v16150_v31  ;;  %v10276_v27 = vld [vmem:[#allocation5 + $0x34] sm:$0xff]  ;;  %v16162_v39 = vld [vmem:[#allocation30_spill] sm:$0xff] }
 0x541   : > { %v8445_v12 = vadd.f32 %v16146_v6, %v8426_v0  ;;  %v8498_v40 = vadd.f32 %v8490_v11, %v8479_v18  ;;  %v8491_v0 = vmul.f32 %v10275_v44, %v16152_v7  ;;  %v8510_v23 = vmul.f32 %v10276_v27, %v16149_v14  ;;  %v9725_v26 = vld [vmem:[%s16157_s17 + $0x30] sm:$0xff]  ;;  %v9714_v18 = vld [vmem:[%s16159_s16 + $0x18] sm:$0xff] }
 0x542   : > { %v8481_v61 = vadd.f32 %v8473_v9, %v8462_v2  ;;  %v8383_v49 = vadd.f32 %v8375_v15, %v8364_v22  ;;  %v8480_v29 = vadd.f32 %v8472_v17, %v8461_v1  ;;  %v8413_v21 = vmul.f32 %v16140_v20, %v15359_v54  ;;  %v9724_v54 = vld [vmem:[%s16157_s17 + $0x28] sm:$0xff]  ;;  %v9713_v11 = vld [vmem:[%s16159_s16 + $0x10] sm:$0xff]  ;;  %v9915_v1 = vld [vmem:[%s16160_s15] ss:$0 sm:$0xff] }
 0x543   : > { %v8464_v51 = vadd.f32 %v16151_v58, %v8445_v12  ;;  %v8517_v46 = vadd.f32 %v8509_v8, %v8498_v40  ;;  %v8432_v12 = vmul.f32 %v16143_v48, %v15327_v30  ;;  %v8451_v33 = vmul.f32 %v16147_v57, %v15329_v37  ;;  %v9723_v48 = vld [vmem:[%s16157_s17 + $0x20] sm:$0xff]  ;;  %v9718_v57 = vld [vmem:[%s16159_s16 + $0x38] sm:$0xff]  ;;  %v9716_v2 = vld [vmem:[%s16159_s16 + $0x28] sm:$0xff] }
 0x544   : > { %v8500_v3 = vadd.f32 %v8492_v19, %v8481_v61  ;;  %8616 = vmatpush.bf16.msrb.mxu3 %v9703_v45  ;;  %v8402_v42 = vadd.f32 %v8394_v35, %v8383_v49  ;;  %v8499_v25 = vadd.f32 %v8491_v0, %v8480_v29  ;;  %v8489_v30 = vmul.f32 %v16152_v7, %v15351_v32  ;;  %v9715_v58 = vld [vmem:[%s16159_s16 + $0x20] sm:$0xff]  ;;  %v9742_v8 = vld [vmem:[%s15790_s21 + $0x38] sm:$0xff]  ;;  %v9736_v15 = vld [vmem:[%s15790_s21 + $0x8] sm:$0xff] }
 0x545   : > { %v8483_v16 = vadd.f32 %v16153_v56, %v8464_v51  ;;  %8525 = vst [vmem:[#allocation6 + $0x8] sm:$0xff] %v8517_v46  ;;  %v8508_v13 = vmul.f32 %v16149_v14, %v15361_v53  ;;  %8689 = vmatpush.bf16.msra.mxu2 %v9718_v57  ;;  %v9721_v53 = vld [vmem:[%s16157_s17 + $0x10] sm:$0xff]  ;;  %v9720_v51 = vld [vmem:[%s16157_s17 + $0x8] sm:$0xff]  ;;  %v9719_v7 = vld [vmem:[%s16157_s17] sm:$0xff] }
 0x546   : > { %v8519_v6 = vadd.f32 %v16158_v62, %v8500_v3  ;;  %v8421_v10 = vadd.f32 %v8413_v21, %v8402_v42  ;;  %v8518_v60 = vadd.f32 %v8510_v23, %v8499_v25  ;;  %v9711_v19 = vld [vmem:[%s16159_s16] sm:$0xff]  ;;  %v16161_v46 = vld [vmem:[#allocation16_spill] sm:$0xff]  ;;  %v10277_v44 = vld [vmem:[#allocation4 + $0x32] sm:$0xff] }
 0x547   : > { %v8502_v24 = vadd.f32 %v16156_v41, %v8483_v16  ;;  %v9739_v22 = vld [vmem:[%s15790_s21 + $0x20] sm:$0xff]  ;;  %v9738_v41 = vld [vmem:[%s15790_s21 + $0x18] sm:$0xff]  ;;  %v16163_v17 = vpack.c.bf16 %v16161_v46, %v16162_v39  ;;  %v10280_v49 = vld [vmem:[#allocation4 + $0x56] sm:$0xff] }
 0x548   : > { %8527 = vst [vmem:[#allocation6 + $0x18] sm:$0xff] %v8519_v6  ;;  %8775 = vmatpush.bf16.msra.mxu3 %v9726_v55  ;;  %v8440_v20 = vadd.f32 %v8432_v12, %v8421_v10  ;;  %v8704_v3 = vld [vmem:[%s15788_s19] sm:$0xff]  ;;  %v8705_v55 = vld [vmem:[%s15788_s19 + $0x8] sm:$0xff]  ;;  %v10278_v0 = vld [vmem:[#allocation4 + $0x3e] sm:$0xff] }
 0x549   : > { %v8521_v38 = vadd.f32 %v8513_v34, %v8502_v24  ;;  %8526 = vst [vmem:[#allocation6 + $0x10] sm:$0xff] %v8518_v60  ;;  %v8470_v34 = vmul.f32 %v16150_v31, %v15333_v43  ;;  %v9717_v43 = vld [vmem:[%s16159_s16 + $0x30] sm:$0xff]  ;;  %v9722_v31 = vld [vmem:[%s16157_s17 + $0x18] sm:$0xff]  ;;  %v9735_v35 = vld [vmem:[%s15790_s21] sm:$0xff]  ;;  %v8912_v62 = vpack.c.bf16 %v10278_v0, %v10277_v44 }
 0x54a   : > { %v8459_v5 = vadd.f32 %v8451_v33, %v8440_v20  ;;  %8690 = vmatpush.bf16.msra.mxu2 %v9717_v43  ;;  %v9737_v24 = vld [vmem:[%s15790_s21 + $0x10] sm:$0xff]  ;;  %v9734_v6 = vld [vmem:[%s15789_s20 + $0x38] sm:$0xff]  ;;  %v10282_v23 = vld [vmem:[#allocation4 + $0x6e] sm:$0xff] }
 0x54b   : > { %8529 = vst [vmem:[#allocation6 + $0x28] sm:$0xff] %v8521_v38  ;;  %v10279_v38 = vld [vmem:[#allocation4 + $0x4a] sm:$0xff]  ;;  %v10281_v27 = vld [vmem:[#allocation4 + $0x62] sm:$0xff]  ;;  %v9729_v10 = vld [vmem:[%s15789_s20 + $0x10] sm:$0xff] }
 0x54c   : > { %8776 = vmatpush.bf16.msra.mxu3 %v9725_v26  ;;  %v8478_v37 = vadd.f32 %v8470_v34, %v8459_v5  ;;  %v8913_v29 = vpack.c.bf16 %v10280_v49, %v10279_v38  ;;  %v8914_v21 = vpack.c.bf16 %v10282_v23, %v10281_v27  ;;  %v9733_v26 = vld [vmem:[%s15789_s20 + $0x30] sm:$0xff]  ;;  %v9732_v42 = vld [vmem:[%s15789_s20 + $0x28] sm:$0xff]  ;;  %v9731_v25 = vld [vmem:[%s15789_s20 + $0x20] sm:$0xff] }
 0x54d   : > { %v9730_v12 = vld [vmem:[%s15789_s20 + $0x18] sm:$0xff]  ;;  %v9728_v60 = vld [vmem:[%s15789_s20 + $0x8] sm:$0xff]  ;;  %v9727_v33 = vld [vmem:[%s15789_s20] sm:$0xff] }
 0x54e   : > { %v8497_v47 = vadd.f32 %v8489_v30, %v8478_v37  ;;  %8691 = vmatpush.bf16.msra.mxu2 %v9716_v2  ;;  %v8904_v2 = vld [vmem:[%s15792_s23 + $0x8] sm:$0xff] }
 0x550   : > { %8777 = vmatpush.bf16.msra.mxu3 %v9724_v54  ;;  %v8516_v32 = vadd.f32 %v8508_v13, %v8497_v47  ;;  %v8534_v52 = vld [vmem:[#allocation6 + $0x10] ss:$2 sm:$0x3] }
 0x551   : > { %v8536_v14 = vrot.slane %v8534_v52, 6  ;;  %v8903_v52 = vld [vmem:[%s15792_s23] sm:$0xff] }
 0x552   : > { %8524 = vst [vmem:[#allocation6] sm:$0xff] %v8516_v32  ;;  %8692 = vmatpush.bf16.msra.mxu2 %v9715_v58  ;;  %v9750_v58 = vld [vmem:[%s15793_s24 + $0x38] sm:$0xff] }
 0x554   : > { %8778 = vmatpush.bf16.msra.mxu3 %v9723_v48  ;;  %v9916_v48 = vld [vmem:[%s16164_s18] ss:$0 sm:$0xff] }
 0x556   : > { %8693 = vmatpush.bf16.msra.mxu2 %v9714_v18  ;;  %v8908_v18 = vld [vmem:[%s15792_s23 + $0x28] sm:$0xff] }
 0x558   : > { %8779 = vmatpush.bf16.msra.mxu3 %v9722_v31 }
 0x559   : > { %v8532_v4 = vld [vmem:[#allocation6] ss:$2 sm:$0x3] }
 0x55a   : > { %v8539_v9 = vsel %vm8538_vm1, %v8532_v4, %v8536_v14  ;;  %8694 = vmatpush.bf16.msra.mxu2 %v9713_v11  ;;  %v8906_v14 = vld [vmem:[%s15792_s23 + $0x18] sm:$0xff]  ;;  %v8907_v4 = vld [vmem:[%s15792_s23 + $0x20] sm:$0xff]  ;;  %v8909_v11 = vld [vmem:[%s15792_s23 + $0x30] sm:$0xff] }
 0x55b   : > { %v8540_v28 = vpack.c.bf16 %v8539_v9, %v8539_v9  ;;  %v9748_v9 = vld [vmem:[%s15793_s24 + $0x28] sm:$0xff] }
 0x55c   : > { %8780 = vmatpush.bf16.msra.mxu3 %v9721_v53  ;;  %v8905_v53 = vld [vmem:[%s15792_s23 + $0x10] sm:$0xff] }
 0x55d   : > { %8617 = vmatmul.bf16.vlgmr.msrb.gmra.mxu3 %v8540_v28  ;;  %v9747_v28 = vld [vmem:[%s15793_s24 + $0x20] sm:$0xff] }
 0x55e   : > { %8695 = vmatpush.bf16.msra.mxu2 %v9712_v63  ;;  %v8910_v63 = vld [vmem:[%s15792_s23 + $0x38] sm:$0xff] }
 0x560   : > { %8781 = vmatpush.bf16.msra.mxu3 %v9720_v51  ;;  %v9749_v51 = vld [vmem:[%s15793_s24 + $0x30] sm:$0xff] }
 0x562   : > { %8696 = vmatpush.bf16.msra.mxu2 %v9711_v19  ;;  %v9745_v19 = vld [vmem:[%s15793_s24 + $0x10] sm:$0xff] }
 0x564   : > { %8782 = vmatpush.bf16.msra.mxu3 %v9719_v7  ;;  %v9746_v7 = vld [vmem:[%s15793_s24 + $0x18] sm:$0xff] }
 0x568   : > { %8887 = vmatpush.bf16.msrb.mxu3 %v9734_v6 }
 0x56c   : > { %8888 = vmatpush.bf16.msrb.mxu3 %v9733_v26 }
 0x56d   : > { %8783 = vmatmul.bf16.vlgmr.msra.gmra.mxu3 %v8706_v36  ;;  %v9740_v36 = vld [vmem:[%s15790_s21 + $0x28] sm:$0xff] }
 0x570   : > { %8889 = vmatpush.bf16.msrb.mxu3 %v9732_v42 }
 0x574   : > { %8890 = vmatpush.bf16.msrb.mxu3 %v9731_v25 }
 0x578   : > { %8891 = vmatpush.bf16.msrb.mxu3 %v9730_v12 }
 0x57c   : > { %8892 = vmatpush.bf16.msrb.mxu3 %v9729_v10 }
 0x580   : > { %8893 = vmatpush.bf16.msrb.mxu3 %v9728_v60 }
 0x584   : > { %8894 = vmatpush.bf16.msrb.mxu3 %v9727_v33 }
 0x5e0   : > { %v8618_v61 = vpop.f32.mrf.mxu3 }
 0x5e1   : > { %v8619_v56 = vadd.f32 %v9915_v1, %v8618_v61  ;;  %v9744_v1 = vld [vmem:[%s15793_s24 + $0x8] sm:$0xff]  ;;  %v9743_v61 = vld [vmem:[%s15793_s24] sm:$0xff] }
 0x5e3   : > { %v8622_v16 = vmax.f32 %v8619_v56, 0.0 }
 0x5e5   : > { %v8623_v40 = vmin.f32 %v8622_v16, 6.0 }
 0x5e7   : > { %v8624_v45 = vpack.c.bf16 %v8623_v40, %v8623_v40  ;;  %9559 = vmatpush.msk.msrb.mxu2 %vm7928_vm0, %v8623_v40 }
 0x5e8   : > { %v8620_v50 = vpop.f32.mrf.mxu3 }
 0x5e9   : > { %8697 = vmatmul.bf16.vlgmr.msra.gmra.mxu2 %v8624_v45 }
 0x5ea   : > { %8983 = vmatpush.bf16.msra.mxu2 %v9742_v8 }
 0x5ee   : > { %8984 = vmatpush.bf16.msra.mxu2 %v9741_v59  ;;  %v9917_v59 = vld [vmem:[%s15791_s22] ss:$0 sm:$0xff] }
 0x5f0   : > { %v8784_v5 = vpop.f32.mrf.mxu3 }
 0x5f1   : > { %v8785_v57 = vadd.f32 %v9916_v48, %v8784_v5 }
 0x5f2   : > { %8985 = vmatpush.bf16.msra.mxu2 %v9740_v36 }
 0x5f6   : > { %8986 = vmatpush.bf16.msra.mxu2 %v9739_v22 }
 0x5f8   : > { %v8786_v37 = vpop.f32.mrf.mxu3 }
 0x5f9   : > { %9560 = vmatmul.msk.f32.vlgmr.msrb.gmra.mxu2 %vm8789_vm2, %v8704_v3  ;;  %v8787_v13 = vadd.f32 %v9916_v48, %v8786_v37 }
 0x5fa   : > { %8987 = vmatpush.bf16.msra.mxu2 %v9738_v41 }
 0x5fe   : > { %8988 = vmatpush.bf16.msra.mxu2 %v9737_v24 }
 0x601   : > { %9561 = vmatmul.msk.f32.gmra.mxu2 %vm8789_vm2, %v8705_v55 }
 0x602   : > { %8989 = vmatpush.bf16.msra.mxu2 %v9736_v15 }
 0x606   : > { %8990 = vmatpush.bf16.msra.mxu2 %v9735_v35 }
 0x609   : > { %8991 = vmatmul.bf16.vlgmr.msra.gmra.mxu2 %v16163_v17 }
 0x60a   : > { %9146 = vmatpush.bf16.msrb.mxu2 %v9750_v58 }
 0x60e   : > { %9147 = vmatpush.bf16.msrb.mxu2 %v9749_v51 }
 0x612   : > { %9148 = vmatpush.bf16.msrb.mxu2 %v9748_v9 }
 0x616   : > { %9149 = vmatpush.bf16.msrb.mxu2 %v9747_v28 }
 0x619   : > { %8996 = vmatmul.bf16.gmra.mxu2 %v8912_v62 }
 0x61a   : > { %9150 = vmatpush.bf16.msrb.mxu2 %v9746_v7 }
 0x61e   : > { %9151 = vmatpush.bf16.msrb.mxu2 %v9745_v19 }
 0x622   : > { %9152 = vmatpush.bf16.msrb.mxu2 %v9744_v1 }
 0x626   : > { %9153 = vmatpush.bf16.msrb.mxu2 %v9743_v61 }
 0x629   : > { %9001 = vmatmul.bf16.gmra.mxu2 %v8913_v29 }
 0x639   : > { %9006 = vmatmul.bf16.gmra.mxu2 %v8914_v21 }
 0x66c   : > { %v8698_v54 = vpop.f32.mrf.mxu2 }
 0x66d   : > { %v8702_v20 = vsel %vm7928_vm0, %v8698_v54, 0.0 }
 0x66e   : > { %8703 = vst [vmem:[%s836_s12] sm:$0xff] %v8702_v20  ;;  %s9188_s12 = scalar_lea.sflag [#allocation8], %s817_s10 }
 0x674   : > { %v8700_v34 = vpop.f32.mrf.mxu2 }
 0x67c   : > { %v8816_v30 = vpop.f32.mrf.mxu2 }
 0x67d   : > { %v8817_v43 = vadd.f32 %v8816_v30, %v8785_v57 }
 0x684   : > { %v8819_v47 = vpop.f32.mrf.mxu2 }
 0x685   : > { %v8820_v32 = vadd.f32 %v8819_v47, %v8787_v13 }
 0x687   : > { %v8822_v31 = vpack.c.bf16 %v8820_v32, %v8817_v43  ;;  %9051 = vmatpush.msra.mxu3 %v8820_v32 }
 0x689   : > { %8895 = vmatmul.bf16.vlgmr.msrb.gmra.mxu3 %v8822_v31 }
 0x68a   : > { %9052 = vmatpush.msra.mxu3 %v8817_v43 }
 0x68c   : > { %v8992_v56 = vpop.f32.mrf.mxu2 }
 0x68d   : > { %v8993_v36 = vadd.f32 %v9917_v59, %v8992_v56 }
 0x694   : > { %v8994_v40 = vpop.f32.mrf.mxu2 }
 0x695   : > { %v8995_v22 = vadd.f32 %v9917_v59, %v8994_v40 }
 0x699   : > { %9626 = vmatmul.msk.f32.vlgmr.msra.gmra.mxu3 %vm9012_vm3, %v8903_v52 }
 0x69c   : > { %v8997_v50 = vpop.f32.mrf.mxu2 }
 0x69d   : > { %v8998_v39 = vadd.f32 %v9917_v59, %v8997_v50 }
 0x6a1   : > { %9627 = vmatmul.msk.f32.gmra.mxu3 %vm9012_vm3, %v8904_v2 }
 0x6a4   : > { %v8999_v15 = vpop.f32.mrf.mxu2 }
 0x6a5   : > { %v9000_v17 = vadd.f32 %v9917_v59, %v8999_v15 }
 0x6a9   : > { %9628 = vmatmul.msk.f32.gmra.mxu3 %vm9012_vm3, %v8905_v53 }
 0x6ac   : > { %v9002_v46 = vpop.f32.mrf.mxu2 }
 0x6ad   : > { %v9003_v29 = vadd.f32 %v9917_v59, %v9002_v46 }
 0x6b1   : > { %9629 = vmatmul.msk.f32.gmra.mxu3 %vm9012_vm3, %v8906_v14 }
 0x6b4   : > { %v9004_v38 = vpop.f32.mrf.mxu2 }
 0x6b5   : > { %v9005_v27 = vadd.f32 %v9917_v59, %v9004_v38 }
 0x6b9   : > { %9630 = vmatmul.msk.f32.gmra.mxu3 %vm9012_vm3, %v8907_v4 }
 0x6bc   : > { %v9007_v42 = vpop.f32.mrf.mxu2 }
 0x6bd   : > { %v9008_v60 = vadd.f32 %v9917_v59, %v9007_v42 }
 0x6c1   : > { %9631 = vmatmul.msk.f32.gmra.mxu3 %vm9012_vm3, %v8908_v18 }
 0x6c4   : > { %v9009_v10 = vpop.f32.mrf.mxu2 }
 0x6c5   : > { %v9010_v33 = vadd.f32 %v9917_v59, %v9009_v10 }
 0x6c9   : > { %9632 = vmatmul.msk.f32.gmra.mxu3 %vm9012_vm3, %v8909_v11 }
 0x6d1   : > { %9633 = vmatmul.msk.f32.gmra.mxu3 %vm9012_vm3, %v8910_v63 }
 0x70c   : > { %v8896_v16 = vpop.f32.mrf.mxu3 }
 0x70d   : > { %8901 = vst [vmem:[%s15724_s8] sm:$0xff] %v8896_v16 }
 0x714   : > { %v8898_v8 = vpop.f32.mrf.mxu3 }
 0x715   : > { %8902 = vst [vmem:[%s15724_s8 + $0x8] sm:$0xff] %v8898_v8  ;;  %s10303_s8 = scalar_lea.hbm %s16165_s5, 32 }
 0x716   : > { %p10305_p2 = scmp.lt.s32.totalorder %s10303_s8, %s10299_s13 }
 0x718   : > { %p10306_p3 = por %p10305_p2, %p10304_p1 }
 0x71a   : > { %p10307_p4 = pnand %p10306_p3, %p10302_p0 }
 0x71c   : > { %v9054_v45 = vpop.f32.mrf.mxu3 }
 0x71d   : > { %v9055_v41 = vadd.f32 %v9054_v45, %v8993_v36 }
 0x724   : > { %v9057_v3 = vpop.f32.mrf.mxu3 }
 0x725   : > { %v9058_v24 = vadd.f32 %v9057_v3, %v8995_v22 }
 0x727   : > { %v9078_v55 = vpack.c.bf16 %v9058_v24, %v9055_v41 }
 0x729   : > { %9154 = vmatmul.bf16.vlgmr.msrb.gmra.mxu2 %v9078_v55 }
 0x72c   : > { %v9060_v35 = vpop.f32.mrf.mxu3 }
 0x72d   : > { %v9061_v0 = vadd.f32 %v9060_v35, %v8998_v39 }
 0x734   : > { %v9063_v44 = vpop.f32.mrf.mxu3 }
 0x735   : > { %v9064_v62 = vadd.f32 %v9063_v44, %v9000_v17 }
 0x737   : > { %v9079_v6 = vpack.c.bf16 %v9064_v62, %v9061_v0 }
 0x739   : > { %9159 = vmatmul.bf16.gmra.mxu2 %v9079_v6 }
 0x73c   : > { %v9066_v49 = vpop.f32.mrf.mxu3 }
 0x73d   : > { %v9067_v21 = vadd.f32 %v9066_v49, %v9003_v29 }
 0x744   : > { %v9069_v23 = vpop.f32.mrf.mxu3 }
 0x745   : > { %v9070_v26 = vadd.f32 %v9069_v23, %v9005_v27 }
 0x747   : > { %v9080_v25 = vpack.c.bf16 %v9070_v26, %v9067_v21 }
 0x749   : > { %9164 = vmatmul.bf16.gmra.mxu2 %v9080_v25 }
 0x74c   : > { %v9072_v12 = vpop.f32.mrf.mxu3 }
 0x74d   : > { %v9073_v20 = vadd.f32 %v9072_v12, %v9008_v60 }
 0x754   : > { %v9075_v54 = vpop.f32.mrf.mxu3 }
 0x755   : > { %v9076_v34 = vadd.f32 %v9075_v54, %v9010_v33 }
 0x757   : > { %v9081_v5 = vpack.c.bf16 %v9076_v34, %v9073_v20 }
 0x759   : > { %9169 = vmatmul.bf16.gmra.mxu2 %v9081_v5 }
 0x75a   : > { %10310 = shalt.err (!%p10307_p4)
}
 0x75b   : > { %s10348_s10 = smov 128   ;;  %s10349_s0 = smov 8  }
 0x75c   : > { %9776 = dma.vmem_to_hbm [thread:$0]  (%p10528_p5), %s9209_s2, 256, %s9211_s11, %s9188_s12, %s10348_s10, %s10348_s10, %s10349_s0  }
 0x75d   : > { %s9333_s6 = sshll.u32 %s10511_s9, 3  ;;  %s16166_s3 = sld [smem:[#allocation66_spill]] }
 0x75e   : > { %p839_p7 = scmp.lt.s32.totalorder %s9333_s6, 15 }
 0x760   : > { %s16178_s6 = smov (!%p839_p7, %s9333_s6), 15 }
 0x761   : > { %s9334_s30 = sshll.u32 %s16178_s6, 3 }
 0x763   : > { %s842_s18 = scalar_lea.vmem %s16166_s3, %s9334_s30 }
 0x7ac   : > { %v9155_v30 = vpop.f32.mrf.mxu2 }
 0x7ad   : > { %9175 = vst [vmem:[%s842_s18] sm:$0xff] %v9155_v30 }
 0x7b4   : > { %v9157_v48 = vpop.f32.mrf.mxu2 }
 0x7b5   : > { %9176 = vst [vmem:[%s842_s18 + $0x8] sm:$0xff] %v9157_v48 }
 0x7bc   : > { %v9160_v37 = vpop.f32.mrf.mxu2 }
 0x7bd   : > { %9177 = vst [vmem:[%s842_s18 + $0x10] sm:$0xff] %v9160_v37 }
 0x7c4   : > { %v9162_v57 = vpop.f32.mrf.mxu2 }
 0x7c5   : > { %9178 = vst [vmem:[%s842_s18 + $0x18] sm:$0xff] %v9162_v57 }
 0x7cc   : > { %v9165_v13 = vpop.f32.mrf.mxu2 }
 0x7cd   : > { %9179 = vst [vmem:[%s842_s18 + $0x20] sm:$0xff] %v9165_v13 }
 0x7d4   : > { %v9167_v47 = vpop.f32.mrf.mxu2 }
 0x7d5   : > { %9180 = vst [vmem:[%s842_s18 + $0x28] sm:$0xff] %v9167_v47 }
 0x7dc   : > { %v9170_v43 = vpop.f32.mrf.mxu2 }
 0x7dd   : > { %9181 = vst [vmem:[%s842_s18 + $0x30] sm:$0xff] %v9170_v43 }
 0x7e4   : > { %v9172_v32 = vpop.f32.mrf.mxu2 }
 0x7e5   : > { %9182 = vst [vmem:[%s842_s18 + $0x38] sm:$0xff] %v9172_v32 }
 0x7e6 PF: > { %s16167_s13 = sld [smem:[#allocation12_spill]] }
 0x7e7   : > { %s16168_s16 = sld [smem:[#allocation10_spill]] }
 0x7ec   : > { %p9782_p5 = scmp.ge.s32.totalorder %s16167_s13, 2 }
 0x7ed   : > { %s9236_s9 = sand.u32 1, %s16168_s16  }
 0x7ee   : > { %p9779_p8 = pnand %p9782_p5, %p10532_p6  ;;  %s9237_s1 = scalar_lea.sflag [#allocation8], %s9236_s9 }
 0x7f0   : > { %p9780_p9 = pneg %p9779_p8 }
 0x7f2   : > { %10328 = dma.done.wait (%p9780_p9), %s9237_s1, 256  }
 0x7f3   : > { %10330 = vsyncadd (%p9780_p9), %s9237_s1, 4294967040  ;;  %s16170_s30 = sld [smem:[#allocation13_spill]]  ;;  %s16173_s7 = smov %s10337_s4 }
 0x7f4   : > { %s16171_s2 = sld [smem:[#allocation11_spill]] }
 0x7f5   : > { %s16172_s8 = sld [smem:[#allocation14_spill]] }
 0x7f9   : > { %p38_p10 = scmp.ge.s32.totalorder %s16170_s30, 4  }
 0x7fa   : > { %s16174_s4 = smov %s16171_s2 }
 0x7fb   :  { %40 = sbr.rel (!%p38_p10) target bundleno = 25 (0x19), region = 190 }
 0x800   :  { %9251 = vsyncpa [#allocation8], 1 }
 0x801   :  { %9253 = vsyncpa [#allocation8 + $0x1], 1 }

</bundles_post_ra>
